<compile_context>
chip_gen: v5e
topology: v5e:2x2
jax: 0.10.0
libtpu: 0.0.40
codegen_flags: <defaults>
</compile_context>

<pallas_src>
import functools

import jax
import jax.numpy as jnp
from jax import lax
from jax.experimental import pallas as pl
from jax.experimental.pallas import tpu as pltpu

N_BATCH = 2
H_ELEC = 2            # EEG "height" in the NCHW input
T_IN = 750            # time samples -> Linear(in_features=736) == 32 * 23
K1 = 51               # firstconv kernel width (pad 25)
K3 = 15               # separable conv kernel width (pad 7)
T1 = T_IN             # after firstconv ("same" padding)
T2 = T1 // 4          # 187 after AvgPool2d((1,4))
T3 = T2 // 8          # 23  after AvgPool2d((1,8))
C1, C2 = 16, 32
N_CLASSES = 2
BN_EPS = 1e-5

PAD1 = K1 // 2        # 25
PAD3 = K3 // 2        # 7
T1P = 768             # lane-padded stage-1 output width  (>= 750, mult of 128)
XW = 896              # lane-padded padded-input width    (>= 50 + 768)
TP1 = 256             # lane-padded pooled width           (>= T2 + 2*PAD3 = 201)
TG = 192              # separable-conv output width        (>= T2 = 187)
KW1 = 8 * K1          # 408: stage-1 im2col rows (8 sublanes per tap, aligned)
KW2 = 64 * K3 + 8     # 968: stage-2 im2col rows (+ ones block for the bias)


def _relu(x):
    return jnp.maximum(x, 0.0)


def _leaky_relu(x):
    return jnp.where(x > 0, x, 0.01 * x)


def _elu(x):
    return jnp.where(x > 0, x, jnp.exp(jnp.minimum(x, 0.0)) - 1.0)


_ACTS = {"Relu": _relu, "LeakyRelu": _leaky_relu, "Elu": _elu}


# --------------------------------------------------------------------------
# Pallas kernel: full EEGNet forward, one matmul per stage, gridless.
# --------------------------------------------------------------------------
def eegnet_kernel(xp_ref, w1_ref, p4_ref, w2_ref, wfc_ref, bfc_ref, out_ref,
                  *, act_name):
    act = _ACTS[act_name]

    # ---- stage 1: firstconv + BN1 + depthwise conv + BN2 as ONE matmul ----
    # im2col over the 51 taps: 8-sublane aligned pieces, row 4 of xp is a
    # constant-ones row that carries the folded bias.
    xp = xp_ref[...]                                            # (8, 896)
    xwin = jnp.concatenate([xp[:, k:k + T1P] for k in range(K1)],
                           axis=0)                              # (408, 768)
    d = act(jnp.dot(w1_ref[...], xwin,
                    preferred_element_type=jnp.float32))        # (64, 768)
    # Dropout(p=0.25): identity in eval mode.

    # ---- stage 2: AvgPool2d((1,4)) fused with the 7-wide zero pad ---------
    p1p = jnp.dot(d, p4_ref[...],
                  preferred_element_type=jnp.float32)           # (64, 256)

    # ---- stage 3: separable conv + BN3 as ONE matmul (im2col over taps) ---
    xwin2 = jnp.concatenate(
        [p1p[:, k:k + TG] for k in range(K3)]
        + [jnp.ones((8, TG), jnp.float32)],                     # bias rows
        axis=0)                                                 # (968, 192)
    g = act(jnp.dot(w2_ref[...], xwin2,
                    preferred_element_type=jnp.float32))        # (64, 192)
    # Dropout(p=0.25): identity in eval mode.

    # ---- stage 4: AvgPool2d((1,8)) + Flatten + Linear folded into wfc -----
    gs = g.reshape(N_BATCH, C2, TG)                             # (2, 32, 192)
    acc = gs[:, None, :, :] * wfc_ref[...][None, :, :, :]       # (2, 2, 32, 192)
    acc = jnp.sum(acc, axis=3)                                  # (2, 2, 32)
    logits = jnp.sum(acc, axis=2)                               # (sample, class)
    out_ref[...] = logits + bfc_ref[...]


# --------------------------------------------------------------------------
# Parameter construction (deterministic, synthetic) and folding helpers.
# --------------------------------------------------------------------------
def init_params(key):
    keys = iter(jax.random.split(key, 32))

    def nrm(shape, scale=0.1):
        return (scale * jax.random.normal(next(keys), shape)).astype(jnp.float32)

    def bn(c):
        return dict(gamma=1.0 + nrm((c,)), beta=nrm((c,)),
                    mean=nrm((c,)), var=1.0 + jnp.abs(nrm((c,))))

    return dict(
        w1=nrm((C1, 1, 1, K1)),          bn1=bn(C1),
        wdw=nrm((C2, 1, H_ELEC, 1)),     bn2=bn(C2),
        wsep=nrm((C2, C2, 1, K3)),       bn3=bn(C2),
        wfc=nrm((N_CLASSES, C2 * T3)),   bfc=nrm((N_CLASSES,)),
    )


def _fold_bn(p):
    scale = p["gamma"] / jnp.sqrt(p["var"] + BN_EPS)
    shift = p["beta"] - p["mean"] * scale
    return scale, shift


def build_eegnet(params, activate="Elu"):
    s1, sh1 = _fold_bn(params["bn1"])
    s2, sh2 = _fold_bn(params["bn2"])
    s3, sh3 = _fold_bn(params["bn3"])

    w1 = params["w1"][:, 0, 0, :]                      # (16, 51)
    wdw = params["wdw"][:, 0, :, 0]                    # (32, 2)
    c1_of = jnp.arange(C2) // 2                        # depthwise group -> in-chan

    # firstconv*BN1 composed with depthwise*BN2 (all linear before the act).
    comb = (s2[:, None, None] * wdw[:, :, None] *
            s1[c1_of][:, None, None] * w1[c1_of][:, None, :])       # (32, 2, 51)
    bias2 = s2 * sh1[c1_of] * (wdw[:, 0] + wdw[:, 1]) + sh2         # (32,)

    # Stage-1 weight, block-diagonal over samples.  im2col row = 8*k + r with
    # r = sample*2 + h (r=4 is the ones row carrying the bias, r=5..7 zeros).
    wblk1 = jnp.zeros((N_BATCH * C2, KW1), jnp.float32)
    for s in range(N_BATCH):
        for h in range(H_ELEC):
            r = s * H_ELEC + h
            wblk1 = wblk1.at[s * C2:(s + 1) * C2, r::8].set(comb[:, h, :])
        wblk1 = wblk1.at[s * C2:(s + 1) * C2, 4].set(bias2)

    # AvgPool(1,4) (drops the trailing 2 of 750 samples, like PyTorch) fused
    # with the 7-wide zero "same" pad of the separable conv.
    u = jnp.arange(T1P)[:, None]
    c = jnp.arange(TP1)[None, :]
    p4 = jnp.where((c == u // 4 + PAD3) & (u < 4 * T2),
                   0.25, 0.0).astype(jnp.float32)                   # (768, 256)

    # Separable conv folded with BN3, block-diagonal over samples, bias column.
    wsep = params["wsep"][:, :, 0, :] * s3[:, None, None]           # (32, 32, 15)
    wblk2 = jnp.zeros((N_BATCH * C2, KW2), jnp.float32)
    for s in range(N_BATCH):
        for k in range(K3):
            col = k * (N_BATCH * C2) + s * C2
            wblk2 = wblk2.at[s * C2:(s + 1) * C2, col:col + C2].set(wsep[:, :, k])
        wblk2 = wblk2.at[s * C2:(s + 1) * C2, K3 * N_BATCH * C2].set(sh3)

    # AvgPool(1,8) + Flatten + Linear folded into per-(class, channel, t) weights.
    wfc = params["wfc"].reshape(N_CLASSES, C2, T3)                  # (2, 32, 23)
    t2 = jnp.arange(TG)
    wfcf = wfc[:, :, jnp.minimum(t2 // 8, T3 - 1)] / 8.0
    wfcf = wfcf * (t2 < 8 * T3).astype(jnp.float32)[None, None, :]  # (2, 32, 192)
    bfc = params["bfc"][None, :]                                    # (1, 2)

    kernel = functools.partial(eegnet_kernel, act_name=activate)
    vmem = pltpu.MemorySpace.VMEM
    call = pl.pallas_call(
        kernel,
        out_shape=jax.ShapeDtypeStruct((N_BATCH, N_CLASSES), jnp.float32),
        in_specs=[pl.BlockSpec(memory_space=vmem)] * 6,
        out_specs=pl.BlockSpec(memory_space=vmem),
    )

    @jax.jit
    def forward(x):
        # x: (N, 1, 2, T) NCHW, exactly like the PyTorch module.
        xr = x[:, 0, :, :].reshape(N_BATCH * H_ELEC, T_IN)
        xp = jnp.zeros((8, XW), jnp.float32)
        xp = xp.at[:N_BATCH * H_ELEC, PAD1:PAD1 + T_IN].set(xr)
        xp = xp.at[4, :].set(1.0)          # constant-ones row -> fused biases
        return call(xp, wblk1, p4, wblk2, wfcf, bfc)

    return forward


# --------------------------------------------------------------------------
# Pure-JAX reference (mirrors the PyTorch module in eval mode).
# --------------------------------------------------------------------------
def reference_forward(params, x, activate="Elu"):
    act = _ACTS[activate]
    hi = lax.Precision.HIGHEST
    dn = ("NCHW", "OIHW", "NCHW")

    def bn(y, p):
        s = p["gamma"] / jnp.sqrt(p["var"] + BN_EPS)
        b = p["beta"] - p["mean"] * s
        return y * s[None, :, None, None] + b[None, :, None, None]

    y = lax.conv_general_dilated(x, params["w1"], (1, 1), ((0, 0), (25, 25)),
                                 dimension_numbers=dn, precision=hi)
    y = bn(y, params["bn1"])
    y = lax.conv_general_dilated(y, params["wdw"], (1, 1), ((0, 0), (0, 0)),
                                 dimension_numbers=dn, feature_group_count=C1,
                                 precision=hi)
    y = act(bn(y, params["bn2"]))
    y = lax.reduce_window(y, 0.0, lax.add, (1, 1, 1, 4), (1, 1, 1, 4), "VALID") / 4.0
    y = lax.conv_general_dilated(y, params["wsep"], (1, 1), ((0, 0), (7, 7)),
                                 dimension_numbers=dn, precision=hi)
    y = act(bn(y, params["bn3"]))
    y = lax.reduce_window(y, 0.0, lax.add, (1, 1, 1, 8), (1, 1, 1, 8), "VALID") / 8.0
    y = y.reshape(x.shape[0], -1)
    return y @ params["wfc"].T + params["bfc"][None, :]


if __name__ == "__main__":
    key = jax.random.PRNGKey(0)
    pkey, xkey = jax.random.split(key)
    params = init_params(pkey)
    x = jax.random.normal(xkey, (N_BATCH, 1, H_ELEC, T_IN), dtype=jnp.float32)

    forward = build_eegnet(params, activate="Elu")
    out = jax.block_until_ready(forward(x))

    ref = jax.block_until_ready(reference_forward(params, x, activate="Elu"))
    assert out.shape == (N_BATCH, N_CLASSES)
    assert bool(jnp.all(jnp.isfinite(out)))
    assert bool(jnp.allclose(out, ref, rtol=5e-2, atol=5e-2)), (out, ref)
    print("KERNEL_OK")
</pallas_src>

<mosaic_0001>
module attributes {stable_mosaic.version = 11 : i64} {
  func.func @eegnet_kernel(%arg0: memref<8x896xf32, #tpu.memory_space<vmem>>, %arg1: memref<64x408xf32, #tpu.memory_space<vmem>>, %arg2: memref<768x256xf32, #tpu.memory_space<vmem>>, %arg3: memref<64x968xf32, #tpu.memory_space<vmem>>, %arg4: memref<2x32x192xf32, #tpu.memory_space<vmem>>, %arg5: memref<1x2xf32, #tpu.memory_space<vmem>>, %arg6: memref<2x2xf32, #tpu.memory_space<vmem>>) attributes {dimension_semantics = [], scalar_prefetch = 0 : i64, scratch_operands = 0 : i64, tpu.core_type = #tpu.core_type<tc>} {
    %c0 = arith.constant 0 : index
    %c0_0 = arith.constant 0 : index
    %0 = vector.load %arg0[%c0, %c0_0] : memref<8x896xf32, #tpu.memory_space<vmem>>, vector<8x896xf32>
    %1 = vector.extract_strided_slice %0 {offsets = [0, 0], sizes = [8, 768], strides = [1, 1]} : vector<8x896xf32> to vector<8x768xf32>
    %2 = vector.extract_strided_slice %0 {offsets = [0, 1], sizes = [8, 768], strides = [1, 1]} : vector<8x896xf32> to vector<8x768xf32>
    %3 = vector.extract_strided_slice %0 {offsets = [0, 2], sizes = [8, 768], strides = [1, 1]} : vector<8x896xf32> to vector<8x768xf32>
    %4 = vector.extract_strided_slice %0 {offsets = [0, 3], sizes = [8, 768], strides = [1, 1]} : vector<8x896xf32> to vector<8x768xf32>
    %5 = vector.extract_strided_slice %0 {offsets = [0, 4], sizes = [8, 768], strides = [1, 1]} : vector<8x896xf32> to vector<8x768xf32>
    %6 = vector.extract_strided_slice %0 {offsets = [0, 5], sizes = [8, 768], strides = [1, 1]} : vector<8x896xf32> to vector<8x768xf32>
    %7 = vector.extract_strided_slice %0 {offsets = [0, 6], sizes = [8, 768], strides = [1, 1]} : vector<8x896xf32> to vector<8x768xf32>
    %8 = vector.extract_strided_slice %0 {offsets = [0, 7], sizes = [8, 768], strides = [1, 1]} : vector<8x896xf32> to vector<8x768xf32>
    %9 = vector.extract_strided_slice %0 {offsets = [0, 8], sizes = [8, 768], strides = [1, 1]} : vector<8x896xf32> to vector<8x768xf32>
    %10 = vector.extract_strided_slice %0 {offsets = [0, 9], sizes = [8, 768], strides = [1, 1]} : vector<8x896xf32> to vector<8x768xf32>
    %11 = vector.extract_strided_slice %0 {offsets = [0, 10], sizes = [8, 768], strides = [1, 1]} : vector<8x896xf32> to vector<8x768xf32>
    %12 = vector.extract_strided_slice %0 {offsets = [0, 11], sizes = [8, 768], strides = [1, 1]} : vector<8x896xf32> to vector<8x768xf32>
    %13 = vector.extract_strided_slice %0 {offsets = [0, 12], sizes = [8, 768], strides = [1, 1]} : vector<8x896xf32> to vector<8x768xf32>
    %14 = vector.extract_strided_slice %0 {offsets = [0, 13], sizes = [8, 768], strides = [1, 1]} : vector<8x896xf32> to vector<8x768xf32>
    %15 = vector.extract_strided_slice %0 {offsets = [0, 14], sizes = [8, 768], strides = [1, 1]} : vector<8x896xf32> to vector<8x768xf32>
    %16 = vector.extract_strided_slice %0 {offsets = [0, 15], sizes = [8, 768], strides = [1, 1]} : vector<8x896xf32> to vector<8x768xf32>
    %17 = vector.extract_strided_slice %0 {offsets = [0, 16], sizes = [8, 768], strides = [1, 1]} : vector<8x896xf32> to vector<8x768xf32>
    %18 = vector.extract_strided_slice %0 {offsets = [0, 17], sizes = [8, 768], strides = [1, 1]} : vector<8x896xf32> to vector<8x768xf32>
    %19 = vector.extract_strided_slice %0 {offsets = [0, 18], sizes = [8, 768], strides = [1, 1]} : vector<8x896xf32> to vector<8x768xf32>
    %20 = vector.extract_strided_slice %0 {offsets = [0, 19], sizes = [8, 768], strides = [1, 1]} : vector<8x896xf32> to vector<8x768xf32>
    %21 = vector.extract_strided_slice %0 {offsets = [0, 20], sizes = [8, 768], strides = [1, 1]} : vector<8x896xf32> to vector<8x768xf32>
    %22 = vector.extract_strided_slice %0 {offsets = [0, 21], sizes = [8, 768], strides = [1, 1]} : vector<8x896xf32> to vector<8x768xf32>
    %23 = vector.extract_strided_slice %0 {offsets = [0, 22], sizes = [8, 768], strides = [1, 1]} : vector<8x896xf32> to vector<8x768xf32>
    %24 = vector.extract_strided_slice %0 {offsets = [0, 23], sizes = [8, 768], strides = [1, 1]} : vector<8x896xf32> to vector<8x768xf32>
    %25 = vector.extract_strided_slice %0 {offsets = [0, 24], sizes = [8, 768], strides = [1, 1]} : vector<8x896xf32> to vector<8x768xf32>
    %26 = vector.extract_strided_slice %0 {offsets = [0, 25], sizes = [8, 768], strides = [1, 1]} : vector<8x896xf32> to vector<8x768xf32>
    %27 = vector.extract_strided_slice %0 {offsets = [0, 26], sizes = [8, 768], strides = [1, 1]} : vector<8x896xf32> to vector<8x768xf32>
    %28 = vector.extract_strided_slice %0 {offsets = [0, 27], sizes = [8, 768], strides = [1, 1]} : vector<8x896xf32> to vector<8x768xf32>
    %29 = vector.extract_strided_slice %0 {offsets = [0, 28], sizes = [8, 768], strides = [1, 1]} : vector<8x896xf32> to vector<8x768xf32>
    %30 = vector.extract_strided_slice %0 {offsets = [0, 29], sizes = [8, 768], strides = [1, 1]} : vector<8x896xf32> to vector<8x768xf32>
    %31 = vector.extract_strided_slice %0 {offsets = [0, 30], sizes = [8, 768], strides = [1, 1]} : vector<8x896xf32> to vector<8x768xf32>
    %32 = vector.extract_strided_slice %0 {offsets = [0, 31], sizes = [8, 768], strides = [1, 1]} : vector<8x896xf32> to vector<8x768xf32>
    %33 = vector.extract_strided_slice %0 {offsets = [0, 32], sizes = [8, 768], strides = [1, 1]} : vector<8x896xf32> to vector<8x768xf32>
    %34 = vector.extract_strided_slice %0 {offsets = [0, 33], sizes = [8, 768], strides = [1, 1]} : vector<8x896xf32> to vector<8x768xf32>
    %35 = vector.extract_strided_slice %0 {offsets = [0, 34], sizes = [8, 768], strides = [1, 1]} : vector<8x896xf32> to vector<8x768xf32>
    %36 = vector.extract_strided_slice %0 {offsets = [0, 35], sizes = [8, 768], strides = [1, 1]} : vector<8x896xf32> to vector<8x768xf32>
    %37 = vector.extract_strided_slice %0 {offsets = [0, 36], sizes = [8, 768], strides = [1, 1]} : vector<8x896xf32> to vector<8x768xf32>
    %38 = vector.extract_strided_slice %0 {offsets = [0, 37], sizes = [8, 768], strides = [1, 1]} : vector<8x896xf32> to vector<8x768xf32>
    %39 = vector.extract_strided_slice %0 {offsets = [0, 38], sizes = [8, 768], strides = [1, 1]} : vector<8x896xf32> to vector<8x768xf32>
    %40 = vector.extract_strided_slice %0 {offsets = [0, 39], sizes = [8, 768], strides = [1, 1]} : vector<8x896xf32> to vector<8x768xf32>
    %41 = vector.extract_strided_slice %0 {offsets = [0, 40], sizes = [8, 768], strides = [1, 1]} : vector<8x896xf32> to vector<8x768xf32>
    %42 = vector.extract_strided_slice %0 {offsets = [0, 41], sizes = [8, 768], strides = [1, 1]} : vector<8x896xf32> to vector<8x768xf32>
    %43 = vector.extract_strided_slice %0 {offsets = [0, 42], sizes = [8, 768], strides = [1, 1]} : vector<8x896xf32> to vector<8x768xf32>
    %44 = vector.extract_strided_slice %0 {offsets = [0, 43], sizes = [8, 768], strides = [1, 1]} : vector<8x896xf32> to vector<8x768xf32>
    %45 = vector.extract_strided_slice %0 {offsets = [0, 44], sizes = [8, 768], strides = [1, 1]} : vector<8x896xf32> to vector<8x768xf32>
    %46 = vector.extract_strided_slice %0 {offsets = [0, 45], sizes = [8, 768], strides = [1, 1]} : vector<8x896xf32> to vector<8x768xf32>
    %47 = vector.extract_strided_slice %0 {offsets = [0, 46], sizes = [8, 768], strides = [1, 1]} : vector<8x896xf32> to vector<8x768xf32>
    %48 = vector.extract_strided_slice %0 {offsets = [0, 47], sizes = [8, 768], strides = [1, 1]} : vector<8x896xf32> to vector<8x768xf32>
    %49 = vector.extract_strided_slice %0 {offsets = [0, 48], sizes = [8, 768], strides = [1, 1]} : vector<8x896xf32> to vector<8x768xf32>
    %50 = vector.extract_strided_slice %0 {offsets = [0, 49], sizes = [8, 768], strides = [1, 1]} : vector<8x896xf32> to vector<8x768xf32>
    %51 = vector.extract_strided_slice %0 {offsets = [0, 50], sizes = [8, 768], strides = [1, 1]} : vector<8x896xf32> to vector<8x768xf32>
    %52 = tpu.concatenate %1, %2, %3, %4, %5, %6, %7, %8, %9, %10, %11, %12, %13, %14, %15, %16 in 0 : vector<8x768xf32>, vector<8x768xf32>, vector<8x768xf32>, vector<8x768xf32>, vector<8x768xf32>, vector<8x768xf32>, vector<8x768xf32>, vector<8x768xf32>, vector<8x768xf32>, vector<8x768xf32>, vector<8x768xf32>, vector<8x768xf32>, vector<8x768xf32>, vector<8x768xf32>, vector<8x768xf32>, vector<8x768xf32> -> vector<128x768xf32>
    %53 = tpu.concatenate %17, %18, %19, %20, %21, %22, %23, %24, %25, %26, %27, %28, %29, %30, %31, %32 in 0 : vector<8x768xf32>, vector<8x768xf32>, vector<8x768xf32>, vector<8x768xf32>, vector<8x768xf32>, vector<8x768xf32>, vector<8x768xf32>, vector<8x768xf32>, vector<8x768xf32>, vector<8x768xf32>, vector<8x768xf32>, vector<8x768xf32>, vector<8x768xf32>, vector<8x768xf32>, vector<8x768xf32>, vector<8x768xf32> -> vector<128x768xf32>
    %54 = tpu.concatenate %33, %34, %35, %36, %37, %38, %39, %40, %41, %42, %43, %44, %45, %46, %47, %48 in 0 : vector<8x768xf32>, vector<8x768xf32>, vector<8x768xf32>, vector<8x768xf32>, vector<8x768xf32>, vector<8x768xf32>, vector<8x768xf32>, vector<8x768xf32>, vector<8x768xf32>, vector<8x768xf32>, vector<8x768xf32>, vector<8x768xf32>, vector<8x768xf32>, vector<8x768xf32>, vector<8x768xf32>, vector<8x768xf32> -> vector<128x768xf32>
    %55 = tpu.concatenate %49, %50, %51 in 0 : vector<8x768xf32>, vector<8x768xf32>, vector<8x768xf32> -> vector<24x768xf32>
    %56 = tpu.concatenate %52, %53, %54, %55 in 0 : vector<128x768xf32>, vector<128x768xf32>, vector<128x768xf32>, vector<24x768xf32> -> vector<408x768xf32>
    %c0_1 = arith.constant 0 : index
    %c0_2 = arith.constant 0 : index
    %57 = vector.load %arg1[%c0_1, %c0_2] : memref<64x408xf32, #tpu.memory_space<vmem>>, vector<64x408xf32>
    %cst = arith.constant dense<0.000000e+00> : vector<64x768xf32>
    %58 = tpu.matmul %57, %56, %cst {dimension_numbers = #tpu.dot_dimension_numbers<[1], [0], [0], [1], [0, 0, 1, 1], [], []>} : vector<64x408xf32>, vector<408x768xf32>, vector<64x768xf32> -> vector<64x768xf32>
    %cst_3 = arith.constant 0.000000e+00 : f32
    %59 = vector.broadcast %cst_3 : f32 to vector<64x768xf32>
    %60 = arith.cmpf ogt, %58, %59 : vector<64x768xf32>
    %cst_4 = arith.constant 0.000000e+00 : f32
    %61 = vector.broadcast %cst_4 : f32 to vector<64x768xf32>
    %62 = arith.minimumf %58, %61 : vector<64x768xf32>
    %63 = math.exp %62 : vector<64x768xf32>
    %cst_5 = arith.constant 1.000000e+00 : f32
    %64 = vector.broadcast %cst_5 : f32 to vector<64x768xf32>
    %65 = arith.subf %63, %64 : vector<64x768xf32>
    %66 = arith.select %60, %58, %65 : vector<64x768xi1>, vector<64x768xf32>
    %c0_6 = arith.constant 0 : index
    %c0_7 = arith.constant 0 : index
    %67 = vector.load %arg2[%c0_6, %c0_7] : memref<768x256xf32, #tpu.memory_space<vmem>>, vector<768x256xf32>
    %cst_8 = arith.constant dense<0.000000e+00> : vector<64x256xf32>
    %68 = tpu.matmul %66, %67, %cst_8 {dimension_numbers = #tpu.dot_dimension_numbers<[1], [0], [0], [1], [0, 0, 1, 1], [], []>} : vector<64x768xf32>, vector<768x256xf32>, vector<64x256xf32> -> vector<64x256xf32>
    %69 = vector.extract_strided_slice %68 {offsets = [0, 0], sizes = [64, 192], strides = [1, 1]} : vector<64x256xf32> to vector<64x192xf32>
    %70 = vector.extract_strided_slice %68 {offsets = [0, 1], sizes = [64, 192], strides = [1, 1]} : vector<64x256xf32> to vector<64x192xf32>
    %71 = vector.extract_strided_slice %68 {offsets = [0, 2], sizes = [64, 192], strides = [1, 1]} : vector<64x256xf32> to vector<64x192xf32>
    %72 = vector.extract_strided_slice %68 {offsets = [0, 3], sizes = [64, 192], strides = [1, 1]} : vector<64x256xf32> to vector<64x192xf32>
    %73 = vector.extract_strided_slice %68 {offsets = [0, 4], sizes = [64, 192], strides = [1, 1]} : vector<64x256xf32> to vector<64x192xf32>
    %74 = vector.extract_strided_slice %68 {offsets = [0, 5], sizes = [64, 192], strides = [1, 1]} : vector<64x256xf32> to vector<64x192xf32>
    %75 = vector.extract_strided_slice %68 {offsets = [0, 6], sizes = [64, 192], strides = [1, 1]} : vector<64x256xf32> to vector<64x192xf32>
    %76 = vector.extract_strided_slice %68 {offsets = [0, 7], sizes = [64, 192], strides = [1, 1]} : vector<64x256xf32> to vector<64x192xf32>
    %77 = vector.extract_strided_slice %68 {offsets = [0, 8], sizes = [64, 192], strides = [1, 1]} : vector<64x256xf32> to vector<64x192xf32>
    %78 = vector.extract_strided_slice %68 {offsets = [0, 9], sizes = [64, 192], strides = [1, 1]} : vector<64x256xf32> to vector<64x192xf32>
    %79 = vector.extract_strided_slice %68 {offsets = [0, 10], sizes = [64, 192], strides = [1, 1]} : vector<64x256xf32> to vector<64x192xf32>
    %80 = vector.extract_strided_slice %68 {offsets = [0, 11], sizes = [64, 192], strides = [1, 1]} : vector<64x256xf32> to vector<64x192xf32>
    %81 = vector.extract_strided_slice %68 {offsets = [0, 12], sizes = [64, 192], strides = [1, 1]} : vector<64x256xf32> to vector<64x192xf32>
    %82 = vector.extract_strided_slice %68 {offsets = [0, 13], sizes = [64, 192], strides = [1, 1]} : vector<64x256xf32> to vector<64x192xf32>
    %83 = vector.extract_strided_slice %68 {offsets = [0, 14], sizes = [64, 192], strides = [1, 1]} : vector<64x256xf32> to vector<64x192xf32>
    %cst_9 = arith.constant 1.000000e+00 : f32
    %84 = vector.broadcast %cst_9 : f32 to vector<8x192xf32>
    %85 = tpu.concatenate %69, %70, %71, %72, %73, %74, %75, %76, %77, %78, %79, %80, %81, %82, %83, %84 in 0 : vector<64x192xf32>, vector<64x192xf32>, vector<64x192xf32>, vector<64x192xf32>, vector<64x192xf32>, vector<64x192xf32>, vector<64x192xf32>, vector<64x192xf32>, vector<64x192xf32>, vector<64x192xf32>, vector<64x192xf32>, vector<64x192xf32>, vector<64x192xf32>, vector<64x192xf32>, vector<64x192xf32>, vector<8x192xf32> -> vector<968x192xf32>
    %c0_10 = arith.constant 0 : index
    %c0_11 = arith.constant 0 : index
    %86 = vector.load %arg3[%c0_10, %c0_11] : memref<64x968xf32, #tpu.memory_space<vmem>>, vector<64x968xf32>
    %cst_12 = arith.constant dense<0.000000e+00> : vector<64x192xf32>
    %87 = tpu.matmul %86, %85, %cst_12 {dimension_numbers = #tpu.dot_dimension_numbers<[1], [0], [0], [1], [0, 0, 1, 1], [], []>} : vector<64x968xf32>, vector<968x192xf32>, vector<64x192xf32> -> vector<64x192xf32>
    %cst_13 = arith.constant 0.000000e+00 : f32
    %88 = vector.broadcast %cst_13 : f32 to vector<64x192xf32>
    %89 = arith.cmpf ogt, %87, %88 : vector<64x192xf32>
    %cst_14 = arith.constant 0.000000e+00 : f32
    %90 = vector.broadcast %cst_14 : f32 to vector<64x192xf32>
    %91 = arith.minimumf %87, %90 : vector<64x192xf32>
    %92 = math.exp %91 : vector<64x192xf32>
    %cst_15 = arith.constant 1.000000e+00 : f32
    %93 = vector.broadcast %cst_15 : f32 to vector<64x192xf32>
    %94 = arith.subf %92, %93 : vector<64x192xf32>
    %95 = arith.select %89, %87, %94 : vector<64x192xi1>, vector<64x192xf32>
    %96 = vector.shape_cast %95 : vector<64x192xf32> to vector<2x32x192xf32>
    %97 = vector.shape_cast %96 : vector<2x32x192xf32> to vector<2x1x32x192xf32>
    %c0_16 = arith.constant 0 : index
    %c0_17 = arith.constant 0 : index
    %c0_18 = arith.constant 0 : index
    %98 = vector.load %arg4[%c0_16, %c0_17, %c0_18] : memref<2x32x192xf32, #tpu.memory_space<vmem>>, vector<2x32x192xf32>
    %99 = vector.shape_cast %98 : vector<2x32x192xf32> to vector<1x2x32x192xf32>
    %100 = vector.broadcast %97 : vector<2x1x32x192xf32> to vector<2x2x32x192xf32>
    %101 = vector.broadcast %99 : vector<1x2x32x192xf32> to vector<2x2x32x192xf32>
    %102 = arith.mulf %100, %101 : vector<2x2x32x192xf32>
    %cst_19 = arith.constant dense<0.000000e+00> : vector<2x2x32xf32>
    %103 = vector.multi_reduction <add>, %102, %cst_19 [3] : vector<2x2x32x192xf32> to vector<2x2x32xf32>
    %cst_20 = arith.constant dense<0.000000e+00> : vector<2x2xf32>
    %104 = vector.multi_reduction <add>, %103, %cst_20 [2] : vector<2x2x32xf32> to vector<2x2xf32>
    %c0_21 = arith.constant 0 : index
    %c0_22 = arith.constant 0 : index
    %105 = vector.load %arg5[%c0_21, %c0_22] : memref<1x2xf32, #tpu.memory_space<vmem>>, vector<1x2xf32>
    %106 = vector.broadcast %105 : vector<1x2xf32> to vector<2x2xf32>
    %107 = arith.addf %104, %106 : vector<2x2xf32>
    %c0_23 = arith.constant 0 : index
    %c0_24 = arith.constant 0 : index
    %108 = vector.load %arg6[%c0_23, %c0_24] : memref<2x2xf32, #tpu.memory_space<vmem>>, vector<2x2xf32>
    tpu.vector_store %arg6[%c0_23, %c0_24], %107 {strides = array<i32>} : memref<2x2xf32, #tpu.memory_space<vmem>>, vector<2x2xf32>,
    return
  }
}

</mosaic_0001>

<bundles_post_ra>
// kernel: forward.1
= control target key start
LH: loop header
LB: loop body
LE: loop exit
PB: predicated region body
PF: predicated region fallthrough
CT: control target
= control target key end

     0   :  { %11 = vsyncpa [#allocation3], 0  ;;  %s13023_s0 = inlined_call_operand.vmem [shape: f32[8,896], index: 0, kind: input, shape index: {}]   ;;  %s13024_s1 = inlined_call_operand.hbm [shape: f32[64,408], index: 1, kind: input, shape index: {}]   ;;  %s13025_s2 = inlined_call_operand.hbm [shape: f32[768,256], index: 2, kind: input, shape index: {}]   ;;  %s13026_s3 = inlined_call_operand.hbm [shape: f32[64,968], index: 3, kind: input, shape index: {}]   ;;  %s13027_s4 = inlined_call_operand.vmem [shape: f32[2,32,192], index: 4, kind: input, shape index: {}]   ;;  %s13028_s5 = inlined_call_operand.vmem [shape: f32[1,2], index: 5, kind: input, shape index: {}]   ;;  %s13029_s6 = inlined_call_operand.hbm [shape: f32[2,2], index: 6, kind: output, shape index: {}]  }
   0x1   :  { %12 = vsyncpa [#allocation6], 0  ;;  %s33_s23 = sshll.u32 %s13025_s2, 4  ;;  %s34_s23 = int_to_ptr.hbm [resolvable:$true] %s33_s23 }
   0x2   :  { %13 = vsyncpa [#allocation4], 0  ;;  %s7125_s24 = smov [#allocation5]   ;;  %s20_s28 = sshll.u32 %s13024_s1, 4  ;;  %s21_s28 = int_to_ptr.hbm [resolvable:$true] %s20_s28 }
   0x3   :  { %s35_s25 = sshll.u32 %s7125_s24, 4  ;;  %s7126_s29 = smov 256   ;;  %s36_s25 = int_to_ptr.vmem [resolvable:$true] %s35_s25 }
   0x4   :  { %s7127_s30 = smov 16   ;;  %s7128_s7 = smov [#allocation2]  }
   0x5   :  { %41 = dma.hbm_to_vmem [thread:$0]  %s34_s23, 24576, %s36_s25, [#allocation6], %s7126_s29, %s7126_s29, %s7127_s30  }
   0x6   :  { %s22_s8 = sshll.u32 %s7128_s7, 4  ;;  %s7129_s9 = smov 512   ;;  %s23_s8 = int_to_ptr.vmem [resolvable:$true] %s22_s8 }
   0x7   :  { %s7130_s10 = smov 32   ;;  %s46_s12 = sshll.u32 %s13026_s3, 4  ;;  %s47_s12 = int_to_ptr.hbm [resolvable:$true] %s46_s12 }
   0x8   :  { %28 = dma.hbm_to_vmem [thread:$0]  %s21_s28, 4096, %s23_s8, [#allocation3], %s7129_s9, %s7129_s9, %s7130_s10  }
   0x9   :  { %s7131_s13 = smov [#allocation7]   ;;  %s7132_s15 = smov 1024  }
   0xa   :  { %s48_s14 = sshll.u32 %s7131_s13, 4  ;;  %s7133_s1 = smov 64   ;;  %s49_s14 = int_to_ptr.vmem [resolvable:$true] %s48_s14 }
   0xb   :  { %54 = dma.hbm_to_vmem [thread:$0]  %s47_s12, 8192, %s49_s14, [#allocation6], %s7132_s15, %s7132_s15, %s7133_s1  }
   0xc   :  { %7119 = dma.done.wait [#allocation3], 4096  }
   0xd   :  { %7120 = vsyncadd [#allocation3], 4294963200 }
   0xe   :  { %7121 = dma.done.wait [#allocation6], 32768  }
   0xf   :  { %7122 = vsyncadd [#allocation6], 4294934528  ;;  %v75_v0 = vld [vmem:[%s13023_s0 + $0x20] sm:$0xff]  ;;  %v76_v1 = vld [vmem:[%s13023_s0 + $0x28] sm:$0xff]  ;;  %s7134_s23 = smov 127   ;;  %s7135_s24 = smov 126  }
  0x10   :  { %v7208_v2 = vld [vmem:[%s13023_s0] sm:$0xff]  ;;  %v7210_v3 = vpack.i.bf16 %v76_v1, %v75_v0  ;;  %v72_v4 = vld [vmem:[%s13023_s0 + $0x8] sm:$0xff]  ;;  %v7227_v6 = vld [vmem:[%s13023_s0 + $0x10] sm:$0xff]  ;;  %s7136_s7 = smov 125   ;;  %s7137_s8 = smov 124   ;;  %vm13149_vm0 = vcmask 1039360  }
  0x11   :  { %v7216_v5 = vpack.i.bf16 %v72_v4, %v7208_v2  ;;  %v74_v7 = vld [vmem:[%s13023_s0 + $0x18] sm:$0xff]  ;;  %v7235_v8 = vld [vmem:[%s13023_s0 + $0x30] sm:$0xff]  ;;  %s7138_s9 = smov 123   ;;  %s7139_s10 = smov 122   ;;  %vm13114_vm1 = vcmask 1031168   ;;  %vm13165_vm2 = vcmask 1022976  }
  0x12   :  { %5447 = vrot.lane.b32.xlu1 %v7210_v3, %s7134_s23  ;;  %v7238_v9 = vpack.i.bf16 %v74_v7, %v7227_v6  ;;  %s7140_s2 = smov 121   ;;  %s7141_s11 = smov 120   ;;  %vm180_vm3 = vcmask 1014784   ;;  %vm477_vm4 = vcmask 924672   ;;  %vm450_vm5 = vcmask 932864  }
  0x13   :  { %5452 = vrot.lane.b32.xlu2 %v7216_v5, %s7135_s24  ;;  %5437 = vrot.lane.b32.xlu0 %v7216_v5, %s7134_s23  ;;  %s7142_s12 = smov 119   ;;  %s7143_s13 = smov 118   ;;  %vm423_vm6 = vcmask 941056   ;;  %vm396_vm7 = vcmask 949248   ;;  %vm369_vm8 = vcmask 957440   ;;  %vm342_vm9 = vcmask 965632  }
  0x14   :  { %s7144_s14 = smov 117   ;;  %s7145_s15 = smov 116   ;;  %vm315_vm10 = vcmask 973824   ;;  %vm288_vm11 = vcmask 982016   ;;  %vm261_vm12 = vcmask 990208   ;;  %vm234_vm13 = vcmask 998400  }
  0x15   :  { %s7146_s1 = smov 115   ;;  %s7147_s16 = smov 114   ;;  %vm207_vm14 = vcmask 1006592   ;;  %vm1131_vm15 = vcmask 785408  }
  0x16   :  { %s7148_s17 = smov 113   ;;  %s7149_s18 = smov 112  }
  0x17   :  { %s7150_s19 = smov 96   ;;  %s7151_s3 = smov 80  }
  0x1a   :  { %97 = vrot.lane.b32.xlu1 %v7235_v8, %s7134_s23 }
  0x1b   :  { %5457 = vrot.lane.b32.xlu2 %v7238_v9, %s7135_s24  ;;  %5442 = vrot.lane.b32.xlu0 %v7238_v9, %s7134_s23 }
  0x22   :  { %124 = vrot.lane.b32.xlu1 %v7235_v8, %s7135_s24 }
  0x23   :  { %5467 = vrot.lane.b32.xlu2 %v7216_v5, %s7136_s7  ;;  %5462 = vrot.lane.b32.xlu0 %v7210_v3, %s7135_s24 }
  0x2a   :  { %5477 = vrot.lane.b32.xlu1 %v7210_v3, %s7136_s7 }
  0x2b   :  { %151 = vrot.lane.b32.xlu2 %v7235_v8, %s7136_s7  ;;  %5472 = vrot.lane.b32.xlu0 %v7238_v9, %s7136_s7 }
  0x32   :  { %5487 = vrot.lane.b32.xlu1 %v7238_v9, %s7137_s8 }
  0x33   :  { %5492 = vrot.lane.b32.xlu2 %v7210_v3, %s7137_s8  ;;  %5482 = vrot.lane.b32.xlu0 %v7216_v5, %s7137_s8 }
  0x3a   :  { %5497 = vrot.lane.b32.xlu1 %v7216_v5, %s7138_s9 }
  0x3b   :  { %5502 = vrot.lane.b32.xlu2 %v7238_v9, %s7138_s9  ;;  %178 = vrot.lane.b32.xlu0 %v7235_v8, %s7137_s8 }
  0x42   :  { %205 = vrot.lane.b32.xlu1 %v7235_v8, %s7138_s9 }
  0x43   :  { %5512 = vrot.lane.b32.xlu2 %v7216_v5, %s7139_s10  ;;  %5507 = vrot.lane.b32.xlu0 %v7210_v3, %s7138_s9 }
  0x4a   :  { %5522 = vrot.lane.b32.xlu1 %v7210_v3, %s7139_s10 }
  0x4b   :  { %232 = vrot.lane.b32.xlu2 %v7235_v8, %s7139_s10  ;;  %5517 = vrot.lane.b32.xlu0 %v7238_v9, %s7139_s10 }
  0x52   :  { %5532 = vrot.lane.b32.xlu1 %v7238_v9, %s7140_s2 }
  0x53   :  { %5537 = vrot.lane.b32.xlu2 %v7210_v3, %s7140_s2  ;;  %5527 = vrot.lane.b32.xlu0 %v7216_v5, %s7140_s2 }
  0x5a   :  { %5542 = vrot.lane.b32.xlu1 %v7216_v5, %s7141_s11 }
  0x5b   :  { %5547 = vrot.lane.b32.xlu2 %v7238_v9, %s7141_s11  ;;  %259 = vrot.lane.b32.xlu0 %v7235_v8, %s7140_s2 }
  0x62   :  { %286 = vrot.lane.b32.xlu1 %v7235_v8, %s7141_s11 }
  0x63   :  { %5557 = vrot.lane.b32.xlu2 %v7216_v5, %s7142_s12  ;;  %5552 = vrot.lane.b32.xlu0 %v7210_v3, %s7141_s11 }
  0x6a   :  { %5567 = vrot.lane.b32.xlu1 %v7210_v3, %s7142_s12 }
  0x6b   :  { %313 = vrot.lane.b32.xlu2 %v7235_v8, %s7142_s12  ;;  %5562 = vrot.lane.b32.xlu0 %v7238_v9, %s7142_s12 }
  0x6d   :  { %v7306_v10 = vpop.permute.xlu2 %5452 }
  0x6e   :  { %v5455_v45 = vunpack.i.h.bf16 %v7306_v10  ;;  %v5454_v47 = vunpack.i.l.bf16 %v7306_v10 }
  0x70   :  { %v7438_v56 = vsel %vm13114_vm1, %v5454_v47, %v5455_v45 }
  0x72   :  { %5577 = vrot.lane.b32.xlu1 %v7238_v9, %s7143_s13 }
  0x73   :  { %5582 = vrot.lane.b32.xlu2 %v7210_v3, %s7143_s13  ;;  %5572 = vrot.lane.b32.xlu0 %v7216_v5, %s7143_s13 }
  0x75   :  { %v7314_v11 = vpop.permute.xlu2 %5457 }
  0x76   :  { %v5459_v48 = vunpack.i.l.bf16 %v7314_v11  ;;  %v5460_v52 = vunpack.i.h.bf16 %v7314_v11 }
  0x78   :  { %v7441_v57 = vsel %vm13114_vm1, %v5455_v45, %v5459_v48  ;;  %v7451_v60 = vsel %vm13114_vm1, %v5459_v48, %v5460_v52 }
  0x79   :  { %13488 = vst [vmem:[#allocation26_spill] sm:$0xff] %v7441_v57  ;;  %v7455_v61 = vpack.i.bf16 %v7441_v57, %v7438_v56 }
  0x7a   :  { %5587 = vrot.lane.b32.xlu1 %v7216_v5, %s7144_s14  ;;  %13491 = vst [vmem:[#allocation29_spill] sm:$0xff] %v7451_v60 }
  0x7b   :  { %5592 = vrot.lane.b32.xlu2 %v7238_v9, %s7144_s14  ;;  %340 = vrot.lane.b32.xlu0 %v7235_v8, %s7143_s13 }
  0x7d   :  { %v7322_v12 = vpop.permute.xlu2 %5467 }
  0x7e   :  { %v5470_v62 = vunpack.i.h.bf16 %v7322_v12  ;;  %v5469_v63 = vunpack.i.l.bf16 %v7322_v12 }
  0x80   :  { %v7477_v11 = vsel %vm13165_vm2, %v5469_v63, %v5470_v62 }
  0x82   :  { %367 = vrot.lane.b32.xlu1 %v7235_v8, %s7144_s14 }
  0x83   :  { %5602 = vrot.lane.b32.xlu2 %v7216_v5, %s7145_s15  ;;  %5597 = vrot.lane.b32.xlu0 %v7210_v3, %s7144_s14 }
  0x84   :  { %v7330_v13 = vpop.permute.xlu1 %5447 }
  0x85   :  { %v7332_v14 = vpop.permute.xlu2 %151  ;;  %v5438_v15 = vpop.permute.xlu0 %5437  ;;  %v5450_v33 = vunpack.i.h.bf16 %v7330_v13  ;;  %v5449_v34 = vunpack.i.l.bf16 %v7330_v13 }
  0x86   :  { %13474 = vst [vmem:[#allocation12_spill] sm:$0xff] %v7332_v14  ;;  %v5440_v35 = vunpack.i.h.bf16 %v5438_v15  ;;  %v5439_v36 = vunpack.i.l.bf16 %v5438_v15 }
  0x87   :  { %v7412_v43 = vsel %vm13149_vm0, %v5449_v34, %v5450_v33 }
  0x88   :  { %13486 = vst [vmem:[#allocation24_spill] sm:$0xff] %v7412_v43  ;;  %v7415_v44 = vsel %vm13149_vm0, %v5439_v36, %v5440_v35 }
  0x89   :  { %v5676_v50 = vpack.i.bf16 %v7415_v44, %v7235_v8 }
  0x8a   :  { %5612 = vrot.lane.b32.xlu1 %v7210_v3, %s7145_s15 }
  0x8b   :  { %394 = vrot.lane.b32.xlu2 %v7235_v8, %s7145_s15  ;;  %5607 = vrot.lane.b32.xlu0 %v7238_v9, %s7145_s15 }
  0x8c   :  { %v7340_v16 = vpop.permute.xlu1 %97 }
  0x8d   :  { %13475 = vst [vmem:[#allocation13_spill] sm:$0xff] %v7340_v16  ;;  %v7342_v17 = vpop.permute.xlu2 %5492  ;;  %v5443_v18 = vpop.permute.xlu0 %5442  ;;  %v7448_v59 = vsel %vm13149_vm0, %v5450_v33, %v7340_v16 }
  0x8e   :  { %13476 = vst [vmem:[#allocation14_spill] sm:$0xff] %v7342_v17  ;;  %v5445_v31 = vunpack.i.h.bf16 %v5443_v18  ;;  %v5444_v32 = vunpack.i.l.bf16 %v5443_v18  ;;  %v5691_v1 = vpack.i.bf16 %v7340_v16, %v7448_v59  ;;  %v5494_v63 = vunpack.i.l.bf16 %v7342_v17 }
  0x8f   :  { %13490 = vst [vmem:[#allocation28_spill] sm:$0xff] %v7448_v59 }
  0x90   :  { %v7403_v40 = vsel %vm13149_vm0, %v5440_v35, %v5444_v32  ;;  %v7406_v41 = vsel %vm13149_vm0, %v5444_v32, %v5445_v31  ;;  %v7409_v42 = vsel %vm13149_vm0, %v5445_v31, %v5449_v34  ;;  %vm1366_vm0 = vcmask 654336  }
  0x91   :  { %13483 = vst [vmem:[#allocation21_spill] sm:$0xff] %v7403_v40  ;;  %v5681_v46 = vpack.i.bf16 %v7406_v41, %v7403_v40  ;;  %v5686_v49 = vpack.i.bf16 %v7412_v43, %v7409_v42 }
  0x92   :  { %5622 = vrot.lane.b32.xlu1 %v7238_v9, %s7146_s1  ;;  %13484 = vst [vmem:[#allocation22_spill] sm:$0xff] %v7406_v41 }
  0x93   :  { %5627 = vrot.lane.b32.xlu2 %v7210_v3, %s7146_s1  ;;  %5617 = vrot.lane.b32.xlu0 %v7216_v5, %s7146_s1  ;;  %13485 = vst [vmem:[#allocation23_spill] sm:$0xff] %v7409_v42 }
  0x94   :  { %v7350_v19 = vpop.permute.xlu1 %124 }
  0x95   :  { %13477 = vst [vmem:[#allocation15_spill] sm:$0xff] %v7350_v19  ;;  %v7352_v20 = vpop.permute.xlu2 %5502  ;;  %v7354_v21 = vpop.permute.xlu0 %5462 }
  0x96   :  { %v5464_v51 = vunpack.i.l.bf16 %v7354_v21 }
  0x98   :  { %v7444_v58 = vsel %vm13114_vm1, %v5460_v52, %v5464_v51 }
  0x99   :  { %13489 = vst [vmem:[#allocation27_spill] sm:$0xff] %v7444_v58  ;;  %v5701_v0 = vpack.i.bf16 %v7444_v58, %v7451_v60 }
  0x9a   :  { %5632 = vrot.lane.b32.xlu1 %v7216_v5, %s7147_s16 }
  0x9b   :  { %5637 = vrot.lane.b32.xlu2 %v7238_v9, %s7147_s16  ;;  %421 = vrot.lane.b32.xlu0 %v7235_v8, %s7146_s1 }
  0x9c   :  { %v7362_v22 = vpop.permute.xlu1 %5477 }
  0x9d   :  { %v7364_v23 = vpop.permute.xlu2 %5512  ;;  %v7366_v24 = vpop.permute.xlu0 %5472  ;;  %v5479_v33 = vunpack.i.l.bf16 %v7362_v22 }
  0x9e   :  { %v5475_v4 = vunpack.i.h.bf16 %v7366_v24  ;;  %v5474_v7 = vunpack.i.l.bf16 %v7366_v24  ;;  %v5480_v24 = vunpack.i.h.bf16 %v7362_v22 }
  0xa0   :  { %v7480_v12 = vsel %vm13165_vm2, %v5470_v62, %v5474_v7  ;;  %v7483_v13 = vsel %vm13165_vm2, %v5474_v7, %v5475_v4  ;;  %v7514_v22 = vsel %vm13165_vm2, %v5480_v24, %v7332_v14 }
  0xa1   :  { %13493 = vst [vmem:[#allocation31_spill] sm:$0xff] %v7483_v13  ;;  %v5716_v31 = vpack.i.bf16 %v7483_v13, %v7480_v12 }
  0xa2   :  { %448 = vrot.lane.b32.xlu1 %v7235_v8, %s7147_s16  ;;  %13497 = vst [vmem:[#allocation35_spill] sm:$0xff] %v7514_v22 }
  0xa3   :  { %5647 = vrot.lane.b32.xlu2 %v7216_v5, %s7148_s17  ;;  %5642 = vrot.lane.b32.xlu0 %v7210_v3, %s7147_s16 }
  0xa4   :  { %v7373_v25 = vpop.permute.xlu1 %5487 }
  0xa5   :  { %v7375_v26 = vpop.permute.xlu2 %232  ;;  %v7377_v27 = vpop.permute.xlu0 %5482  ;;  %v5489_v34 = vunpack.i.l.bf16 %v7373_v25 }
  0xa6   :  { %13478 = vst [vmem:[#allocation16_spill] sm:$0xff] %v7375_v26  ;;  %v5485_v35 = vunpack.i.h.bf16 %v7377_v27  ;;  %v5484_v36 = vunpack.i.l.bf16 %v7377_v27 }
  0xa8   :  { %v7517_v48 = vsel %vm180_vm3, %v5484_v36, %v5485_v35  ;;  %v7520_v27 = vsel %vm180_vm3, %v5485_v35, %v5489_v34 }
  0xa9   :  { %13498 = vst [vmem:[#allocation36_spill] sm:$0xff] %v7520_v27  ;;  %v7532_v52 = vpack.i.bf16 %v7520_v27, %v7517_v48 }
  0xaa   :  { %5657 = vrot.lane.b32.xlu1 %v7210_v3, %s7148_s17 }
  0xab   :  { %475 = vrot.lane.b32.xlu2 %v7235_v8, %s7148_s17  ;;  %5652 = vrot.lane.b32.xlu0 %v7238_v9, %s7148_s17 }
  0xac   :  { %v7382_v28 = vpop.permute.xlu1 %5497 }
  0xad   :  { %v7384_v29 = vpop.permute.xlu2 %5537  ;;  %v7386_v30 = vpop.permute.xlu0 %178 }
  0xae   :  { %13479 = vst [vmem:[#allocation17_spill] sm:$0xff] %v7384_v29 }
  0xaf   :  { %13480 = vst [vmem:[#allocation18_spill] sm:$0xff] %v7386_v30 }
  0xb2   :  { %5667 = vrot.lane.b32.xlu1 %v7238_v9, %s7149_s18 }
  0xb3   :  { %5672 = vrot.lane.b32.xlu2 %v7210_v3, %s7149_s18  ;;  %5662 = vrot.lane.b32.xlu0 %v7216_v5, %s7149_s18  ;;  %v5465_v3 = vunpack.i.h.bf16 %v7354_v21  ;;  %v5711_v21 = vpack.i.bf16 %v7477_v11, %v7350_v19 }
  0xb4   :  { %v7396_v37 = vpop.permute.xlu1 %205 }
  0xb5   :  { %13481 = vst [vmem:[#allocation19_spill] sm:$0xff] %v7396_v37  ;;  %v7398_v38 = vpop.permute.xlu2 %5547  ;;  %v7400_v39 = vpop.permute.xlu0 %5507  ;;  %v7486_v15 = vsel %vm13114_vm1, %v5464_v51, %v5465_v3  ;;  %v7490_v18 = vsel %vm13114_vm1, %v5465_v3, %v7350_v19  ;;  %v5726_v51 = vpack.i.bf16 %v7332_v14, %v7514_v22  ;;  %v13047_v19 = vunpack.i.h.bf16 %v7342_v17 }
  0xb6   :  { %13482 = vst [vmem:[#allocation20_spill] sm:$0xff] %v7400_v39  ;;  %v5706_v32 = vpack.i.bf16 %v7490_v18, %v7486_v15  ;;  %vm714_vm1 = vcmask 916480  }
  0xb7   :  { %13494 = vst [vmem:[#allocation32_spill] sm:$0xff] %v7486_v15  ;;  %v7593_v30 = vsel %vm180_vm3, %v5494_v63, %v13047_v19 }
  0xb8   :  { %13495 = vst [vmem:[#allocation33_spill] sm:$0xff] %v7490_v18 }
  0xb9   :  { %13507 = vst [vmem:[#allocation45_spill] sm:$0xff] %v7593_v30 }
  0xba   :  { %5682 = vrot.lane.b32.xlu1 %v5681_v46, %s7149_s18 }
  0xbb   :  { %5687 = vrot.lane.b32.xlu2 %v5686_v49, %s7149_s18  ;;  %5677 = vrot.lane.b32.xlu0 %v5676_v50, %s7149_s18  ;;  %v7523_v49 = vsel %vm13165_vm2, %v5475_v4, %v5479_v33  ;;  %v7526_v50 = vsel %vm13165_vm2, %v5479_v33, %v5480_v24  ;;  %vm1435_vm2 = vcmask 195584  }
  0xbc   :  { %v7431_v53 = vpop.permute.xlu1 %5522  ;;  %13499 = vst [vmem:[#allocation37_spill] sm:$0xff] %v7523_v49  ;;  %v5721_v62 = vpack.i.bf16 %v7526_v50, %v7523_v49  ;;  %v5500_v49 = vunpack.i.h.bf16 %v7382_v28 }
  0xbd   :  { %13487 = vst [vmem:[#allocation25_spill] sm:$0xff] %v7431_v53  ;;  %v7433_v54 = vpop.permute.xlu2 %5557  ;;  %v7435_v55 = vpop.permute.xlu0 %5517  ;;  %v13516_v53 = vunpack.i.h.bf16 %v7364_v23 }
  0xbe   :  { %13500 = vst [vmem:[#allocation38_spill] sm:$0xff] %v7526_v50 }
  0xc2   :  { %5697 = vrot.lane.b32.xlu1 %v7455_v61, %s7149_s18 }
  0xc3   :  { %5702 = vrot.lane.b32.xlu2 %v5701_v0, %s7149_s18  ;;  %5692 = vrot.lane.b32.xlu0 %v5691_v1, %s7149_s18  ;;  %v5490_v0 = vunpack.i.h.bf16 %v7373_v25 }
  0xc4   :  { %v7470_v8 = vpop.permute.xlu1 %5532 }
  0xc5   :  { %v7472_v9 = vpop.permute.xlu2 %313  ;;  %v7474_v10 = vpop.permute.xlu0 %5527  ;;  %v7549_v7 = vsel %vm180_vm3, %v5489_v34, %v5490_v0 }
  0xc6   :  { %13492 = vst [vmem:[#allocation30_spill] sm:$0xff] %v7472_v9 }
  0xc7   :  { %13502 = vst [vmem:[#allocation40_spill] sm:$0xff] %v7549_v7 }
  0xca   :  { %5712 = vrot.lane.b32.xlu1 %v5711_v21, %s7149_s18  ;;  %v7552_v21 = vsel %vm180_vm3, %v5490_v0, %v5494_v63 }
  0xcb   :  { %5717 = vrot.lane.b32.xlu2 %v5716_v31, %s7149_s18  ;;  %5707 = vrot.lane.b32.xlu0 %v5706_v32, %s7149_s18  ;;  %13503 = vst [vmem:[#allocation41_spill] sm:$0xff] %v7552_v21  ;;  %v5736_v25 = vpack.i.bf16 %v7552_v21, %v7549_v7  ;;  %v13513_v21 = vunpack.i.h.bf16 %v7433_v54 }
  0xcc   :  { %v7506_v45 = vpop.permute.xlu1 %5542 }
  0xcd   :  { %v7508_v46 = vpop.permute.xlu2 %5582  ;;  %v7510_v47 = vpop.permute.xlu0 %259 }
  0xce   :  { %13496 = vst [vmem:[#allocation34_spill] sm:$0xff] %v7510_v47 }
  0xd2   :  { %5727 = vrot.lane.b32.xlu1 %v5726_v51, %s7149_s18 }
  0xd3   :  { %5732 = vrot.lane.b32.xlu2 %v7532_v52, %s7149_s18  ;;  %5722 = vrot.lane.b32.xlu0 %v5721_v62, %s7149_s18 }
  0xd4   :  { %v7542_v1 = vpop.permute.xlu1 %286 }
  0xd5   :  { %13501 = vst [vmem:[#allocation39_spill] sm:$0xff] %v7542_v1  ;;  %v7544_v3 = vpop.permute.xlu2 %5592  ;;  %v7546_v4 = vpop.permute.xlu0 %5552 }
  0xdb   :  { %5737 = vrot.lane.b32.xlu0 %v5736_v25, %s7149_s18 }
  0xdc   :  { %v7557_v24 = vpop.permute.xlu1 %5567 }
  0xdd   :  { %v7559_v31 = vpop.permute.xlu2 %5602  ;;  %v7561_v32 = vpop.permute.xlu0 %5562 }
  0xe4   :  { %v7563_v33 = vpop.permute.xlu1 %5577 }
  0xe5   :  { %v7565_v35 = vpop.permute.xlu2 %394  ;;  %v7567_v34 = vpop.permute.xlu0 %5572 }
  0xe6   :  { %13504 = vst [vmem:[#allocation42_spill] sm:$0xff] %v7565_v35 }
  0xec   :  { %v7569_v36 = vpop.permute.xlu1 %5587 }
  0xed   :  { %v7571_v51 = vpop.permute.xlu2 %5627  ;;  %v7573_v62 = vpop.permute.xlu0 %340 }
  0xee   :  { %13505 = vst [vmem:[#allocation43_spill] sm:$0xff] %v7573_v62 }
  0xf4   :  { %v7575_v0 = vpop.permute.xlu1 %367 }
  0xf5   :  { %13506 = vst [vmem:[#allocation44_spill] sm:$0xff] %v7575_v0  ;;  %v7577_v25 = vpop.permute.xlu2 %5637  ;;  %v7579_v16 = vpop.permute.xlu0 %5597 }
  0xf6   :  { %v13058_v17 = vunpack.i.l.bf16 %v7577_v25 }
  0xfc   :  { %v7582_v14 = vpop.permute.xlu1 %5612 }
  0xfd   :  { %v7584_v22 = vpop.permute.xlu2 %5647  ;;  %v7586_v59 = vpop.permute.xlu0 %5607 }
  0xfe   :  { %v13048_v26 = vunpack.i.h.bf16 %v7584_v22  ;;  %v5649_v47 = vunpack.i.l.bf16 %v7584_v22 }
 0x100   :  { %v7598_v37 = vsel %vm477_vm4, %v5649_v47, %v13048_v26 }
 0x101   :  { %v5741_v1 = vpack.i.bf16 %v7598_v37, %v7593_v30  ;;  %1460 = vmatpush.msra.mxu0 %v7598_v37  ;;  %v5529_v30 = vunpack.i.l.bf16 %v7474_v10 }
 0x103   :  { %5742 = vrot.lane.b32.xlu1 %v5741_v1, %s7149_s18  ;;  %v5604_v1 = vunpack.i.l.bf16 %v7559_v31 }
 0x104   :  { %v7604_v35 = vpop.permute.xlu1 %5622 }
 0x105   :  { %v7606_v57 = vpop.permute.xlu0 %5617  ;;  %v5624_v39 = vunpack.i.l.bf16 %v7604_v35 }
 0x106   :  { %v5619_v47 = vunpack.i.l.bf16 %v7606_v57  ;;  %v13510_v43 = vunpack.i.h.bf16 %v7606_v57 }
 0x108   :  { %v7627_v62 = vsel %vm423_vm6, %v5619_v47, %v13510_v43 }
 0x10c   :  { %v5633_v63 = vpop.permute.xlu1 %5632 }
 0x10d   :  { %v5635_v26 = vunpack.i.h.bf16 %v5633_v63  ;;  %v5634_v9 = vunpack.i.l.bf16 %v5633_v63  ;;  %v7611_v27 = vpop.permute.xlu0 %421  ;;  %v5590_v63 = vunpack.i.h.bf16 %v7569_v36 }
 0x10e   :  { %13508 = vst [vmem:[#allocation46_spill] sm:$0xff] %v7611_v27  ;;  %v5589_v27 = vunpack.i.l.bf16 %v7569_v36  ;;  %v5559_v36 = vunpack.i.l.bf16 %v7433_v54 }
 0x10f   :  { %v451_v50 = vsel %vm450_vm5, %v5634_v9, %v5635_v26  ;;  %v7619_v0 = vsel %vm450_vm5, %v5635_v26, %v13058_v17  ;;  %v5574_v9 = vunpack.i.l.bf16 %v7567_v34  ;;  %v13511_v17 = vunpack.i.h.bf16 %v7559_v31 }
 0x110   :  { %13509 = vst [vmem:[#allocation47_spill] sm:$0xff] %v7619_v0  ;;  %1461 = vmatpush.msra.mxu0 %v451_v50  ;;  %v5751_v19 = vpack.i.bf16 %v7619_v0, %v451_v50  ;;  %v5545_v26 = vunpack.i.h.bf16 %v7506_v45  ;;  %v5766_v43 = vpack.i.bf16 %v7627_v62, %v7619_v0  ;;  %v13514_v0 = vunpack.i.h.bf16 %v7474_v10 }
 0x111   :  { %v7636_v15 = vsel %vm396_vm7, %v5604_v1, %v13511_v17  ;;  %v5544_v17 = vunpack.i.l.bf16 %v7506_v45  ;;  %v13512_v1 = vunpack.i.h.bf16 %v7567_v34  ;;  %v7663_v45 = vsel %vm315_vm10, %v5559_v36, %v13513_v21 }
 0x112   :  { %1462 = vmatpush.msra.mxu0 %v7627_v62  ;;  %5752 = vrot.lane.b32.xlu0 %v5751_v19, %s7150_s19  ;;  %v7644_v19 = vsel %vm369_vm8, %v5589_v27, %v5590_v63  ;;  %v5499_v21 = vunpack.i.l.bf16 %v7382_v28 }
 0x113   :  { %v7652_v18 = vsel %vm342_vm9, %v5574_v9, %v13512_v1  ;;  %v5514_v1 = vunpack.i.l.bf16 %v7364_v23  ;;  %v7670_v27 = vsel %vm288_vm11, %v5544_v17, %v5545_v26  ;;  %v13515_v9 = vunpack.i.l.bf16 %v7544_v3 }
 0x114   :  { %1463 = vmatpush.msra.mxu0 %v7636_v15 }
 0x115   :  { %v7641_v47 = vpop.permute.xlu0 %5642  ;;  %v7685_v42 = vsel %vm369_vm8, %v5590_v63, %v13515_v9  ;;  %v7692_v28 = vsel %vm234_vm13, %v5514_v1, %v13516_v53  ;;  %v7705_v9 = vsel %vm207_vm14, %v5499_v21, %v5500_v49  ;;  %v5609_v1 = vunpack.i.l.bf16 %v7586_v59 }
 0x116   :  { %1464 = vmatpush.msra.mxu0 %v7644_v19  ;;  %v5781_v63 = vpack.i.bf16 %v7685_v42, %v7644_v19 }
 0x118   :  { %1465 = vmatpush.msra.mxu0 %v7652_v18 }
 0x11a   :  { %1466 = vmatpush.msra.mxu0 %v7663_v45  ;;  %5767 = vrot.lane.b32.xlu0 %v5766_v43, %s7149_s18  ;;  %v7680_v43 = vsel %vm261_vm12, %v5529_v30, %v13514_v0  ;;  %v13517_v30 = vunpack.i.h.bf16 %v7584_v22 }
 0x11c   :  { %1467 = vmatpush.msra.mxu0 %v7670_v27 }
 0x11d   :  { %v7675_v36 = vpop.permute.xlu0 %5652 }
 0x11e   :  { %v5654_v17 = vunpack.i.l.bf16 %v7675_v36  ;;  %1468 = vmatpush.msra.mxu0 %v7680_v43 }
 0x120   :  { %1469 = vmatpush.msra.mxu0 %v7692_v28  ;;  %v7700_v0 = vsel %vm477_vm4, %v13517_v30, %v5654_v17 }
 0x121   :  { %v5746_v29 = vpack.i.bf16 %v7700_v0, %v7598_v37  ;;  %v5756_v53 = vpack.i.bf16 %v451_v50, %v7700_v0  ;;  %v13518_v37 = vunpack.i.h.bf16 %v7606_v57  ;;  %v13519_v50 = vunpack.i.h.bf16 %v7559_v31 }
 0x122   :  { %1470 = vmatpush.msra.mxu0 %v7705_v9  ;;  %5782 = vrot.lane.b32.xlu0 %v5781_v63, %s7150_s19 }
 0x123   :  { %5747 = vrot.lane.b32.xlu2 %v5746_v29, %s7150_s19  ;;  %5757 = vrot.lane.b32.xlu1 %v5756_v53, %s7149_s18  ;;  %v7723_v22 = vsel %vm423_vm6, %v13518_v37, %v5624_v39  ;;  %v7730_v21 = vsel %vm396_vm7, %v13519_v50, %v5609_v1  ;;  %v5796_v29 = vpack.i.bf16 %v7652_v18, %v7685_v42  ;;  %v5564_v53 = vunpack.i.l.bf16 %v7561_v32 }
 0x124   :  { %1471 = vmatpush.msra.mxu0 %v7517_v48  ;;  %v5549_v48 = vunpack.i.l.bf16 %v7398_v38  ;;  %v5761_v57 = vpack.i.bf16 %v7723_v22, %v7627_v62  ;;  %v5771_v30 = vpack.i.bf16 %v7730_v21, %v7636_v15  ;;  %v5776_v62 = vpack.i.bf16 %v7636_v15, %v7723_v22 }
 0x125   :  { %v5786_v63 = vpack.i.bf16 %v7644_v19, %v7730_v21  ;;  %v5579_v37 = vunpack.i.l.bf16 %v7563_v33  ;;  %v13521_v15 = vunpack.i.h.bf16 %v7433_v54 }
 0x126   :  { %1472 = vmatpush.msra.mxu0 %v7477_v11 }
 0x127   :  { %v7771_v19 = vsel %vm315_vm10, %v13521_v15, %v5564_v53 }
 0x128   :  { %1473 = vmatpush.msra.mxu0 %v7438_v56  ;;  %v7748_v56 = vsel %vm288_vm11, %v5545_v26, %v5549_v48 }
 0x129   :  { %v5811_v31 = vpack.i.bf16 %v7748_v56, %v7670_v27  ;;  %v5826_v50 = vpack.i.bf16 %v7680_v43, %v7748_v56 }
 0x12a   :  { %5797 = vrot.lane.b32.xlu0 %v5796_v29, %s7149_s18  ;;  %1474 = vmatpush.msra.mxu0 %v7415_v44  ;;  %v13081_v29 = vunpack.i.l.bf16 %v7352_v20 }
 0x12b   :  { %5762 = vrot.lane.b32.xlu2 %v5761_v57, %s7150_s19  ;;  %5772 = vrot.lane.b32.xlu1 %v5771_v30, %s7150_s19 }
 0x12c   :  { %1475 = vmatpush.msra.mxu0 %v7208_v2  ;;  %v13520_v2 = vunpack.i.h.bf16 %v7567_v34  ;;  %v5801_v34 = vpack.i.bf16 %v7771_v19, %v7663_v45  ;;  %v7786_v54 = vsel %vm207_vm14, %v5500_v49, %v13081_v29  ;;  %v13522_v49 = vunpack.i.h.bf16 %v7474_v10 }
 0x12d   :  { %v5841_v30 = vpack.i.bf16 %v7786_v54, %v7705_v9  ;;  %v5871_v10 = vpack.i.bf16 %v7403_v40, %v7415_v44  ;;  %v13539_v29 = vunpack.i.l.bf16 %v7544_v3 }
 0x12e   :  { %v7764_v26 = vsel %vm342_vm9, %v13520_v2, %v5579_v37  ;;  %v7797_v2 = vpop.permute.xlu2 %475 }
 0x12f   :  { %v5791_v57 = vpack.i.bf16 %v7764_v26, %v7652_v18  ;;  %v5806_v18 = vpack.i.bf16 %v7663_v45, %v7764_v26 }
 0x132   :  { %5812 = vrot.lane.b32.xlu0 %v5811_v31, %s7150_s19  ;;  %v5816_v31 = vpack.i.bf16 %v7670_v27, %v7771_v19  ;;  %v13523_v27 = vunpack.i.h.bf16 %v7364_v23 }
 0x133   :  { %5777 = vrot.lane.b32.xlu2 %v5776_v62, %s7149_s18  ;;  %5787 = vrot.lane.b32.xlu1 %v5786_v63, %s7149_s18  ;;  %v13080_v62 = vunpack.i.l.bf16 %v7435_v55  ;;  %v13076_v63 = vunpack.i.l.bf16 %v7470_v8 }
 0x135   :  { %v7806_v45 = vsel %vm261_vm12, %v13522_v49, %v13076_v63  ;;  %v7813_v15 = vsel %vm234_vm13, %v13523_v27, %v13080_v62 }
 0x136   :  { %v7827_v23 = vpop.permute.xlu2 %5672 }
 0x137   :  { %13524 = vst [vmem:[#allocation48_spill] sm:$0xff] %v7827_v23 }
 0x13a   :  { %5827 = vrot.lane.b32.xlu0 %v5826_v50, %s7149_s18  ;;  %v7815_v50 = vpop.permute.xlu1 %448 }
 0x13b   :  { %5792 = vrot.lane.b32.xlu2 %v5791_v57, %s7150_s19  ;;  %5802 = vrot.lane.b32.xlu1 %v5801_v34, %s7150_s19  ;;  %v5821_v57 = vpack.i.bf16 %v7806_v45, %v7680_v43  ;;  %v5831_v34 = vpack.i.bf16 %v7813_v15, %v7692_v28  ;;  %v5836_v43 = vpack.i.bf16 %v7692_v28, %v7806_v45 }
 0x13e   :  { %v7850_v28 = vpop.permute.xlu2 %5687 }
 0x13f   :  { %13527 = vst [vmem:[#allocation51_spill] sm:$0xff] %v7850_v28 }
 0x142   :  { %5842 = vrot.lane.b32.xlu0 %v5841_v30, %s7150_s19  ;;  %v7821_v30 = vpop.permute.xlu0 %5662  ;;  %v7837_v49 = vpop.permute.xlu1 %5657 }
 0x143   :  { %5807 = vrot.lane.b32.xlu2 %v5806_v18, %s7149_s18  ;;  %5817 = vrot.lane.b32.xlu1 %v5816_v31, %s7149_s18  ;;  %v5846_v18 = vpack.i.bf16 %v7705_v9, %v7813_v15  ;;  %v13075_v31 = vunpack.i.h.bf16 %v7675_v36 }
 0x145   :  { %v7848_v44 = vsel %vm477_vm4, %v5654_v17, %v13075_v31  ;;  %v13530_v17 = vunpack.i.l.bf16 %v7577_v25  ;;  %v13078_v31 = vunpack.i.h.bf16 %v7563_v33 }
 0x146   :  { %13526 = vst [vmem:[#allocation50_spill] sm:$0xff] %v7848_v44  ;;  %v5861_v9 = vpack.i.bf16 %v7848_v44, %v7786_v54  ;;  %v7873_v63 = vpop.permute.xlu2 %5702 }
 0x147   :  { %13532 = vst [vmem:[#allocation55_spill] sm:$0xff] %v7873_v63 }
 0x14a   :  { %5857 = vrot.lane.b32.xlu0 %v7455_v61, %s7151_s3  ;;  %v7841_v27 = vpop.permute.xlu0 %5677 }
 0x14b   :  { %5822 = vrot.lane.b32.xlu2 %v5821_v57, %s7150_s19  ;;  %5832 = vrot.lane.b32.xlu1 %v5831_v34, %s7150_s19  ;;  %13525 = vst [vmem:[#allocation49_spill] sm:$0xff] %v7841_v27  ;;  %v13077_v57 = vunpack.i.h.bf16 %v7577_v25  ;;  %v7859_v34 = vpop.permute.xlu1 %5667 }
 0x14c   :  { %13528 = vst [vmem:[#allocation52_spill] sm:$0xff] %v7859_v34 }
 0x152   :  { %5872 = vrot.lane.b32.xlu0 %v5871_v10, %s7151_s3 }
 0x153   :  { %5837 = vrot.lane.b32.xlu2 %v5836_v43, %s7149_s18  ;;  %5847 = vrot.lane.b32.xlu1 %v5846_v18, %s7149_s18  ;;  %v7861_v43 = vpop.permute.xlu0 %5692  ;;  %v7868_v18 = vsel %vm450_vm5, %v13530_v17, %v13077_v57  ;;  %v7885_v17 = vsel %vm342_vm9, %v5579_v37, %v13078_v31  ;;  %v7887_v57 = vpop.permute.xlu1 %5682  ;;  %v13083_v37 = vunpack.i.h.bf16 %v7398_v38 }
 0x154   :  { %13529 = vst [vmem:[#allocation53_spill] sm:$0xff] %v7861_v43  ;;  %v7903_v31 = vpop.permute.xlu2 %5717 }
 0x155   :  { %13531 = vst [vmem:[#allocation54_spill] sm:$0xff] %v7868_v18  ;;  %v7923_v62 = vsel %vm288_vm11, %v5549_v48, %v13083_v37  ;;  %v13090_v48 = vunpack.i.h.bf16 %v7352_v20 }
 0x156   :  { %13533 = vst [vmem:[#allocation56_spill] sm:$0xff] %v7885_v17 }
 0x157   :  { %13537 = vst [vmem:[#allocation60_spill] sm:$0xff] %v7923_v62 }
 0x15a   :  { %5887 = vrot.lane.b32.xlu0 %v5871_v10, %s7150_s19  ;;  %v5901_v10 = vpack.i.bf16 %v7868_v18, %v7848_v44 }
 0x15b   :  { %5852 = vrot.lane.b32.xlu2 %v7532_v52, %s7150_s19  ;;  %5862 = vrot.lane.b32.xlu1 %v5861_v9, %s7149_s18  ;;  %v5866_v52 = vpack.i.bf16 %v7480_v12, %v7477_v11  ;;  %v13079_v9 = vunpack.i.h.bf16 %v7561_v32  ;;  %v7942_v37 = vpop.permute.xlu1 %5697 }
 0x15d   :  { %v7894_v11 = vsel %vm315_vm10, %v5564_v53, %v13079_v9  ;;  %v13086_v53 = vunpack.i.h.bf16 %v7544_v3  ;;  %v13085_v9 = vunpack.i.h.bf16 %v7604_v35 }
 0x15e   :  { %13534 = vst [vmem:[#allocation57_spill] sm:$0xff] %v7894_v11 }
 0x162   :  { %5902 = vrot.lane.b32.xlu0 %v5901_v10, %s7150_s19  ;;  %v7896_v10 = vpop.permute.xlu0 %5707 }
 0x163   :  { %5867 = vrot.lane.b32.xlu2 %v5866_v52, %s7150_s19  ;;  %5877 = vrot.lane.b32.xlu1 %v7455_v61, %s7150_s19  ;;  %13535 = vst [vmem:[#allocation58_spill] sm:$0xff] %v7896_v10  ;;  %v5916_v52 = vpack.i.bf16 %v7894_v11, %v7885_v17  ;;  %v13082_v61 = vunpack.i.h.bf16 %v7586_v59 }
 0x16a   :  { %5917 = vrot.lane.b32.xlu0 %v5916_v52, %s7149_s18  ;;  %v7916_v52 = vsel %vm396_vm7, %v5609_v1, %v13082_v61  ;;  %v7937_v1 = vsel %vm369_vm8, %v13539_v29, %v13086_v53  ;;  %v5931_v61 = vpack.i.bf16 %v7923_v62, %v7894_v11  ;;  %v7953_v29 = vpop.permute.xlu2 %5732  ;;  %v13542_v53 = vunpack.i.l.bf16 %v7352_v20 }
 0x16b   :  { %5882 = vrot.lane.b32.xlu2 %v7216_v5, %s7151_s3  ;;  %5892 = vrot.lane.b32.xlu1 %v7216_v5, %s7150_s19  ;;  %13536 = vst [vmem:[#allocation59_spill] sm:$0xff] %v7916_v52  ;;  %v7930_v5 = vsel %vm423_vm6, %v5624_v39, %v13085_v9  ;;  %v5906_v39 = vpack.i.bf16 %v7937_v1, %v7916_v52  ;;  %v7948_v9 = vpop.permute.xlu0 %5722 }
 0x16c   :  { %13538 = vst [vmem:[#allocation61_spill] sm:$0xff] %v7930_v5  ;;  %v5896_v43 = vpack.i.bf16 %v7930_v5, %v7868_v18  ;;  %v7960_v23 = vsel %vm207_vm14, %v13542_v53, %v13090_v48  ;;  %v5911_v28 = vpack.i.bf16 %v7916_v52, %v7930_v5  ;;  %v13100_v53 = vunpack.i.h.bf16 %v7470_v8 }
 0x16d   :  { %13540 = vst [vmem:[#allocation62_spill] sm:$0xff] %v7937_v1  ;;  %v5946_v10 = vpack.i.bf16 %v7549_v7, %v7960_v23  ;;  %v5961_v11 = vpack.i.bf16 %v7444_v58, %v7227_v6 }
 0x16e   :  { %13541 = vst [vmem:[#allocation63_spill] sm:$0xff] %v7948_v9 }
 0x16f   :  { %13543 = vst [vmem:[#allocation64_spill] sm:$0xff] %v7960_v23 }
 0x172   :  { %5932 = vrot.lane.b32.xlu0 %v5931_v61, %s7150_s19  ;;  %v13098_v61 = vunpack.i.h.bf16 %v7435_v55 }
 0x173   :  { %5897 = vrot.lane.b32.xlu2 %v5896_v43, %s7149_s18  ;;  %5907 = vrot.lane.b32.xlu1 %v5906_v39, %s7149_s18  ;;  %v5921_v43 = vpack.i.bf16 %v7885_v17, %v7937_v1  ;;  %v7970_v39 = vpop.permute.xlu1 %5712  ;;  %v7975_v48 = vpop.permute.xlu0 %5737  ;;  %v13555_v1 = vunpack.i.h.bf16 %v7577_v25 }
 0x174   :  { %13544 = vst [vmem:[#allocation65_spill] sm:$0xff] %v7970_v39 }
 0x175   :  { %13545 = vst [vmem:[#allocation66_spill] sm:$0xff] %v7975_v48 }
 0x17a   :  { %5947 = vrot.lane.b32.xlu0 %v5946_v10, %s7150_s19  ;;  %v13546_v10 = vunpack.i.l.bf16 %v7435_v55 }
 0x17b   :  { %5912 = vrot.lane.b32.xlu2 %v5911_v28, %s7150_s19  ;;  %5922 = vrot.lane.b32.xlu1 %v5921_v43, %s7150_s19  ;;  %v13548_v43 = vunpack.i.l.bf16 %v7470_v8 }
 0x17c   :  { %v7986_v63 = vsel %vm234_vm13, %v13546_v10, %v13098_v61 }
 0x17d   :  { %v7977_v9 = vpop.permute.xlu2 %5747  ;;  %13547 = vst [vmem:[#allocation67_spill] sm:$0xff] %v7986_v63  ;;  %v7996_v48 = vsel %vm261_vm12, %v13548_v43, %v13100_v53  ;;  %v5936_v61 = vpack.i.bf16 %v7960_v23, %v7986_v63  ;;  %v13551_v23 = vunpack.i.l.bf16 %v7837_v49 }
 0x17e   :  { %v13099_v7 = vunpack.i.h.bf16 %v7977_v9  ;;  %v5749_v34 = vunpack.i.l.bf16 %v7977_v9  ;;  %13549 = vst [vmem:[#allocation68_spill] sm:$0xff] %v7996_v48  ;;  %v5926_v10 = vpack.i.bf16 %v7996_v48, %v7923_v62  ;;  %v13554_v62 = vunpack.i.l.bf16 %v7641_v47 }
 0x180   :  { %v1222_v28 = vsel %vm1131_vm15, %v5749_v34, %v13099_v7  ;;  %v8011_v7 = vpop.permute.xlu1 %5727  ;;  %v8034_v52 = vsel %vm450_vm5, %v13555_v1, %v13554_v62 }
 0x181   :  { %1542 = vmatpush.msra.mxu2 %v1222_v28  ;;  %13550 = vst [vmem:[#allocation69_spill] sm:$0xff] %v8011_v7 }
 0x182   :  { %5962 = vrot.lane.b32.xlu0 %v5961_v11, %s7151_s3  ;;  %v13552_v11 = vunpack.i.h.bf16 %v7675_v36  ;;  %13556 = vst [vmem:[#allocation71_spill] sm:$0xff] %v8034_v52 }
 0x183   :  { %5927 = vrot.lane.b32.xlu2 %v5926_v10, %s7149_s18  ;;  %5937 = vrot.lane.b32.xlu1 %v5936_v61, %s7149_s18  ;;  %v5951_v10 = vpack.i.bf16 %v7406_v41, %v7451_v60 }
 0x184   :  { %v8009_v43 = vpop.permute.xlu0 %5752  ;;  %v8022_v34 = vsel %vm477_vm4, %v13552_v11, %v13551_v23  ;;  %v13109_v23 = vunpack.i.l.bf16 %v7579_v16  ;;  %v5941_v11 = vpack.i.bf16 %v7986_v63, %v7996_v48  ;;  %v13585_v63 = vld [vmem:[#allocation17_spill] sm:$0xff] }
 0x185   :  { %v8013_v53 = vpop.permute.xlu2 %5762  ;;  %v13106_v28 = vunpack.i.h.bf16 %v8009_v43  ;;  %v5754_v17 = vunpack.i.l.bf16 %v8009_v43  ;;  %13553 = vst [vmem:[#allocation70_spill] sm:$0xff] %v8022_v34  ;;  %v5976_v36 = vpack.i.bf16 %v8034_v52, %v8022_v34  ;;  %v13559_v52 = vunpack.i.h.bf16 %v7544_v3 }
 0x186   :  { %v5764_v61 = vunpack.i.l.bf16 %v8013_v53  ;;  %v13116_v34 = vunpack.i.l.bf16 %v7571_v51  ;;  %v5956_v3 = vpack.i.bf16 %v7451_v60, %v7483_v13  ;;  %v13570_v60 = vunpack.i.l.bf16 %v7582_v14 }
 0x187   :  { %v1216_v7 = vsel %vm1131_vm15, %v5754_v17, %v13106_v28  ;;  %v13557_v17 = vunpack.i.h.bf16 %v8013_v53 }
 0x188   :  { %1543 = vmatpush.msra.mxu2 %v1216_v7  ;;  %v13110_v7 = vunpack.i.l.bf16 %v7508_v46  ;;  %v8052_v62 = vpop.permute.xlu1 %5742 }
 0x189   :  { %v1210_v28 = vsel %vm1131_vm15, %v5764_v61, %v13557_v17  ;;  %13558 = vst [vmem:[#allocation72_spill] sm:$0xff] %v8052_v62  ;;  %v8061_v61 = vsel %vm369_vm8, %v13559_v52, %v13109_v23  ;;  %v5966_v52 = vpack.i.bf16 %v7227_v6, %v7406_v41  ;;  %v13565_v6 = vunpack.i.h.bf16 %v7604_v35 }
 0x18a   :  { %5977 = vrot.lane.b32.xlu0 %v5976_v36, %s7150_s19  ;;  %1544 = vmatpush.msra.mxu2 %v1210_v28  ;;  %13560 = vst [vmem:[#allocation73_spill] sm:$0xff] %v8061_v61  ;;  %v13561_v28 = vunpack.i.h.bf16 %v7563_v33  ;;  %v13567_v33 = vunpack.i.l.bf16 %v7557_v24  ;;  %v13571_v35 = vunpack.i.h.bf16 %v7586_v59 }
 0x18b   :  { %5942 = vrot.lane.b32.xlu2 %v5941_v11, %s7150_s19  ;;  %5952 = vrot.lane.b32.xlu1 %v5951_v10, %s7151_s3 }
 0x18c   :  { %v8050_v25 = vpop.permute.xlu0 %5767  ;;  %v8068_v11 = vsel %vm342_vm9, %v13561_v28, %v13110_v7  ;;  %v13568_v28 = vunpack.i.h.bf16 %v7561_v32  ;;  %v13574_v32 = vunpack.i.h.bf16 %v7398_v38 }
 0x18d   :  { %v8054_v1 = vpop.permute.xlu2 %5777  ;;  %13562 = vst [vmem:[#allocation74_spill] sm:$0xff] %v8068_v11  ;;  %v5991_v10 = vpack.i.bf16 %v8068_v11, %v8061_v61  ;;  %v8094_v11 = vsel %vm423_vm6, %v13565_v6, %v13116_v34  ;;  %v8111_v6 = vsel %vm396_vm7, %v13571_v35, %v13570_v60  ;;  %v13573_v34 = vunpack.i.l.bf16 %v7546_v4 }
 0x18e   :  { %13566 = vst [vmem:[#allocation77_spill] sm:$0xff] %v8094_v11  ;;  %v5981_v13 = vpack.i.bf16 %v8111_v6, %v8094_v11  ;;  %v5770_v35 = vunpack.i.h.bf16 %v8050_v25  ;;  %v13123_v38 = vunpack.i.l.bf16 %v8050_v25 }
 0x18f   :  { %13572 = vst [vmem:[#allocation79_spill] sm:$0xff] %v8111_v6 }
 0x192   :  { %5992 = vrot.lane.b32.xlu0 %v5991_v10, %s7149_s18 }
 0x193   :  { %5957 = vrot.lane.b32.xlu2 %v5956_v3, %s7150_s19  ;;  %5967 = vrot.lane.b32.xlu1 %v5966_v52, %s7150_s19  ;;  %v8101_v3 = vsel %vm315_vm10, %v13568_v28, %v13567_v33  ;;  %v5745_v52 = vunpack.i.h.bf16 %v8052_v62  ;;  %v8118_v33 = vsel %vm288_vm11, %v13574_v32, %v13573_v34  ;;  %v13576_v34 = vld [vmem:[#allocation20_spill] sm:$0xff]  ;;  %v13579_v32 = vunpack.i.h.bf16 %v7837_v49 }
 0x194   :  { %v8083_v23 = vpop.permute.xlu0 %5782  ;;  %13569 = vst [vmem:[#allocation78_spill] sm:$0xff] %v8101_v3  ;;  %v6006_v59 = vpack.i.bf16 %v8118_v33, %v8101_v3  ;;  %v13582_v11 = vunpack.i.l.bf16 %v13576_v34 }
 0x195   :  { %13563 = vst [vmem:[#allocation75_spill] sm:$0xff] %v8083_v23  ;;  %v8085_v7 = vpop.permute.xlu2 %5792  ;;  %v8087_v17 = vpop.permute.xlu1 %5757  ;;  %v5784_v6 = vunpack.i.l.bf16 %v8083_v23 }
 0x196   :  { %13564 = vst [vmem:[#allocation76_spill] sm:$0xff] %v8085_v7  ;;  %v13120_v61 = vunpack.i.l.bf16 %v8087_v17  ;;  %v5760_v41 = vunpack.i.h.bf16 %v8087_v17 }
 0x197   :  { %13575 = vst [vmem:[#allocation80_spill] sm:$0xff] %v8118_v33 }
 0x198   :  { %v805_v62 = vsel %vm714_vm1, %v5745_v52, %v13120_v61  ;;  %v799_v52 = vsel %vm714_vm1, %v5760_v41, %v13123_v38  ;;  %v5794_v38 = vunpack.i.l.bf16 %v8085_v7 }
 0x199   :  { %1501 = vmatpush.msra.mxu1 %v805_v62  ;;  %v13578_v62 = vunpack.i.l.bf16 %v8054_v1 }
 0x19a   :  { %6007 = vrot.lane.b32.xlu0 %v6006_v59, %s7150_s19 }
 0x19b   :  { %5972 = vrot.lane.b32.xlu2 %v5976_v36, %s7149_s18  ;;  %5982 = vrot.lane.b32.xlu1 %v5981_v13, %s7149_s18  ;;  %v793_v33 = vsel %vm714_vm1, %v5770_v35, %v13578_v62  ;;  %v13580_v36 = vunpack.i.l.bf16 %v7837_v49  ;;  %v13583_v35 = vunpack.i.h.bf16 %v7352_v20  ;;  %v13586_v20 = vld [vmem:[#allocation25_spill] sm:$0xff] }
 0x19c   :  { %1502 = vmatpush.msra.mxu1 %v799_v52  ;;  %v8138_v61 = vpop.permute.xlu0 %5797 }
 0x19d   :  { %13577 = vst [vmem:[#allocation81_spill] sm:$0xff] %v8138_v61  ;;  %v8140_v28 = vpop.permute.xlu2 %5807  ;;  %v8142_v60 = vpop.permute.xlu1 %5772  ;;  %v8152_v3 = vsel %vm477_vm4, %v13580_v36, %v13579_v32  ;;  %v8163_v62 = vsel %vm207_vm14, %v13583_v35, %v13582_v11  ;;  %v13131_v36 = vunpack.i.h.bf16 %v8085_v7  ;;  %v13587_v11 = vunpack.i.h.bf16 %v8083_v23 }
 0x19e   :  { %13581 = vst [vmem:[#allocation82_spill] sm:$0xff] %v8152_v3  ;;  %v13129_v41 = vunpack.i.h.bf16 %v8142_v60  ;;  %v5774_v52 = vunpack.i.l.bf16 %v8142_v60  ;;  %1503 = vmatpush.msra.mxu1 %v793_v33  ;;  %v6021_v33 = vpack.i.bf16 %v8152_v3, %v8163_v62  ;;  %v13594_v7 = vunpack.i.l.bf16 %v13586_v20 }
 0x19f   :  { %13584 = vst [vmem:[#allocation83_spill] sm:$0xff] %v8163_v62 }
 0x1a0   :  { %v1204_v32 = vsel %vm1131_vm15, %v5774_v52, %v13129_v41  ;;  %v1198_v52 = vsel %vm1131_vm15, %v5784_v6, %v13587_v11  ;;  %v5780_v6 = vunpack.i.h.bf16 %v8054_v1 }
 0x1a1   :  { %1545 = vmatpush.msra.mxu2 %v1204_v32  ;;  %v1192_v32 = vsel %vm1131_vm15, %v5794_v38, %v13131_v36  ;;  %v13595_v38 = vunpack.i.h.bf16 %v7435_v55 }
 0x1a2   :  { %6022 = vrot.lane.b32.xlu0 %v6021_v33, %s7149_s18  ;;  %v13590_v33 = vunpack.i.l.bf16 %v13585_v63 }
 0x1a3   :  { %5987 = vrot.lane.b32.xlu2 %v5981_v13, %s7150_s19  ;;  %5997 = vrot.lane.b32.xlu1 %v5991_v10, %s7150_s19  ;;  %v13591_v13 = vunpack.i.h.bf16 %v7470_v8  ;;  %v8206_v36 = vsel %vm234_vm13, %v13595_v38, %v13594_v7  ;;  %v5800_v7 = vunpack.i.h.bf16 %v8138_v61  ;;  %v13136_v38 = vunpack.i.l.bf16 %v8138_v61 }
 0x1a4   :  { %1546 = vmatpush.msra.mxu2 %v1198_v52  ;;  %v8180_v35 = vpop.permute.xlu0 %5812  ;;  %v8198_v52 = vld [vmem:[#allocation2] sm:$0xff]  ;;  %13596 = vst [vmem:[#allocation86_spill] sm:$0xff] %v8206_v36 }
 0x1a5   :  { %13588 = vst [vmem:[#allocation17_spill] sm:$0xff] %v8180_v35  ;;  %v8182_v41 = vpop.permute.xlu2 %5822  ;;  %v8184_v48 = vpop.permute.xlu1 %5787  ;;  %v8194_v10 = vsel %vm261_vm12, %v13591_v13, %v13590_v33  ;;  %1476 = vmatmul.f32.vlgmr.msra.gmra.mxu0 %v8198_v52  ;;  %v6964_v33 = vld [vmem:[%s13023_s0 + $0x18] sm:$0xff] }
 0x1a6   :  { %13589 = vst [vmem:[#allocation25_spill] sm:$0xff] %v8182_v41  ;;  %v13133_v11 = vunpack.i.l.bf16 %v8184_v48  ;;  %1547 = vmatpush.msra.mxu2 %v1192_v32  ;;  %v5790_v5 = vunpack.i.h.bf16 %v8184_v48  ;;  %v6011_v32 = vpack.i.bf16 %v8206_v36, %v8194_v10  ;;  %v13597_v13 = vld [vmem:[#allocation23_spill] sm:$0xff]  ;;  %v5824_v61 = vunpack.i.l.bf16 %v8182_v41 }
 0x1a7   :  { %13592 = vst [vmem:[#allocation84_spill] sm:$0xff] %v8194_v10  ;;  %v6036_v18 = vpack.i.bf16 %v6964_v33, %v13597_v13  ;;  %v8239_v10 = vld [vmem:[#allocation2 + $0x20] sm:$0xff] }
 0x1a8   :  { %13593 = vst [vmem:[#allocation85_spill] sm:$0xff] %v8198_v52  ;;  %v787_v8 = vsel %vm714_vm1, %v5780_v6, %v13133_v11  ;;  %v781_v11 = vsel %vm714_vm1, %v5790_v5, %v13136_v38  ;;  %v13602_v38 = vunpack.i.h.bf16 %v7641_v47  ;;  %v13603_v52 = vunpack.i.l.bf16 %v7641_v47 }
 0x1a9   :  { %1504 = vmatpush.msra.mxu1 %v787_v8  ;;  %v13600_v8 = vunpack.i.l.bf16 %v8140_v28  ;;  %13601 = vst [vmem:[#allocation89_spill] sm:$0xff] %v8239_v10 }
 0x1aa   :  { %6037 = vrot.lane.b32.xlu0 %v6036_v18, %s7151_s3  ;;  %v8248_v23 = vsel %vm450_vm5, %v13603_v52, %v13602_v38  ;;  %v13606_v38 = vunpack.i.h.bf16 %v8180_v35  ;;  %v13611_v52 = vunpack.i.h.bf16 %v7508_v46 }
 0x1ab   :  { %6002 = vrot.lane.b32.xlu2 %v6006_v59, %s7149_s18  ;;  %6012 = vrot.lane.b32.xlu1 %v6011_v32, %s7149_s18  ;;  %v775_v36 = vsel %vm714_vm1, %v5800_v7, %v13600_v8  ;;  %13604 = vst [vmem:[#allocation90_spill] sm:$0xff] %v8248_v23  ;;  %v6051_v5 = vpack.i.bf16 %v8248_v23, %v8152_v3  ;;  %v13614_v3 = vunpack.i.h.bf16 %v7557_v24 }
 0x1ac   :  { %1505 = vmatpush.msra.mxu1 %v781_v11  ;;  %v8228_v33 = vpop.permute.xlu0 %5827  ;;  %v5814_v11 = vunpack.i.l.bf16 %v8180_v35 }
 0x1ad   :  { %13598 = vst [vmem:[#allocation87_spill] sm:$0xff] %v8228_v33  ;;  %v8230_v55 = vpop.permute.xlu2 %5837  ;;  %v8232_v13 = vpop.permute.xlu1 %5802  ;;  %1479 = vmatmul.f32.gmra.mxu0 %v8239_v10  ;;  %v13150_v10 = vunpack.i.l.bf16 %v8228_v33 }
 0x1ae   :  { %13599 = vst [vmem:[#allocation88_spill] sm:$0xff] %v8232_v13  ;;  %v13142_v6 = vunpack.i.h.bf16 %v8232_v13  ;;  %v5804_v59 = vunpack.i.l.bf16 %v8232_v13  ;;  %1506 = vmatpush.msra.mxu1 %v775_v36  ;;  %v13605_v36 = vld [vmem:[#allocation41_spill] sm:$0xff] }
 0x1af   :  { %v6026_v8 = vpack.i.bf16 %v13605_v36, %v8163_v62  ;;  %v13615_v36 = vunpack.i.l.bf16 %v7557_v24  ;;  %v5830_v62 = vunpack.i.h.bf16 %v8228_v33 }
 0x1b0   :  { %v1186_v7 = vsel %vm1131_vm15, %v5804_v59, %v13142_v6  ;;  %v1180_v59 = vsel %vm1131_vm15, %v5814_v11, %v13606_v38  ;;  %v5810_v11 = vunpack.i.h.bf16 %v8140_v28 }
 0x1b1   :  { %1548 = vmatpush.msra.mxu2 %v1186_v7  ;;  %v13610_v7 = vunpack.i.h.bf16 %v8182_v41 }
 0x1b2   :  { %6052 = vrot.lane.b32.xlu0 %v6051_v5, %s7150_s19 }
 0x1b3   :  { %6017 = vrot.lane.b32.xlu2 %v6011_v32, %s7150_s19  ;;  %6027 = vrot.lane.b32.xlu1 %v6026_v8, %s7150_s19  ;;  %v1174_v5 = vsel %vm1131_vm15, %v5824_v61, %v13610_v7  ;;  %v13612_v32 = vunpack.i.l.bf16 %v7508_v46  ;;  %v8292_v61 = vsel %vm315_vm10, %v13615_v36, %v13614_v3  ;;  %v8294_v7 = vld [vmem:[#allocation2 + $0x40] sm:$0xff]  ;;  %v13618_v3 = vld [vmem:[#allocation37_spill] sm:$0xff] }
 0x1b4   :  { %1549 = vmatpush.msra.mxu2 %v1180_v59  ;;  %v8268_v6 = vpop.permute.xlu0 %5842  ;;  %13616 = vst [vmem:[#allocation95_spill] sm:$0xff] %v8292_v61  ;;  %v6031_v36 = vpack.i.bf16 %v7444_v58, %v13618_v3  ;;  %v13627_v3 = vunpack.i.l.bf16 %v7546_v4 }
 0x1b5   :  { %13607 = vst [vmem:[#allocation91_spill] sm:$0xff] %v8268_v6  ;;  %v8270_v44 = vpop.permute.xlu2 %5852  ;;  %v8272_v40 = vpop.permute.xlu1 %5817  ;;  %v8282_v8 = vsel %vm342_vm9, %v13612_v32, %v13611_v52  ;;  %1482 = vmatmul.f32.gmra.mxu0 %v8294_v7 }
 0x1b6   :  { %13608 = vst [vmem:[#allocation92_spill] sm:$0xff] %v8270_v44  ;;  %v13148_v38 = vunpack.i.l.bf16 %v8272_v40  ;;  %1550 = vmatpush.msra.mxu2 %v1174_v5  ;;  %v5820_v59 = vunpack.i.h.bf16 %v8272_v40  ;;  %v6066_v32 = vpack.i.bf16 %v8292_v61, %v8282_v8 }
 0x1b7   :  { %13609 = vst [vmem:[#allocation93_spill] sm:$0xff] %v8272_v40 }
 0x1b8   :  { %13613 = vst [vmem:[#allocation94_spill] sm:$0xff] %v8282_v8  ;;  %v769_v52 = vsel %vm714_vm1, %v5810_v11, %v13148_v38  ;;  %v763_v11 = vsel %vm714_vm1, %v5820_v59, %v13150_v10  ;;  %v13624_v38 = vunpack.i.l.bf16 %v7582_v14 }
 0x1b9   :  { %13617 = vst [vmem:[#allocation96_spill] sm:$0xff] %v8294_v7  ;;  %1507 = vmatpush.msra.mxu1 %v769_v52 }
 0x1ba   :  { %6067 = vrot.lane.b32.xlu0 %v6066_v32, %s7149_s18  ;;  %v13626_v32 = vunpack.i.h.bf16 %v7546_v4 }
 0x1bb   :  { %6032 = vrot.lane.b32.xlu2 %v6031_v36, %s7150_s19  ;;  %6042 = vrot.lane.b32.xlu1 %v6036_v18, %s7150_s19  ;;  %v13622_v36 = vunpack.i.l.bf16 %v8230_v55 }
 0x1bc   :  { %1508 = vmatpush.msra.mxu1 %v763_v11  ;;  %v8317_v5 = vpop.permute.xlu0 %5857  ;;  %v13623_v11 = vunpack.i.h.bf16 %v7582_v14  ;;  %v8342_v7 = vsel %vm288_vm11, %v13627_v3, %v13626_v32  ;;  %v13632_v32 = vunpack.i.h.bf16 %v7571_v51 }
 0x1bd   :  { %13619 = vst [vmem:[#allocation97_spill] sm:$0xff] %v8317_v5  ;;  %v8319_v41 = vpop.permute.xlu2 %5867  ;;  %v8321_v35 = vpop.permute.xlu1 %5832  ;;  %v5859_v18 = vunpack.i.l.bf16 %v8317_v5  ;;  %v757_v59 = vsel %vm714_vm1, %v5830_v62, %v13622_v36  ;;  %v5844_v36 = vunpack.i.l.bf16 %v8268_v6  ;;  %v6081_v13 = vpack.i.bf16 %v8342_v7, %v8292_v61 }
 0x1be   :  { %13620 = vst [vmem:[#allocation98_spill] sm:$0xff] %v8319_v41  ;;  %v5834_v52 = vunpack.i.l.bf16 %v8321_v35  ;;  %1509 = vmatpush.msra.mxu1 %v757_v59  ;;  %v8335_v58 = vsel %vm396_vm7, %v13624_v38, %v13623_v11  ;;  %v13629_v59 = vunpack.i.h.bf16 %v8317_v5  ;;  %v8351_v38 = vld [vmem:[#allocation2 + $0x60] sm:$0xff]  ;;  %v13631_v33 = vunpack.i.h.bf16 %v8321_v35 }
 0x1bf   :  { %13621 = vst [vmem:[#allocation99_spill] sm:$0xff] %v8321_v35  ;;  %v13633_v62 = vunpack.i.l.bf16 %v7571_v51  ;;  %1485 = vmatmul.f32.gmra.mxu0 %v8351_v38  ;;  %v13639_v11 = vunpack.i.h.bf16 %v13576_v34 }
 0x1c0   :  { %13625 = vst [vmem:[#allocation100_spill] sm:$0xff] %v8335_v58  ;;  %v1379_v10 = vsel %vm1366_vm0, %v5859_v18, %v13629_v59  ;;  %v1168_v3 = vsel %vm1131_vm15, %v5834_v52, %v13631_v33  ;;  %v13635_v18 = vunpack.i.h.bf16 %v7579_v16  ;;  %v13636_v59 = vunpack.i.l.bf16 %v7579_v16 }
 0x1c1   :  { %13628 = vst [vmem:[#allocation101_spill] sm:$0xff] %v8342_v7  ;;  %1596 = vmatpush.msra.mxu3 %v1379_v10  ;;  %v8362_v5 = vsel %vm423_vm6, %v13633_v62, %v13632_v32  ;;  %v5854_v10 = vunpack.i.l.bf16 %v8270_v44  ;;  %1551 = vmatpush.msra.mxu2 %v1168_v3  ;;  %v5869_v32 = vunpack.i.l.bf16 %v8319_v41 }
 0x1c2   :  { %13630 = vst [vmem:[#allocation102_spill] sm:$0xff] %v8351_v38  ;;  %v8369_v61 = vsel %vm369_vm8, %v13636_v59, %v13635_v18  ;;  %v6046_v33 = vpack.i.bf16 %v8362_v5, %v8248_v23  ;;  %6082 = vrot.lane.b32.xlu0 %v6081_v13, %s7150_s19  ;;  %v13638_v18 = vunpack.i.h.bf16 %v8268_v6  ;;  %v13640_v23 = vunpack.i.l.bf16 %v13576_v34 }
 0x1c3   :  { %13634 = vst [vmem:[#allocation103_spill] sm:$0xff] %v8362_v5  ;;  %v6056_v52 = vpack.i.bf16 %v8369_v61, %v8335_v58 }
 0x1c4   :  { %13637 = vst [vmem:[#allocation104_spill] sm:$0xff] %v8369_v61  ;;  %6047 = vrot.lane.b32.xlu2 %v6046_v33, %s7149_s18  ;;  %v1162_v3 = vsel %vm1131_vm15, %v5844_v36, %v13638_v18  ;;  %v8386_v59 = vpop.permute.xlu0 %5872  ;;  %v8393_v13 = vsel %vm207_vm14, %v13640_v23, %v13639_v11  ;;  %v13642_v36 = vunpack.i.h.bf16 %v8270_v44  ;;  %v13643_v11 = vunpack.i.h.bf16 %v8319_v41  ;;  %v8422_v41 = vld [vmem:[#allocation2 + $0x80] sm:$0xff] }
 0x1c5   :  { %6057 = vrot.lane.b32.xlu1 %v6056_v52, %s7149_s18  ;;  %1552 = vmatpush.msra.mxu2 %v1162_v3  ;;  %13641 = vst [vmem:[#allocation105_spill] sm:$0xff] %v8393_v13  ;;  %v8395_v62 = vpop.permute.xlu2 %5882  ;;  %v8397_v38 = vpop.permute.xlu1 %5847  ;;  %v13166_v33 = vunpack.i.h.bf16 %v8386_v59  ;;  %v5874_v52 = vunpack.i.l.bf16 %v8386_v59  ;;  %v5840_v3 = vunpack.i.h.bf16 %v8230_v55 }
 0x1c6   :  { %v1156_v18 = vsel %vm1131_vm15, %v5854_v10, %v13642_v36  ;;  %v5884_v35 = vunpack.i.l.bf16 %v8395_v62  ;;  %v13167_v23 = vunpack.i.l.bf16 %v8397_v38  ;;  %v1150_v34 = vsel %vm1131_vm15, %v5869_v32, %v13643_v11  ;;  %v13644_v36 = vld [vmem:[#allocation45_spill] sm:$0xff]  ;;  %13646 = vst [vmem:[#allocation106_spill] sm:$0xff] %v8422_v41 }
 0x1c7   :  { %1553 = vmatpush.msra.mxu2 %v1156_v18  ;;  %v1373_v40 = vsel %vm1366_vm0, %v5874_v52, %v13166_v33  ;;  %v6096_v6 = vpack.i.bf16 %v13644_v36, %v8393_v13  ;;  %v13645_v44 = vunpack.i.h.bf16 %v8395_v62  ;;  %v6061_v32 = vpack.i.bf16 %v8335_v58, %v8362_v5  ;;  %v8428_v52 = vld [vmem:[#allocation2 + $0x18] sm:$0xff]  ;;  %1488 = vmatmul.f32.gmra.mxu0 %v8422_v41 }
 0x1c8   :  { %v751_v10 = vsel %vm714_vm1, %v5840_v3, %v13167_v23  ;;  %1597 = vmatpush.msra.mxu3 %v1373_v40  ;;  %v13170_v40 = vunpack.i.h.bf16 %v13586_v20  ;;  %v13647_v33 = vld [vmem:[#allocation47_spill] sm:$0xff]  ;;  %v13655_v58 = vunpack.i.l.bf16 %v13585_v63  ;;  %v5715_v41 = vunpack.i.h.bf16 %v7970_v39 }
 0x1c9   :  { %1554 = vmatpush.msra.mxu2 %v1150_v34  ;;  %v1367_v18 = vsel %vm1366_vm0, %v5884_v35, %v13645_v44  ;;  %1510 = vmatpush.msra.mxu1 %v751_v10  ;;  %v6071_v34 = vpack.i.bf16 %v8282_v8, %v8369_v61  ;;  %v8461_v44 = vld [vmem:[%s13023_s0 + $0x20] sm:$0xff]  ;;  %v13650_v10 = vld [vmem:[#allocation33_spill] sm:$0xff]  ;;  %v13653_v61 = vunpack.i.l.bf16 %v8087_v17 }
 0x1ca   :  { %6097 = vrot.lane.b32.xlu0 %v6096_v6, %s7150_s19  ;;  %1598 = vmatpush.msra.mxu3 %v1367_v18  ;;  %v5850_v6 = vunpack.i.h.bf16 %v8397_v38  ;;  %v6111_v18 = vpack.i.bf16 %v13650_v10, %v8461_v44 }
 0x1cb   :  { %5278 = vmatmul.msk.f32.vlgmr.msra.gmra.mxu3 %vm1435_vm2, %v8428_v52 }
 0x1cc   :  { %6062 = vrot.lane.b32.xlu2 %v6061_v32, %s7150_s19  ;;  %v8438_v35 = vpop.permute.xlu0 %5887  ;;  %1624 = vmatpush.msrb.mxu3 %v7700_v0  ;;  %v13648_v0 = vunpack.i.l.bf16 %v13586_v20 }
 0x1cd   :  { %6072 = vrot.lane.b32.xlu1 %v6071_v34, %s7150_s19  ;;  %v8441_v3 = vpop.permute.xlu2 %5897  ;;  %v8443_v11 = vpop.permute.xlu1 %5862  ;;  %v5734_v34 = vunpack.i.l.bf16 %v7953_v29 }
 0x1ce   :  { %1625 = vmatpush.msrb.mxu3 %v13647_v33  ;;  %v8456_v23 = vsel %vm234_vm13, %v13648_v0, %v13170_v40  ;;  %v13174_v32 = vunpack.i.l.bf16 %v8441_v3  ;;  %v13651_v36 = vunpack.i.l.bf16 %v8443_v11  ;;  %v13652_v8 = vunpack.i.h.bf16 %v8443_v11 }
 0x1cf   :  { %13649 = vst [vmem:[#allocation47_spill] sm:$0xff] %v8456_v23  ;;  %v13654_v40 = vunpack.i.h.bf16 %v13585_v63  ;;  %v6086_v17 = vpack.i.bf16 %v8393_v13, %v8456_v23 }
 0x1d0   :  { %v745_v33 = vsel %vm714_vm1, %v5850_v6, %v13651_v36  ;;  %v806_v0 = vsel %vm714_vm1, %v13653_v61, %v13652_v8  ;;  %1626 = vmatpush.msrb.mxu3 %v7723_v22  ;;  %v8489_v8 = vld [vmem:[#allocation2 + $0x38] sm:$0xff]  ;;  %v5699_v22 = vunpack.i.l.bf16 %v7942_v37 }
 0x1d1   :  { %v8479_v5 = vsel %vm261_vm12, %v13655_v58, %v13654_v40  ;;  %1511 = vmatpush.msra.mxu1 %v745_v33  ;;  %1665 = vmatpush.msrb.mxu0 %v806_v0  ;;  %13657 = vst [vmem:[#allocation107_spill] sm:$0xff] %v8489_v8  ;;  %v13175_v58 = vunpack.i.l.bf16 %v7903_v31  ;;  %v13658_v40 = vunpack.i.h.bf16 %v7953_v29 }
 0x1d2   :  { %13656 = vst [vmem:[#allocation33_spill] sm:$0xff] %v8479_v5  ;;  %v6076_v36 = vpack.i.bf16 %v8479_v5, %v8342_v7  ;;  %6112 = vrot.lane.b32.xlu0 %v6111_v18, %s7151_s3  ;;  %1627 = vmatpush.msrb.mxu3 %v7730_v21  ;;  %v13659_v18 = vunpack.i.l.bf16 %v8050_v25  ;;  %v5680_v21 = vunpack.i.h.bf16 %v7841_v27  ;;  %v13722_v7 = vld [vmem:[#allocation20_spill] sm:$0xff] }
 0x1d3   :  { %v739_v33 = vsel %vm714_vm1, %v5734_v34, %v13658_v40  ;;  %5279 = vmatmul.msk.f32.gmra.mxu3 %vm1435_vm2, %v8489_v8  ;;  %v733_v25 = vsel %vm714_vm1, %v5715_v41, %v13175_v58  ;;  %v8532_v41 = vld [vmem:[#allocation2 + $0xa0] sm:$0xff]  ;;  %v13667_v58 = vunpack.i.h.bf16 %v7942_v37 }
 0x1d4   :  { %6077 = vrot.lane.b32.xlu2 %v6076_v36, %s7149_s18  ;;  %1512 = vmatpush.msra.mxu1 %v739_v33  ;;  %v800_v0 = vsel %vm714_vm1, %v13659_v18, %v13174_v32  ;;  %v8505_v61 = vpop.permute.xlu0 %5902  ;;  %v13663_v32 = vunpack.i.l.bf16 %v8054_v1  ;;  %13664 = vst [vmem:[#allocation109_spill] sm:$0xff] %v8532_v41  ;;  %v5664_v33 = vunpack.i.l.bf16 %v7821_v30  ;;  %v13177_v1 = vunpack.i.h.bf16 %v8438_v35 }
 0x1d5   :  { %6087 = vrot.lane.b32.xlu1 %v6086_v17, %s7149_s18  ;;  %1666 = vmatpush.msrb.mxu0 %v800_v0  ;;  %v8511_v34 = vpop.permute.xlu2 %5912  ;;  %v8513_v36 = vpop.permute.xlu1 %5877  ;;  %v13660_v17 = vunpack.i.h.bf16 %v7837_v49  ;;  %v13662_v0 = vunpack.i.h.bf16 %v8441_v3  ;;  %v13665_v49 = vunpack.i.h.bf16 %v7641_v47 }
 0x1d6   :  { %1628 = vmatpush.msrb.mxu3 %v7685_v42  ;;  %v5879_v18 = vunpack.i.l.bf16 %v8513_v36  ;;  %1513 = vmatpush.msra.mxu1 %v733_v25  ;;  %v13178_v42 = vunpack.i.h.bf16 %v7821_v30  ;;  %v727_v25 = vsel %vm714_vm1, %v5699_v22, %v13667_v58  ;;  %v13668_v47 = vunpack.i.h.bf16 %v8513_v36 }
 0x1d7   :  { %v8522_v40 = vsel %vm477_vm4, %v13660_v17, %v7797_v2  ;;  %v794_v6 = vsel %vm714_vm1, %v13663_v32, %v13662_v0  ;;  %v8538_v17 = vsel %vm450_vm5, %v13665_v49, %v7815_v50  ;;  %v5889_v32 = vunpack.i.l.bf16 %v8438_v35  ;;  %1491 = vmatmul.f32.gmra.mxu0 %v8532_v41 }
 0x1d8   :  { %13661 = vst [vmem:[#allocation108_spill] sm:$0xff] %v8522_v40  ;;  %1667 = vmatpush.msrb.mxu0 %v794_v6  ;;  %1629 = vmatpush.msrb.mxu3 %v7764_v26  ;;  %v1144_v0 = vsel %vm1131_vm15, %v5879_v18, %v13668_v47  ;;  %v13669_v49 = vunpack.i.l.bf16 %v7887_v57  ;;  %v6091_v58 = vpack.i.bf16 %v8456_v23, %v8479_v5  ;;  %v13670_v18 = vld [vmem:[#allocation32_spill] sm:$0xff]  ;;  %v8759_v23 = vld [vmem:[#allocation2 + $0x50] sm:$0xff]  ;;  %v13721_v5 = vld [vmem:[#allocation19_spill] sm:$0xff] }
 0x1d9   :  { %13666 = vst [vmem:[#allocation110_spill] sm:$0xff] %v8538_v17  ;;  %1514 = vmatpush.msra.mxu1 %v727_v25  ;;  %1555 = vmatpush.msra.mxu2 %v1144_v0  ;;  %v8558_v22 = vpack.i.bf16 %v8538_v17, %v8522_v40  ;;  %v13671_v25 = vld [vmem:[#allocation24_spill] sm:$0xff]  ;;  %v8570_v0 = vld [vmem:[#allocation2 + $0x58] sm:$0xff] }
 0x1da   :  { %v721_v6 = vsel %vm714_vm1, %v5680_v21, %v13669_v49  ;;  %1630 = vmatpush.msrb.mxu3 %v7771_v19  ;;  %v6101_v47 = vpack.i.bf16 %v13671_v25, %v13670_v18  ;;  %v8568_v21 = vld [vmem:[#allocation2 + $0x8] sm:$0xff]  ;;  %13672 = vst [vmem:[#allocation111_spill] sm:$0xff] %v8570_v0  ;;  %v13180_v49 = vunpack.i.h.bf16 %v8505_v61  ;;  %v715_v19 = vsel %vm714_vm1, %v5664_v33, %v13178_v42  ;;  %v13696_v17 = vld [vmem:[#allocation30_spill] sm:$0xff] }
 0x1db   :  { %1515 = vmatpush.msra.mxu1 %v721_v6  ;;  %6127 = vrot.lane.b32.xlu0 %v8558_v22, %s7150_s19  ;;  %v1138_v6 = vsel %vm1131_vm15, %v5889_v32, %v13177_v1  ;;  %v13673_v33 = vunpack.i.l.bf16 %v8505_v61  ;;  %v8599_v1 = vld [vmem:[#allocation2 + $0xc0] sm:$0xff]  ;;  %v13680_v42 = vunpack.i.l.bf16 %v8511_v34  ;;  %v13699_v40 = vld [vmem:[#allocation26_spill] sm:$0xff] }
 0x1dc   :  { %6092 = vrot.lane.b32.xlu2 %v6091_v58, %s7150_s19  ;;  %1631 = vmatpush.msrb.mxu3 %v7748_v56  ;;  %v8581_v58 = vpop.permute.xlu0 %5917  ;;  %13675 = vst [vmem:[#allocation112_spill] sm:$0xff] %v8599_v1  ;;  %v13676_v56 = vunpack.i.h.bf16 %v8009_v43  ;;  %v13681_v43 = vunpack.i.h.bf16 %v8013_v53  ;;  %v13687_v53 = vunpack.i.h.bf16 %v8142_v60 }
 0x1dd   :  { %6102 = vrot.lane.b32.xlu1 %v6101_v47, %s7151_s3  ;;  %1516 = vmatpush.msra.mxu1 %v715_v19  ;;  %v8583_v26 = vpop.permute.xlu2 %5927  ;;  %v8585_v27 = vpop.permute.xlu1 %5892  ;;  %v13674_v47 = vunpack.i.h.bf16 %v7977_v9 }
 0x1de   :  { %1556 = vmatpush.msra.mxu2 %v1138_v6  ;;  %1517 = vmatmul.f32.vlgmr.msra.gmra.mxu1 %v8568_v21  ;;  %v13181_v19 = vunpack.i.h.bf16 %v8585_v27  ;;  %v5894_v6 = vunpack.i.l.bf16 %v8585_v27  ;;  %v1217_v39 = vsel %vm1131_vm15, %v13676_v56, %v13180_v49  ;;  %v1211_v56 = vsel %vm1131_vm15, %v13681_v43, %v13680_v42  ;;  %v13682_v49 = vld [vmem:[#allocation38_spill] sm:$0xff]  ;;  %v8647_v43 = vld [vmem:[#allocation2 + $0x28] sm:$0xff] }
 0x1df   :  { %5280 = vmatmul.msk.f32.gmra.mxu3 %vm1435_vm2, %v8570_v0  ;;  %v1223_v32 = vsel %vm1131_vm15, %v13674_v47, %v13673_v33  ;;  %v13677_v33 = vld [vmem:[#allocation44_spill] sm:$0xff]  ;;  %v13678_v47 = vunpack.i.h.bf16 %v7579_v16  ;;  %1494 = vmatmul.f32.gmra.mxu0 %v8599_v1  ;;  %v13683_v16 = vld [vmem:[#allocation43_spill] sm:$0xff]  ;;  %v13733_v1 = vld [vmem:[#allocation14_spill] sm:$0xff] }
 0x1e0   :  { %1632 = vmatpush.msrb.mxu3 %v7806_v45  ;;  %1706 = vmatpush.msrb.mxu1 %v1223_v32  ;;  %v1132_v9 = vsel %vm1131_vm15, %v5894_v6, %v13181_v19  ;;  %v8617_v32 = vld [vmem:[#allocation2 + $0x10] sm:$0xff]  ;;  %v6106_v6 = vpack.i.bf16 %v13670_v18, %v13682_v49 }
 0x1e1   :  { %v8614_v45 = vsel %vm369_vm8, %v13678_v47, %v13677_v33  ;;  %1557 = vmatpush.msra.mxu2 %v1132_v9  ;;  %v13684_v47 = vunpack.i.h.bf16 %v7508_v46  ;;  %v6116_v9 = vpack.i.bf16 %v8461_v44, %v13671_v25  ;;  %v13692_v19 = vld [vmem:[#allocation46_spill] sm:$0xff]  ;;  %v13693_v44 = vunpack.i.h.bf16 %v7571_v51 }
 0x1e2   :  { %13679 = vst [vmem:[#allocation44_spill] sm:$0xff] %v8614_v45  ;;  %1633 = vmatpush.msrb.mxu3 %v7813_v15  ;;  %1707 = vmatpush.msrb.mxu1 %v1217_v39  ;;  %v13686_v39 = vunpack.i.h.bf16 %v8511_v34  ;;  %v13758_v0 = vld [vmem:[#allocation66_spill] sm:$0xff] }
 0x1e3   :  { %v8631_v15 = vsel %vm342_vm9, %v13684_v47, %v13683_v16  ;;  %1558 = vmatmul.f32.vlgmr.msra.gmra.mxu2 %v8617_v32  ;;  %v13689_v47 = vld [vmem:[#allocation36_spill] sm:$0xff] }
 0x1e4   :  { %13685 = vst [vmem:[#allocation43_spill] sm:$0xff] %v8631_v15  ;;  %1634 = vmatpush.msrb.mxu3 %v7786_v54  ;;  %1708 = vmatpush.msrb.mxu1 %v1211_v56  ;;  %v1205_v42 = vsel %vm1131_vm15, %v13687_v53, %v13686_v39  ;;  %v8645_v46 = vpack.i.bf16 %v8631_v15, %v8614_v45  ;;  %v8649_v54 = vld [vmem:[#allocation2 + $0x78] sm:$0xff]  ;;  %v8651_v56 = vpop.permute.xlu0 %5932  ;;  %v8666_v53 = vld [vmem:[#allocation2 + $0xe0] sm:$0xff]  ;;  %v8681_v45 = vld [vmem:[#allocation2 + $0x30] sm:$0xff] }
 0x1e5   :  { %6107 = vrot.lane.b32.xlu2 %v6106_v6, %s7150_s19  ;;  %13688 = vst [vmem:[#allocation113_spill] sm:$0xff] %v8649_v54  ;;  %v8654_v60 = vpop.permute.xlu2 %5942  ;;  %v8656_v39 = vpop.permute.xlu1 %5907  ;;  %6117 = vrot.lane.b32.xlu1 %v6116_v9, %s7150_s19  ;;  %v13691_v9 = vunpack.i.l.bf16 %v8184_v48  ;;  %v8679_v15 = vsel %vm423_vm6, %v13693_v44, %v13692_v19  ;;  %v13703_v44 = vld [vmem:[#allocation42_spill] sm:$0xff] }
 0x1e6   :  { %1635 = vmatpush.msrb.mxu3 %v13689_v47  ;;  %1709 = vmatpush.msrb.mxu1 %v1205_v42  ;;  %v13186_v6 = vunpack.i.l.bf16 %v8656_v39  ;;  %13690 = vst [vmem:[#allocation36_spill] sm:$0xff] %v8666_v53  ;;  %v13697_v42 = vunpack.i.h.bf16 %v7557_v24  ;;  %v13700_v48 = vunpack.i.h.bf16 %v8656_v39  ;;  %v13706_v24 = vld [vmem:[#allocation39_spill] sm:$0xff] }
 0x1e7   :  { %6142 = vrot.lane.b32.xlu0 %v8645_v46, %s7149_s18  ;;  %1520 = vmatmul.f32.gmra.mxu1 %v8647_v43  ;;  %13694 = vst [vmem:[#allocation46_spill] sm:$0xff] %v8679_v15 }
 0x1e8   :  { %5281 = vmatmul.msk.f32.gmra.mxu3 %vm1435_vm2, %v8649_v54  ;;  %v788_v47 = vsel %vm714_vm1, %v13691_v9, %v13186_v6  ;;  %13695 = vst [vmem:[#allocation114_spill] sm:$0xff] %v8681_v45  ;;  %v13701_v9 = vld [vmem:[#allocation81_spill] sm:$0xff]  ;;  %1497 = vmatmul.f32.gmra.mxu0 %v8666_v53  ;;  %v13723_v53 = vunpack.i.h.bf16 %v13722_v7  ;;  %v13732_v7 = vld [vmem:[#allocation18_spill] sm:$0xff] }
 0x1e9   :  { %1636 = vmatpush.msrb.mxu3 %v7480_v12  ;;  %1668 = vmatpush.msrb.mxu0 %v788_v47  ;;  %v8687_v12 = vsel %vm315_vm10, %v13697_v42, %v13696_v17  ;;  %v13702_v6 = vunpack.i.l.bf16 %v13701_v9  ;;  %v13704_v47 = vunpack.i.h.bf16 %v7582_v14  ;;  %v13707_v42 = vunpack.i.h.bf16 %v7546_v4  ;;  %v13709_v9 = vld [vmem:[#allocation21_spill] sm:$0xff]  ;;  %13720 = vst [vmem:[#allocation39_spill] sm:$0xff] %v8759_v23 }
 0x1ea   :  { %13698 = vst [vmem:[#allocation30_spill] sm:$0xff] %v8687_v12 }
 0x1eb   :  { %1637 = vmatpush.msrb.mxu3 %v13699_v40  ;;  %v782_v51 = vsel %vm714_vm1, %v13702_v6, %v13700_v48  ;;  %v8700_v25 = vsel %vm396_vm7, %v13704_v47, %v13703_v44  ;;  %v8706_v40 = vsel %vm288_vm11, %v13707_v42, %v13706_v24  ;;  %1561 = vmatmul.f32.gmra.mxu2 %v8681_v45  ;;  %v13710_v48 = vunpack.i.l.bf16 %v8581_v58  ;;  %v8726_v42 = vld [vmem:[#allocation2 + $0x48] sm:$0xff] }
 0x1ec   :  { %13705 = vst [vmem:[#allocation26_spill] sm:$0xff] %v8700_v25  ;;  %1669 = vmatpush.msrb.mxu0 %v782_v51  ;;  %v6131_v6 = vpack.i.bf16 %v8700_v25, %v8679_v15  ;;  %v8713_v14 = vpop.permute.xlu0 %5947  ;;  %v13711_v51 = vunpack.i.l.bf16 %v8140_v28  ;;  %v8724_v47 = vpack.i.bf16 %v8706_v40, %v8687_v12  ;;  %v13715_v28 = vld [vmem:[#allocation93_spill] sm:$0xff]  ;;  %v13717_v15 = vld [vmem:[#allocation75_spill] sm:$0xff] }
 0x1ed   :  { %13708 = vst [vmem:[#allocation81_spill] sm:$0xff] %v8706_v40  ;;  %1638 = vmatpush.msrb.mxu3 %v13709_v9  ;;  %6122 = vrot.lane.b32.xlu2 %v8558_v22, %s7149_s18  ;;  %v8728_v9 = vld [vmem:[#allocation2 + $0x98] sm:$0xff]  ;;  %v8730_v18 = vpop.permute.xlu2 %5957  ;;  %v8732_v25 = vpop.permute.xlu1 %5922  ;;  %v13718_v49 = vunpack.i.h.bf16 %v13717_v15 }
 0x1ee   :  { %v776_v4 = vsel %vm714_vm1, %v13711_v51, %v13710_v48  ;;  %13712 = vst [vmem:[#allocation42_spill] sm:$0xff] %v8728_v9  ;;  %v6966_v48 = vld [vmem:[%s13023_s0 + $0x8] sm:$0xff]  ;;  %6132 = vrot.lane.b32.xlu1 %v6131_v6, %s7149_s18  ;;  %v13199_v22 = vunpack.i.l.bf16 %v8732_v25  ;;  %v13713_v51 = vld [vmem:[#allocation50_spill] sm:$0xff] }
 0x1ef   :  { %1670 = vmatpush.msrb.mxu0 %v776_v4  ;;  %1639 = vmatpush.msrb.mxu3 %v6966_v48  ;;  %v13714_v4 = vunpack.i.h.bf16 %v8581_v58  ;;  %v13716_v48 = vunpack.i.l.bf16 %v13715_v28  ;;  %v13719_v40 = vld [vmem:[#allocation54_spill] sm:$0xff]  ;;  %v8765_v28 = vsel %vm207_vm14, %v13723_v53, %v13721_v5  ;;  %v13734_v53 = vunpack.i.h.bf16 %v13733_v1 }
 0x1f0   :  { %6157 = vrot.lane.b32.xlu0 %v8724_v47, %s7150_s19  ;;  %1523 = vmatmul.f32.gmra.mxu1 %v8726_v42  ;;  %v1199_v13 = vsel %vm1131_vm15, %v13718_v49, %v13199_v22  ;;  %13724 = vst [vmem:[#allocation21_spill] sm:$0xff] %v8765_v28  ;;  %v13728_v49 = vld [vmem:[#allocation61_spill] sm:$0xff]  ;;  %v13737_v1 = vunpack.i.h.bf16 %v8583_v26 }
 0x1f1   :  { %1788 = vmatpush.msra.mxu3 %v13713_v51  ;;  %v770_v12 = vsel %vm714_vm1, %v13716_v48, %v13714_v4  ;;  %v13725_v4 = vunpack.i.l.bf16 %v8583_v26  ;;  %v13726_v48 = vld [vmem:[#allocation87_spill] sm:$0xff]  ;;  %1710 = vmatpush.msrb.mxu1 %v1199_v13  ;;  %v8782_v54 = vsel %vm180_vm3, %v13734_v53, %v13732_v7 }
 0x1f2   :  { %5282 = vmatmul.msk.f32.gmra.mxu3 %vm1435_vm2, %v8728_v9  ;;  %1671 = vmatpush.msrb.mxu0 %v770_v12  ;;  %v13727_v9 = vunpack.i.l.bf16 %v13726_v48  ;;  %v13729_v12 = vunpack.i.h.bf16 %v8732_v25  ;;  %13735 = vst [vmem:[#allocation50_spill] sm:$0xff] %v8782_v54  ;;  %v13205_v48 = vunpack.i.l.bf16 %v8651_v56 }
 0x1f3   :  { %1789 = vmatpush.msra.mxu3 %v13719_v40  ;;  %v13730_v40 = vld [vmem:[#allocation76_spill] sm:$0xff]  ;;  %1564 = vmatmul.f32.gmra.mxu2 %v8759_v23 }
 0x1f4   :  { %v764_v15 = vsel %vm714_vm1, %v13727_v9, %v13725_v4  ;;  %v13731_v22 = vunpack.i.h.bf16 %v13730_v40  ;;  %v8786_v13 = vpop.permute.xlu0 %5962  ;;  %v13736_v9 = vld [vmem:[#allocation59_spill] sm:$0xff]  ;;  %v13738_v4 = vunpack.i.l.bf16 %v8230_v55  ;;  %v13740_v55 = vld [vmem:[#allocation62_spill] sm:$0xff] }
 0x1f5   :  { %1790 = vmatpush.msra.mxu3 %v13728_v49  ;;  %1672 = vmatpush.msrb.mxu0 %v764_v15  ;;  %v8799_v49 = vld [vmem:[#allocation2 + $0x68] sm:$0xff]  ;;  %v8805_v40 = vpop.permute.xlu1 %5937 }
 0x1f6   :  { %v1193_v51 = vsel %vm1131_vm15, %v13731_v22, %v13729_v12  ;;  %6137 = vrot.lane.b32.xlu2 %v6131_v6, %s7150_s19  ;;  %v8792_v22 = vpack.i.bf16 %v8782_v54, %v8765_v28  ;;  %v758_v15 = vsel %vm714_vm1, %v13738_v4, %v13737_v1  ;;  %v8801_v12 = vld [vmem:[#allocation2 + $0xb8] sm:$0xff]  ;;  %6147 = vrot.lane.b32.xlu1 %v8645_v46, %s7150_s19  ;;  %v13207_v53 = vunpack.i.l.bf16 %v8805_v40  ;;  %v13741_v46 = vld [vmem:[#allocation88_spill] sm:$0xff] }
 0x1f7   :  { %1711 = vmatpush.msrb.mxu1 %v1193_v51  ;;  %1791 = vmatpush.msra.mxu3 %v13736_v9  ;;  %13739 = vst [vmem:[#allocation93_spill] sm:$0xff] %v8801_v12  ;;  %v8803_v51 = vpop.permute.xlu2 %5972  ;;  %v13742_v4 = vunpack.i.h.bf16 %v13741_v46  ;;  %v13743_v6 = vunpack.i.l.bf16 %v8397_v38  ;;  %v13744_v9 = vld [vmem:[#allocation34_spill] sm:$0xff]  ;;  %v13745_v1 = vunpack.i.h.bf16 %v13585_v63  ;;  %v13747_v28 = vld [vmem:[#allocation56_spill] sm:$0xff]  ;;  %v13753_v63 = vunpack.i.h.bf16 %v13586_v20 }
 0x1f8   :  { %1673 = vmatpush.msrb.mxu0 %v758_v15  ;;  %6172 = vrot.lane.b32.xlu0 %v8792_v22, %s7149_s18 }
 0x1f9   :  { %1792 = vmatpush.msra.mxu3 %v13740_v55  ;;  %1526 = vmatmul.f32.gmra.mxu1 %v8799_v49  ;;  %v1187_v15 = vsel %vm1131_vm15, %v13742_v4, %v13205_v48  ;;  %v752_v55 = vsel %vm714_vm1, %v13743_v6, %v13207_v53  ;;  %v8833_v54 = vsel %vm261_vm12, %v13745_v1, %v13744_v9  ;;  %v13749_v4 = vunpack.i.h.bf16 %v8651_v56  ;;  %v13750_v48 = vld [vmem:[#allocation17_spill] sm:$0xff]  ;;  %v13752_v6 = vld [vmem:[#allocation16_spill] sm:$0xff] }
 0x1fa   :  { %5283 = vmatmul.msk.f32.gmra.mxu3 %vm1435_vm2, %v8801_v12  ;;  %13746 = vst [vmem:[#allocation75_spill] sm:$0xff] %v8833_v54  ;;  %1712 = vmatpush.msrb.mxu1 %v1187_v15  ;;  %v8836_v12 = vld [vmem:[#allocation2 + $0x70] sm:$0xff]  ;;  %v13751_v41 = vunpack.i.h.bf16 %v13750_v48  ;;  %v8848_v1 = vsel %vm234_vm13, %v13753_v63, %v13752_v6  ;;  %v13757_v53 = vunpack.i.l.bf16 %v8443_v11 }
 0x1fb   :  { %1793 = vmatpush.msra.mxu3 %v13747_v28  ;;  %13748 = vst [vmem:[#allocation54_spill] sm:$0xff] %v8836_v12  ;;  %1674 = vmatpush.msrb.mxu0 %v752_v55  ;;  %v13755_v15 = vld [vmem:[#allocation57_spill] sm:$0xff]  ;;  %v13756_v28 = vunpack.i.h.bf16 %v8805_v40 }
 0x1fc   :  { %v1181_v38 = vsel %vm1131_vm15, %v13751_v41, %v13749_v4  ;;  %13754 = vst [vmem:[#allocation19_spill] sm:$0xff] %v8848_v1  ;;  %v13759_v41 = vunpack.i.l.bf16 %v8654_v60  ;;  %v13760_v55 = vld [vmem:[#allocation25_spill] sm:$0xff]  ;;  %1567 = vmatmul.f32.gmra.mxu2 %v8836_v12  ;;  %v8865_v63 = vpop.permute.xlu0 %5977 }
 0x1fd   :  { %1713 = vmatpush.msrb.mxu1 %v1181_v38  ;;  %1794 = vmatpush.msra.mxu3 %v13755_v15  ;;  %v746_v46 = vsel %vm714_vm1, %v13757_v53, %v13756_v28  ;;  %v13761_v4 = vunpack.i.h.bf16 %v13760_v55  ;;  %v6161_v38 = vpack.i.bf16 %v8848_v1, %v8833_v54  ;;  %v13762_v53 = vld [vmem:[#allocation60_spill] sm:$0xff]  ;;  %v8879_v1 = vpop.permute.xlu1 %5952  ;;  %v8921_v12 = vld [vmem:[#allocation2 + $0x90] sm:$0xff] }
 0x1fe   :  { %1675 = vmatpush.msrb.mxu0 %v746_v46  ;;  %v6967_v28 = vld [vmem:[%s13023_s0 + $0x28] sm:$0xff]  ;;  %6152 = vrot.lane.b32.xlu2 %v8724_v47, %s7149_s18  ;;  %v5954_v54 = vunpack.i.l.bf16 %v8879_v1  ;;  %v13770_v47 = vunpack.i.l.bf16 %v13758_v0  ;;  %v13777_v0 = vld [vmem:[#allocation55_spill] sm:$0xff] }
 0x1ff   :  { %v1175_v20 = vsel %vm1131_vm15, %v13761_v4, %v13759_v41  ;;  %1795 = vmatpush.msra.mxu3 %v13762_v53  ;;  %v13763_v55 = vld [vmem:[#allocation28_spill] sm:$0xff]  ;;  %v8877_v4 = vpop.permute.xlu2 %5987  ;;  %6162 = vrot.lane.b32.xlu1 %v6161_v38, %s7149_s18  ;;  %v13766_v53 = vld [vmem:[#allocation99_spill] sm:$0xff] }
 0x200   :  { %1714 = vmatpush.msrb.mxu1 %v1175_v20  ;;  %v8873_v48 = vpack.i.bf16 %v6967_v28, %v13763_v55  ;;  %v8875_v41 = vld [vmem:[#allocation2 + $0x88] sm:$0xff]  ;;  %v13765_v20 = vunpack.i.h.bf16 %v8654_v60  ;;  %v13767_v15 = vunpack.i.h.bf16 %v13766_v53  ;;  %v8890_v55 = vld [vmem:[#allocation2 + $0xd8] sm:$0xff]  ;;  %v13771_v53 = vunpack.i.h.bf16 %v7953_v29 }
 0x201   :  { %13764 = vst [vmem:[#allocation20_spill] sm:$0xff] %v8875_v41  ;;  %v13769_v46 = vld [vmem:[#allocation68_spill] sm:$0xff]  ;;  %1529 = vmatmul.f32.gmra.mxu1 %v8875_v41 }
 0x202   :  { %v1169_v28 = vsel %vm1131_vm15, %v13767_v15, %v13765_v20  ;;  %13768 = vst [vmem:[#allocation87_spill] sm:$0xff] %v8890_v55  ;;  %6187 = vrot.lane.b32.xlu0 %v8873_v48, %s7151_s3  ;;  %1796 = vmatpush.msra.mxu3 %v13769_v46  ;;  %v740_v15 = vsel %vm714_vm1, %v13771_v53, %v13770_v47  ;;  %v13772_v20 = vld [vmem:[#allocation97_spill] sm:$0xff]  ;;  %v13774_v46 = vunpack.i.l.bf16 %v8713_v14  ;;  %v13778_v47 = vld [vmem:[#allocation67_spill] sm:$0xff]  ;;  %v13779_v53 = vunpack.i.h.bf16 %v7903_v31  ;;  %v13784_v29 = vld [vmem:[#allocation64_spill] sm:$0xff] }
 0x203   :  { %1715 = vmatpush.msrb.mxu1 %v1169_v28  ;;  %v13773_v23 = vunpack.i.h.bf16 %v13772_v20  ;;  %5284 = vmatmul.msk.f32.gmra.mxu3 %vm1435_vm2, %v8890_v55  ;;  %v13775_v28 = vld [vmem:[#allocation91_spill] sm:$0xff]  ;;  %v13782_v55 = vld [vmem:[#allocation92_spill] sm:$0xff] }
 0x204   :  { %1676 = vmatpush.msrb.mxu0 %v740_v15  ;;  %v13776_v41 = vunpack.i.h.bf16 %v13775_v28  ;;  %1797 = vmatpush.msra.mxu3 %v13778_v47  ;;  %v13781_v28 = vunpack.i.h.bf16 %v8713_v14  ;;  %v8937_v15 = vpop.permute.xlu0 %5992  ;;  %v8978_v47 = vld [vmem:[#allocation2 + $0xf8] sm:$0xff] }
 0x205   :  { %v1380_v8 = vsel %vm1366_vm0, %v13773_v23, %v5954_v54  ;;  %v13780_v23 = vunpack.i.l.bf16 %v7903_v31  ;;  %1570 = vmatmul.f32.gmra.mxu2 %v8921_v12 }
 0x206   :  { %v1163_v45 = vsel %vm1131_vm15, %v13776_v41, %v13774_v46  ;;  %v13783_v41 = vunpack.i.h.bf16 %v13782_v55  ;;  %1760 = vmatpush.msrb.mxu2 %v1380_v8  ;;  %1798 = vmatpush.msra.mxu3 %v13784_v29  ;;  %v13787_v55 = vunpack.i.l.bf16 %v8730_v18  ;;  %v8947_v29 = vpop.permute.xlu1 %5967 }
 0x207   :  { %1716 = vmatpush.msrb.mxu1 %v1163_v45  ;;  %v734_v20 = vsel %vm714_vm1, %v13780_v23, %v13779_v53  ;;  %v13219_v45 = vunpack.i.h.bf16 %v8730_v18  ;;  %v13785_v53 = vunpack.i.l.bf16 %v13777_v0  ;;  %v13786_v23 = vunpack.i.h.bf16 %v7942_v37  ;;  %6167 = vrot.lane.b32.xlu2 %v6161_v38, %s7150_s19 }
 0x208   :  { %1677 = vmatpush.msrb.mxu0 %v734_v20  ;;  %v1157_v46 = vsel %vm1131_vm15, %v13783_v41, %v13781_v28  ;;  %v13788_v28 = vld [vmem:[#allocation98_spill] sm:$0xff]  ;;  %v8951_v37 = vpack.i.bf16 %v7815_v50, %v7797_v2  ;;  %6177 = vrot.lane.b32.xlu1 %v8792_v22, %s7150_s19  ;;  %v8964_v2 = vld [vmem:[#allocation2 + $0xa8] sm:$0xff]  ;;  %v13794_v50 = vunpack.i.h.bf16 %v8513_v36  ;;  %v13795_v22 = vunpack.i.h.bf16 %v8879_v1 }
 0x209   :  { %1717 = vmatpush.msrb.mxu1 %v1157_v46  ;;  %v728_v20 = vsel %vm714_vm1, %v13786_v23, %v13785_v53  ;;  %v13789_v8 = vunpack.i.h.bf16 %v13788_v28  ;;  %v8945_v46 = vpop.permute.xlu2 %6002  ;;  %v13790_v53 = vld [vmem:[#allocation52_spill] sm:$0xff]  ;;  %v13793_v28 = vunpack.i.l.bf16 %v7887_v57  ;;  %v13797_v23 = vld [vmem:[#allocation31_spill] sm:$0xff] }
 0x20a   :  { %1678 = vmatpush.msrb.mxu0 %v728_v20  ;;  %v13791_v20 = vld [vmem:[#allocation40_spill] sm:$0xff]  ;;  %6202 = vrot.lane.b32.xlu0 %v8951_v37, %s7150_s19  ;;  %v1145_v38 = vsel %vm1131_vm15, %v13794_v50, %v13219_v45  ;;  %v13798_v36 = vunpack.i.l.bf16 %v13790_v53 }
 0x20b   :  { %v1151_v41 = vsel %vm1131_vm15, %v13789_v8, %v13787_v55  ;;  %1799 = vmatpush.msra.mxu3 %v13791_v20  ;;  %v13792_v55 = vunpack.i.h.bf16 %v7887_v57  ;;  %1532 = vmatmul.f32.gmra.mxu1 %v8964_v2 }
 0x20c   :  { %1718 = vmatpush.msrb.mxu1 %v1151_v41  ;;  %v13796_v41 = vunpack.i.h.bf16 %v8386_v59  ;;  %v13799_v59 = vunpack.i.h.bf16 %v7821_v30  ;;  %5285 = vmatmul.msk.f32.gmra.mxu3 %vm1435_vm2, %v8978_v47  ;;  %v9009_v45 = vpop.permute.xlu0 %6007 }
 0x20d   :  { %v722_v8 = vsel %vm714_vm1, %v13793_v28, %v13792_v55  ;;  %v13221_v55 = vunpack.i.l.bf16 %v8947_v29  ;;  %v13232_v28 = vunpack.i.l.bf16 %v8803_v51  ;;  %1800 = vmatpush.msra.mxu3 %v13797_v23 }
 0x20e   :  { %1679 = vmatpush.msrb.mxu0 %v722_v8  ;;  %v1374_v20 = vsel %vm1366_vm0, %v13796_v41, %v13795_v22  ;;  %1719 = vmatpush.msrb.mxu1 %v1145_v38  ;;  %v13220_v8 = vunpack.i.h.bf16 %v8786_v13  ;;  %v716_v50 = vsel %vm714_vm1, %v13799_v59, %v13798_v36  ;;  %v13225_v22 = vunpack.i.h.bf16 %v8803_v51 }
 0x20f   :  { %1761 = vmatpush.msrb.mxu2 %v1374_v20  ;;  %v13800_v38 = vunpack.i.l.bf16 %v8786_v13  ;;  %v13801_v41 = vunpack.i.h.bf16 %v8395_v62  ;;  %v13802_v20 = vld [vmem:[#allocation29_spill] sm:$0xff]  ;;  %v13803_v36 = vunpack.i.h.bf16 %v8438_v35  ;;  %v13222_v62 = vunpack.i.h.bf16 %v8947_v29  ;;  %v9020_v35 = vpop.permute.xlu1 %5982 }
 0x210   :  { %1680 = vmatpush.msrb.mxu0 %v716_v50  ;;  %1801 = vmatpush.msra.mxu3 %v13802_v20  ;;  %v1381_v30 = vsel %vm1366_vm0, %v5954_v54, %v13220_v8  ;;  %v9007_v50 = vld [vmem:[#allocation2 + $0xb0] sm:$0xff]  ;;  %v13806_v20 = vld [vmem:[#allocation35_spill] sm:$0xff]  ;;  %v9027_v8 = vpack.i.bf16 %v13683_v16, %v13677_v33  ;;  %v13226_v33 = vunpack.i.h.bf16 %v8865_v63  ;;  %v13808_v16 = vunpack.i.h.bf16 %v8585_v27 }
 0x211   :  { %v1368_v23 = vsel %vm1366_vm0, %v13801_v41, %v13800_v38  ;;  %v1139_v59 = vsel %vm1131_vm15, %v13803_v36, %v13221_v55  ;;  %1681 = vmatmul.f32.vlgmr.msrb.gmra.mxu0 %v8568_v21  ;;  %v13804_v38 = vunpack.i.h.bf16 %v8443_v11  ;;  %v9018_v41 = vpop.permute.xlu2 %6017  ;;  %v6181_v36 = vpack.i.bf16 %v13650_v10, %v13806_v20  ;;  %1573 = vmatmul.f32.gmra.mxu2 %v9007_v50 }
 0x212   :  { %1762 = vmatpush.msrb.mxu2 %v1368_v23  ;;  %v13805_v23 = vld [vmem:[#allocation22_spill] sm:$0xff]  ;;  %v13223_v55 = vunpack.i.l.bf16 %v8865_v63  ;;  %v13807_v11 = vunpack.i.l.bf16 %v8441_v3  ;;  %1720 = vmatpush.msrb.mxu1 %v1139_v59  ;;  %v1133_v59 = vsel %vm1131_vm15, %v13808_v16, %v13222_v62  ;;  %v13812_v16 = vunpack.i.h.bf16 %v8441_v3 }
 0x213   :  { %v807_v54 = vsel %vm714_vm1, %v13804_v38, %v13232_v28  ;;  %1802 = vmatpush.msra.mxu3 %v13805_v23  ;;  %6182 = vrot.lane.b32.xlu2 %v6181_v36, %s7150_s19  ;;  %v9037_v38 = vld [vmem:[#allocation2 + $0xc8] sm:$0xff]  ;;  %v6968_v23 = vld [vmem:[%s13023_s0 + $0x10] sm:$0xff]  ;;  %v13228_v36 = vunpack.i.l.bf16 %v8877_v4  ;;  %v13231_v3 = vunpack.i.h.bf16 %v9020_v35 }
 0x214   :  { %1924 = vmatpush.msra.mxu2 %v1381_v30  ;;  %1829 = vmatpush.msra.mxu0 %v807_v54  ;;  %v801_v30 = vsel %vm714_vm1, %v13807_v11, %v13225_v22  ;;  %v13224_v54 = vunpack.i.l.bf16 %v9020_v35  ;;  %v13810_v11 = vunpack.i.l.bf16 %v8505_v61  ;;  %v9069_v62 = vpop.permute.xlu0 %6022  ;;  %v13815_v22 = vunpack.i.l.bf16 %v8511_v34 }
 0x215   :  { %6192 = vrot.lane.b32.xlu1 %v8873_v48, %s7150_s19  ;;  %6217 = vrot.lane.b32.xlu0 %v9027_v8, %s7149_s18  ;;  %v13809_v48 = vld [vmem:[#allocation85_spill] sm:$0xff] }
 0x216   :  { %1830 = vmatpush.msra.mxu0 %v801_v30  ;;  %1721 = vmatpush.msrb.mxu1 %v1133_v59  ;;  %v1224_v27 = vsel %vm1131_vm15, %v13810_v11, %v13223_v55  ;;  %v13811_v30 = vld [vmem:[#allocation70_spill] sm:$0xff]  ;;  %v795_v59 = vsel %vm714_vm1, %v13812_v16, %v13224_v54  ;;  %v13813_v11 = vunpack.i.h.bf16 %v8505_v61  ;;  %v13814_v16 = vld [vmem:[#allocation71_spill] sm:$0xff]  ;;  %v6206_v54 = vpack.i.bf16 %v13703_v44, %v13692_v19 }
 0x217   :  { %1803 = vmatpush.msra.mxu3 %v6968_v23  ;;  %1535 = vmatmul.f32.gmra.mxu1 %v9037_v38  ;;  %v9067_v23 = vld [vmem:[#allocation2 + $0xd0] sm:$0xff]  ;;  %v9080_v55 = vpop.permute.xlu1 %5997  ;;  %v1212_v61 = vsel %vm1131_vm15, %v13815_v22, %v13228_v36  ;;  %v13817_v19 = vunpack.i.h.bf16 %v8511_v34  ;;  %v9107_v22 = vld [vmem:[#allocation2 + $0xe8] sm:$0xff] }
 0x218   :  { %1640 = vmatmul.f32.vlgmr.msrb.gmra.mxu3 %v13809_v48  ;;  %1870 = vmatpush.msra.mxu1 %v1224_v27  ;;  %v13227_v48 = vunpack.i.h.bf16 %v8877_v4  ;;  %v1218_v27 = vsel %vm1131_vm15, %v13813_v11, %v13226_v33  ;;  %v13229_v11 = vunpack.i.l.bf16 %v9080_v55  ;;  %v13230_v33 = vunpack.i.l.bf16 %v8937_v15  ;;  %v9135_v36 = vld [vmem:[#allocation2 + $0xf0] sm:$0xff] }
 0x219   :  { %1952 = vmatpush.msrb.mxu3 %v13811_v30  ;;  %1684 = vmatmul.f32.gmra.mxu0 %v8647_v43  ;;  %v9078_v30 = vpop.permute.xlu2 %6032 }
 0x21a   :  { %1871 = vmatpush.msra.mxu1 %v1218_v27  ;;  %1831 = vmatpush.msra.mxu0 %v795_v59  ;;  %v13816_v27 = vld [vmem:[#allocation77_spill] sm:$0xff]  ;;  %v1206_v44 = vsel %vm1131_vm15, %v13817_v19, %v13227_v48  ;;  %v5995_v59 = vunpack.i.h.bf16 %v8937_v15  ;;  %v6004_v19 = vunpack.i.l.bf16 %v8945_v46 }
 0x21b   :  { %1953 = vmatpush.msrb.mxu3 %v13814_v16  ;;  %1576 = vmatmul.f32.gmra.mxu2 %v9067_v23  ;;  %v9097_v16 = vpack.i.bf16 %v13706_v24, %v13696_v17  ;;  %v13819_v17 = vunpack.i.l.bf16 %v8656_v39  ;;  %v13244_v24 = vunpack.i.h.bf16 %v9080_v55  ;;  %v13823_v48 = vld [vmem:[#allocation73_spill] sm:$0xff] }
 0x21c   :  { %1872 = vmatpush.msra.mxu1 %v1212_v61  ;;  %6197 = vrot.lane.b32.xlu2 %v8951_v37, %s7149_s18  ;;  %v13818_v61 = vld [vmem:[#allocation79_spill] sm:$0xff]  ;;  %v13820_v37 = vunpack.i.l.bf16 %v8732_v25 }
 0x21d   :  { %1954 = vmatpush.msrb.mxu3 %v13816_v27  ;;  %6207 = vrot.lane.b32.xlu1 %v6206_v54, %s7149_s18  ;;  %v789_v34 = vsel %vm714_vm1, %v13819_v17, %v13231_v3  ;;  %v13827_v3 = vunpack.i.h.bf16 %v8581_v58 }
 0x21e   :  { %1873 = vmatpush.msra.mxu1 %v1206_v44  ;;  %6232 = vrot.lane.b32.xlu0 %v9097_v16, %s7150_s19  ;;  %v1200_v27 = vsel %vm1131_vm15, %v13820_v37, %v13229_v11  ;;  %v13821_v44 = vld [vmem:[#allocation89_spill] sm:$0xff] }
 0x21f   :  { %1955 = vmatpush.msrb.mxu3 %v13818_v61  ;;  %1832 = vmatpush.msra.mxu0 %v789_v34  ;;  %v13822_v61 = vunpack.i.h.bf16 %v8656_v39  ;;  %v9132_v34 = vpop.permute.xlu0 %6037  ;;  %v9139_v11 = vpop.permute.xlu1 %6012  ;;  %v771_v28 = vsel %vm714_vm1, %v13827_v3, %v6004_v19  ;;  %v13829_v3 = vld [vmem:[#allocation80_spill] sm:$0xff] }
 0x220   :  { %1538 = vmatmul.f32.gmra.mxu1 %v9107_v22  ;;  %1643 = vmatmul.f32.gmra.mxu3 %v13821_v44  ;;  %v13824_v44 = vunpack.i.l.bf16 %v8581_v58  ;;  %v13236_v58 = vunpack.i.h.bf16 %v9009_v45 }
 0x221   :  { %v783_v17 = vsel %vm714_vm1, %v13822_v61, %v13230_v33  ;;  %1956 = vmatpush.msrb.mxu3 %v13823_v48  ;;  %v9137_v37 = vpop.permute.xlu2 %6047  ;;  %1687 = vmatmul.f32.gmra.mxu0 %v8726_v42  ;;  %v13242_v61 = vunpack.i.h.bf16 %v8945_v46  ;;  %v13825_v33 = vld [vmem:[#allocation74_spill] sm:$0xff]  ;;  %v13826_v48 = vunpack.i.h.bf16 %v8732_v25 }
 0x222   :  { %1833 = vmatpush.msra.mxu0 %v783_v17  ;;  %v777_v39 = vsel %vm714_vm1, %v13824_v44, %v5995_v59  ;;  %1874 = vmatpush.msra.mxu1 %v1200_v27  ;;  %v13233_v27 = vunpack.i.l.bf16 %v9139_v11  ;;  %v13239_v44 = vunpack.i.l.bf16 %v9009_v45  ;;  %v13828_v25 = vld [vmem:[#allocation78_spill] sm:$0xff] }
 0x223   :  { %1957 = vmatpush.msrb.mxu3 %v13825_v33  ;;  %v1194_v17 = vsel %vm1131_vm15, %v13826_v48, %v13244_v24  ;;  %1579 = vmatmul.f32.gmra.mxu2 %v9135_v36  ;;  %v9163_v33 = vpack.i.bf16 %v13732_v7, %v13721_v5  ;;  %v13830_v5 = vunpack.i.l.bf16 %v8583_v26 }
 0x224   :  { %1834 = vmatpush.msra.mxu0 %v777_v39  ;;  %1875 = vmatpush.msra.mxu1 %v1194_v17  ;;  %v13234_v39 = vunpack.i.l.bf16 %v9132_v34  ;;  %v13235_v17 = vunpack.i.l.bf16 %v9018_v41 }
 0x225   :  { %1958 = vmatpush.msrb.mxu3 %v13828_v25  ;;  %6212 = vrot.lane.b32.xlu2 %v6206_v54, %s7150_s19  ;;  %v765_v7 = vsel %vm714_vm1, %v13830_v5, %v13242_v61  ;;  %v13833_v25 = vld [vmem:[#allocation84_spill] sm:$0xff]  ;;  %v13855_v61 = vld [vmem:[#allocation27_spill] sm:$0xff] }
 0x226   :  { %1835 = vmatpush.msra.mxu0 %v771_v28  ;;  %6222 = vrot.lane.b32.xlu1 %v9027_v8, %s7150_s19  ;;  %v13831_v28 = vld [vmem:[#allocation96_spill] sm:$0xff]  ;;  %v13832_v8 = vunpack.i.h.bf16 %v8583_v26  ;;  %v13835_v26 = vunpack.i.h.bf16 %v8879_v1  ;;  %v13237_v1 = vunpack.i.h.bf16 %v9018_v41 }
 0x227   :  { %1959 = vmatpush.msrb.mxu3 %v13829_v3  ;;  %6247 = vrot.lane.b32.xlu0 %v9163_v33, %s7149_s18  ;;  %v9186_v48 = vpop.permute.xlu0 %6052  ;;  %v13834_v3 = vunpack.i.l.bf16 %v8651_v56 }
 0x228   :  { %1836 = vmatpush.msra.mxu0 %v765_v7  ;;  %1646 = vmatmul.f32.gmra.mxu3 %v13831_v28  ;;  %v759_v54 = vsel %vm714_vm1, %v13832_v8, %v13233_v27  ;;  %v1375_v7 = vsel %vm1366_vm0, %v13835_v26, %v13234_v39  ;;  %v9203_v8 = vpop.permute.xlu1 %6027  ;;  %v13240_v26 = vunpack.i.h.bf16 %v9132_v34  ;;  %v13838_v39 = vld [vmem:[#allocation83_spill] sm:$0xff] }
 0x229   :  { %1722 = vmatmul.f32.vlgmr.msrb.gmra.mxu1 %v8617_v32  ;;  %1960 = vmatpush.msrb.mxu3 %v13833_v25  ;;  %v1188_v5 = vsel %vm1131_vm15, %v13834_v3, %v13239_v44  ;;  %v9201_v28 = vpop.permute.xlu2 %6062  ;;  %v13238_v32 = vunpack.i.h.bf16 %v9139_v11  ;;  %v13836_v25 = vld [vmem:[#allocation86_spill] sm:$0xff]  ;;  %v13837_v3 = vunpack.i.h.bf16 %v8651_v56 }
 0x22a   :  { %1876 = vmatpush.msra.mxu1 %v1188_v5  ;;  %1690 = vmatmul.f32.gmra.mxu0 %v8799_v49  ;;  %v6236_v5 = vpack.i.bf16 %v13752_v6, %v13744_v9  ;;  %v13840_v9 = vld [vmem:[#allocation12_spill] sm:$0xff]  ;;  %v13841_v6 = vld [vmem:[#allocation15_spill] sm:$0xff]  ;;  %v13850_v44 = vld [vmem:[#allocation114_spill] sm:$0xff] }
 0x22b   :  { %1961 = vmatpush.msrb.mxu3 %v13836_v25  ;;  %v1182_v27 = vsel %vm1131_vm15, %v13837_v3, %v13236_v58  ;;  %1837 = vmatpush.msra.mxu0 %v759_v54  ;;  %v13839_v25 = vunpack.i.l.bf16 %v8654_v60  ;;  %v13241_v54 = vunpack.i.l.bf16 %v9203_v8  ;;  %v13243_v3 = vunpack.i.l.bf16 %v9069_v62 }
 0x22c   :  { %1877 = vmatpush.msra.mxu1 %v1182_v27  ;;  %1925 = vmatpush.msra.mxu2 %v1375_v7  ;;  %v6261_v27 = vpack.i.bf16 %v13841_v6, %v13840_v9  ;;  %v13843_v7 = vunpack.i.l.bf16 %v8805_v40  ;;  %v13846_v9 = vunpack.i.l.bf16 %v8786_v13 }
 0x22d   :  { %1962 = vmatpush.msrb.mxu3 %v13838_v39  ;;  %v1176_v56 = vsel %vm1131_vm15, %v13839_v25, %v13235_v17  ;;  %5286 = vmatmul.msk.f32.vlgmr.msrb.gmra.mxu2 %vm1435_vm2, %v8428_v52  ;;  %v13842_v39 = vld [vmem:[#allocation41_spill] sm:$0xff]  ;;  %v13844_v25 = vld [vmem:[#allocation66_spill] sm:$0xff] }
 0x22e   :  { %1878 = vmatpush.msra.mxu1 %v1176_v56  ;;  %6227 = vrot.lane.b32.xlu2 %v9097_v16, %s7149_s18  ;;  %v753_v52 = vsel %vm714_vm1, %v13843_v7, %v13238_v32  ;;  %v5740_v17 = vunpack.i.h.bf16 %v13844_v25  ;;  %v13845_v16 = vunpack.i.h.bf16 %v8654_v60  ;;  %v13849_v32 = vld [vmem:[#allocation102_spill] sm:$0xff] }
 0x22f   :  { %1963 = vmatpush.msrb.mxu3 %v13842_v39  ;;  %6237 = vrot.lane.b32.xlu1 %v6236_v5, %s7149_s18  ;;  %v1369_v39 = vsel %vm1366_vm0, %v13846_v9, %v13240_v26  ;;  %v9250_v58 = vpop.permute.xlu0 %6067  ;;  %v13246_v26 = vunpack.i.h.bf16 %v13777_v0 }
 0x230   :  { %6262 = vrot.lane.b32.xlu0 %v6261_v27, %s7150_s19  ;;  %1838 = vmatpush.msra.mxu0 %v753_v52  ;;  %v1170_v56 = vsel %vm1131_vm15, %v13845_v16, %v13237_v1  ;;  %v13847_v27 = vunpack.i.l.bf16 %v8713_v14  ;;  %v9259_v60 = vpop.permute.xlu1 %6042  ;;  %v13848_v16 = vld [vmem:[#allocation63_spill] sm:$0xff] }
 0x231   :  { %1879 = vmatpush.msra.mxu1 %v1170_v56  ;;  %1926 = vmatpush.msra.mxu2 %v1369_v39  ;;  %v9257_v52 = vpop.permute.xlu2 %6077  ;;  %v13247_v1 = vunpack.i.l.bf16 %v13848_v16  ;;  %v13851_v56 = vunpack.i.h.bf16 %v8805_v40  ;;  %v13852_v39 = vld [vmem:[#allocation37_spill] sm:$0xff]  ;;  %v13250_v40 = vunpack.i.l.bf16 %v9078_v30 }
 0x232   :  { %v1164_v7 = vsel %vm1131_vm15, %v13847_v27, %v13241_v54  ;;  %1649 = vmatmul.f32.gmra.mxu3 %v13849_v32  ;;  %1725 = vmatmul.f32.gmra.mxu1 %v13850_v44  ;;  %v13245_v27 = vunpack.i.h.bf16 %v9203_v8  ;;  %v13853_v54 = vld [vmem:[#allocation20_spill] sm:$0xff]  ;;  %v13854_v32 = vunpack.i.l.bf16 %v13844_v25  ;;  %v13906_v25 = vunpack.i.l.bf16 %v13848_v16 }
 0x233   :  { %v747_v9 = vsel %vm714_vm1, %v13851_v56, %v13243_v3  ;;  %1964 = vmatpush.msrb.mxu3 %v13852_v39  ;;  %1693 = vmatmul.f32.gmra.mxu0 %v13853_v54  ;;  %v13856_v56 = vunpack.i.h.bf16 %v7903_v31  ;;  %v13857_v39 = vld [vmem:[#allocation107_spill] sm:$0xff]  ;;  %v13249_v31 = vunpack.i.h.bf16 %v13790_v53 }
 0x234   :  { %1839 = vmatpush.msra.mxu0 %v747_v9  ;;  %v741_v44 = vsel %vm714_vm1, %v13854_v32, %v5740_v17  ;;  %1880 = vmatpush.msra.mxu1 %v1164_v7  ;;  %v13858_v3 = vld [vmem:[#allocation51_spill] sm:$0xff] }
 0x235   :  { %1965 = vmatpush.msrb.mxu3 %v13855_v61  ;;  %v735_v9 = vsel %vm714_vm1, %v13856_v56, %v13247_v1  ;;  %5287 = vmatmul.msk.f32.gmra.mxu2 %vm1435_vm2, %v13857_v39  ;;  %v13248_v24 = vunpack.i.l.bf16 %v13858_v3  ;;  %v13859_v32 = vld [vmem:[#allocation23_spill] sm:$0xff]  ;;  %v13860_v61 = vunpack.i.h.bf16 %v8713_v14  ;;  %v13253_v14 = vunpack.i.h.bf16 %v9069_v62 }
 0x236   :  { %1840 = vmatpush.msra.mxu0 %v741_v44  ;;  %6242 = vrot.lane.b32.xlu2 %v6236_v5, %s7150_s19  ;;  %v13251_v44 = vunpack.i.h.bf16 %v9078_v30  ;;  %v13861_v5 = vunpack.i.l.bf16 %v13777_v0 }
 0x237   :  { %1966 = vmatpush.msrb.mxu3 %v13859_v32  ;;  %v1158_v7 = vsel %vm1131_vm15, %v13860_v61, %v13245_v27  ;;  %6252 = vrot.lane.b32.xlu1 %v9163_v33, %s7150_s19  ;;  %v9305_v39 = vpop.permute.xlu0 %6082  ;;  %v6969_v33 = vld [vmem:[%s13023_s0 + $0x18] sm:$0xff] }
 0x238   :  { %1841 = vmatpush.msra.mxu0 %v735_v9  ;;  %v729_v56 = vsel %vm714_vm1, %v13861_v5, %v13246_v26  ;;  %1881 = vmatpush.msra.mxu1 %v1158_v7  ;;  %v13254_v9 = vunpack.i.l.bf16 %v9259_v60  ;;  %v9308_v32 = vpop.permute.xlu1 %6057  ;;  %v13862_v61 = vld [vmem:[#allocation106_spill] sm:$0xff]  ;;  %v13863_v27 = vld [vmem:[#allocation39_spill] sm:$0xff]  ;;  %v13864_v7 = vunpack.i.h.bf16 %v7887_v57  ;;  %v13866_v57 = vunpack.i.l.bf16 %v13790_v53 }
 0x239   :  { %1967 = vmatpush.msrb.mxu3 %v6969_v33  ;;  %v9325_v1 = vpop.permute.xlu2 %6092  ;;  %v13252_v33 = vunpack.i.l.bf16 %v9137_v37 }
 0x23a   :  { %1842 = vmatpush.msra.mxu0 %v729_v56  ;;  %1652 = vmatmul.f32.gmra.mxu3 %v13862_v61  ;;  %v723_v5 = vsel %vm714_vm1, %v13864_v7, %v13248_v24  ;;  %v13865_v56 = vunpack.i.l.bf16 %v8730_v18  ;;  %v717_v61 = vsel %vm714_vm1, %v13866_v57, %v13249_v31  ;;  %v13867_v7 = vunpack.i.h.bf16 %v8730_v18  ;;  %v13870_v31 = vld [vmem:[#allocation13_spill] sm:$0xff] }
 0x23b   :  { %1728 = vmatmul.f32.gmra.mxu1 %v13863_v27  ;;  %v13255_v27 = vunpack.i.h.bf16 %v9259_v60  ;;  %1696 = vmatmul.f32.gmra.mxu0 %v8964_v2  ;;  %v13869_v24 = vunpack.i.l.bf16 %v8803_v51  ;;  %v13258_v18 = vunpack.i.h.bf16 %v9137_v37 }
 0x23c   :  { %v1152_v26 = vsel %vm1131_vm15, %v13865_v56, %v13250_v40  ;;  %1843 = vmatpush.msra.mxu0 %v723_v5  ;;  %v1146_v56 = vsel %vm1131_vm15, %v13867_v7, %v13251_v44  ;;  %v6256_v40 = vpack.i.bf16 %v13870_v31, %v13841_v6  ;;  %v13256_v7 = vunpack.i.l.bf16 %v9186_v48  ;;  %v13871_v44 = vld [vmem:[#allocation111_spill] sm:$0xff] }
 0x23d   :  { %1882 = vmatpush.msra.mxu1 %v1152_v26  ;;  %v13868_v26 = vunpack.i.l.bf16 %v8947_v29  ;;  %v808_v57 = vsel %vm714_vm1, %v13869_v24, %v13253_v14  ;;  %5288 = vmatmul.msk.f32.gmra.mxu2 %vm1435_vm2, %v13871_v44  ;;  %v13873_v24 = vunpack.i.h.bf16 %v8803_v51  ;;  %v6055_v6 = vunpack.i.h.bf16 %v9186_v48  ;;  %v6970_v44 = vld [vmem:[%s13023_s0 + $0x30] sm:$0xff] }
 0x23e   :  { %1844 = vmatpush.msra.mxu0 %v717_v61  ;;  %v13257_v61 = vunpack.i.l.bf16 %v9308_v32  ;;  %6257 = vrot.lane.b32.xlu2 %v6256_v40, %s7151_s3  ;;  %v6064_v40 = vunpack.i.l.bf16 %v9201_v28  ;;  %v13877_v14 = vunpack.i.l.bf16 %v9020_v35 }
 0x23f   :  { %v1140_v5 = vsel %vm1131_vm15, %v13868_v26, %v13254_v9  ;;  %1883 = vmatpush.msra.mxu1 %v1146_v56  ;;  %v9357_v56 = vpop.f32.mrf.mxu0  ;;  %v802_v26 = vsel %vm714_vm1, %v13873_v24, %v13252_v33  ;;  %1336 = vrot.lane.b32.xlu1 %v6970_v44, %s7151_s3  ;;  %v9375_v51 = vpop.permute.xlu0 %6097  ;;  %v13876_v33 = vld [vmem:[#allocation54_spill] sm:$0xff] }
 0x240   :  { %1993 = vmatpush.msrb.mxu0 %v808_v57  ;;  %13872 = vst [vmem:[#allocation61_spill] sm:$0xff] %v9357_v56  ;;  %v9377_v24 = vpop.permute.xlu1 %6072  ;;  %v796_v9 = vsel %vm714_vm1, %v13877_v14, %v13258_v18  ;;  %v13880_v14 = vunpack.i.h.bf16 %v8865_v63  ;;  %v13882_v18 = vld [vmem:[#allocation113_spill] sm:$0xff] }
 0x241   :  { %1884 = vmatpush.msra.mxu1 %v1140_v5  ;;  %v13874_v5 = vunpack.i.h.bf16 %v8947_v29  ;;  %v13878_v29 = vunpack.i.l.bf16 %v8865_v63  ;;  %v13883_v63 = vunpack.i.l.bf16 %v8937_v15  ;;  %v13888_v15 = vunpack.i.h.bf16 %v9080_v55 }
 0x242   :  { %1994 = vmatpush.msrb.mxu0 %v802_v26  ;;  %v13875_v26 = vld [vmem:[#allocation109_spill] sm:$0xff] }
 0x243   :  { %v1134_v57 = vsel %vm1131_vm15, %v13874_v5, %v13255_v27  ;;  %1655 = vmatmul.f32.gmra.mxu3 %v13875_v26  ;;  %1731 = vmatmul.f32.gmra.mxu1 %v13876_v33  ;;  %v1225_v5 = vsel %vm1131_vm15, %v13878_v29, %v13256_v7  ;;  %v13259_v33 = vunpack.i.h.bf16 %v9308_v32  ;;  %v13270_v27 = vunpack.i.h.bf16 %v9201_v28  ;;  %v9405_v7 = vpop.permute.xlu2 %6107 }
 0x244   :  { %1885 = vmatpush.msra.mxu1 %v1134_v57  ;;  %v13879_v57 = vunpack.i.h.bf16 %v9020_v35  ;;  %1995 = vmatpush.msrb.mxu0 %v796_v9  ;;  %v1219_v29 = vsel %vm1131_vm15, %v13880_v14, %v6055_v6  ;;  %v13261_v35 = vunpack.i.l.bf16 %v9377_v24  ;;  %v6266_v9 = vpack.i.bf16 %v6970_v44, %v13870_v31 }
 0x245   :  { %1699 = vmatmul.f32.gmra.mxu0 %v9037_v38  ;;  %5289 = vmatmul.msk.f32.gmra.mxu2 %vm1435_vm2, %v13882_v18  ;;  %v784_v31 = vsel %vm714_vm1, %v13883_v63, %v13259_v33  ;;  %v13269_v44 = vunpack.i.h.bf16 %v9250_v58  ;;  %v13268_v18 = vunpack.i.h.bf16 %v9377_v24  ;;  %v13262_v63 = vunpack.i.l.bf16 %v9257_v52  ;;  %v13887_v33 = vld [vmem:[#allocation112_spill] sm:$0xff] }
 0x246   :  { %v790_v26 = vsel %vm714_vm1, %v13879_v57, %v13257_v61  ;;  %2034 = vmatpush.msrb.mxu1 %v1225_v5  ;;  %v13260_v5 = vunpack.i.l.bf16 %v9250_v58  ;;  %v13881_v57 = vunpack.i.l.bf16 %v8877_v4  ;;  %6267 = vrot.lane.b32.xlu2 %v6266_v9, %s7150_s19 }
 0x247   :  { %1996 = vmatpush.msrb.mxu0 %v790_v26  ;;  %v13884_v26 = vunpack.i.h.bf16 %v8877_v4  ;;  %v9435_v9 = vpop.f32.mrf.mxu0  ;;  %v13264_v4 = vunpack.i.l.bf16 %v9305_v39 }
 0x248   :  { %2035 = vmatpush.msrb.mxu1 %v1219_v29  ;;  %v1213_v61 = vsel %vm1131_vm15, %v13881_v57, %v6064_v40  ;;  %13886 = vst [vmem:[#allocation76_spill] sm:$0xff] %v9435_v9  ;;  %v9437_v57 = vpop.permute.xlu0 %6112 }
 0x249   :  { %v1207_v14 = vsel %vm1131_vm15, %v13884_v26, %v13270_v27  ;;  %1997 = vmatpush.msrb.mxu0 %v784_v31  ;;  %v778_v31 = vsel %vm714_vm1, %v5995_v59, %v13260_v5  ;;  %v9448_v26 = vpop.permute.xlu1 %6087  ;;  %v1195_v59 = vsel %vm1131_vm15, %v13888_v15, %v13268_v18  ;;  %v13892_v15 = vunpack.i.l.bf16 %v9139_v11  ;;  %v13903_v18 = vld [vmem:[#allocation58_spill] sm:$0xff]  ;;  %v13904_v27 = vld [vmem:[#allocation93_spill] sm:$0xff] }
 0x24a   :  { %2036 = vmatpush.msrb.mxu1 %v1213_v61  ;;  %v13885_v61 = vunpack.i.l.bf16 %v9080_v55  ;;  %v13891_v55 = vunpack.i.l.bf16 %v9009_v45 }
 0x24b   :  { %1658 = vmatmul.f32.gmra.mxu3 %v13887_v33  ;;  %1734 = vmatmul.f32.gmra.mxu1 %v8921_v12  ;;  %v772_v12 = vsel %vm714_vm1, %v6004_v19, %v13269_v44  ;;  %v13267_v33 = vunpack.i.l.bf16 %v9448_v26  ;;  %v9472_v19 = vpop.permute.xlu2 %6122  ;;  %v13273_v44 = vunpack.i.l.bf16 %v13903_v18 }
 0x24c   :  { %v1201_v29 = vsel %vm1131_vm15, %v13885_v61, %v13261_v35  ;;  %2037 = vmatpush.msrb.mxu1 %v1207_v14  ;;  %v13263_v14 = vunpack.i.h.bf16 %v9257_v52  ;;  %1998 = vmatpush.msrb.mxu0 %v778_v31  ;;  %v13265_v61 = vunpack.i.h.bf16 %v9305_v39  ;;  %v13889_v31 = vunpack.i.h.bf16 %v8945_v46  ;;  %v13890_v35 = vld [vmem:[#allocation42_spill] sm:$0xff] }
 0x24d   :  { %1702 = vmatmul.f32.gmra.mxu0 %v9107_v22  ;;  %5290 = vmatmul.msk.f32.gmra.mxu2 %vm1435_vm2, %v13890_v35  ;;  %v13286_v35 = vunpack.i.h.bf16 %v9448_v26  ;;  %v14016_v9 = vunpack.i.h.bf16 %v9472_v19 }
 0x24e   :  { %2038 = vmatpush.msrb.mxu1 %v1201_v29  ;;  %1999 = vmatpush.msrb.mxu0 %v772_v12  ;;  %v13266_v29 = vunpack.i.l.bf16 %v9325_v1  ;;  %v766_v5 = vsel %vm714_vm1, %v13889_v31, %v13262_v63  ;;  %v1189_v12 = vsel %vm1131_vm15, %v13891_v55, %v13264_v4  ;;  %v760_v46 = vsel %vm714_vm1, %v13892_v15, %v13263_v14  ;;  %v13895_v15 = vld [vmem:[#allocation72_spill] sm:$0xff] }
 0x24f   :  { %v13893_v31 = vunpack.i.h.bf16 %v9009_v45  ;;  %v13272_v14 = vunpack.i.l.bf16 %v9375_v51  ;;  %v13896_v4 = vld [vmem:[#allocation36_spill] sm:$0xff]  ;;  %v13897_v45 = vunpack.i.l.bf16 %v9018_v41 }
 0x250   :  { %2039 = vmatpush.msrb.mxu1 %v1195_v59  ;;  %2000 = vmatpush.msrb.mxu0 %v766_v5  ;;  %v13279_v59 = vunpack.i.h.bf16 %v9325_v1  ;;  %v13894_v5 = vunpack.i.h.bf16 %v9139_v11  ;;  %v9507_v11 = vpop.f32.mrf.mxu0 }
 0x251   :  { %v1183_v63 = vsel %vm1131_vm15, %v13893_v31, %v13265_v61  ;;  %v1177_v31 = vsel %vm1131_vm15, %v13897_v45, %v13266_v29  ;;  %v9505_v61 = vpop.permute.xlu1 %6102  ;;  %13898 = vst [vmem:[#allocation18_spill] sm:$0xff] %v9507_v11  ;;  %v13900_v45 = vunpack.i.l.bf16 %v9069_v62  ;;  %v9979_v11 = vld [vmem:[#allocation2 + $0x98] sm:$0xff] }
 0x252   :  { %2040 = vmatpush.msrb.mxu1 %v1189_v12  ;;  %v754_v55 = vsel %vm714_vm1, %v13894_v5, %v13267_v33  ;;  %2001 = vmatpush.msrb.mxu0 %v760_v46  ;;  %v13278_v12 = vunpack.i.l.bf16 %v13895_v15  ;;  %v9510_v46 = vpop.permute.xlu0 %6127  ;;  %v9512_v5 = vpop.f32.mrf.mxu3  ;;  %v13902_v33 = vunpack.i.h.bf16 %v8786_v13  ;;  %v13274_v13 = vunpack.i.l.bf16 %v9405_v7 }
 0x253   :  { %1661 = vmatmul.f32.gmra.mxu3 %v13896_v4  ;;  %1737 = vmatmul.f32.gmra.mxu1 %v9007_v50  ;;  %13899 = vst [vmem:[#allocation14_spill] sm:$0xff] %v9512_v5  ;;  %v13275_v50 = vunpack.i.h.bf16 %v13848_v16  ;;  %v13271_v4 = vunpack.i.h.bf16 %v9375_v51  ;;  %v748_v29 = vsel %vm714_vm1, %v13900_v45, %v13286_v35 }
 0x254   :  { %2041 = vmatpush.msrb.mxu1 %v1183_v63  ;;  %2002 = vmatpush.msrb.mxu0 %v754_v55  ;;  %v6104_v63 = vunpack.i.l.bf16 %v9505_v61  ;;  %v13901_v55 = vunpack.i.h.bf16 %v9018_v41  ;;  %v742_v41 = vsel %vm714_vm1, %v5740_v17, %v13278_v12 }
 0x255   :  { %1845 = vmatmul.f32.vlgmr.msra.gmra.mxu0 %v8568_v21  ;;  %5291 = vmatmul.msk.f32.gmra.mxu2 %vm1435_vm2, %v13904_v27  ;;  %v736_v17 = vsel %vm714_vm1, %v13906_v25, %v13275_v50  ;;  %v13907_v27 = vunpack.i.h.bf16 %v9203_v8  ;;  %v13908_v25 = vunpack.i.h.bf16 %v13777_v0  ;;  %v13912_v0 = vunpack.i.l.bf16 %v13858_v3 }
 0x256   :  { %2042 = vmatpush.msrb.mxu1 %v1177_v31  ;;  %v1171_v31 = vsel %vm1131_vm15, %v13901_v55, %v13279_v59  ;;  %2003 = vmatpush.msrb.mxu0 %v748_v29  ;;  %v1382_v21 = vsel %vm1366_vm0, %v13902_v33, %v6104_v63  ;;  %v13905_v29 = vunpack.i.l.bf16 %v9203_v8  ;;  %v13276_v33 = vunpack.i.h.bf16 %v13858_v3  ;;  %v9547_v55 = vpop.permute.xlu2 %6137 }
 0x257   :  { %2088 = vmatpush.msrb.mxu2 %v1382_v21  ;;  %v730_v8 = vsel %vm714_vm1, %v13908_v25, %v13273_v44 }
 0x258   :  { %2043 = vmatpush.msrb.mxu1 %v1171_v31  ;;  %v1165_v45 = vsel %vm1131_vm15, %v13905_v29, %v13272_v14  ;;  %2004 = vmatpush.msrb.mxu0 %v742_v41  ;;  %v1159_v31 = vsel %vm1131_vm15, %v13907_v27, %v13271_v4  ;;  %v13277_v41 = vunpack.i.h.bf16 %v9405_v7  ;;  %v9561_v29 = vld [vmem:[#allocation2] sm:$0xff]  ;;  %v13910_v4 = vld [vmem:[#allocation82_spill] sm:$0xff]  ;;  %v13287_v14 = vunpack.i.l.bf16 %v9437_v57 }
 0x259   :  { %v13909_v27 = vld [vmem:[#allocation48_spill] sm:$0xff]  ;;  %v724_v25 = vsel %vm714_vm1, %v13912_v0, %v13276_v33  ;;  %v9584_v44 = vpop.permute.xlu1 %6117  ;;  %v13282_v0 = vunpack.i.l.bf16 %v9472_v19  ;;  %v13917_v33 = vld [vmem:[#allocation87_spill] sm:$0xff] }
 0x25a   :  { %2044 = vmatpush.msrb.mxu1 %v1165_v45  ;;  %2005 = vmatpush.msrb.mxu0 %v736_v17  ;;  %v13288_v45 = vunpack.i.h.bf16 %v9505_v61  ;;  %v13284_v21 = vunpack.i.l.bf16 %v13909_v27  ;;  %v13911_v17 = vunpack.i.l.bf16 %v9078_v30  ;;  %v9597_v50 = vpop.f32.mrf.mxu3 }
 0x25b   :  { %1740 = vmatmul.f32.gmra.mxu1 %v9067_v23  ;;  %1804 = vmatmul.f32.vlgmr.msra.gmra.mxu3 %v9561_v29  ;;  %13916 = vst [vmem:[#allocation62_spill] sm:$0xff] %v9597_v50  ;;  %v9614_v59 = vpop.f32.mrf.mxu1  ;;  %v14014_v50 = vunpack.i.l.bf16 %v9472_v19 }
 0x25c   :  { %2045 = vmatpush.msrb.mxu1 %v1159_v31  ;;  %2116 = vmatpush.msra.mxu3 %v13910_v4  ;;  %v1153_v31 = vsel %vm1131_vm15, %v13911_v17, %v13274_v13  ;;  %v9586_v4 = vpop.f32.mrf.mxu0  ;;  %v13915_v17 = vunpack.i.h.bf16 %v9078_v30  ;;  %v9595_v13 = vpop.permute.xlu0 %6142  ;;  %13921 = vst [vmem:[#allocation88_spill] sm:$0xff] %v9614_v59 }
 0x25d   :  { %2006 = vmatpush.msrb.mxu0 %v730_v8  ;;  %13913 = vst [vmem:[#allocation59_spill] sm:$0xff] %v9586_v4  ;;  %v13914_v8 = vld [vmem:[#allocation90_spill] sm:$0xff]  ;;  %5292 = vmatmul.msk.f32.gmra.mxu2 %vm1435_vm2, %v13917_v33  ;;  %v13922_v33 = vunpack.i.l.bf16 %v9259_v60 }
 0x25e   :  { %1848 = vmatmul.f32.gmra.mxu0 %v8647_v43  ;;  %2046 = vmatpush.msrb.mxu1 %v1153_v31  ;;  %v1147_v43 = vsel %vm1131_vm15, %v13915_v17, %v13277_v41  ;;  %v13280_v31 = vunpack.i.l.bf16 %v9584_v44  ;;  %v13283_v17 = vunpack.i.h.bf16 %v9584_v44  ;;  %v13920_v41 = vunpack.i.h.bf16 %v13790_v53  ;;  %v13924_v53 = vld [vmem:[#allocation100_spill] sm:$0xff] }
 0x25f   :  { %2117 = vmatpush.msra.mxu3 %v13914_v8  ;;  %2007 = vmatpush.msrb.mxu0 %v724_v25  ;;  %v13918_v25 = vunpack.i.l.bf16 %v9132_v34  ;;  %v13919_v8 = vld [vmem:[#allocation103_spill] sm:$0xff] }
 0x260   :  { %2047 = vmatpush.msrb.mxu1 %v1147_v43  ;;  %v718_v12 = vsel %vm714_vm1, %v13920_v41, %v13284_v21  ;;  %v1141_v43 = vsel %vm1131_vm15, %v13922_v33, %v13280_v31  ;;  %v9629_v41 = vld [vmem:[#allocation2 + $0x20] sm:$0xff]  ;;  %v9632_v33 = vpop.permute.xlu2 %6152 }
 0x261   :  { %v1376_v30 = vsel %vm1366_vm0, %v13918_v25, %v13288_v45  ;;  %2118 = vmatpush.msra.mxu3 %v13919_v8  ;;  %v13281_v25 = vunpack.i.h.bf16 %v9472_v19  ;;  %2008 = vmatpush.msrb.mxu0 %v718_v12  ;;  %13925 = vst [vmem:[#allocation34_spill] sm:$0xff] %v9629_v41  ;;  %v13926_v12 = vunpack.i.h.bf16 %v9069_v62  ;;  %v13927_v31 = vld [vmem:[#allocation104_spill] sm:$0xff]  ;;  %v9651_v62 = vpop.permute.xlu1 %6132 }
 0x262   :  { %2089 = vmatpush.msrb.mxu2 %v1376_v30  ;;  %v13923_v30 = vunpack.i.h.bf16 %v9132_v34  ;;  %2048 = vmatpush.msrb.mxu1 %v1141_v43  ;;  %v13928_v43 = vunpack.i.h.bf16 %v9259_v60  ;;  %v13289_v60 = vunpack.i.l.bf16 %v9510_v46  ;;  %v9676_v21 = vld [vmem:[#allocation2 + $0x40] sm:$0xff]  ;;  %v14017_v59 = vunpack.i.l.bf16 %v9651_v62 }
 0x263   :  { %2119 = vmatpush.msra.mxu3 %v13924_v53  ;;  %1743 = vmatmul.f32.gmra.mxu1 %v9135_v36  ;;  %v809_v34 = vsel %vm714_vm1, %v13926_v12, %v13282_v0  ;;  %v13930_v12 = vld [vmem:[#allocation94_spill] sm:$0xff]  ;;  %v13936_v0 = vld [vmem:[#allocation101_spill] sm:$0xff]  ;;  %v14019_v19 = vunpack.i.h.bf16 %v9651_v62 }
 0x264   :  { %v1370_v8 = vsel %vm1366_vm0, %v13923_v30, %v13287_v14  ;;  %1807 = vmatmul.f32.gmra.mxu3 %v9629_v41  ;;  %2157 = vmatpush.msra.mxu0 %v809_v34  ;;  %v1135_v30 = vsel %vm1131_vm15, %v13928_v43, %v13283_v17  ;;  %v9655_v34 = vpop.permute.xlu0 %6157  ;;  %v9662_v43 = vpop.f32.mrf.mxu0  ;;  %v13292_v17 = vunpack.i.l.bf16 %v9547_v55 }
 0x265   :  { %2090 = vmatpush.msrb.mxu2 %v1370_v8  ;;  %2120 = vmatpush.msra.mxu3 %v13927_v31  ;;  %v13929_v8 = vunpack.i.l.bf16 %v9137_v37  ;;  %v13285_v31 = vunpack.i.l.bf16 %v9651_v62  ;;  %13932 = vst [vmem:[#allocation17_spill] sm:$0xff] %v9662_v43  ;;  %v13949_v43 = vld [vmem:[#allocation45_spill] sm:$0xff] }
 0x266   :  { %1851 = vmatmul.f32.gmra.mxu0 %v8726_v42  ;;  %2049 = vmatpush.msrb.mxu1 %v1135_v30  ;;  %v9660_v42 = vpop.f32.mrf.mxu3  ;;  %v13934_v30 = vunpack.i.h.bf16 %v9137_v37  ;;  %v13937_v37 = vunpack.i.l.bf16 %v9186_v48  ;;  %v13294_v48 = vunpack.i.l.bf16 %v9632_v33 }
 0x267   :  { %v803_v53 = vsel %vm714_vm1, %v13929_v8, %v13281_v25  ;;  %2121 = vmatpush.msra.mxu3 %v13930_v12  ;;  %5293 = vmatmul.msk.f32.gmra.mxu2 %vm1435_vm2, %v8978_v47  ;;  %13931 = vst [vmem:[#allocation56_spill] sm:$0xff] %v9660_v42  ;;  %v13933_v8 = vld [vmem:[#allocation95_spill] sm:$0xff]  ;;  %v13290_v12 = vunpack.i.h.bf16 %v9510_v46  ;;  %v9671_v25 = vpop.f32.mrf.mxu1  ;;  %v13291_v47 = vunpack.i.h.bf16 %v9651_v62 }
 0x268   :  { %2158 = vmatpush.msra.mxu0 %v803_v53  ;;  %v797_v53 = vsel %vm714_vm1, %v13934_v30, %v13285_v31  ;;  %13935 = vst [vmem:[#allocation16_spill] sm:$0xff] %v9671_v25  ;;  %v1226_v30 = vsel %vm1131_vm15, %v13937_v37, %v13289_v60  ;;  %v9689_v31 = vpop.f32.mrf.mxu2  ;;  %v9692_v14 = vpop.permute.xlu2 %6167  ;;  %v13293_v60 = vunpack.i.h.bf16 %v9437_v57 }
 0x269   :  { %2122 = vmatpush.msra.mxu3 %v13933_v8  ;;  %v9679_v8 = vld [vmem:[#allocation2 + $0x10] sm:$0xff]  ;;  %13939 = vst [vmem:[#allocation57_spill] sm:$0xff] %v9689_v31  ;;  %v1220_v45 = vsel %vm1131_vm15, %v6055_v6, %v13290_v12  ;;  %v9700_v37 = vpop.permute.xlu1 %6147  ;;  %v1214_v6 = vsel %vm1131_vm15, %v6064_v40, %v13292_v17  ;;  %v13945_v40 = vunpack.i.h.bf16 %v9308_v32  ;;  %v10004_v31 = vld [vmem:[#allocation2 + $0xb8] sm:$0xff] }
 0x26a   :  { %2159 = vmatpush.msra.mxu0 %v797_v53  ;;  %v13938_v53 = vld [vmem:[#allocation33_spill] sm:$0xff]  ;;  %v1383_v12 = vsel %vm1366_vm0, %v6104_v63, %v13293_v60  ;;  %v13955_v63 = vld [vmem:[#allocation38_spill] sm:$0xff] }
 0x26b   :  { %2123 = vmatpush.msra.mxu3 %v13936_v0  ;;  %1886 = vmatmul.f32.vlgmr.msra.gmra.mxu1 %v9679_v8 }
 0x26c   :  { %1810 = vmatmul.f32.gmra.mxu3 %v9676_v21  ;;  %2198 = vmatpush.msra.mxu1 %v1226_v30  ;;  %v13941_v30 = vunpack.i.l.bf16 %v9308_v32  ;;  %v9710_v0 = vpop.permute.xlu0 %6172 }
 0x26d   :  { %2124 = vmatpush.msra.mxu3 %v13938_v53  ;;  %v13940_v53 = vld [vmem:[#allocation47_spill] sm:$0xff] }
 0x26e   :  { %1854 = vmatmul.f32.gmra.mxu0 %v8799_v49  ;;  %2199 = vmatpush.msra.mxu1 %v1220_v45  ;;  %v791_v35 = vsel %vm714_vm1, %v13941_v30, %v13291_v47  ;;  %v9722_v45 = vpop.f32.mrf.mxu3  ;;  %v13943_v30 = vld [vmem:[#allocation105_spill] sm:$0xff]  ;;  %v13944_v47 = vunpack.i.l.bf16 %v9595_v13  ;;  %v13947_v49 = vunpack.i.h.bf16 %v9201_v28 }
 0x26f   :  { %2125 = vmatpush.msra.mxu3 %v13940_v53  ;;  %v9718_v53 = vld [vmem:[#allocation2 + $0x18] sm:$0xff]  ;;  %2160 = vmatpush.msra.mxu0 %v791_v35  ;;  %13942 = vst [vmem:[#allocation25_spill] sm:$0xff] %v9722_v45  ;;  %v13946_v35 = vunpack.i.h.bf16 %v9547_v55  ;;  %v9745_v32 = vpop.f32.mrf.mxu1  ;;  %v13958_v45 = vld [vmem:[#allocation32_spill] sm:$0xff] }
 0x270   :  { %5294 = vmatmul.msk.f32.vlgmr.msra.gmra.mxu2 %vm1435_vm2, %v9718_v53  ;;  %2200 = vmatpush.msra.mxu1 %v1214_v6  ;;  %v785_v17 = vsel %vm714_vm1, %v13945_v40, %v13944_v47  ;;  %13950 = vst [vmem:[#allocation99_spill] sm:$0xff] %v9745_v32  ;;  %v13951_v47 = vunpack.i.l.bf16 %v9700_v37  ;;  %v13952_v40 = vunpack.i.l.bf16 %v9377_v24  ;;  %v9958_v32 = vld [vmem:[#allocation2 + $0xc0] sm:$0xff] }
 0x271   :  { %2126 = vmatpush.msra.mxu3 %v13943_v30  ;;  %v1208_v6 = vsel %vm1131_vm15, %v13947_v49, %v13946_v35  ;;  %2252 = vmatpush.msra.mxu2 %v1383_v12  ;;  %v9741_v30 = vpop.f32.mrf.mxu0  ;;  %v9753_v49 = vld [vmem:[#allocation2 + $0x60] sm:$0xff]  ;;  %v13954_v12 = vunpack.i.l.bf16 %v9250_v58 }
 0x272   :  { %2161 = vmatpush.msra.mxu0 %v785_v17  ;;  %13948 = vst [vmem:[#allocation60_spill] sm:$0xff] %v9741_v30  ;;  %2201 = vmatpush.msra.mxu1 %v1208_v6  ;;  %v1202_v60 = vsel %vm1131_vm15, %v13952_v40, %v13951_v47  ;;  %v9756_v17 = vld [vmem:[#allocation2 + $0x30] sm:$0xff]  ;;  %v9766_v47 = vpop.f32.mrf.mxu2  ;;  %v13957_v40 = vunpack.i.h.bf16 %v9250_v58  ;;  %v9774_v30 = vpop.permute.xlu1 %6162  ;;  %v13964_v58 = vunpack.i.l.bf16 %v9655_v34 }
 0x273   :  { %2127 = vmatpush.msra.mxu3 %v13949_v43  ;;  %1889 = vmatmul.f32.gmra.mxu1 %v9756_v17  ;;  %v13953_v43 = vunpack.i.h.bf16 %v9595_v13  ;;  %13956 = vst [vmem:[#allocation68_spill] sm:$0xff] %v9766_v47  ;;  %v9786_v6 = vpop.permute.xlu2 %6182 }
 0x274   :  { %1813 = vmatmul.f32.gmra.mxu3 %v9753_v49  ;;  %v773_v28 = vsel %vm714_vm1, %v13957_v40, %v13294_v48  ;;  %2202 = vmatpush.msra.mxu1 %v1202_v60  ;;  %v9788_v60 = vld [vmem:[#allocation2 + $0x38] sm:$0xff] }
 0x275   :  { %v779_v35 = vsel %vm714_vm1, %v13954_v12, %v13953_v43  ;;  %2128 = vmatpush.msra.mxu3 %v13955_v63  ;;  %v13959_v43 = vunpack.i.h.bf16 %v9700_v37  ;;  %v13960_v63 = vunpack.i.h.bf16 %v9377_v24 }
 0x276   :  { %2162 = vmatpush.msra.mxu0 %v779_v35  ;;  %v9783_v35 = vpop.permute.xlu0 %6187  ;;  %v9806_v42 = vpop.f32.mrf.mxu3 }
 0x277   :  { %1857 = vmatmul.f32.gmra.mxu0 %v13853_v54  ;;  %2129 = vmatpush.msra.mxu3 %v13958_v45  ;;  %v1196_v12 = vsel %vm1131_vm15, %v13960_v63, %v13959_v43  ;;  %v13961_v45 = vunpack.i.h.bf16 %v9632_v33  ;;  %v13295_v43 = vunpack.i.l.bf16 %v9783_v35  ;;  %v13963_v63 = vld [vmem:[#allocation24_spill] sm:$0xff]  ;;  %v13965_v54 = vunpack.i.l.bf16 %v9305_v39  ;;  %13966 = vst [vmem:[#allocation97_spill] sm:$0xff] %v9806_v42 }
 0x278   :  { %2163 = vmatpush.msra.mxu0 %v773_v28  ;;  %5295 = vmatmul.msk.f32.gmra.mxu2 %vm1435_vm2, %v9788_v60  ;;  %v13962_v28 = vunpack.i.l.bf16 %v9257_v52 }
 0x279   :  { %2203 = vmatpush.msra.mxu1 %v1196_v12  ;;  %2130 = vmatpush.msra.mxu3 %v13963_v63  ;;  %v1190_v4 = vsel %vm1131_vm15, %v13965_v54, %v13964_v58  ;;  %v13968_v12 = vunpack.i.h.bf16 %v9257_v52  ;;  %v13969_v63 = vunpack.i.h.bf16 %v9505_v61  ;;  %v9820_v54 = vpop.f32.mrf.mxu1  ;;  %v13971_v61 = vunpack.i.h.bf16 %v9655_v34 }
 0x27a   :  { %v767_v24 = vsel %vm714_vm1, %v13962_v28, %v13961_v45  ;;  %v13967_v45 = vunpack.i.l.bf16 %v9774_v30  ;;  %13970 = vst [vmem:[#allocation91_spill] sm:$0xff] %v9820_v54  ;;  %v13976_v58 = vunpack.i.h.bf16 %v9783_v35  ;;  %v9847_v42 = vpop.f32.mrf.mxu2 }
 0x27b   :  { %2164 = vmatpush.msra.mxu0 %v767_v24  ;;  %2204 = vmatpush.msra.mxu1 %v1190_v4  ;;  %v1377_v48 = vsel %vm1366_vm0, %v13969_v63, %v13295_v43  ;;  %v13972_v4 = vunpack.i.h.bf16 %v9305_v39  ;;  %v13975_v43 = vunpack.i.l.bf16 %v9448_v26  ;;  %v13977_v24 = vunpack.i.l.bf16 %v9437_v57  ;;  %13978 = vst [vmem:[#allocation67_spill] sm:$0xff] %v9847_v42  ;;  %v13979_v39 = vld [vmem:[#allocation69_spill] sm:$0xff] }
 0x27c   :  { %v761_v28 = vsel %vm714_vm1, %v13968_v12, %v13967_v45  ;;  %2253 = vmatpush.msra.mxu2 %v1377_v48  ;;  %v9824_v45 = vld [vmem:[#allocation2 + $0x80] sm:$0xff]  ;;  %v9827_v12 = vld [vmem:[#allocation2 + $0x50] sm:$0xff]  ;;  %v13974_v48 = vunpack.i.h.bf16 %v9774_v30 }
 0x27d   :  { %2165 = vmatpush.msra.mxu0 %v761_v28  ;;  %1816 = vmatmul.f32.gmra.mxu3 %v9824_v45  ;;  %v1184_v63 = vsel %vm1131_vm15, %v13972_v4, %v13971_v61  ;;  %v9835_v28 = vpop.f32.mrf.mxu0  ;;  %v1371_v40 = vsel %vm1366_vm0, %v13977_v24, %v13976_v58  ;;  %v13980_v4 = vunpack.i.l.bf16 %v9692_v14  ;;  %v9862_v58 = vpop.permute.xlu1 %6177  ;;  %v6982_v24 = vld [vmem:[%s13023_s0 + $0x20] sm:$0xff] }
 0x27e   :  { %1892 = vmatmul.f32.gmra.mxu1 %v9827_v12  ;;  %13973 = vst [vmem:[#allocation55_spill] sm:$0xff] %v9835_v28  ;;  %v755_v52 = vsel %vm714_vm1, %v13975_v43, %v13974_v48  ;;  %v13981_v28 = vunpack.i.l.bf16 %v9325_v1  ;;  %2254 = vmatpush.msra.mxu2 %v1371_v40  ;;  %v13985_v40 = vunpack.i.h.bf16 %v9325_v1  ;;  %v9883_v61 = vpop.f32.mrf.mxu3  ;;  %v13989_v1 = vld [vmem:[#allocation53_spill] sm:$0xff] }
 0x27f   :  { %2205 = vmatpush.msra.mxu1 %v1184_v63  ;;  %2166 = vmatpush.msra.mxu0 %v755_v52  ;;  %v13982_v52 = vunpack.i.l.bf16 %v9710_v0  ;;  %v13983_v63 = vunpack.i.h.bf16 %v9448_v26  ;;  %13988 = vst [vmem:[#allocation92_spill] sm:$0xff] %v9883_v61  ;;  %v9887_v26 = vpop.permute.xlu2 %6197 }
 0x280   :  { %1860 = vmatmul.f32.gmra.mxu0 %v8964_v2  ;;  %v1178_v43 = vsel %vm1131_vm15, %v13981_v28, %v13980_v4  ;;  %v9864_v2 = vld [vmem:[#allocation2 + $0x58] sm:$0xff]  ;;  %v13984_v28 = vunpack.i.h.bf16 %v9692_v14  ;;  %2131 = vmatpush.msra.mxu3 %v6982_v24  ;;  %v13993_v24 = vunpack.i.l.bf16 %v9375_v51 }
 0x281   :  { %v749_v48 = vsel %vm714_vm1, %v13983_v63, %v13982_v52  ;;  %2206 = vmatpush.msra.mxu1 %v1178_v43  ;;  %5296 = vmatmul.msk.f32.gmra.mxu2 %vm1435_vm2, %v9864_v2  ;;  %v13986_v43 = vunpack.i.h.bf16 %v9710_v0  ;;  %v13987_v63 = vunpack.i.l.bf16 %v13895_v15  ;;  %v13990_v52 = vunpack.i.l.bf16 %v13979_v39  ;;  %v9899_v61 = vpop.f32.mrf.mxu1 }
 0x282   :  { %2167 = vmatpush.msra.mxu0 %v749_v48  ;;  %v1172_v4 = vsel %vm1131_vm15, %v13985_v40, %v13984_v28  ;;  %v13991_v15 = vunpack.i.h.bf16 %v13848_v16  ;;  %13994 = vst [vmem:[#allocation64_spill] sm:$0xff] %v9899_v61  ;;  %v9902_v40 = vld [vmem:[#allocation2 + $0xa0] sm:$0xff]  ;;  %v9905_v28 = vld [vmem:[#allocation2 + $0x70] sm:$0xff]  ;;  %v13995_v16 = vunpack.i.h.bf16 %v13903_v18  ;;  %v13296_v61 = vunpack.i.h.bf16 %v13909_v27 }
 0x283   :  { %v743_v48 = vsel %vm714_vm1, %v13987_v63, %v13986_v43  ;;  %2207 = vmatpush.msra.mxu1 %v1172_v4  ;;  %v13992_v63 = vunpack.i.l.bf16 %v9862_v58 }
 0x284   :  { %2168 = vmatpush.msra.mxu0 %v743_v48  ;;  %v737_v43 = vsel %vm714_vm1, %v13991_v15, %v13990_v52  ;;  %v13996_v52 = vunpack.i.l.bf16 %v13903_v18  ;;  %v9920_v48 = vpop.f32.mrf.mxu2 }
 0x285   :  { %v1166_v4 = vsel %vm1131_vm15, %v13993_v24, %v13992_v63  ;;  %1819 = vmatmul.f32.gmra.mxu3 %v9902_v40  ;;  %v13997_v63 = vunpack.i.h.bf16 %v9862_v58  ;;  %13999 = vst [vmem:[#allocation98_spill] sm:$0xff] %v9920_v48  ;;  %v9924_v54 = vpop.f32.mrf.mxu0 }
 0x286   :  { %2169 = vmatpush.msra.mxu0 %v737_v43  ;;  %2208 = vmatpush.msra.mxu1 %v1166_v4  ;;  %v731_v15 = vsel %vm714_vm1, %v13996_v52, %v13995_v16  ;;  %v13998_v43 = vunpack.i.h.bf16 %v9375_v51  ;;  %v9918_v4 = vpop.permute.xlu0 %6202  ;;  %v14000_v16 = vunpack.i.l.bf16 %v13989_v1  ;;  %v14001_v52 = vunpack.i.h.bf16 %v13858_v3 }
 0x287   :  { %1895 = vmatmul.f32.gmra.mxu1 %v9905_v28  ;;  %v9956_v42 = vpop.permute.xlu2 %6212 }
 0x288   :  { %v1160_v24 = vsel %vm1131_vm15, %v13998_v43, %v13997_v63  ;;  %2170 = vmatpush.msra.mxu0 %v731_v15  ;;  %v725_v51 = vsel %vm714_vm1, %v14001_v52, %v14000_v16  ;;  %v14002_v63 = vunpack.i.l.bf16 %v9786_v6  ;;  %v14003_v43 = vunpack.i.l.bf16 %v9405_v7 }
 0x289   :  { %2209 = vmatpush.msra.mxu1 %v1160_v24  ;;  %1863 = vmatmul.f32.gmra.mxu0 %v9037_v38  ;;  %v9936_v24 = vld [vmem:[#allocation2 + $0x78] sm:$0xff]  ;;  %v14004_v38 = vunpack.i.l.bf16 %v13909_v27  ;;  %v14005_v16 = vunpack.i.h.bf16 %v9786_v6  ;;  %v14006_v52 = vunpack.i.h.bf16 %v9405_v7  ;;  %v14008_v7 = vunpack.i.l.bf16 %v9584_v44 }
 0x28a   :  { %v1154_v15 = vsel %vm1131_vm15, %v14003_v43, %v14002_v63  ;;  %2171 = vmatpush.msra.mxu0 %v725_v51  ;;  %5297 = vmatmul.msk.f32.gmra.mxu2 %vm1435_vm2, %v9936_v24  ;;  %v9950_v63 = vpop.permute.xlu1 %6192 }
 0x28b   :  { %2210 = vmatpush.msra.mxu1 %v1154_v15  ;;  %v719_v3 = vsel %vm714_vm1, %v14004_v38, %v13296_v61  ;;  %v1148_v48 = vsel %vm1131_vm15, %v14006_v52, %v14005_v16  ;;  %v13298_v51 = vunpack.i.h.bf16 %v9950_v63  ;;  %v13297_v43 = vunpack.i.l.bf16 %v9950_v63  ;;  %v9954_v15 = vpop.f32.mrf.mxu3  ;;  %v9961_v38 = vld [vmem:[#allocation2 + $0x90] sm:$0xff] }
 0x28c   :  { %2172 = vmatpush.msra.mxu0 %v719_v3  ;;  %14007 = vst [vmem:[#allocation52_spill] sm:$0xff] %v9954_v15  ;;  %v9969_v3 = vpop.f32.mrf.mxu1  ;;  %v14010_v16 = vunpack.i.h.bf16 %v9584_v44  ;;  %v9977_v61 = vpop.f32.mrf.mxu2  ;;  %v9988_v44 = vld [vmem:[#allocation2 + $0xb0] sm:$0xff] }
 0x28d   :  { %2211 = vmatpush.msra.mxu1 %v1148_v48  ;;  %1822 = vmatmul.f32.gmra.mxu3 %v9958_v32  ;;  %v1142_v48 = vsel %vm1131_vm15, %v14008_v7, %v13297_v43  ;;  %14009 = vst [vmem:[#allocation40_spill] sm:$0xff] %v9969_v3  ;;  %v9985_v3 = vld [vmem:[#allocation2 + $0xe0] sm:$0xff] }
 0x28e   :  { %v1136_v52 = vsel %vm1131_vm15, %v14010_v16, %v13298_v51  ;;  %14011 = vst [vmem:[#allocation31_spill] sm:$0xff] %v9977_v61  ;;  %v6218_v15 = vpop.permute.xlu0 %6217  ;;  %v1682_v7 = vpop.f32.mrf.mxu0  ;;  %v9993_v61 = vld [vmem:[#allocation2 + $0x8] sm:$0xff] }
 0x28f   :  { %1898 = vmatmul.f32.gmra.mxu1 %v9961_v38  ;;  %14012 = vst [vmem:[#allocation29_spill] sm:$0xff] %v9988_v44  ;;  %v6228_v51 = vpop.permute.xlu2 %6227 }
 0x290   :  { %2212 = vmatpush.msra.mxu1 %v1142_v48  ;;  %v6199_v48 = vunpack.i.l.bf16 %v9887_v26  ;;  %14013 = vst [vmem:[#allocation22_spill] sm:$0xff] %v9993_v61 }
 0x291   :  { %1866 = vmatmul.f32.gmra.mxu0 %v9107_v22  ;;  %v6200_v22 = vunpack.i.h.bf16 %v9887_v26 }
 0x292   :  { %2213 = vmatpush.msra.mxu1 %v1136_v52  ;;  %5298 = vmatmul.msk.f32.gmra.mxu2 %vm1435_vm2, %v9979_v11  ;;  %v6208_v43 = vpop.permute.xlu1 %6207  ;;  %v810_v26 = vsel %vm714_vm1, %v14014_v50, %v6199_v48 }
 0x293   :  { %v6209_v16 = vunpack.i.l.bf16 %v6208_v43  ;;  %v9991_v52 = vpop.f32.mrf.mxu3  ;;  %v6210_v25 = vunpack.i.h.bf16 %v6208_v43  ;;  %v804_v5 = vsel %vm714_vm1, %v14016_v9, %v6200_v22  ;;  %v6219_v43 = vunpack.i.l.bf16 %v6218_v15 }
 0x294   :  { %v9999_v47 = vpop.f32.mrf.mxu1  ;;  %v6220_v9 = vunpack.i.h.bf16 %v6218_v15  ;;  %v14022_v15 = vld [vmem:[#allocation110_spill] sm:$0xff] }
 0x295   :  { %1825 = vmatmul.f32.gmra.mxu3 %v9985_v3  ;;  %14015 = vst [vmem:[#allocation35_spill] sm:$0xff] %v9999_v47  ;;  %v798_v56 = vsel %vm714_vm1, %v14017_v59, %v6209_v16  ;;  %v792_v22 = vsel %vm714_vm1, %v14019_v19, %v6210_v25  ;;  %v14020_v16 = vld [vmem:[#allocation108_spill] sm:$0xff]  ;;  %v6230_v25 = vunpack.i.h.bf16 %v6228_v51 }
 0x296   :  { %v10013_v50 = vpop.permute.xlu0 %6232  ;;  %v10025_v47 = vld [vmem:[#allocation2 + $0x28] sm:$0xff] }
 0x297   :  { %1901 = vmatmul.f32.gmra.mxu1 %v9988_v44  ;;  %v10011_v44 = vpop.f32.mrf.mxu2  ;;  %v10032_v19 = vpop.permute.xlu2 %6242 }
 0x298   :  { %14018 = vst [vmem:[#allocation85_spill] sm:$0xff] %v10011_v44  ;;  %v14026_v44 = vld [vmem:[#allocation46_spill] sm:$0xff] }
 0x299   :  { %2009 = vmatmul.f32.vlgmr.msrb.gmra.mxu0 %v9993_v61  ;;  %v1685_v61 = vpop.f32.mrf.mxu0 }
 0x29a   :  { %2321 = vmatpush.msrb.mxu0 %v810_v26  ;;  %5299 = vmatmul.msk.f32.gmra.mxu2 %vm1435_vm2, %v10004_v31  ;;  %v10015_v48 = vpop.permute.xlu1 %6222 }
 0x29b   :  { %v1641_v59 = vpop.f32.mrf.mxu3 }
 0x29c   :  { %2322 = vmatpush.msrb.mxu0 %v804_v5  ;;  %v10023_v26 = vadd.f32 %v1682_v7, %v1641_v59  ;;  %v6229_v5 = vunpack.i.l.bf16 %v6228_v51  ;;  %v10037_v59 = vld [vmem:[#allocation2 + $0xd8] sm:$0xff] }
 0x29d   :  { %1968 = vmatmul.f32.vlgmr.msrb.gmra.mxu3 %v9561_v29  ;;  %v1539_v62 = vpop.f32.mrf.mxu1  ;;  %14024 = vst [vmem:[#allocation70_spill] sm:$0xff] %v10037_v59 }
 0x29e   :  { %2323 = vmatpush.msrb.mxu0 %v798_v56  ;;  %2280 = vmatpush.msrb.mxu3 %v14020_v16  ;;  %v14021_v56 = vunpack.i.l.bf16 %v9595_v13 }
 0x29f   :  { %1904 = vmatmul.f32.gmra.mxu1 %v9067_v23  ;;  %v10041_v16 = vpop.f32.mrf.mxu2 }
 0x2a0   :  { %2324 = vmatpush.msrb.mxu0 %v792_v22  ;;  %v786_v23 = vsel %vm714_vm1, %v14021_v56, %v6219_v43  ;;  %2281 = vmatpush.msrb.mxu3 %v14022_v15  ;;  %v14023_v22 = vunpack.i.h.bf16 %v9595_v13  ;;  %14025 = vst [vmem:[#allocation71_spill] sm:$0xff] %v10041_v16  ;;  %v14027_v56 = vunpack.i.l.bf16 %v9632_v33  ;;  %v14028_v15 = vld [vmem:[#allocation26_spill] sm:$0xff]  ;;  %v14030_v16 = vld [vmem:[#allocation44_spill] sm:$0xff] }
 0x2a1   :  { %2012 = vmatmul.f32.gmra.mxu0 %v10025_v47  ;;  %v1688_v43 = vpop.f32.mrf.mxu0 }
 0x2a2   :  { %2325 = vmatpush.msrb.mxu0 %v786_v23  ;;  %v780_v7 = vsel %vm714_vm1, %v14023_v22, %v6220_v9  ;;  %5300 = vmatmul.msk.f32.gmra.mxu2 %vm1435_vm2, %v10037_v59  ;;  %v774_v51 = vsel %vm714_vm1, %v14027_v56, %v6229_v5  ;;  %v6248_v23 = vpop.permute.xlu0 %6247  ;;  %v6238_v13 = vpop.permute.xlu1 %6237  ;;  %v14029_v9 = vunpack.i.h.bf16 %v9632_v33  ;;  %v10054_v56 = vld [vmem:[#allocation2 + $0x48] sm:$0xff]  ;;  %v14033_v33 = vld [vmem:[#allocation43_spill] sm:$0xff] }
 0x2a3   :  { %2282 = vmatpush.msrb.mxu3 %v14026_v44  ;;  %v6240_v44 = vunpack.i.h.bf16 %v6238_v13  ;;  %v1644_v59 = vpop.f32.mrf.mxu3  ;;  %v6249_v5 = vunpack.i.l.bf16 %v6248_v23  ;;  %14031 = vst [vmem:[#allocation77_spill] sm:$0xff] %v10054_v56 }
 0x2a4   :  { %2326 = vmatpush.msrb.mxu0 %v780_v7  ;;  %v768_v22 = vsel %vm714_vm1, %v14029_v9, %v6230_v25  ;;  %v6239_v7 = vunpack.i.l.bf16 %v6238_v13  ;;  %v6204_v25 = vunpack.i.l.bf16 %v9918_v4  ;;  %v10065_v9 = vld [vmem:[#allocation2 + $0xf8] sm:$0xff] }
 0x2a5   :  { %2283 = vmatpush.msrb.mxu3 %v14028_v15  ;;  %14034 = vst [vmem:[#allocation79_spill] sm:$0xff] %v10065_v9 }
 0x2a6   :  { %2327 = vmatpush.msrb.mxu0 %v774_v51  ;;  %1971 = vmatmul.f32.gmra.mxu3 %v9629_v41  ;;  %v10057_v51 = vadd.f32 %v1685_v61, %v1644_v59  ;;  %v1723_v13 = vpop.f32.mrf.mxu1  ;;  %v14035_v61 = vunpack.i.h.bf16 %v9774_v30  ;;  %v6250_v41 = vunpack.i.h.bf16 %v6248_v23  ;;  %v5730_v23 = vunpack.i.h.bf16 %v13979_v39 }
 0x2a7   :  { %1907 = vmatmul.f32.gmra.mxu1 %v9135_v36  ;;  %2284 = vmatpush.msrb.mxu3 %v14030_v16  ;;  %v14032_v36 = vunpack.i.l.bf16 %v9774_v30  ;;  %v1540_v16 = vadd.f32 %v1539_v62, %v9924_v54  ;;  %v14037_v62 = vunpack.i.l.bf16 %v9710_v0  ;;  %v6214_v30 = vunpack.i.l.bf16 %v9956_v42 }
 0x2a8   :  { %2328 = vmatpush.msrb.mxu0 %v768_v22  ;;  %v756_v59 = vsel %vm714_vm1, %v14035_v61, %v6240_v44  ;;  %v14036_v22 = vld [vmem:[#allocation30_spill] sm:$0xff]  ;;  %v14039_v44 = vunpack.i.l.bf16 %v9510_v46 }
 0x2a9   :  { %2015 = vmatmul.f32.gmra.mxu0 %v10054_v56  ;;  %v762_v15 = vsel %vm714_vm1, %v14032_v36, %v6239_v7  ;;  %2285 = vmatpush.msrb.mxu3 %v14033_v33  ;;  %v10073_v7 = vpop.f32.mrf.mxu0  ;;  %v1580_v36 = vpop.f32.mrf.mxu2  ;;  %v750_v56 = vsel %vm714_vm1, %v14037_v62, %v6249_v5 }
 0x2aa   :  { %2329 = vmatpush.msrb.mxu0 %v762_v15  ;;  %5301 = vmatmul.msk.f32.gmra.mxu2 %vm1435_vm2, %v10065_v9  ;;  %v6205_v15 = vunpack.i.h.bf16 %v9918_v4  ;;  %v6258_v33 = vpop.permute.xlu2 %6257  ;;  %v1581_v54 = vadd.f32 %v1580_v36, %v1540_v16  ;;  %v14038_v9 = vld [vmem:[#allocation81_spill] sm:$0xff]  ;;  %v1227_v4 = vsel %vm1131_vm15, %v14039_v44, %v6204_v25  ;;  %v10086_v61 = vpop.permute.xlu1 %6252  ;;  %v14042_v25 = vunpack.i.h.bf16 %v9510_v46 }
 0x2ab   :  { %2286 = vmatpush.msrb.mxu3 %v14036_v22  ;;  %v6259_v5 = vunpack.i.l.bf16 %v6258_v33  ;;  %v10094_v22 = vld [vmem:[#allocation2 + $0x68] sm:$0xff]  ;;  %v1724_v44 = vadd.f32 %v1723_v13, %v10023_v26  ;;  %v14048_v13 = vunpack.i.l.bf16 %v13979_v39 }
 0x2ac   :  { %2330 = vmatpush.msrb.mxu0 %v756_v59  ;;  %v10089_v16 = vadd.f32 %v9991_v52, %v1581_v54  ;;  %v6215_v59 = vunpack.i.h.bf16 %v9956_v42  ;;  %v1221_v36 = vsel %vm1131_vm15, %v14042_v25, %v6205_v15  ;;  %v14043_v52 = vld [vmem:[#allocation65_spill] sm:$0xff]  ;;  %v6224_v15 = vunpack.i.l.bf16 %v10015_v48 }
 0x2ad   :  { %2287 = vmatpush.msrb.mxu3 %v14038_v9  ;;  %v14041_v9 = vld [vmem:[#allocation75_spill] sm:$0xff]  ;;  %v5714_v54 = vunpack.i.l.bf16 %v14043_v52  ;;  %v14050_v25 = vunpack.i.h.bf16 %v9547_v55  ;;  %v6225_v52 = vunpack.i.h.bf16 %v10015_v48  ;;  %v14054_v48 = vunpack.i.l.bf16 %v9700_v37 }
 0x2ae   :  { %2331 = vmatpush.msrb.mxu0 %v750_v56  ;;  %1974 = vmatmul.f32.gmra.mxu3 %v9676_v21  ;;  %14040 = vst [vmem:[#allocation89_spill] sm:$0xff] %v10089_v16  ;;  %v1647_v56 = vpop.f32.mrf.mxu3  ;;  %v14044_v16 = vld [vmem:[#allocation19_spill] sm:$0xff] }
 0x2af   :  { %2050 = vmatmul.f32.vlgmr.msrb.gmra.mxu1 %v9679_v8  ;;  %2288 = vmatpush.msrb.mxu3 %v14041_v9  ;;  %v10100_v62 = vadd.f32 %v1688_v43, %v1647_v56  ;;  %v14046_v9 = vunpack.i.l.bf16 %v9547_v55  ;;  %v6260_v43 = vunpack.i.h.bf16 %v6258_v33  ;;  %v14047_v56 = vld [vmem:[#allocation21_spill] sm:$0xff]  ;;  %v1726_v26 = vpop.f32.mrf.mxu1  ;;  %v1209_v33 = vsel %vm1131_vm15, %v14050_v25, %v6215_v59 }
 0x2b0   :  { %2362 = vmatpush.msrb.mxu1 %v1227_v4  ;;  %v14045_v4 = vunpack.i.h.bf16 %v9710_v0  ;;  %v738_v0 = vsel %vm714_vm1, %v14048_v13, %v5730_v23  ;;  %v14052_v23 = vunpack.i.h.bf16 %v13903_v18  ;;  %v6234_v59 = vunpack.i.l.bf16 %v10013_v50  ;;  %v10155_v25 = vld [vmem:[#allocation2 + $0x88] sm:$0xff] }
 0x2b1   :  { %2018 = vmatmul.f32.gmra.mxu0 %v10094_v22  ;;  %2289 = vmatpush.msrb.mxu3 %v14044_v16  ;;  %v1215_v46 = vsel %vm1131_vm15, %v14046_v9, %v6214_v30  ;;  %v5695_v30 = vunpack.i.h.bf16 %v13989_v1  ;;  %v1694_v39 = vpop.f32.mrf.mxu0  ;;  %v1203_v18 = vsel %vm1131_vm15, %v14054_v48, %v6224_v15  ;;  %v14057_v13 = vunpack.i.h.bf16 %v9783_v35 }
 0x2b2   :  { %2363 = vmatpush.msrb.mxu1 %v1221_v36  ;;  %v744_v42 = vsel %vm714_vm1, %v14045_v4, %v6250_v41  ;;  %5302 = vmatmul.msk.f32.vlgmr.msrb.gmra.mxu2 %vm1435_vm2, %v9718_v53  ;;  %v14049_v41 = vunpack.i.h.bf16 %v9437_v57  ;;  %v1764_v36 = vpop.f32.mrf.mxu2  ;;  %v14051_v4 = vld [vmem:[#allocation50_spill] sm:$0xff]  ;;  %v732_v57 = vsel %vm714_vm1, %v14052_v23, %v5714_v54  ;;  %v1337_v55 = vpop.permute.xlu1 %1336  ;;  %v14055_v54 = vunpack.i.l.bf16 %v9783_v35 }
 0x2b3   :  { %2332 = vmatpush.msrb.mxu0 %v744_v42  ;;  %2290 = vmatpush.msrb.mxu3 %v14047_v56  ;;  %v14053_v42 = vld [vmem:[#allocation49_spill] sm:$0xff]  ;;  %v14058_v15 = vunpack.i.h.bf16 %v9700_v37  ;;  %v14060_v37 = vunpack.i.l.bf16 %v9655_v34  ;;  %v6254_v23 = vunpack.i.l.bf16 %v10086_v61 }
 0x2b4   :  { %2364 = vmatpush.msrb.mxu1 %v1215_v46  ;;  %v1384_v16 = vsel %vm1366_vm0, %v14049_v41, %v6259_v5  ;;  %v10130_v5 = vadd.f32 %v1764_v36, %v1724_v44  ;;  %v5679_v9 = vunpack.i.l.bf16 %v14053_v42  ;;  %v1378_v44 = vsel %vm1366_vm0, %v14055_v54, %v6260_v43  ;;  %v6263_v42 = vpop.permute.xlu0 %6262  ;;  %v10189_v54 = vld [vmem:[#allocation2 + $0xa8] sm:$0xff] }
 0x2b5   :  { %2333 = vmatpush.msrb.mxu0 %v738_v0  ;;  %2416 = vmatpush.msrb.mxu2 %v1384_v16  ;;  %v14056_v46 = vunpack.i.l.bf16 %v13989_v1  ;;  %v1372_v0 = vsel %vm1366_vm0, %v14057_v13, %v1337_v55  ;;  %v1197_v41 = vsel %vm1131_vm15, %v14058_v15, %v6225_v52  ;;  %v1727_v16 = vadd.f32 %v1726_v26, %v10057_v51  ;;  %v14061_v26 = vld [vmem:[#allocation28_spill] sm:$0xff] }
 0x2b6   :  { %2291 = vmatpush.msrb.mxu3 %v14051_v4  ;;  %2365 = vmatpush.msrb.mxu1 %v1209_v33  ;;  %v1650_v43 = vpop.f32.mrf.mxu3  ;;  %v14059_v1 = vunpack.i.h.bf16 %v13909_v27  ;;  %v6245_v33 = vunpack.i.h.bf16 %v10032_v19  ;;  %v14062_v27 = vunpack.i.h.bf16 %v9655_v34  ;;  %v6999_v34 = vld [vmem:[%s13023_s0 + $0x28] sm:$0xff]  ;;  %v14064_v55 = vunpack.i.h.bf16 %v9692_v14 }
 0x2b7   :  { %2334 = vmatpush.msrb.mxu0 %v732_v57  ;;  %1977 = vmatmul.f32.gmra.mxu3 %v9753_v49  ;;  %v726_v56 = vsel %vm714_vm1, %v14056_v46, %v5695_v30  ;;  %v1692_v35 = vadd.f32 %v10073_v7, %v1650_v43  ;;  %v1191_v30 = vsel %vm1131_vm15, %v14060_v37, %v6234_v59  ;;  %v6264_v46 = vunpack.i.l.bf16 %v6263_v42 }
 0x2b8   :  { %2053 = vmatmul.f32.gmra.mxu1 %v9756_v17  ;;  %2292 = vmatpush.msrb.mxu3 %v13806_v20  ;;  %v6235_v20 = vunpack.i.h.bf16 %v10013_v50  ;;  %v720_v50 = vsel %vm714_vm1, %v14059_v1, %v5679_v9  ;;  %v1729_v51 = vpop.f32.mrf.mxu1  ;;  %v6255_v9 = vunpack.i.h.bf16 %v10086_v61  ;;  %v1173_v59 = vsel %vm1131_vm15, %v14064_v55, %v6245_v33  ;;  %v6268_v61 = vpop.permute.xlu2 %6267 }
 0x2b9   :  { %2366 = vmatpush.msrb.mxu1 %v1203_v18  ;;  %2417 = vmatpush.msrb.mxu2 %v1378_v44  ;;  %v1697_v36 = vpop.f32.mrf.mxu0  ;;  %v1730_v18 = vadd.f32 %v1729_v51, %v10100_v62  ;;  %v14066_v62 = vunpack.i.h.bf16 %v9862_v58  ;;  %v6269_v43 = vunpack.i.l.bf16 %v6268_v61  ;;  %v10210_v51 = vld [vmem:[#allocation2 + $0xc8] sm:$0xff]  ;;  %v14069_v33 = vunpack.i.l.bf16 %v9950_v63 }
 0x2ba   :  { %2335 = vmatpush.msrb.mxu0 %v726_v56  ;;  %2293 = vmatpush.msrb.mxu3 %v13650_v10  ;;  %v6244_v10 = vunpack.i.l.bf16 %v10032_v19  ;;  %v1185_v7 = vsel %vm1131_vm15, %v14062_v27, %v6235_v20  ;;  %v1767_v52 = vpop.f32.mrf.mxu2  ;;  %v14063_v19 = vunpack.i.l.bf16 %v9692_v14  ;;  %v14065_v56 = vunpack.i.l.bf16 %v9862_v58 }
 0x2bb   :  { %2021 = vmatmul.f32.gmra.mxu0 %v10155_v25  ;;  %2367 = vmatpush.msrb.mxu1 %v1197_v41  ;;  %v10174_v4 = vadd.f32 %v1767_v52, %v1727_v16  ;;  %v6265_v14 = vunpack.i.h.bf16 %v6263_v42  ;;  %v1161_v20 = vsel %vm1131_vm15, %v14066_v62, %v6255_v9  ;;  %v14067_v16 = vunpack.i.l.bf16 %v9786_v6  ;;  %v10240_v62 = vld [vmem:[#allocation2 + $0xd0] sm:$0xff] }
 0x2bc   :  { %2336 = vmatpush.msrb.mxu0 %v720_v50  ;;  %2418 = vmatpush.msrb.mxu2 %v1372_v0  ;;  %v1179_v57 = vsel %vm1131_vm15, %v14063_v19, %v6244_v10  ;;  %v1167_v13 = vsel %vm1131_vm15, %v14065_v56, %v6254_v23  ;;  %v6270_v50 = vunpack.i.h.bf16 %v6268_v61  ;;  %v14068_v58 = vunpack.i.h.bf16 %v9786_v6 }
 0x2bd   :  { %2294 = vmatpush.msrb.mxu3 %v14061_v26  ;;  %2368 = vmatpush.msrb.mxu1 %v1191_v30  ;;  %v1155_v1 = vsel %vm1131_vm15, %v14067_v16, %v6264_v46  ;;  %v1143_v27 = vsel %vm1131_vm15, %v14069_v33, %v6269_v43  ;;  %v14070_v6 = vunpack.i.h.bf16 %v9950_v63  ;;  %v14073_v16 = vld [vmem:[#allocation70_spill] sm:$0xff]  ;;  %vm2445_vm0 = vcmp.gt.f32.partialorder %v10130_v5, 0.0 }
 0x2be   :  { %5303 = vmatmul.msk.f32.gmra.mxu2 %vm1435_vm2, %v9788_v60  ;;  %v1653_v48 = vpop.f32.mrf.mxu3  ;;  %v1149_v10 = vsel %vm1131_vm15, %v14068_v58, %v6265_v14  ;;  %v14074_v58 = vld [vmem:[#allocation34_spill] sm:$0xff]  ;;  %vm2451_vm4 = vcmp.gt.f32.partialorder %v10174_v4, 0.0 }
 0x2bf   :  { %2369 = vmatpush.msrb.mxu1 %v1185_v7  ;;  %1980 = vmatmul.f32.gmra.mxu3 %v9824_v45  ;;  %v1695_v44 = vadd.f32 %v1694_v39, %v1653_v48  ;;  %v1137_v52 = vsel %vm1131_vm15, %v14070_v6, %v6270_v50  ;;  %v14071_v48 = vld [vmem:[#allocation29_spill] sm:$0xff] }
 0x2c0   :  { %2056 = vmatmul.f32.gmra.mxu1 %v9827_v12  ;;  %2295 = vmatpush.msrb.mxu3 %v6999_v34  ;;  %v1732_v0 = vpop.f32.mrf.mxu1  ;;  %v10225_v34 = vld [vmem:[#allocation2 + $0xe8] sm:$0xff] }
 0x2c1   :  { %2370 = vmatpush.msrb.mxu1 %v1179_v57  ;;  %v1733_v30 = vadd.f32 %v1732_v0, %v1692_v35 }
 0x2c2   :  { %v1700_v15 = vpop.f32.mrf.mxu0  ;;  %v1770_v41 = vpop.f32.mrf.mxu2 }
 0x2c3   :  { %2024 = vmatmul.f32.gmra.mxu0 %v10189_v54  ;;  %2371 = vmatpush.msrb.mxu1 %v1173_v59  ;;  %v10201_v39 = vadd.f32 %v1770_v41, %v1730_v18 }
 0x2c5   :  { %2372 = vmatpush.msrb.mxu1 %v1167_v13 }
 0x2c6   :  { %5304 = vmatmul.msk.f32.gmra.mxu2 %vm1435_vm2, %v9864_v2  ;;  %v1656_v37 = vpop.f32.mrf.mxu3 }
 0x2c7   :  { %2373 = vmatpush.msrb.mxu1 %v1161_v20  ;;  %1983 = vmatmul.f32.gmra.mxu3 %v9902_v40  ;;  %v1698_v26 = vadd.f32 %v1697_v36, %v1656_v37 }
 0x2c8   :  { %2059 = vmatmul.f32.gmra.mxu1 %v9905_v28  ;;  %v1735_v7 = vpop.f32.mrf.mxu1 }
 0x2c9   :  { %2374 = vmatpush.msrb.mxu1 %v1155_v1  ;;  %v1736_v57 = vadd.f32 %v1735_v7, %v1695_v44  ;;  %v14072_v44 = vld [vmem:[#allocation22_spill] sm:$0xff]  ;;  %v14076_v7 = vld [vmem:[#allocation79_spill] sm:$0xff] }
 0x2ca   :  { %v1703_v35 = vpop.f32.mrf.mxu0  ;;  %v1773_v23 = vpop.f32.mrf.mxu2 }
 0x2cb   :  { %2027 = vmatmul.f32.gmra.mxu0 %v10210_v51  ;;  %2375 = vmatpush.msrb.mxu1 %v1149_v10  ;;  %v10222_v19 = vadd.f32 %v1773_v23, %v1733_v30  ;;  %v10249_v10 = vld [vmem:[#allocation2 + $0xf0] sm:$0xff] }
 0x2cd   :  { %2376 = vmatpush.msrb.mxu1 %v1143_v27 }
 0x2ce   :  { %5305 = vmatmul.msk.f32.gmra.mxu2 %vm1435_vm2, %v9936_v24  ;;  %v1659_v36 = vpop.f32.mrf.mxu3 }
 0x2cf   :  { %2377 = vmatpush.msrb.mxu1 %v1137_v52  ;;  %1986 = vmatmul.f32.gmra.mxu3 %v9958_v32  ;;  %v1701_v42 = vadd.f32 %v1700_v15, %v1659_v36 }
 0x2d0   :  { %2062 = vmatmul.f32.gmra.mxu1 %v9961_v38  ;;  %v1738_v9 = vpop.f32.mrf.mxu1 }
 0x2d1   :  { %v1739_v46 = vadd.f32 %v1738_v9, %v1698_v26  ;;  %v14075_v26 = vld [vmem:[#allocation77_spill] sm:$0xff] }
 0x2d2   :  { %v1846_v63 = vpop.f32.mrf.mxu0  ;;  %v1776_v55 = vpop.f32.mrf.mxu2 }
 0x2d3   :  { %2030 = vmatmul.f32.gmra.mxu0 %v10225_v34  ;;  %v10231_v59 = vadd.f32 %v1776_v55, %v1736_v57 }
 0x2d6   :  { %5306 = vmatmul.msk.f32.gmra.mxu2 %vm1435_vm2, %v9979_v11  ;;  %v1662_v18 = vpop.f32.mrf.mxu3 }
 0x2d7   :  { %1989 = vmatmul.f32.gmra.mxu3 %v9985_v3  ;;  %v1704_v56 = vadd.f32 %v1703_v35, %v1662_v18 }
 0x2d8   :  { %2065 = vmatmul.f32.gmra.mxu1 %v14071_v48  ;;  %v1741_v13 = vpop.f32.mrf.mxu1 }
 0x2d9   :  { %v1742_v15 = vadd.f32 %v1741_v13, %v1701_v42 }
 0x2da   :  { %v1779_v61 = vpop.f32.mrf.mxu2 }
 0x2db   :  { %2173 = vmatmul.f32.vlgmr.msra.gmra.mxu0 %v14072_v44  ;;  %v1849_v0 = vpop.f32.mrf.mxu0  ;;  %v10238_v14 = vadd.f32 %v1779_v61, %v1739_v46 }
 0x2de   :  { %5307 = vmatmul.msk.f32.gmra.mxu2 %vm1435_vm2, %v10004_v31  ;;  %v1805_v20 = vpop.f32.mrf.mxu3 }
 0x2df   :  { %2132 = vmatmul.f32.vlgmr.msra.gmra.mxu3 %v9561_v29  ;;  %v1847_v41 = vadd.f32 %v1846_v63, %v1805_v20 }
 0x2e0   :  { %2068 = vmatmul.f32.gmra.mxu1 %v10240_v62  ;;  %v1744_v43 = vpop.f32.mrf.mxu1 }
 0x2e1   :  { %v1745_v30 = vadd.f32 %v1744_v43, %v1704_v56 }
 0x2e2   :  { %v1782_v50 = vpop.f32.mrf.mxu2 }
 0x2e3   :  { %2176 = vmatmul.f32.gmra.mxu0 %v10025_v47  ;;  %v1852_v1 = vpop.f32.mrf.mxu0  ;;  %v10247_v29 = vadd.f32 %v1782_v50, %v1742_v15 }
 0x2e6   :  { %5308 = vmatmul.msk.f32.gmra.mxu2 %vm1435_vm2, %v14073_v16 }
 0x2e7   :  { %2135 = vmatmul.f32.gmra.mxu3 %v14074_v58  ;;  %v1808_v37 = vpop.f32.mrf.mxu3 }
 0x2e8   :  { %2071 = vmatmul.f32.gmra.mxu1 %v10249_v10  ;;  %v1850_v33 = vadd.f32 %v1849_v0, %v1808_v37  ;;  %v1887_v27 = vpop.f32.mrf.mxu1 }
 0x2e9   :  { %v1888_v36 = vadd.f32 %v1887_v27, %v1847_v41 }
 0x2ea   :  { %v1785_v52 = vpop.f32.mrf.mxu2 }
 0x2eb   :  { %2179 = vmatmul.f32.gmra.mxu0 %v14075_v26  ;;  %v1855_v6 = vpop.f32.mrf.mxu0  ;;  %v10256_v35 = vadd.f32 %v1785_v52, %v1745_v30 }
 0x2ee   :  { %5309 = vmatmul.msk.f32.gmra.mxu2 %vm1435_vm2, %v14076_v7 }
 0x2ef   :  { %2138 = vmatmul.f32.gmra.mxu3 %v9676_v21  ;;  %v1811_v23 = vpop.f32.mrf.mxu3 }
 0x2f0   :  { %2214 = vmatmul.f32.vlgmr.msra.gmra.mxu1 %v9679_v8  ;;  %v1853_v57 = vadd.f32 %v1852_v1, %v1811_v23  ;;  %v1890_v42 = vpop.f32.mrf.mxu1 }
 0x2f1   :  { %v1891_v18 = vadd.f32 %v1890_v42, %v1850_v33 }
 0x2f3   :  { %2182 = vmatmul.f32.gmra.mxu0 %v10094_v22  ;;  %v1928_v63 = vpop.f32.mrf.mxu2 }
 0x2f4   :  { %v1858_v9 = vpop.f32.mrf.mxu0  ;;  %v10263_v55 = vadd.f32 %v1928_v63, %v1888_v36 }
 0x2f6   :  { %5310 = vmatmul.msk.f32.vlgmr.msra.gmra.mxu2 %vm1435_vm2, %v9718_v53 }
 0x2f7   :  { %2141 = vmatmul.f32.gmra.mxu3 %v9753_v49  ;;  %v1814_v21 = vpop.f32.mrf.mxu3 }
 0x2f8   :  { %2217 = vmatmul.f32.gmra.mxu1 %v9756_v17  ;;  %v1856_v8 = vadd.f32 %v1855_v6, %v1814_v21 }
 0x2fb   :  { %2185 = vmatmul.f32.gmra.mxu0 %v10155_v25  ;;  %v1893_v46 = vpop.f32.mrf.mxu1  ;;  %v1931_v13 = vpop.f32.mrf.mxu2 }
 0x2fc   :  { %v10270_v53 = vadd.f32 %v1931_v13, %v1891_v18  ;;  %v1894_v61 = vadd.f32 %v1893_v46, %v1853_v57 }
 0x2fd   :  { %v1861_v56 = vpop.f32.mrf.mxu0 }
 0x2fe   :  { %5311 = vmatmul.msk.f32.gmra.mxu2 %vm1435_vm2, %v9788_v60 }
 0x2ff   :  { %2144 = vmatmul.f32.gmra.mxu3 %v9824_v45 }
 0x300   :  { %2220 = vmatmul.f32.gmra.mxu1 %v9827_v12  ;;  %v1817_v0 = vpop.f32.mrf.mxu3 }
 0x301   :  { %v1859_v20 = vadd.f32 %v1858_v9, %v1817_v0 }
 0x303   :  { %2188 = vmatmul.f32.gmra.mxu0 %v10189_v54 }
 0x304   :  { %v1896_v15 = vpop.f32.mrf.mxu1  ;;  %v1934_v43 = vpop.f32.mrf.mxu2 }
 0x305   :  { %v10277_v60 = vadd.f32 %v1934_v43, %v1894_v61  ;;  %v1897_v50 = vadd.f32 %v1896_v15, %v1856_v8  ;;  %v2794_v8 = vld [vmem:[#allocation5 + $0x1f0] sm:$0xff]  ;;  %v2788_v61 = vld [vmem:[#allocation5 + $0x1c0] sm:$0xff] }
 0x306   :  { %5312 = vmatmul.msk.f32.gmra.mxu2 %vm1435_vm2, %v9864_v2  ;;  %v1864_v41 = vpop.f32.mrf.mxu0  ;;  %2965 = vmatpush.msra.mxu0 %v2794_v8  ;;  %v2750_v8 = vld [vmem:[#allocation5 + $0x90] sm:$0xff] }
 0x307   :  { %2147 = vmatmul.f32.gmra.mxu3 %v9902_v40 }
 0x308   :  { %2223 = vmatmul.f32.gmra.mxu1 %v9905_v28  ;;  %v1820_v1 = vpop.f32.mrf.mxu3 }
 0x309   :  { %v1862_v58 = vadd.f32 %v1861_v56, %v1820_v1  ;;  %v2792_v56 = vld [vmem:[#allocation5 + $0x1e0] sm:$0xff]  ;;  %v2758_v1 = vld [vmem:[#allocation5 + $0xd0] sm:$0xff] }
 0x30a   :  { %2966 = vmatpush.msra.mxu0 %v2792_v56 }
 0x30b   :  { %2191 = vmatmul.f32.gmra.mxu0 %v10210_v51 }
 0x30c   :  { %v1899_v37 = vpop.f32.mrf.mxu1 }
 0x30d   :  { %v1937_v33 = vpop.f32.mrf.mxu2  ;;  %v1900_v52 = vadd.f32 %v1899_v37, %v1859_v20 }
 0x30e   :  { %5313 = vmatmul.msk.f32.gmra.mxu2 %vm1435_vm2, %v9936_v24  ;;  %v1867_v30 = vpop.f32.mrf.mxu0  ;;  %v10284_v27 = vadd.f32 %v1937_v33, %v1897_v50  ;;  %v2784_v50 = vld [vmem:[#allocation5 + $0x1a0] sm:$0xff] }
 0x30f   :  { %2150 = vmatmul.f32.gmra.mxu3 %v9958_v32 }
 0x310   :  { %2226 = vmatmul.f32.gmra.mxu1 %v9961_v38  ;;  %v1823_v6 = vpop.f32.mrf.mxu3 }
 0x311   :  { %v1865_v23 = vadd.f32 %v1864_v41, %v1823_v6  ;;  %v2786_v41 = vld [vmem:[#allocation5 + $0x1b0] sm:$0xff] }
 0x312   :  { %v2782_v6 = vld [vmem:[#allocation5 + $0x190] sm:$0xff] }
 0x313   :  { %2194 = vmatmul.f32.gmra.mxu0 %v10225_v34 }
 0x314   :  { %v1902_v36 = vpop.f32.mrf.mxu1 }
 0x315   :  { %v1940_v42 = vpop.f32.mrf.mxu2  ;;  %v1903_v21 = vadd.f32 %v1902_v36, %v1862_v58 }
 0x316   :  { %5314 = vmatmul.msk.f32.gmra.mxu2 %vm1435_vm2, %v9979_v11  ;;  %v10290_v57 = vpop.f32.mrf.mxu0  ;;  %v10293_v9 = vadd.f32 %v1940_v42, %v1900_v52  ;;  %v2754_v52 = vld [vmem:[#allocation5 + $0xb0] sm:$0xff]  ;;  %v2752_v42 = vld [vmem:[#allocation5 + $0xa0] sm:$0xff] }
 0x317   :  { %2153 = vmatmul.f32.gmra.mxu3 %v9985_v3  ;;  %v7005_v3 = vld [vmem:[#allocation2] sm:$0xff] }
 0x318   :  { %2229 = vmatmul.f32.gmra.mxu1 %v14071_v48  ;;  %v1826_v63 = vpop.f32.mrf.mxu3  ;;  %v2790_v48 = vld [vmem:[#allocation5 + $0x1d0] sm:$0xff] }
 0x319   :  { %v1868_v18 = vadd.f32 %v1867_v30, %v1826_v63  ;;  %2967 = vmatpush.msra.mxu0 %v2790_v48  ;;  %v7006_v30 = vld [vmem:[#allocation2 + $0x20] sm:$0xff]  ;;  %v2778_v63 = vld [vmem:[#allocation5 + $0x170] sm:$0xff] }
 0x31a   :  { %v7008_v48 = vld [vmem:[#allocation2 + $0x10] sm:$0xff] }
 0x31b   :  { %2337 = vmatmul.f32.vlgmr.msrb.gmra.mxu0 %v14072_v44  ;;  %v2762_v44 = vld [vmem:[#allocation5 + $0xf0] sm:$0xff] }
 0x31c   :  { %v1905_v46 = vpop.f32.mrf.mxu1  ;;  %2924 = vmatpush.msra.mxu3 %v2762_v44  ;;  %2968 = vmatpush.msra.mxu0 %v2788_v61  ;;  %v2774_v44 = vld [vmem:[#allocation5 + $0x150] sm:$0xff] }
 0x31d   :  { %v1943_v13 = vpop.f32.mrf.mxu2  ;;  %v1906_v15 = vadd.f32 %v1905_v46, %v1865_v23  ;;  %v2780_v23 = vld [vmem:[#allocation5 + $0x180] sm:$0xff]  ;;  %v2746_v61 = vld [vmem:[#allocation5 + $0x70] sm:$0xff] }
 0x31e   :  { %5315 = vmatmul.msk.f32.gmra.mxu2 %vm1435_vm2, %v10004_v31  ;;  %v10299_v11 = vpop.f32.mrf.mxu0  ;;  %v10301_v0 = vadd.f32 %v1943_v13, %v1903_v21  ;;  %v2760_v31 = vld [vmem:[#allocation5 + $0xe0] sm:$0xff]  ;;  %2969 = vmatpush.msra.mxu0 %v2786_v41 }
 0x31f   :  { %2296 = vmatmul.f32.vlgmr.msrb.gmra.mxu3 %v7005_v3  ;;  %v2776_v13 = vld [vmem:[#allocation5 + $0x160] sm:$0xff] }
 0x320   :  { %2232 = vmatmul.f32.gmra.mxu1 %v10240_v62  ;;  %v10304_v20 = vpop.f32.mrf.mxu3  ;;  %2925 = vmatpush.msra.mxu3 %v2760_v31  ;;  %v7007_v3 = vld [vmem:[#allocation2 + $0x40] sm:$0xff] }
 0x321   :  { %2970 = vmatpush.msra.mxu0 %v2784_v50  ;;  %v2824_v41 = vld [vmem:[#allocation5 + $0x2e0] sm:$0xff]  ;;  %v2822_v50 = vld [vmem:[#allocation5 + $0x2d0] sm:$0xff] }
 0x322   :  { %2926 = vmatpush.msra.mxu3 %v2758_v1  ;;  %v2744_v1 = vld [vmem:[#allocation5 + $0x60] sm:$0xff] }
 0x323   :  { %2340 = vmatmul.f32.gmra.mxu0 %v10025_v47  ;;  %v2756_v47 = vld [vmem:[#allocation5 + $0xc0] sm:$0xff] }
 0x324   :  { %v1908_v43 = vpop.f32.mrf.mxu1  ;;  %2927 = vmatpush.msra.mxu3 %v2756_v47  ;;  %2971 = vmatpush.msra.mxu0 %v2782_v6  ;;  %v2742_v6 = vld [vmem:[#allocation5 + $0x50] sm:$0xff] }
 0x325   :  { %v1946_v37 = vpop.f32.mrf.mxu2 }
 0x326   :  { %5316 = vmatmul.msk.f32.gmra.mxu2 %vm1435_vm2, %v14073_v16  ;;  %v10309_v58 = vpop.f32.mrf.mxu0  ;;  %v10311_v33 = vadd.f32 %v1946_v37, %v1906_v15  ;;  %2928 = vmatpush.msra.mxu3 %v2754_v52  ;;  %v1909_v16 = vadd.f32 %v1908_v43, %v1868_v18  ;;  %v2826_v15 = vld [vmem:[#allocation5 + $0x2f0] sm:$0xff]  ;;  %v7009_v37 = vld [vmem:[#allocation2 + $0x18] sm:$0xff] }
 0x327   :  { %2299 = vmatmul.f32.gmra.mxu3 %v7006_v30  ;;  %2972 = vmatpush.msra.mxu0 %v2780_v23  ;;  %v2770_v30 = vld [vmem:[#allocation5 + $0x130] sm:$0xff] }
 0x328   :  { %2235 = vmatmul.f32.gmra.mxu1 %v10249_v10  ;;  %2929 = vmatpush.msra.mxu3 %v2752_v42  ;;  %v2858_v23 = vld [vmem:[#allocation5 + $0x3f0] sm:$0xff]  ;;  %v2740_v42 = vld [vmem:[#allocation5 + $0x40] sm:$0xff] }
 0x329   :  { %v10314_v36 = vpop.f32.mrf.mxu3  ;;  %2973 = vmatpush.msra.mxu0 %v2778_v63  ;;  %3006 = vmatpush.msra.mxu1 %v2826_v15  ;;  %v2818_v63 = vld [vmem:[#allocation5 + $0x2b0] sm:$0xff] }
 0x32a   :  { %2930 = vmatpush.msra.mxu3 %v2750_v8  ;;  %3047 = vmatpush.msra.mxu2 %v2858_v23  ;;  %v14078_v15 = vld [vmem:[#allocation61_spill] sm:$0xff] }
 0x32b   :  { %2343 = vmatmul.f32.gmra.mxu0 %v14075_v26  ;;  %v2748_v26 = vld [vmem:[#allocation5 + $0x80] sm:$0xff]  ;;  %3007 = vmatpush.msra.mxu1 %v2824_v41  ;;  %v2734_v23 = vld [vmem:[#allocation5 + $0x10] sm:$0xff] }
 0x32c   :  { %v10317_v21 = vpop.f32.mrf.mxu1  ;;  %2974 = vmatpush.msra.mxu0 %v2776_v13  ;;  %2931 = vmatpush.msra.mxu3 %v2748_v26  ;;  %v2816_v13 = vld [vmem:[#allocation5 + $0x2a0] sm:$0xff]  ;;  %v2738_v26 = vld [vmem:[#allocation5 + $0x30] sm:$0xff] }
 0x32d   :  { %v1949_v56 = vpop.f32.mrf.mxu2  ;;  %3008 = vmatpush.msra.mxu1 %v2822_v50  ;;  %v2736_v41 = vld [vmem:[#allocation5 + $0x20] sm:$0xff] }
 0x32e   :  { %5317 = vmatmul.msk.f32.gmra.mxu2 %vm1435_vm2, %v14076_v7  ;;  %v10321_v46 = vpop.f32.mrf.mxu0  ;;  %v10323_v18 = vadd.f32 %v1949_v56, %v1909_v16  ;;  %v2772_v7 = vld [vmem:[#allocation5 + $0x140] sm:$0xff]  ;;  %2975 = vmatpush.msra.mxu0 %v2774_v44  ;;  %v2766_v56 = vld [vmem:[#allocation5 + $0x110] sm:$0xff] }
 0x32f   :  { %2302 = vmatmul.f32.gmra.mxu3 %v7007_v3  ;;  %v2768_v16 = vld [vmem:[#allocation5 + $0x120] sm:$0xff] }
 0x330   :  { %14077 = vst [vmem:[#allocation73_spill] sm:$0xff] %v10323_v18  ;;  %2378 = vmatmul.f32.vlgmr.msrb.gmra.mxu1 %v7008_v48  ;;  %2932 = vmatpush.msra.mxu3 %v2746_v61  ;;  %v7010_v48 = vld [vmem:[#allocation2 + $0x38] sm:$0xff]  ;;  %v2764_v44 = vld [vmem:[#allocation5 + $0x100] sm:$0xff]  ;;  %v2814_v61 = vld [vmem:[#allocation5 + $0x290] sm:$0xff] }
 0x331   :  { %v10325_v31 = vpop.f32.mrf.mxu3  ;;  %2976 = vmatpush.msra.mxu0 %v2772_v7  ;;  %v14079_v7 = vld [vmem:[#allocation88_spill] sm:$0xff] }
 0x332   :  { %2933 = vmatpush.msra.mxu3 %v2744_v1  ;;  %v2852_v1 = vld [vmem:[#allocation5 + $0x3c0] sm:$0xff] }
 0x333   :  { %2346 = vmatmul.f32.gmra.mxu0 %v10094_v22  ;;  %v2820_v22 = vld [vmem:[#allocation5 + $0x2c0] sm:$0xff] }
 0x334   :  { %2977 = vmatpush.msra.mxu0 %v2770_v30  ;;  %3009 = vmatpush.msra.mxu1 %v2820_v22  ;;  %v14080_v30 = vld [vmem:[#allocation57_spill] sm:$0xff] }
 0x335   :  { %v10328_v43 = vpop.f32.mrf.mxu1  ;;  %v10332_v47 = vpop.f32.mrf.mxu2  ;;  %2934 = vmatpush.msra.mxu3 %v2742_v6 }
 0x336   :  { %5318 = vmatmul.msk.f32.vlgmr.msrb.gmra.mxu2 %vm1435_vm2, %v7009_v37  ;;  %3010 = vmatpush.msra.mxu1 %v2818_v63  ;;  %v2812_v37 = vld [vmem:[#allocation5 + $0x280] sm:$0xff] }
 0x337   :  { %2305 = vmatmul.f32.gmra.mxu3 %v9753_v49  ;;  %v2856_v49 = vld [vmem:[#allocation5 + $0x3e0] sm:$0xff]  ;;  %2978 = vmatpush.msra.mxu0 %v2768_v16  ;;  %v2850_v16 = vld [vmem:[#allocation5 + $0x3b0] sm:$0xff] }
 0x338   :  { %v10334_v52 = vpop.f32.mrf.mxu0  ;;  %2381 = vmatmul.f32.gmra.mxu1 %v9756_v17  ;;  %2935 = vmatpush.msra.mxu3 %v2740_v42  ;;  %v2854_v17 = vld [vmem:[#allocation5 + $0x3d0] sm:$0xff]  ;;  %v2732_v63 = vld [vmem:[#allocation5] sm:$0xff] }
 0x339   :  { %3048 = vmatpush.msra.mxu2 %v2856_v49  ;;  %3011 = vmatpush.msra.mxu1 %v2816_v13  ;;  %v14081_v49 = vld [vmem:[#allocation14_spill] sm:$0xff]  ;;  %v2493_v13 = vmin.f32 %v10130_v5, 0.0 }
 0x33a   :  { %v10337_v8 = vpop.f32.mrf.mxu3  ;;  %2979 = vmatpush.msra.mxu0 %v2766_v56  ;;  %2936 = vmatpush.msra.mxu3 %v2738_v26  ;;  %v2808_v26 = vld [vmem:[#allocation5 + $0x260] sm:$0xff] }
 0x33b   :  { %2349 = vmatmul.f32.gmra.mxu0 %v10155_v25  ;;  %v1519_v25 = vadd.f32 %v14079_v7, %v14078_v15  ;;  %3049 = vmatpush.msra.mxu2 %v2854_v17  ;;  %v2806_v7 = vld [vmem:[#allocation5 + $0x250] sm:$0xff] }
 0x33c   :  { %2980 = vmatpush.msra.mxu0 %v2764_v44  ;;  %3012 = vmatpush.msra.mxu1 %v2814_v61  ;;  %v14083_v44 = vld [vmem:[#allocation16_spill] sm:$0xff] }
 0x33d   :  { %v10340_v3 = vpop.f32.mrf.mxu1  ;;  %v1560_v6 = vadd.f32 %v14080_v30, %v1519_v25  ;;  %2937 = vmatpush.msra.mxu3 %v2736_v41  ;;  %3050 = vmatpush.msra.mxu2 %v2852_v1  ;;  %v14084_v41 = vld [vmem:[#allocation68_spill] sm:$0xff] }
 0x33e   :  { %5319 = vmatmul.msk.f32.gmra.mxu2 %vm1435_vm2, %v7010_v48  ;;  %3013 = vmatpush.msra.mxu1 %v2812_v37  ;;  %v2846_v48 = vld [vmem:[#allocation5 + $0x390] sm:$0xff]  ;;  %v2542_v37 = vmul.f32 1.442695, %v2493_v13  ;;  %v2844_v30 = vld [vmem:[#allocation5 + $0x380] sm:$0xff] }
 0x33f   :  { %2308 = vmatmul.f32.gmra.mxu3 %v9824_v45  ;;  %v2810_v45 = vld [vmem:[#allocation5 + $0x270] sm:$0xff]  ;;  %3051 = vmatpush.msra.mxu2 %v2850_v16  ;;  %v10356_v56 = vadd.f32 %v14081_v49, %v1560_v6  ;;  %v14087_v13 = vld [vmem:[#allocation99_spill] sm:$0xff] }
 0x340   :  { %v10346_v50 = vpop.f32.mrf.mxu0  ;;  %2384 = vmatmul.f32.gmra.mxu1 %v9827_v12  ;;  %2938 = vmatpush.msra.mxu3 %v2734_v23  ;;  %v2848_v12 = vld [vmem:[#allocation5 + $0x3a0] sm:$0xff]  ;;  %v14085_v16 = vld [vmem:[#allocation62_spill] sm:$0xff]  ;;  %6836 = vpow2.f32 %v2542_v37 }
 0x341   :  { %v10350_v22 = vpop.f32.mrf.mxu2  ;;  %3014 = vmatpush.msra.mxu1 %v2810_v45  ;;  %3052 = vmatpush.msra.mxu2 %v2848_v12  ;;  %v2492_v25 = vmin.f32 %v10356_v56, 0.0  ;;  %v2804_v23 = vld [vmem:[#allocation5 + $0x240] sm:$0xff]  ;;  %v14086_v49 = vld [vmem:[#allocation18_spill] sm:$0xff]  ;;  %vm2444_vm1 = vcmp.gt.f32.partialorder %v10356_v56, 0.0 }
 0x342   :  { %v10352_v42 = vpop.f32.mrf.mxu3  ;;  %2939 = vmatpush.msra.mxu3 %v2732_v63  ;;  %v2499_v63 = vmin.f32 %v10174_v4, 0.0 }
 0x343   :  { %2352 = vmatmul.f32.gmra.mxu0 %v10189_v54  ;;  %v14082_v54 = vld [vmem:[#allocation76_spill] sm:$0xff]  ;;  %3015 = vmatpush.msra.mxu1 %v2808_v26  ;;  %v1525_v26 = vadd.f32 %v14087_v13, %v14086_v49 }
 0x344   :  { %v1522_v61 = vadd.f32 %v14083_v44, %v14082_v54  ;;  %3053 = vmatpush.msra.mxu2 %v2846_v48  ;;  %v2840_v48 = vld [vmem:[#allocation5 + $0x360] sm:$0xff] }
 0x345   :  { %v10359_v17 = vpop.f32.mrf.mxu1  ;;  %3016 = vmatpush.msra.mxu1 %v2806_v7  ;;  %v14088_v54 = vld [vmem:[#allocation67_spill] sm:$0xff] }
 0x346   :  { %5320 = vmatmul.msk.f32.gmra.mxu2 %vm1435_vm2, %v9864_v2  ;;  %v1563_v1 = vadd.f32 %v14084_v41, %v1522_v61  ;;  %v1566_v44 = vadd.f32 %v14088_v54, %v1525_v26  ;;  %v2800_v7 = vld [vmem:[#allocation5 + $0x220] sm:$0xff]  ;;  %v2554_v41 = vmul.f32 1.442695, %v2499_v63  ;;  %v7011_v26 = vld [vmem:[#allocation2 + $0x98] sm:$0xff] }
 0x347   :  { %2311 = vmatmul.f32.gmra.mxu3 %v9902_v40  ;;  %3054 = vmatpush.msra.mxu2 %v2844_v30  ;;  %v2842_v40 = vld [vmem:[#allocation5 + $0x370] sm:$0xff]  ;;  %v6837_v30 = vpop.eup %6836  ;;  %v14090_v54 = vld [vmem:[#allocation59_spill] sm:$0xff] }
 0x348   :  { %v10366_v15 = vpop.f32.mrf.mxu0  ;;  %2387 = vmatmul.f32.gmra.mxu1 %v9905_v28  ;;  %v2540_v28 = vmul.f32 1.442695, %v2492_v25  ;;  %v10377_v45 = vadd.f32 %v14085_v16, %v1563_v1  ;;  %v2505_v16 = vmin.f32 %v10201_v39, 0.0  ;;  %v5327_v13 = vadd.f32 -1.0, %v6837_v30  ;;  %v14092_v30 = vld [vmem:[#allocation98_spill] sm:$0xff] }
 0x349   :  { %v10371_v2 = vpop.f32.mrf.mxu2  ;;  %3017 = vmatpush.msra.mxu1 %v2804_v23  ;;  %3055 = vmatpush.msra.mxu2 %v2842_v40  ;;  %v14089_v23 = vld [vmem:[#allocation56_spill] sm:$0xff] }
 0x34a   :  { %v10373_v6 = vpop.f32.mrf.mxu3  ;;  %6838 = vpow2.f32 %v2540_v28  ;;  %v2498_v25 = vmin.f32 %v10377_v45, 0.0  ;;  %v10398_v40 = vadd.f32 %v14089_v23, %v1566_v44  ;;  %v2836_v28 = vld [vmem:[#allocation5 + $0x340] sm:$0xff]  ;;  %vm2450_vm15 = vcmp.gt.f32.partialorder %v10377_v45, 0.0 }
 0x34b   :  { %2355 = vmatmul.f32.gmra.mxu0 %v10210_v51  ;;  %v2802_v51 = vld [vmem:[#allocation5 + $0x230] sm:$0xff]  ;;  %3056 = vmatpush.msra.mxu2 %v2840_v48  ;;  %6840 = vpow2.f32 %v2554_v41  ;;  %v14091_v44 = vld [vmem:[#allocation91_spill] sm:$0xff] }
 0x34c   :  { %3018 = vmatpush.msra.mxu1 %v2802_v51  ;;  %v2552_v49 = vmul.f32 1.442695, %v2498_v25  ;;  %v2834_v51 = vld [vmem:[#allocation5 + $0x330] sm:$0xff] }
 0x34d   :  { %v10380_v12 = vpop.f32.mrf.mxu1  ;;  %v7013_v25 = vld [vmem:[#allocation2 + $0xb0] sm:$0xff] }
 0x34e   :  { %5321 = vmatmul.msk.f32.gmra.mxu2 %vm1435_vm2, %v9936_v24  ;;  %v2838_v24 = vld [vmem:[#allocation5 + $0x350] sm:$0xff]  ;;  %3019 = vmatpush.msra.mxu1 %v2800_v7  ;;  %v1528_v7 = vadd.f32 %v14091_v44, %v14090_v54  ;;  %6842 = vpow2.f32 %v2552_v49  ;;  %v10418_v54 = vsel %vm2445_vm0, %v10130_v5, %v5327_v13  ;;  %v2511_v5 = vmin.f32 %v10222_v19, 0.0 }
 0x34f   :  { %2314 = vmatmul.f32.gmra.mxu3 %v9958_v32  ;;  %v2798_v32 = vld [vmem:[#allocation5 + $0x210] sm:$0xff]  ;;  %3057 = vmatpush.msra.mxu2 %v2838_v24  ;;  %14093 = vst [vmem:[#allocation74_spill] sm:$0xff] %v10418_v54  ;;  %vm2457_vm0 = vcmp.gt.f32.partialorder %v10201_v39, 0.0 }
 0x350   :  { %v10388_v61 = vpop.f32.mrf.mxu0  ;;  %2390 = vmatmul.f32.gmra.mxu1 %v9961_v38  ;;  %v2011_v38 = vadd.f32 %v10290_v57, %v10304_v20  ;;  %v6839_v48 = vpop.eup %6838  ;;  %v7012_v57 = vld [vmem:[#allocation2 + $0xe0] sm:$0xff]  ;;  %v2504_v20 = vmin.f32 %v10398_v40, 0.0  ;;  %v1569_v23 = vadd.f32 %v14092_v30, %v1528_v7  ;;  %v2830_v44 = vld [vmem:[#allocation5 + $0x310] sm:$0xff] }
 0x351   :  { %v10392_v1 = vpop.f32.mrf.mxu2  ;;  %3020 = vmatpush.msra.mxu1 %v2798_v32  ;;  %3058 = vmatpush.msra.mxu2 %v2836_v28  ;;  %v2832_v32 = vld [vmem:[#allocation5 + $0x320] sm:$0xff]  ;;  %v2494_v28 = vmin.f32 %v10263_v55, 0.0  ;;  %v14094_v7 = vld [vmem:[#allocation25_spill] sm:$0xff] }
 0x352   :  { %v10394_v37 = vpop.f32.mrf.mxu3  ;;  %v2052_v41 = vadd.f32 %v10317_v21, %v2011_v38  ;;  %v5326_v38 = vadd.f32 -1.0, %v6839_v48 }
 0x353   :  { %2358 = vmatmul.f32.gmra.mxu0 %v10225_v34  ;;  %v2796_v34 = vld [vmem:[#allocation5 + $0x200] sm:$0xff]  ;;  %3059 = vmatpush.msra.mxu2 %v2834_v51  ;;  %v2544_v48 = vmul.f32 1.442695, %v2494_v28 }
 0x354   :  { %3021 = vmatpush.msra.mxu1 %v2796_v34  ;;  %v10426_v49 = vadd.f32 %v10332_v47, %v2052_v41  ;;  %v2564_v34 = vmul.f32 1.442695, %v2504_v20  ;;  %v2828_v51 = vld [vmem:[#allocation5 + $0x300] sm:$0xff]  ;;  %v14096_v20 = vld [vmem:[#allocation17_spill] sm:$0xff] }
 0x355   :  { %v10403_v63 = vpop.f32.mrf.mxu1  ;;  %3060 = vmatpush.msra.mxu2 %v2832_v32  ;;  %v7014_v32 = vld [vmem:[#allocation2 + $0xb8] sm:$0xff]  ;;  %v14097_v41 = vld [vmem:[#allocation64_spill] sm:$0xff] }
 0x356   :  { %5322 = vmatmul.msk.f32.gmra.mxu2 %vm1435_vm2, %v7011_v26  ;;  %v2566_v26 = vmul.f32 1.442695, %v2505_v16  ;;  %v2014_v16 = vadd.f32 %v10299_v11, %v10314_v36  ;;  %v10437_v11 = vsel %vm2444_vm1, %v10356_v56, %v5326_v38  ;;  %v1531_v30 = vadd.f32 %v14097_v41, %v14096_v20  ;;  %v14098_v28 = vld [vmem:[#allocation31_spill] sm:$0xff] }
 0x357   :  { %2317 = vmatmul.f32.gmra.mxu3 %v7012_v57  ;;  %v6841_v57 = vpop.eup %6840  ;;  %3061 = vmatpush.msra.mxu2 %v2830_v44  ;;  %14095 = vst [vmem:[#allocation78_spill] sm:$0xff] %v10437_v11  ;;  %v2888_v20 = vld [vmem:[#allocation5 + $0x4e0] sm:$0xff]  ;;  %vm2456_vm1 = vcmp.gt.f32.partialorder %v10398_v40, 0.0 }
 0x358   :  { %v10410_v24 = vpop.f32.mrf.mxu0  ;;  %2393 = vmatmul.f32.gmra.mxu1 %v7013_v25  ;;  %v10429_v25 = vadd.f32 %v14094_v7, %v1569_v23  ;;  %6844 = vpow2.f32 %v2566_v26  ;;  %v5333_v36 = vadd.f32 -1.0, %v6841_v57  ;;  %v6843_v47 = vpop.eup %6842  ;;  %v2055_v23 = vadd.f32 %v10328_v43, %v2014_v16 }
 0x359   :  { %v10414_v18 = vpop.f32.mrf.mxu2  ;;  %3062 = vmatpush.msra.mxu2 %v2828_v51  ;;  %v2495_v26 = vmin.f32 %v10426_v49, 0.0  ;;  %6846 = vpow2.f32 %v2564_v34  ;;  %v1572_v38 = vadd.f32 %v14098_v28, %v1531_v30  ;;  %v2578_v57 = vmul.f32 1.442695, %v2511_v5 }
 0x35a   :  { %v10420_v21 = vpop.f32.mrf.mxu3  ;;  %v2510_v56 = vmin.f32 %v10429_v25, 0.0  ;;  %6848 = vpow2.f32 %v2544_v48  ;;  %v2500_v43 = vmin.f32 %v10270_v53, 0.0  ;;  %v10454_v16 = vsel %vm2451_vm4, %v10174_v4, %v5333_v36  ;;  %v14100_v4 = vld [vmem:[#allocation97_spill] sm:$0xff] }
 0x35b   :  { %2981 = vmatmul.f32.vlgmr.msra.gmra.mxu0 %v10418_v54  ;;  %14099 = vst [vmem:[#allocation80_spill] sm:$0xff] %v10454_v16  ;;  %v2017_v5 = vadd.f32 %v10309_v58, %v10325_v31  ;;  %v2546_v41 = vmul.f32 1.442695, %v2495_v26  ;;  %v10462_v30 = vadd.f32 %v10350_v22, %v2055_v23  ;;  %v10466_v48 = vadd.f32 %v14100_v4, %v1572_v38  ;;  %v14101_v54 = vld [vmem:[#allocation60_spill] sm:$0xff]  ;;  %v7015_v22 = vld [vmem:[#allocation2 + $0xd8] sm:$0xff]  ;;  %v14104_v4 = vld [vmem:[#allocation85_spill] sm:$0xff] }
 0x35c   :  { %6850 = vpow2.f32 %v2578_v57  ;;  %v2517_v36 = vmin.f32 %v10231_v59, 0.0  ;;  %v2576_v28 = vmul.f32 1.442695, %v2510_v56  ;;  %v14102_v58 = vld [vmem:[#allocation40_spill] sm:$0xff]  ;;  %v2556_v26 = vmul.f32 1.442695, %v2500_v43 }
 0x35d   :  { %v10432_v13 = vpop.f32.mrf.mxu1  ;;  %v1534_v31 = vadd.f32 %v14102_v58, %v14101_v54  ;;  %v2884_v57 = vld [vmem:[#allocation5 + $0x4c0] sm:$0xff]  ;;  %6852 = vpow2.f32 %v2546_v41  ;;  %v2501_v54 = vmin.f32 %v10462_v30, 0.0  ;;  %v2506_v41 = vmin.f32 %v10277_v60, 0.0 }
 0x35e   :  { %5323 = vmatmul.msk.f32.gmra.mxu2 %vm1435_vm2, %v7014_v32  ;;  %v2890_v32 = vld [vmem:[#allocation5 + $0x4f0] sm:$0xff]  ;;  %v6845_v34 = vpop.eup %6844  ;;  %6854 = vpow2.f32 %v2576_v28  ;;  %vm2446_vm4 = vcmp.gt.f32.partialorder %v10263_v55, 0.0 }
 0x35f   :  { %2940 = vmatmul.f32.vlgmr.msra.gmra.mxu3 %v10437_v11  ;;  %v5339_v38 = vadd.f32 -1.0, %v6845_v34  ;;  %v1575_v56 = vadd.f32 %v14104_v4, %v1534_v31  ;;  %v2058_v11 = vadd.f32 %v10340_v3, %v2017_v5  ;;  %6856 = vpow2.f32 %v2556_v26 }
 0x360   :  { %v10444_v44 = vpop.f32.mrf.mxu0  ;;  %2396 = vmatmul.f32.gmra.mxu1 %v10240_v62  ;;  %v5332_v62 = vadd.f32 -1.0, %v6843_v47  ;;  %3088 = vmatpush.msrb.mxu3 %v2890_v32  ;;  %v2886_v32 = vld [vmem:[#allocation5 + $0x4d0] sm:$0xff]  ;;  %v2020_v26 = vadd.f32 %v10321_v46, %v10337_v8  ;;  %v7016_v46 = vld [vmem:[#allocation2 + $0xf8] sm:$0xff] }
 0x361   :  { %v10449_v7 = vpop.f32.mrf.mxu2  ;;  %v10490_v3 = vsel %vm2457_vm0, %v10201_v39, %v5339_v38  ;;  %v10502_v39 = vadd.f32 %v10371_v2, %v2058_v11  ;;  %v14108_v38 = vld [vmem:[#allocation35_spill] sm:$0xff]  ;;  %vm2447_vm0 = vcmp.gt.f32.partialorder %v10426_v49, 0.0 }
 0x362   :  { %v10456_v51 = vpop.f32.mrf.mxu3  ;;  %3089 = vmatpush.msrb.mxu3 %v2888_v20  ;;  %v10475_v23 = vsel %vm2450_vm15, %v10377_v45, %v5332_v62  ;;  %v2516_v45 = vmin.f32 %v10466_v48, 0.0  ;;  %v2590_v62 = vmul.f32 1.442695, %v2517_v36  ;;  %14105 = vst [vmem:[#allocation84_spill] sm:$0xff] %v10490_v3  ;;  %v2880_v36 = vld [vmem:[#allocation5 + $0x4a0] sm:$0xff]  ;;  %vm2462_vm15 = vcmp.gt.f32.partialorder %v10429_v25, 0.0 }
 0x363   :  { %2984 = vmatmul.f32.gmra.mxu0 %v10454_v16  ;;  %v6847_v16 = vpop.eup %6846  ;;  %14103 = vst [vmem:[#allocation96_spill] sm:$0xff] %v10475_v23 }
 0x364   :  { %3090 = vmatpush.msrb.mxu3 %v2886_v32  ;;  %v6849_v20 = vpop.eup %6848  ;;  %v2882_v32 = vld [vmem:[#allocation5 + $0x4b0] sm:$0xff]  ;;  %v5338_v58 = vadd.f32 -1.0, %v6847_v16  ;;  %v14107_v16 = vld [vmem:[#allocation55_spill] sm:$0xff]  ;;  %6858 = vpow2.f32 %v2590_v62 }
 0x365   :  { %v10469_v47 = vpop.f32.mrf.mxu1  ;;  %v5328_v31 = vadd.f32 -1.0, %v6849_v20  ;;  %v1537_v4 = vadd.f32 %v14108_v38, %v14107_v16  ;;  %v2523_v20 = vmin.f32 %v10238_v14, 0.0  ;;  %v2061_v38 = vadd.f32 %v10359_v17, %v2020_v26 }
 0x366   :  { %5324 = vmatmul.msk.f32.gmra.mxu2 %vm1435_vm2, %v7015_v22  ;;  %3091 = vmatpush.msrb.mxu3 %v2884_v57  ;;  %v14106_v22 = vld [vmem:[#allocation92_spill] sm:$0xff]  ;;  %v2558_v57 = vmul.f32 1.442695, %v2501_v54  ;;  %v10514_v8 = vsel %vm2456_vm1, %v10398_v40, %v5338_v58  ;;  %v14110_v54 = vld [vmem:[#allocation71_spill] sm:$0xff]  ;;  %v2507_v40 = vmin.f32 %v10502_v39, 0.0  ;;  %vm2452_vm1 = vcmp.gt.f32.partialorder %v10270_v53, 0.0 }
 0x367   :  { %2943 = vmatmul.f32.gmra.mxu3 %v10475_v23  ;;  %v10497_v28 = vadd.f32 %v14106_v22, %v1575_v56  ;;  %v2878_v23 = vld [vmem:[#allocation5 + $0x490] sm:$0xff]  ;;  %v2568_v22 = vmul.f32 1.442695, %v2506_v41  ;;  %14109 = vst [vmem:[#allocation86_spill] sm:$0xff] %v10514_v8  ;;  %v1578_v62 = vadd.f32 %v14110_v54, %v1537_v4 }
 0x368   :  { %v10481_v43 = vpop.f32.mrf.mxu0  ;;  %2399 = vmatmul.f32.gmra.mxu1 %v10249_v10  ;;  %3092 = vmatpush.msrb.mxu3 %v2882_v32  ;;  %v6851_v10 = vpop.eup %6850  ;;  %6860 = vpow2.f32 %v2558_v57  ;;  %v2512_v57 = vmin.f32 %v10284_v27, 0.0 }
 0x369   :  { %v10485_v34 = vpop.f32.mrf.mxu2  ;;  %v6853_v56 = vpop.eup %6852  ;;  %v5345_v2 = vadd.f32 -1.0, %v6851_v10  ;;  %v2522_v16 = vmin.f32 %v10497_v28, 0.0 }
 0x36a   :  { %v10492_v5 = vpop.f32.mrf.mxu3  ;;  %3093 = vmatpush.msrb.mxu3 %v2880_v36  ;;  %v6855_v11 = vpop.eup %6854  ;;  %v2876_v36 = vld [vmem:[#allocation5 + $0x480] sm:$0xff]  ;;  %v5329_v58 = vadd.f32 -1.0, %v6853_v56 }
 0x36b   :  { %2987 = vmatmul.f32.gmra.mxu0 %v10490_v3  ;;  %v2588_v3 = vmul.f32 1.442695, %v2516_v45  ;;  %v10519_v45 = vsel %vm2446_vm4, %v10263_v55, %v5328_v31  ;;  %v6857_v41 = vpop.eup %6856  ;;  %v2874_v55 = vld [vmem:[#allocation5 + $0x470] sm:$0xff]  ;;  %v2763_v31 = vld [vmem:[#allocation5 + $0xf8] sm:$0xff]  ;;  %v14113_v56 = vld [vmem:[#allocation52_spill] sm:$0xff]  ;;  %vm2469_vm4 = vcmp.gt.f32.partialorder %v10231_v59, 0.0 }
 0x36c   :  { %3094 = vmatpush.msrb.mxu3 %v2878_v23  ;;  %14111 = vst [vmem:[#allocation83_spill] sm:$0xff] %v10519_v45  ;;  %v2602_v23 = vmul.f32 1.442695, %v2523_v20  ;;  %3170 = vmatpush.msrb.mxu1 %v2763_v31  ;;  %v6859_v20 = vpop.eup %6858  ;;  %v10537_v54 = vadd.f32 %v14113_v56, %v1578_v62  ;;  %v2529_v62 = vmin.f32 %v10247_v29, 0.0  ;;  %v2600_v31 = vmul.f32 1.442695, %v2522_v16 }
 0x36d   :  { %v10507_v32 = vpop.f32.mrf.mxu1  ;;  %6862 = vpow2.f32 %v2588_v3  ;;  %v5334_v3 = vadd.f32 -1.0, %v6857_v41  ;;  %v10551_v41 = vsel %vm2447_vm0, %v10426_v49, %v5329_v58  ;;  %v2870_v56 = vld [vmem:[#allocation5 + $0x450] sm:$0xff]  ;;  %vm2458_vm0 = vcmp.gt.f32.partialorder %v10277_v60, 0.0 }
 0x36e   :  { %5325 = vmatmul.msk.f32.gmra.mxu2 %vm1435_vm2, %v7016_v46  ;;  %3095 = vmatpush.msrb.mxu3 %v2876_v36  ;;  %vm2463_vm2 = vcmp.gt.f32.partialorder %v10222_v19, 0.0  ;;  %6864 = vpow2.f32 %v2568_v22  ;;  %v5344_v46 = vadd.f32 -1.0, %v6855_v11  ;;  %v2872_v22 = vld [vmem:[#allocation5 + $0x460] sm:$0xff]  ;;  %v2761_v36 = vld [vmem:[#allocation5 + $0xe8] sm:$0xff]  ;;  %v10545_v11 = vadd.f32 %v10392_v1, %v2061_v38 }
 0x36f   :  { %2946 = vmatmul.f32.gmra.mxu3 %v10514_v8  ;;  %v10532_v17 = vsel %vm2463_vm2, %v10222_v19, %v5345_v2  ;;  %v2023_v19 = vadd.f32 %v10334_v52, %v10352_v42  ;;  %v2570_v2 = vmul.f32 1.442695, %v2507_v40  ;;  %3171 = vmatpush.msrb.mxu1 %v2761_v36  ;;  %6866 = vpow2.f32 %v2602_v23  ;;  %v2868_v38 = vld [vmem:[#allocation5 + $0x440] sm:$0xff]  ;;  %v2757_v40 = vld [vmem:[#allocation5 + $0xc8] sm:$0xff]  ;;  %v2795_v23 = vld [vmem:[#allocation5 + $0x1f8] sm:$0xff] }
 0x370   :  { %3022 = vmatmul.f32.vlgmr.msra.gmra.mxu1 %v10519_v45  ;;  %v10525_v10 = vpop.f32.mrf.mxu0  ;;  %14112 = vst [vmem:[#allocation12_spill] sm:$0xff] %v10532_v17  ;;  %3096 = vmatpush.msrb.mxu3 %v2874_v55  ;;  %v2759_v45 = vld [vmem:[#allocation5 + $0xd8] sm:$0xff]  ;;  %v2580_v8 = vmul.f32 1.442695, %v2512_v57  ;;  %v10557_v52 = vsel %vm2462_vm15, %v10429_v25, %v5344_v46  ;;  %v5351_v42 = vadd.f32 -1.0, %v6859_v20  ;;  %v2528_v49 = vmin.f32 %v10537_v54, 0.0 }
 0x371   :  { %v10527_v4 = vpop.f32.mrf.mxu2  ;;  %v10563_v16 = vsel %vm2452_vm1, %v10270_v53, %v5334_v3  ;;  %3172 = vmatpush.msrb.mxu1 %v2759_v45  ;;  %6868 = vpow2.f32 %v2570_v2  ;;  %v2064_v25 = vadd.f32 %v10380_v12, %v2023_v19  ;;  %v2513_v57 = vmin.f32 %v10545_v11, 0.0  ;;  %3211 = vmatpush.msrb.mxu2 %v2795_v23  ;;  %v2866_v45 = vld [vmem:[#allocation5 + $0x430] sm:$0xff]  ;;  %v2755_v3 = vld [vmem:[#allocation5 + $0xb8] sm:$0xff] }
 0x372   :  { %v10534_v26 = vpop.f32.mrf.mxu3  ;;  %3097 = vmatpush.msrb.mxu3 %v2872_v22  ;;  %v2614_v46 = vmul.f32 1.442695, %v2529_v62  ;;  %6870 = vpow2.f32 %v2600_v31  ;;  %v2793_v22 = vld [vmem:[#allocation5 + $0x1e8] sm:$0xff]  ;;  %v2518_v12 = vmin.f32 %v10293_v9, 0.0  ;;  %v10573_v36 = vsel %vm2469_vm4, %v10231_v59, %v5351_v42 }
 0x373   :  { %2990 = vmatmul.f32.gmra.mxu0 %v10532_v17  ;;  %v6861_v17 = vpop.eup %6860  ;;  %3173 = vmatpush.msrb.mxu1 %v2757_v40  ;;  %6872 = vpow2.f32 %v2580_v8  ;;  %v2864_v8 = vld [vmem:[#allocation5 + $0x420] sm:$0xff]  ;;  %v2753_v40 = vld [vmem:[#allocation5 + $0xa8] sm:$0xff]  ;;  %v2582_v23 = vmul.f32 1.442695, %v2513_v57  ;;  %v10583_v59 = vadd.f32 %v10414_v18, %v2064_v25  ;;  %vm2453_vm2 = vcmp.gt.f32.partialorder %v10462_v30, 0.0  ;;  %v2862_v18 = vld [vmem:[#allocation5 + $0x410] sm:$0xff] }
 0x374   :  { %3098 = vmatpush.msrb.mxu3 %v2870_v56  ;;  %v6863_v1 = vpop.eup %6862  ;;  %v5335_v53 = vadd.f32 -1.0, %v6861_v17  ;;  %v2026_v17 = vadd.f32 %v10346_v50, %v10373_v6  ;;  %vm2468_vm15 = vcmp.gt.f32.partialorder %v10466_v48, 0.0  ;;  %3212 = vmatpush.msrb.mxu2 %v2793_v22  ;;  %v2791_v50 = vld [vmem:[#allocation5 + $0x1d8] sm:$0xff]  ;;  %6874 = vpow2.f32 %v2614_v46 }
 0x375   :  { %v10548_v55 = vpop.f32.mrf.mxu1  ;;  %v6865_v58 = vpop.eup %6864  ;;  %v5350_v2 = vadd.f32 -1.0, %v6863_v1  ;;  %3174 = vmatpush.msrb.mxu1 %v2755_v3  ;;  %v2535_v6 = vmin.f32 %v10256_v35, 0.0  ;;  %v2175_v42 = vadd.f32 %v10410_v24, %v10456_v51  ;;  %v2592_v25 = vmul.f32 1.442695, %v2518_v12  ;;  %v2789_v24 = vld [vmem:[#allocation5 + $0x1c8] sm:$0xff] }
 0x376   :  { %3063 = vmatmul.f32.vlgmr.msra.gmra.mxu2 %v10551_v41  ;;  %3099 = vmatpush.msrb.mxu3 %v2868_v38  ;;  %v6867_v62 = vpop.eup %6866  ;;  %v5340_v56 = vadd.f32 -1.0, %v6865_v58  ;;  %v2612_v38 = vmul.f32 1.442695, %v2528_v49  ;;  %v10593_v49 = vsel %vm2453_vm2, %v10462_v30, %v5335_v53  ;;  %v14114_v3 = vld [vmem:[#allocation89_spill] sm:$0xff]  ;;  %v2067_v30 = vadd.f32 %v10403_v63, %v2026_v17  ;;  %v2787_v17 = vld [vmem:[#allocation5 + $0x1b8] sm:$0xff] }
 0x377   :  { %2949 = vmatmul.f32.gmra.mxu3 %v10557_v52  ;;  %3175 = vmatpush.msrb.mxu1 %v2753_v40  ;;  %v6869_v58 = vpop.eup %6868  ;;  %v10597_v57 = vsel %vm2468_vm15, %v10466_v48, %v5350_v2  ;;  %v5357_v46 = vadd.f32 -1.0, %v6867_v62  ;;  %v2534_v22 = vmin.f32 %v14114_v3, 0.0  ;;  %v2860_v48 = vld [vmem:[#allocation5 + $0x400] sm:$0xff]  ;;  %v2519_v2 = vmin.f32 %v10583_v59, 0.0  ;;  %v2749_v62 = vld [vmem:[#allocation5 + $0x88] sm:$0xff] }
 0x378   :  { %3025 = vmatmul.f32.gmra.mxu1 %v10563_v16  ;;  %3100 = vmatpush.msrb.mxu3 %v2866_v45  ;;  %v10579_v31 = vpop.f32.mrf.mxu0  ;;  %v2751_v45 = vld [vmem:[#allocation5 + $0x98] sm:$0xff]  ;;  %v6871_v51 = vpop.eup %6870  ;;  %v10604_v53 = vsel %vm2458_vm0, %v10277_v60, %v5340_v56  ;;  %6876 = vpow2.f32 %v2612_v38  ;;  %v2216_v40 = vadd.f32 %v10507_v32, %v2175_v42  ;;  %vm2475_vm1 = vcmp.gt.f32.partialorder %v10238_v14, 0.0 }
 0x379   :  { %v10569_v20 = vpop.f32.mrf.mxu2  ;;  %3213 = vmatpush.msrb.mxu2 %v2791_v50  ;;  %v6873_v12 = vpop.eup %6872  ;;  %6878 = vpow2.f32 %v2582_v23  ;;  %v5341_v60 = vadd.f32 -1.0, %v6869_v58  ;;  %3176 = vmatpush.msrb.mxu1 %v2751_v45  ;;  %v2524_v56 = vmin.f32 %v10301_v0, 0.0  ;;  %v10614_v38 = vsel %vm2475_vm1, %v10238_v14, %v5357_v46  ;;  %v2785_v14 = vld [vmem:[#allocation5 + $0x1a8] sm:$0xff] }
 0x37a   :  { %v10575_v19 = vpop.f32.mrf.mxu3  ;;  %3101 = vmatpush.msrb.mxu3 %v2864_v8  ;;  %v2626_v8 = vmul.f32 1.442695, %v2535_v6  ;;  %6880 = vpow2.f32 %v2592_v25  ;;  %v5356_v50 = vadd.f32 -1.0, %v6871_v51  ;;  %v2747_v6 = vld [vmem:[#allocation5 + $0x78] sm:$0xff]  ;;  %v2029_v32 = vadd.f32 %v10366_v15, %v10394_v37 }
 0x37b   :  { %2993 = vmatmul.f32.gmra.mxu0 %v10573_v36  ;;  %3214 = vmatpush.msrb.mxu2 %v2789_v24  ;;  %v10621_v42 = vadd.f32 %v10449_v7, %v2067_v30  ;;  %v5346_v58 = vadd.f32 -1.0, %v6873_v12  ;;  %v2624_v25 = vmul.f32 1.442695, %v2534_v22  ;;  %v2594_v45 = vmul.f32 1.442695, %v2519_v2 }
 0x37c   :  { %3102 = vmatpush.msrb.mxu3 %v2862_v18  ;;  %v6875_v18 = vpop.eup %6874  ;;  %3177 = vmatpush.msrb.mxu1 %v2749_v62  ;;  %vm2459_vm4 = vcmp.gt.f32.partialorder %v10502_v39, 0.0  ;;  %vm2474_vm2 = vcmp.gt.f32.partialorder %v10497_v28, 0.0  ;;  %6882 = vpow2.f32 %v2626_v8  ;;  %v2178_v15 = vadd.f32 %v10444_v44, %v10492_v5  ;;  %v2745_v5 = vld [vmem:[#allocation5 + $0x68] sm:$0xff] }
 0x37d   :  { %v10590_v1 = vpop.f32.mrf.mxu1  ;;  %3215 = vmatpush.msrb.mxu2 %v2787_v17  ;;  %v10629_v37 = vadd.f32 %v10569_v20, %v2216_v40  ;;  %v10636_v51 = vsel %vm2459_vm4, %v10502_v39, %v5341_v60  ;;  %v2604_v30 = vmul.f32 1.442695, %v2524_v56  ;;  %vm2464_vm15 = vcmp.gt.f32.partialorder %v10284_v27, 0.0  ;;  %v2783_v20 = vld [vmem:[#allocation5 + $0x198] sm:$0xff] }
 0x37e   :  { %3066 = vmatmul.f32.gmra.mxu2 %v10593_v49  ;;  %3103 = vmatpush.msrb.mxu3 %v2860_v48  ;;  %v6877_v46 = vpop.eup %6876  ;;  %v10640_v48 = vsel %vm2474_vm2, %v10497_v28, %v5356_v50  ;;  %v5363_v44 = vadd.f32 -1.0, %v6875_v18  ;;  %v2070_v12 = vadd.f32 %v10432_v13, %v2029_v32  ;;  %v2525_v2 = vmin.f32 %v10621_v42, 0.0  ;;  %v2743_v28 = vld [vmem:[#allocation5 + $0x58] sm:$0xff] }
 0x37f   :  { %2952 = vmatmul.f32.gmra.mxu3 %v10597_v57  ;;  %3178 = vmatpush.msrb.mxu1 %v2747_v6  ;;  %v6879_v22 = vpop.eup %6878  ;;  %v10647_v39 = vsel %vm2464_vm15, %v10284_v27, %v5346_v58  ;;  %6884 = vpow2.f32 %v2624_v25  ;;  %v2219_v8 = vadd.f32 %v10548_v55, %v2178_v15  ;;  %v2496_v40 = vmin.f32 %v10629_v37, 0.0  ;;  %v2781_v27 = vld [vmem:[#allocation5 + $0x188] sm:$0xff] }
 0x380   :  { %3028 = vmatmul.f32.gmra.mxu1 %v10604_v53  ;;  %v10631_v7 = vpop.f32.mrf.mxu0  ;;  %3216 = vmatpush.msrb.mxu2 %v2785_v14  ;;  %v6881_v62 = vpop.eup %6880  ;;  %6886 = vpow2.f32 %v2594_v45  ;;  %vm2481_vm0 = vcmp.gt.f32.partialorder %v10247_v29, 0.0  ;;  %v5347_v13 = vadd.f32 -1.0, %v6879_v22  ;;  %v2530_v17 = vmin.f32 %v10311_v33, 0.0  ;;  %v2741_v55 = vld [vmem:[#allocation5 + $0x48] sm:$0xff]  ;;  %v2922_v14 = vld [vmem:[#allocation5 + $0x5f0] sm:$0xff] }
 0x381   :  { %v10609_v63 = vpop.f32.mrf.mxu2  ;;  %3179 = vmatpush.msrb.mxu1 %v2745_v5  ;;  %6888 = vpow2.f32 %v2604_v30  ;;  %v10657_v56 = vsel %vm2481_vm0, %v10247_v29, %v5363_v44  ;;  %v5362_v6 = vadd.f32 -1.0, %v6877_v46  ;;  %v2032_v32 = vadd.f32 %v10388_v61, %v10420_v21  ;;  %v2779_v29 = vld [vmem:[#allocation5 + $0x178] sm:$0xff]  ;;  %3129 = vmatpush.msrb.mxu0 %v2922_v14  ;;  %v2920_v30 = vld [vmem:[#allocation5 + $0x5e0] sm:$0xff] }
 0x382   :  { %v10616_v23 = vpop.f32.mrf.mxu3  ;;  %3217 = vmatpush.msrb.mxu2 %v2783_v20  ;;  %v6883_v18 = vpop.eup %6882  ;;  %v2606_v58 = vmul.f32 1.442695, %v2525_v2  ;;  %v10664_v25 = vadd.f32 %v10485_v34, %v2070_v12  ;;  %v5352_v45 = vadd.f32 -1.0, %v6881_v62  ;;  %vm2465_vm1 = vcmp.gt.f32.partialorder %v10545_v11, 0.0 }
 0x383   :  { %2996 = vmatmul.f32.gmra.mxu0 %v10614_v38  ;;  %3180 = vmatpush.msrb.mxu1 %v2743_v28  ;;  %vm2480_vm4 = vcmp.gt.f32.partialorder %v10537_v54, 0.0  ;;  %v2181_v61 = vadd.f32 %v10481_v43, %v10534_v26  ;;  %v2548_v21 = vmul.f32 1.442695, %v2496_v40  ;;  %v10672_v34 = vadd.f32 %v10609_v63, %v2219_v8  ;;  %v2739_v26 = vld [vmem:[#allocation5 + $0x38] sm:$0xff]  ;;  %v2777_v63 = vld [vmem:[#allocation5 + $0x168] sm:$0xff] }
 0x384   :  { %3218 = vmatpush.msrb.mxu2 %v2781_v27  ;;  %v10677_v22 = vsel %vm2465_vm1, %v10545_v11, %v5347_v13  ;;  %v2616_v5 = vmul.f32 1.442695, %v2530_v17  ;;  %v10681_v20 = vsel %vm2480_vm4, %v10537_v54, %v5362_v6  ;;  %vm2470_vm2 = vcmp.gt.f32.partialorder %v10293_v9, 0.0  ;;  %3130 = vmatpush.msrb.mxu0 %v2920_v30  ;;  %v2918_v54 = vld [vmem:[#allocation5 + $0x5d0] sm:$0xff]  ;;  %v2737_v8 = vld [vmem:[#allocation5 + $0x28] sm:$0xff]  ;;  %v2916_v17 = vld [vmem:[#allocation5 + $0x5c0] sm:$0xff] }
 0x385   :  { %v10633_v24 = vpop.f32.mrf.mxu1  ;;  %v6885_v46 = vpop.eup %6884  ;;  %3181 = vmatpush.msrb.mxu1 %v2741_v55  ;;  %v5369_v43 = vadd.f32 -1.0, %v6883_v18  ;;  %6890 = vpow2.f32 %v2606_v58  ;;  %v2073_v12 = vadd.f32 %v10469_v47, %v2032_v32  ;;  %v2531_v11 = vmin.f32 %v10664_v25, 0.0  ;;  %v14115_v6 = vld [vmem:[#allocation73_spill] sm:$0xff] }
 0x386   :  { %3069 = vmatmul.f32.gmra.mxu2 %v10636_v51  ;;  %v6887_v44 = vpop.eup %6886  ;;  %v10690_v62 = vsel %vm2470_vm2, %v10293_v9, %v5352_v45  ;;  %vm2487_vm15 = vcmp.gt.f32.partialorder %v10256_v35, 0.0  ;;  %3131 = vmatpush.msrb.mxu0 %v2918_v54  ;;  %6892 = vpow2.f32 %v2548_v21  ;;  %v2222_v47 = vadd.f32 %v10590_v1, %v2181_v61  ;;  %v2775_v9 = vld [vmem:[#allocation5 + $0x158] sm:$0xff]  ;;  %v2914_v61 = vld [vmem:[#allocation5 + $0x5b0] sm:$0xff] }
 0x387   :  { %2955 = vmatmul.f32.gmra.mxu3 %v10640_v48  ;;  %3219 = vmatpush.msrb.mxu2 %v2779_v29  ;;  %v6889_v28 = vpop.eup %6888  ;;  %v2502_v40 = vmin.f32 %v10672_v34, 0.0  ;;  %v5353_v27 = vadd.f32 -1.0, %v6887_v44  ;;  %6894 = vpow2.f32 %v2616_v5  ;;  %v2536_v55 = vmin.f32 %v14115_v6, 0.0  ;;  %v2735_v45 = vld [vmem:[#allocation5 + $0x18] sm:$0xff] }
 0x388   :  { %3031 = vmatmul.f32.gmra.mxu1 %v10647_v39  ;;  %v10686_v2 = vpop.f32.mrf.mxu0  ;;  %v10700_v18 = vsel %vm2487_vm15, %v10256_v35, %v5369_v43  ;;  %v5368_v58 = vadd.f32 -1.0, %v6885_v46  ;;  %3132 = vmatpush.msrb.mxu0 %v2916_v17  ;;  %v2618_v1 = vmul.f32 1.442695, %v2531_v11  ;;  %v10705_v14 = vadd.f32 %v10527_v4, %v2073_v12  ;;  %v2773_v35 = vld [vmem:[#allocation5 + $0x148] sm:$0xff]  ;;  %v2912_v43 = vld [vmem:[#allocation5 + $0x5a0] sm:$0xff]  ;;  %v2910_v11 = vld [vmem:[#allocation5 + $0x590] sm:$0xff] }
 0x389   :  { %v10652_v60 = vpop.f32.mrf.mxu2  ;;  %3182 = vmatpush.msrb.mxu1 %v2739_v26  ;;  %3220 = vmatpush.msrb.mxu2 %v2777_v63  ;;  %v5358_v29 = vadd.f32 -1.0, %v6889_v28  ;;  %vm2471_vm0 = vcmp.gt.f32.partialorder %v10583_v59, 0.0  ;;  %vm2486_vm1 = vcmp.gt.f32.partialorder %v14114_v3, 0.0  ;;  %v2184_v46 = vadd.f32 %v10525_v10, %v10575_v19  ;;  %v2733_v10 = vld [vmem:[#allocation5 + $0x8] sm:$0xff]  ;;  %v2771_v19 = vld [vmem:[#allocation5 + $0x138] sm:$0xff] }
 0x38a   :  { %v10659_v50 = vpop.f32.mrf.mxu3  ;;  %3133 = vmatpush.msrb.mxu0 %v2914_v61  ;;  %v2560_v30 = vmul.f32 1.442695, %v2502_v40  ;;  %v10713_v4 = vadd.f32 %v10652_v60, %v2222_v47  ;;  %v10718_v5 = vsel %vm2471_vm0, %v10583_v59, %v5353_v27  ;;  %v2628_v26 = vmul.f32 1.442695, %v2536_v55  ;;  %v2769_v28 = vld [vmem:[#allocation5 + $0x128] sm:$0xff]  ;;  %v2767_v55 = vld [vmem:[#allocation5 + $0x118] sm:$0xff] }
 0x38b   :  { %2999 = vmatmul.f32.gmra.mxu0 %v10657_v56  ;;  %3183 = vmatpush.msrb.mxu1 %v2737_v8  ;;  %v6891_v21 = vpop.eup %6890  ;;  %v10722_v63 = vsel %vm2486_vm1, %v14114_v3, %v5368_v58  ;;  %vm2476_vm4 = vcmp.gt.f32.partialorder %v10301_v0, 0.0  ;;  %6896 = vpow2.f32 %v2618_v1  ;;  %v2537_v12 = vmin.f32 %v10705_v14, 0.0 }
 0x38c   :  { %3221 = vmatpush.msrb.mxu2 %v2775_v9  ;;  %3134 = vmatpush.msrb.mxu0 %v2912_v43  ;;  %v6893_v60 = vpop.eup %6892  ;;  %v10728_v59 = vsel %vm2476_vm4, %v10301_v0, %v5358_v29  ;;  %v5359_v3 = vadd.f32 -1.0, %v6891_v21  ;;  %6898 = vpow2.f32 %v2560_v30  ;;  %v2225_v8 = vadd.f32 %v10633_v24, %v2184_v46  ;;  %v2908_v0 = vld [vmem:[#allocation5 + $0x580] sm:$0xff]  ;;  %v2906_v24 = vld [vmem:[#allocation5 + $0x570] sm:$0xff]  ;;  %v2765_v29 = vld [vmem:[#allocation5 + $0x108] sm:$0xff] }
 0x38d   :  { %v10674_v15 = vpop.f32.mrf.mxu1  ;;  %3184 = vmatpush.msrb.mxu1 %v2735_v45  ;;  %v6895_v54 = vpop.eup %6894  ;;  %v2508_v47 = vmin.f32 %v10713_v4, 0.0  ;;  %6900 = vpow2.f32 %v2628_v26  ;;  %v5330_v9 = vadd.f32 -1.0, %v6893_v60  ;;  %v2630_v58 = vmul.f32 1.442695, %v2537_v12  ;;  %v2904_v43 = vld [vmem:[#allocation5 + $0x560] sm:$0xff] }
 0x38e   :  { %3072 = vmatmul.f32.gmra.mxu2 %v10677_v22  ;;  %3135 = vmatpush.msrb.mxu0 %v2910_v11  ;;  %vm2477_vm2 = vcmp.gt.f32.partialorder %v10621_v42, 0.0  ;;  %v5364_v45 = vadd.f32 -1.0, %v6895_v54  ;;  %vm2448_vm15 = vcmp.gt.f32.partialorder %v10629_v37, 0.0  ;;  %vm2482_vm0 = vcmp.gt.f32.partialorder %v10311_v33, 0.0  ;;  %v2900_v12 = vld [vmem:[#allocation5 + $0x540] sm:$0xff]  ;;  %v2827_v11 = vld [vmem:[#allocation5 + $0x2f8] sm:$0xff] }
 0x38f   :  { %2958 = vmatmul.f32.gmra.mxu3 %v10681_v20  ;;  %3222 = vmatpush.msrb.mxu2 %v2773_v35  ;;  %v10739_v1 = vsel %vm2477_vm2, %v10621_v42, %v5359_v3  ;;  %v2187_v35 = vadd.f32 %v10579_v31, %v10616_v23  ;;  %v2572_v21 = vmul.f32 1.442695, %v2508_v47  ;;  %v10752_v42 = vsel %vm2448_vm15, %v10629_v37, %v5330_v9  ;;  %v2902_v23 = vld [vmem:[#allocation5 + $0x550] sm:$0xff]  ;;  %v2825_v47 = vld [vmem:[#allocation5 + $0x2e8] sm:$0xff] }
 0x390   :  { %3034 = vmatmul.f32.gmra.mxu1 %v10690_v62  ;;  %v10733_v40 = vpop.f32.mrf.mxu0  ;;  %3136 = vmatpush.msrb.mxu0 %v2908_v0  ;;  %6902 = vpow2.f32 %v2630_v58  ;;  %v10755_v31 = vsel %vm2482_vm0, %v10311_v33, %v5364_v45  ;;  %vm2483_vm1 = vcmp.gt.f32.partialorder %v10664_v25, 0.0  ;;  %v2190_v9 = vadd.f32 %v10631_v7, %v10659_v50  ;;  %v2894_v50 = vld [vmem:[#allocation5 + $0x510] sm:$0xff] }
 0x391   :  { %v10696_v13 = vpop.f32.mrf.mxu2  ;;  %3185 = vmatpush.msrb.mxu1 %v2733_v10  ;;  %3223 = vmatpush.msrb.mxu2 %v2771_v19  ;;  %v6897_v61 = vpop.eup %6896  ;;  %6904 = vpow2.f32 %v2572_v21  ;;  %v2228_v19 = vadd.f32 %v10674_v15, %v2187_v35  ;;  %vm2454_vm4 = vcmp.gt.f32.partialorder %v10672_v34, 0.0  ;;  %vm2488_vm2 = vcmp.gt.f32.partialorder %v14115_v6, 0.0 }
 0x392   :  { %v10702_v32 = vpop.f32.mrf.mxu3  ;;  %3137 = vmatpush.msrb.mxu0 %v2906_v24  ;;  %v10745_v46 = vadd.f32 %v10696_v13, %v2225_v8  ;;  %v6899_v26 = vpop.eup %6898  ;;  %v5365_v10 = vadd.f32 -1.0, %v6897_v61  ;;  %3252 = vmatpush.msra.mxu3 %v2827_v11  ;;  %v2898_v8 = vld [vmem:[#allocation5 + $0x530] sm:$0xff]  ;;  %v2896_v24 = vld [vmem:[#allocation5 + $0x520] sm:$0xff]  ;;  %vm2489_vm15 = vcmp.gt.f32.partialorder %v10705_v14, 0.0  ;;  %vm2460_vm0 = vcmp.gt.f32.partialorder %v10713_v4, 0.0 }
 0x393   :  { %3002 = vmatmul.f32.gmra.mxu0 %v10700_v18  ;;  %3224 = vmatpush.msrb.mxu2 %v2769_v28  ;;  %v6901_v13 = vpop.eup %6900  ;;  %v5336_v33 = vadd.f32 -1.0, %v6899_v26  ;;  %v2892_v26 = vld [vmem:[#allocation5 + $0x500] sm:$0xff] }
 0x394   :  { %3138 = vmatpush.msrb.mxu0 %v2904_v43  ;;  %v2514_v37 = vmin.f32 %v10745_v46, 0.0  ;;  %v5370_v28 = vadd.f32 -1.0, %v6901_v13  ;;  %v10767_v0 = vsel %vm2483_vm1, %v10664_v25, %v5365_v10  ;;  %3253 = vmatpush.msra.mxu3 %v2825_v47  ;;  %v2817_v10 = vld [vmem:[#allocation5 + $0x2a8] sm:$0xff]  ;;  %vm2466_vm1 = vcmp.gt.f32.partialorder %v10745_v46, 0.0 }
 0x395   :  { %v10715_v44 = vpop.f32.mrf.mxu1  ;;  %3225 = vmatpush.msrb.mxu2 %v2767_v55  ;;  %v10779_v25 = vsel %vm2454_vm4, %v10672_v34, %v5336_v33  ;;  %v2813_v47 = vld [vmem:[#allocation5 + $0x288] sm:$0xff] }
 0x396   :  { %3075 = vmatmul.f32.gmra.mxu2 %v10718_v5  ;;  %3139 = vmatpush.msrb.mxu0 %v2902_v23  ;;  %v6903_v15 = vpop.eup %6902  ;;  %v2584_v55 = vmul.f32 1.442695, %v2514_v37  ;;  %v10782_v7 = vsel %vm2488_vm2, %v14115_v6, %v5370_v28  ;;  %v2231_v21 = vadd.f32 %v10715_v44, %v2190_v9  ;;  %v2819_v23 = vld [vmem:[#allocation5 + $0x2b8] sm:$0xff]  ;;  %v2193_v44 = vadd.f32 %v10686_v2, %v10702_v32 }
 0x397   :  { %2961 = vmatmul.f32.gmra.mxu3 %v10722_v63  ;;  %3226 = vmatpush.msrb.mxu2 %v2765_v29  ;;  %v2823_v29 = vld [vmem:[#allocation5 + $0x2d8] sm:$0xff]  ;;  %v6905_v61 = vpop.eup %6904  ;;  %v5371_v35 = vadd.f32 -1.0, %v6903_v15 }
 0x398   :  { %3037 = vmatmul.f32.gmra.mxu1 %v10728_v59  ;;  %3140 = vmatpush.msrb.mxu0 %v2900_v12  ;;  %v10763_v3 = vpop.f32.mrf.mxu0  ;;  %6906 = vpow2.f32 %v2584_v55  ;;  %v5342_v6 = vadd.f32 -1.0, %v6905_v61  ;;  %v2815_v28 = vld [vmem:[#allocation5 + $0x298] sm:$0xff]  ;;  %v2809_v61 = vld [vmem:[#allocation5 + $0x268] sm:$0xff] }
 0x399   :  { %v2268_v27 = vpop.f32.mrf.mxu2  ;;  %3254 = vmatpush.msra.mxu3 %v2823_v29  ;;  %v14116_v15 = vld [vmem:[#allocation78_spill] sm:$0xff] }
 0x39a   :  { %v10735_v17 = vpop.f32.mrf.mxu3  ;;  %3141 = vmatpush.msrb.mxu0 %v2898_v8  ;;  %v10771_v58 = vadd.f32 %v2268_v27, %v2228_v19  ;;  %v2821_v27 = vld [vmem:[#allocation5 + $0x2c8] sm:$0xff]  ;;  %v10792_v19 = vsel %vm2489_vm15, %v10705_v14, %v5371_v35  ;;  %v10801_v8 = vsel %vm2460_vm0, %v10713_v4, %v5342_v6  ;;  %v2811_v9 = vld [vmem:[#allocation5 + $0x278] sm:$0xff] }
 0x39b   :  { %3255 = vmatpush.msra.mxu3 %v2821_v27  ;;  %v2891_v55 = vld [vmem:[#allocation5 + $0x4f8] sm:$0xff] }
 0x39c   :  { %3142 = vmatpush.msrb.mxu0 %v2896_v24  ;;  %v2520_v43 = vmin.f32 %v10771_v58, 0.0  ;;  %3334 = vmatpush.msra.mxu1 %v2891_v55  ;;  %v2801_v55 = vld [vmem:[#allocation5 + $0x228] sm:$0xff]  ;;  %vm2472_vm4 = vcmp.gt.f32.partialorder %v10771_v58, 0.0 }
 0x39d   :  { %v10747_v30 = vpop.f32.mrf.mxu1  ;;  %3256 = vmatpush.msra.mxu3 %v2819_v23 }
 0x39e   :  { %3078 = vmatmul.f32.gmra.mxu2 %v10739_v1  ;;  %3143 = vmatpush.msrb.mxu0 %v2894_v50  ;;  %v2596_v37 = vmul.f32 1.442695, %v2520_v43  ;;  %v6907_v14 = vpop.eup %6906  ;;  %v2234_v2 = vadd.f32 %v10747_v30, %v2193_v44  ;;  %v2889_v50 = vld [vmem:[#allocation5 + $0x4e8] sm:$0xff]  ;;  %v2196_v30 = vadd.f32 %v10733_v40, %v10735_v17  ;;  %v2807_v43 = vld [vmem:[#allocation5 + $0x258] sm:$0xff] }
 0x39f   :  { %3104 = vmatmul.f32.vlgmr.msrb.gmra.mxu3 %v10752_v42  ;;  %v5348_v29 = vadd.f32 -1.0, %v6907_v14  ;;  %3335 = vmatpush.msra.mxu1 %v2889_v50  ;;  %v2805_v40 = vld [vmem:[#allocation5 + $0x248] sm:$0xff]  ;;  %v2883_v14 = vld [vmem:[#allocation5 + $0x4b8] sm:$0xff] }
 0x3a0   :  { %3040 = vmatmul.f32.gmra.mxu1 %v10755_v31  ;;  %3144 = vmatpush.msrb.mxu0 %v2892_v26  ;;  %v2341_v12 = vpop.f32.mrf.mxu0  ;;  %6908 = vpow2.f32 %v2596_v37  ;;  %v14117_v26 = vld [vmem:[#allocation74_spill] sm:$0xff]  ;;  %v2885_v17 = vld [vmem:[#allocation5 + $0x4c8] sm:$0xff] }
 0x3a1   :  { %v2271_v60 = vpop.f32.mrf.mxu2  ;;  %3257 = vmatpush.msra.mxu3 %v2817_v10  ;;  %v10818_v23 = vsel %vm2466_vm1, %v10745_v46, %v5348_v29  ;;  %v14118_v44 = vld [vmem:[#allocation96_spill] sm:$0xff]  ;;  %v2803_v46 = vld [vmem:[#allocation5 + $0x238] sm:$0xff] }
 0x3a2   :  { %v10761_v54 = vpop.f32.mrf.mxu3  ;;  %v10796_v11 = vadd.f32 %v2271_v60, %v2231_v21 }
 0x3a3   :  { %3258 = vmatpush.msra.mxu3 %v2815_v28  ;;  %v2339_v4 = vadd.f32 %v10763_v3, %v10761_v54  ;;  %v2887_v54 = vld [vmem:[#allocation5 + $0x4d8] sm:$0xff] }
 0x3a4   :  { %v2526_v32 = vmin.f32 %v10796_v11, 0.0  ;;  %3336 = vmatpush.msra.mxu1 %v2887_v54  ;;  %v14119_v54 = vld [vmem:[#allocation80_spill] sm:$0xff]  ;;  %vm2478_vm2 = vcmp.gt.f32.partialorder %v10796_v11, 0.0 }
 0x3a5   :  { %v10773_v45 = vpop.f32.mrf.mxu1  ;;  %3259 = vmatpush.msra.mxu3 %v2813_v47  ;;  %v2921_v47 = vld [vmem:[#allocation5 + $0x5e8] sm:$0xff] }
 0x3a6   :  { %3081 = vmatmul.f32.gmra.mxu2 %v10767_v0  ;;  %v2608_v27 = vmul.f32 1.442695, %v2526_v32  ;;  %v6909_v6 = vpop.eup %6908  ;;  %v2237_v37 = vadd.f32 %v10773_v45, %v2196_v30  ;;  %3337 = vmatpush.msra.mxu1 %v2885_v17  ;;  %v2881_v45 = vld [vmem:[#allocation5 + $0x4a8] sm:$0xff]  ;;  %v14120_v17 = vld [vmem:[#allocation86_spill] sm:$0xff] }
 0x3a7   :  { %3107 = vmatmul.f32.gmra.mxu3 %v10779_v25 }
 0x3a8   :  { %3043 = vmatmul.f32.gmra.mxu1 %v10782_v7  ;;  %3260 = vmatpush.msra.mxu3 %v2811_v9  ;;  %v2344_v10 = vpop.f32.mrf.mxu0  ;;  %6910 = vpow2.f32 %v2608_v27  ;;  %v5354_v9 = vadd.f32 -1.0, %v6909_v6 }
 0x3a9   :  { %v2274_v34 = vpop.f32.mrf.mxu2  ;;  %3338 = vmatpush.msra.mxu1 %v2883_v14 }
 0x3aa   :  { %v10788_v13 = vpop.f32.mrf.mxu3  ;;  %v10813_v35 = vadd.f32 %v2274_v34, %v2234_v2  ;;  %3261 = vmatpush.msra.mxu3 %v2809_v61  ;;  %v2923_v34 = vld [vmem:[#allocation5 + $0x5f8] sm:$0xff] }
 0x3ab   :  { %3375 = vmatpush.msra.mxu2 %v2923_v34  ;;  %3339 = vmatpush.msra.mxu1 %v2881_v45  ;;  %v2915_v34 = vld [vmem:[#allocation5 + $0x5b8] sm:$0xff] }
 0x3ac   :  { %3262 = vmatpush.msra.mxu3 %v2807_v43  ;;  %vm2484_vm0 = vcmp.gt.f32.partialorder %v10813_v35, 0.0 }
 0x3ad   :  { %v2379_v33 = vpop.f32.mrf.mxu1  ;;  %3376 = vmatpush.msra.mxu2 %v2921_v47  ;;  %v2913_v47 = vld [vmem:[#allocation5 + $0x5a8] sm:$0xff] }
 0x3ae   :  { %3084 = vmatmul.f32.gmra.mxu2 %v10792_v19  ;;  %v2380_v3 = vadd.f32 %v2379_v33, %v2339_v4  ;;  %v2532_v33 = vmin.f32 %v10813_v35, 0.0  ;;  %3263 = vmatpush.msra.mxu3 %v2805_v40  ;;  %v2919_v4 = vld [vmem:[#allocation5 + $0x5d8] sm:$0xff]  ;;  %v6911_v6 = vpop.eup %6910  ;;  %v2877_v40 = vld [vmem:[#allocation5 + $0x488] sm:$0xff] }
 0x3af   :  { %3110 = vmatmul.f32.gmra.mxu3 %v10801_v8  ;;  %3377 = vmatpush.msra.mxu2 %v2919_v4  ;;  %v5360_v14 = vadd.f32 -1.0, %v6911_v6 }
 0x3b0   :  { %3186 = vmatmul.f32.vlgmr.msrb.gmra.mxu1 %v14116_v15  ;;  %v2342_v15 = vadd.f32 %v2341_v12, %v10788_v13  ;;  %3264 = vmatpush.msra.mxu3 %v2803_v46  ;;  %v2620_v61 = vmul.f32 1.442695, %v2532_v33  ;;  %v2799_v13 = vld [vmem:[#allocation5 + $0x218] sm:$0xff] }
 0x3b1   :  { %v2277_v60 = vpop.f32.mrf.mxu2  ;;  %v2879_v12 = vld [vmem:[#allocation5 + $0x498] sm:$0xff] }
 0x3b2   :  { %v10809_v24 = vpop.f32.mrf.mxu3  ;;  %v10830_v50 = vadd.f32 %v2277_v60, %v2237_v37  ;;  %3265 = vmatpush.msra.mxu3 %v2801_v55  ;;  %3340 = vmatpush.msra.mxu1 %v2879_v12  ;;  %v2797_v60 = vld [vmem:[#allocation5 + $0x208] sm:$0xff]  ;;  %v2911_v55 = vld [vmem:[#allocation5 + $0x598] sm:$0xff] }
 0x3b3   :  { %v2345_v33 = vadd.f32 %v2344_v10, %v10809_v24  ;;  %v2871_v12 = vld [vmem:[#allocation5 + $0x458] sm:$0xff] }
 0x3b4   :  { %3266 = vmatpush.msra.mxu3 %v2799_v13  ;;  %3341 = vmatpush.msra.mxu1 %v2877_v40  ;;  %v10849_v13 = vsel %vm2478_vm2, %v10796_v11, %v5360_v14 }
 0x3b5   :  { %v2382_v21 = vpop.f32.mrf.mxu1 }
 0x3b6   :  { %3227 = vmatmul.f32.vlgmr.msrb.gmra.mxu2 %v14117_v26  ;;  %v2383_v27 = vadd.f32 %v2382_v21, %v2342_v15  ;;  %v2917_v26 = vld [vmem:[#allocation5 + $0x5c8] sm:$0xff]  ;;  %v2347_v21 = vpop.f32.mrf.mxu0  ;;  %3267 = vmatpush.msra.mxu3 %v2797_v60 }
 0x3b7   :  { %3113 = vmatmul.f32.gmra.mxu3 %v10818_v23  ;;  %3378 = vmatpush.msra.mxu2 %v2917_v26  ;;  %v2873_v15 = vld [vmem:[#allocation5 + $0x468] sm:$0xff] }
 0x3b8   :  { %3189 = vmatmul.f32.gmra.mxu1 %v14118_v44  ;;  %v2538_v44 = vmin.f32 %v10830_v50, 0.0  ;;  %v2869_v26 = vld [vmem:[#allocation5 + $0x448] sm:$0xff] }
 0x3b9   :  { %v2420_v28 = vpop.f32.mrf.mxu2  ;;  %3379 = vmatpush.msra.mxu2 %v2915_v34 }
 0x3ba   :  { %v10825_v2 = vadd.f32 %v2420_v28, %v2380_v3  ;;  %v10827_v32 = vpop.f32.mrf.mxu3  ;;  %v10835_v3 = vsel %vm2472_vm4, %v10771_v58, %v5354_v9  ;;  %v2875_v58 = vld [vmem:[#allocation5 + $0x478] sm:$0xff]  ;;  %v2632_v45 = vmul.f32 1.442695, %v2538_v44  ;;  %vm2490_vm4 = vcmp.gt.f32.partialorder %v10830_v50, 0.0 }
 0x3bb   :  { %3342 = vmatpush.msra.mxu1 %v2875_v58  ;;  %3380 = vmatpush.msra.mxu2 %v2913_v47  ;;  %v2348_v11 = vadd.f32 %v2347_v21, %v10827_v32  ;;  %v2867_v44 = vld [vmem:[#allocation5 + $0x438] sm:$0xff]  ;;  %v2857_v21 = vld [vmem:[#allocation5 + $0x3e8] sm:$0xff] }
 0x3bc   :  { %v2497_v29 = vmin.f32 %v10825_v2, 0.0  ;;  %vm2449_vm15 = vcmp.gt.f32.partialorder %v10825_v2, 0.0  ;;  %v2859_v58 = vld [vmem:[#allocation5 + $0x3f8] sm:$0xff] }
 0x3bd   :  { %v2385_v30 = vpop.f32.mrf.mxu1  ;;  %3343 = vmatpush.msra.mxu1 %v2873_v15  ;;  %3381 = vmatpush.msra.mxu2 %v2911_v55  ;;  %v2903_v32 = vld [vmem:[#allocation5 + $0x558] sm:$0xff]  ;;  %v14122_v55 = vld [vmem:[#allocation12_spill] sm:$0xff] }
 0x3be   :  { %v2550_v43 = vmul.f32 1.442695, %v2497_v29  ;;  %3230 = vmatmul.f32.gmra.mxu2 %v14119_v54  ;;  %v2386_v10 = vadd.f32 %v2385_v30, %v2345_v33  ;;  %v2907_v30 = vld [vmem:[#allocation5 + $0x578] sm:$0xff]  ;;  %3293 = vmatpush.msra.mxu0 %v2859_v58  ;;  %v2865_v33 = vld [vmem:[#allocation5 + $0x428] sm:$0xff] }
 0x3bf   :  { %3116 = vmatmul.f32.gmra.mxu3 %v10835_v3  ;;  %3344 = vmatpush.msra.mxu1 %v2871_v12  ;;  %v2855_v12 = vld [vmem:[#allocation5 + $0x3d8] sm:$0xff]  ;;  %v2849_v58 = vld [vmem:[#allocation5 + $0x3a8] sm:$0xff] }
 0x3c0   :  { %6912 = vpow2.f32 %v2550_v43  ;;  %3192 = vmatmul.f32.gmra.mxu1 %v14120_v17  ;;  %3294 = vmatpush.msra.mxu0 %v2857_v21 }
 0x3c1   :  { %6914 = vpow2.f32 %v2620_v61  ;;  %v2423_v37 = vpop.f32.mrf.mxu2  ;;  %v14121_v61 = vld [vmem:[#allocation84_spill] sm:$0xff]  ;;  %3345 = vmatpush.msra.mxu1 %v2869_v26 }
 0x3c2   :  { %v10841_v28 = vadd.f32 %v2423_v37, %v2383_v27  ;;  %v10843_v46 = vpop.f32.mrf.mxu3  ;;  %v2909_v27 = vld [vmem:[#allocation5 + $0x588] sm:$0xff]  ;;  %v2350_v37 = vpop.f32.mrf.mxu0  ;;  %3295 = vmatpush.msra.mxu0 %v2855_v12 }
 0x3c3   :  { %3382 = vmatpush.msra.mxu2 %v2909_v27  ;;  %3346 = vmatpush.msra.mxu1 %v2867_v44  ;;  %v2351_v26 = vadd.f32 %v2350_v37, %v10843_v46  ;;  %v2897_v44 = vld [vmem:[#allocation5 + $0x528] sm:$0xff] }
 0x3c4   :  { %v2503_v9 = vmin.f32 %v10841_v28, 0.0  ;;  %vm2455_vm1 = vcmp.gt.f32.partialorder %v10841_v28, 0.0 }
 0x3c5   :  { %v2388_v4 = vpop.f32.mrf.mxu1  ;;  %3383 = vmatpush.msra.mxu2 %v2907_v30  ;;  %3347 = vmatpush.msra.mxu1 %v2865_v33 }
 0x3c6   :  { %v6913_v24 = vpop.eup %6912  ;;  %v2562_v29 = vmul.f32 1.442695, %v2503_v9  ;;  %3233 = vmatmul.f32.gmra.mxu2 %v14121_v61  ;;  %v2389_v15 = vadd.f32 %v2388_v4, %v2348_v11  ;;  %v2901_v61 = vld [vmem:[#allocation5 + $0x548] sm:$0xff] }
 0x3c7   :  { %v6915_v43 = vpop.eup %6914  ;;  %v5331_v54 = vadd.f32 -1.0, %v6913_v24  ;;  %3119 = vmatmul.f32.gmra.mxu3 %v10849_v13  ;;  %v2863_v24 = vld [vmem:[#allocation5 + $0x418] sm:$0xff]  ;;  %v2861_v4 = vld [vmem:[#allocation5 + $0x408] sm:$0xff] }
 0x3c8   :  { %6916 = vpow2.f32 %v2562_v29  ;;  %3195 = vmatmul.f32.gmra.mxu1 %v10557_v52  ;;  %v5366_v34 = vadd.f32 -1.0, %v6915_v43  ;;  %v2905_v52 = vld [vmem:[#allocation5 + $0x568] sm:$0xff]  ;;  %v2899_v43 = vld [vmem:[#allocation5 + $0x538] sm:$0xff] }
 0x3c9   :  { %6918 = vpow2.f32 %v2632_v45  ;;  %v2426_v6 = vpop.f32.mrf.mxu2  ;;  %v10855_v60 = vsel %vm2449_vm15, %v10825_v2, %v5331_v54  ;;  %3384 = vmatpush.msra.mxu2 %v2905_v52  ;;  %3348 = vmatpush.msra.mxu1 %v2863_v24  ;;  %v2853_v54 = vld [vmem:[#allocation5 + $0x3c8] sm:$0xff] }
 0x3ca   :  { %v10858_v40 = vadd.f32 %v2426_v6, %v2386_v10  ;;  %3145 = vmatmul.f32.vlgmr.msrb.gmra.mxu0 %v10855_v60  ;;  %v10861_v17 = vpop.f32.mrf.mxu3  ;;  %v10867_v45 = vsel %vm2484_vm0, %v10813_v35, %v5366_v34  ;;  %v2845_v24 = vld [vmem:[#allocation5 + $0x388] sm:$0xff] }
 0x3cb   :  { %3385 = vmatpush.msra.mxu2 %v2903_v32  ;;  %3349 = vmatpush.msra.mxu1 %v2861_v4  ;;  %v2895_v32 = vld [vmem:[#allocation5 + $0x518] sm:$0xff] }
 0x3cc   :  { %v2509_v2 = vmin.f32 %v10858_v40, 0.0  ;;  %3296 = vmatpush.msra.mxu0 %v2853_v54  ;;  %vm2461_vm2 = vcmp.gt.f32.partialorder %v10858_v40, 0.0  ;;  %v2839_v54 = vld [vmem:[#allocation5 + $0x358] sm:$0xff] }
 0x3cd   :  { %v2391_v14 = vpop.f32.mrf.mxu1  ;;  %3386 = vmatpush.msra.mxu2 %v2901_v61 }
 0x3ce   :  { %v6917_v47 = vpop.eup %6916  ;;  %v2574_v9 = vmul.f32 1.442695, %v2509_v2  ;;  %3236 = vmatmul.f32.gmra.mxu2 %v14122_v55  ;;  %v2392_v46 = vadd.f32 %v2391_v14, %v2351_v26 }
 0x3cf   :  { %v6919_v10 = vpop.eup %6918  ;;  %3122 = vmatmul.f32.gmra.mxu3 %v10867_v45  ;;  %v5337_v29 = vadd.f32 -1.0, %v6917_v47  ;;  %3387 = vmatpush.msra.mxu2 %v2899_v43  ;;  %v2893_v47 = vld [vmem:[#allocation5 + $0x508] sm:$0xff]  ;;  %v14123_v43 = vld [vmem:[#allocation83_spill] sm:$0xff] }
 0x3d0   :  { %6920 = vpow2.f32 %v2574_v9  ;;  %3198 = vmatmul.f32.gmra.mxu1 %v10597_v57  ;;  %v5372_v11 = vadd.f32 -1.0, %v6919_v10  ;;  %v2851_v57 = vld [vmem:[#allocation5 + $0x3b8] sm:$0xff] }
 0x3d1   :  { %v2429_v27 = vpop.f32.mrf.mxu2  ;;  %v10873_v35 = vsel %vm2455_vm1, %v10841_v28, %v5337_v29  ;;  %v2353_v28 = vpop.f32.mrf.mxu0  ;;  %3297 = vmatpush.msra.mxu0 %v2851_v57  ;;  %3388 = vmatpush.msra.mxu2 %v2897_v44  ;;  %v2843_v10 = vld [vmem:[#allocation5 + $0x378] sm:$0xff] }
 0x3d2   :  { %v2430_v30 = vadd.f32 %v2429_v27, %v2389_v15  ;;  %3148 = vmatmul.f32.gmra.mxu0 %v10873_v35  ;;  %v2315_v6 = vpop.f32.mrf.mxu3  ;;  %v10880_v33 = vsel %vm2490_vm4, %v10830_v50, %v5372_v11  ;;  %v2847_v15 = vld [vmem:[#allocation5 + $0x398] sm:$0xff] }
 0x3d3   :  { %3298 = vmatpush.msra.mxu0 %v2849_v58  ;;  %3389 = vmatpush.msra.mxu2 %v2895_v32 }
 0x3d4   :  { %v2515_v34 = vmin.f32 %v2430_v30, 0.0  ;;  %vm2467_vm15 = vcmp.gt.f32.partialorder %v2430_v30, 0.0 }
 0x3d5   :  { %v2394_v52 = vpop.f32.mrf.mxu1  ;;  %3390 = vmatpush.msra.mxu2 %v2893_v47  ;;  %3299 = vmatpush.msra.mxu0 %v2847_v15 }
 0x3d6   :  { %v6921_v2 = vpop.eup %6920  ;;  %v2586_v37 = vmul.f32 1.442695, %v2515_v34  ;;  %3239 = vmatmul.f32.gmra.mxu2 %v10573_v36  ;;  %v2354_v36 = vadd.f32 %v2353_v28, %v10861_v17 }
 0x3d7   :  { %3125 = vmatmul.f32.gmra.mxu3 %v10880_v33  ;;  %v5343_v21 = vadd.f32 -1.0, %v6921_v2  ;;  %3300 = vmatpush.msra.mxu0 %v2845_v24 }
 0x3d8   :  { %6922 = vpow2.f32 %v2586_v37  ;;  %3201 = vmatmul.f32.gmra.mxu1 %v10640_v48  ;;  %v2395_v12 = vadd.f32 %v2394_v52, %v2354_v36  ;;  %v2835_v52 = vld [vmem:[#allocation5 + $0x338] sm:$0xff] }
 0x3d9   :  { %v2432_v14 = vpop.f32.mrf.mxu2  ;;  %v10886_v9 = vsel %vm2461_vm2, %v10858_v40, %v5343_v21  ;;  %v2841_v40 = vld [vmem:[#allocation5 + $0x368] sm:$0xff]  ;;  %v2356_v27 = vpop.f32.mrf.mxu0  ;;  %3301 = vmatpush.msra.mxu0 %v2843_v10  ;;  %v2831_v37 = vld [vmem:[#allocation5 + $0x318] sm:$0xff] }
 0x3da   :  { %v2433_v50 = vadd.f32 %v2432_v14, %v2392_v46  ;;  %3151 = vmatmul.f32.gmra.mxu0 %v10886_v9  ;;  %v2318_v55 = vpop.f32.mrf.mxu3  ;;  %v2357_v57 = vadd.f32 %v2356_v27, %v2315_v6 }
 0x3db   :  { %3302 = vmatpush.msra.mxu0 %v2841_v40 }
 0x3dc   :  { %v2521_v48 = vmin.f32 %v2433_v50, 0.0  ;;  %vm2473_vm0 = vcmp.gt.f32.partialorder %v2433_v50, 0.0 }
 0x3dd   :  { %v2397_v29 = vpop.f32.mrf.mxu1  ;;  %3303 = vmatpush.msra.mxu0 %v2839_v54 }
 0x3de   :  { %v6923_v61 = vpop.eup %6922  ;;  %v2598_v4 = vmul.f32 1.442695, %v2521_v48  ;;  %3242 = vmatmul.f32.gmra.mxu2 %v10614_v38  ;;  %v2837_v38 = vld [vmem:[#allocation5 + $0x348] sm:$0xff] }
 0x3df   :  { %3268 = vmatmul.f32.vlgmr.msra.gmra.mxu3 %v14123_v43  ;;  %v5349_v17 = vadd.f32 -1.0, %v6923_v61  ;;  %3304 = vmatpush.msra.mxu0 %v2837_v38 }
 0x3e0   :  { %6924 = vpow2.f32 %v2598_v4  ;;  %3204 = vmatmul.f32.gmra.mxu1 %v10681_v20  ;;  %v2398_v20 = vadd.f32 %v2397_v29, %v2357_v57 }
 0x3e1   :  { %v2435_v26 = vpop.f32.mrf.mxu2  ;;  %v10893_v11 = vsel %vm2467_vm15, %v2430_v30, %v5349_v17  ;;  %v2833_v30 = vld [vmem:[#allocation5 + $0x328] sm:$0xff]  ;;  %3305 = vmatpush.msra.mxu0 %v2835_v52  ;;  %v2359_v32 = vpop.f32.mrf.mxu0  ;;  %vm14218_vm15 = vcmask 1022976  }
 0x3e2   :  { %v2436_v34 = vadd.f32 %v2435_v26, %v2395_v12  ;;  %3154 = vmatmul.f32.gmra.mxu0 %v10893_v11  ;;  %v10896_v44 = vpop.f32.mrf.mxu3  ;;  %v2360_v15 = vadd.f32 %v2359_v32, %v2318_v55 }
 0x3e3   :  { %3306 = vmatpush.msra.mxu0 %v2833_v30 }
 0x3e4   :  { %v2527_v28 = vmin.f32 %v2436_v34, 0.0  ;;  %vm2479_vm1 = vcmp.gt.f32.partialorder %v2436_v34, 0.0 }
 0x3e5   :  { %v2400_v58 = vpop.f32.mrf.mxu1  ;;  %3307 = vmatpush.msra.mxu0 %v2831_v37 }
 0x3e6   :  { %v6925_v2 = vpop.eup %6924  ;;  %v2610_v46 = vmul.f32 1.442695, %v2527_v28  ;;  %3245 = vmatmul.f32.gmra.mxu2 %v10657_v56  ;;  %v2829_v56 = vld [vmem:[#allocation5 + $0x308] sm:$0xff]  ;;  %v2401_v48 = vadd.f32 %v2400_v58, %v2360_v15 }
 0x3e7   :  { %3271 = vmatmul.f32.gmra.mxu3 %v10563_v16  ;;  %v5355_v6 = vadd.f32 -1.0, %v6925_v2  ;;  %3308 = vmatpush.msra.mxu0 %v2829_v56 }
 0x3e8   :  { %6926 = vpow2.f32 %v2610_v46  ;;  %3207 = vmatmul.f32.gmra.mxu1 %v10722_v63 }
 0x3e9   :  { %v2438_v21 = vpop.f32.mrf.mxu2  ;;  %v10901_v47 = vsel %vm2473_vm0, %v2433_v50, %v5355_v6  ;;  %vm14220_vm0 = vmmov %vm14218_vm15 }
 0x3ea   :  { %v2439_v14 = vadd.f32 %v2438_v21, %v2398_v20  ;;  %3157 = vmatmul.f32.gmra.mxu0 %v10901_v47  ;;  %v10904_v16 = vpop.f32.mrf.mxu3 }
 0x3ec   :  { %v2533_v36 = vmin.f32 %v2439_v14, 0.0  ;;  %vm2485_vm4 = vcmp.gt.f32.partialorder %v2439_v14, 0.0 }
 0x3ed   :  { %v10906_v24 = vpop.f32.mrf.mxu1 }
 0x3ee   :  { %v6927_v63 = vpop.eup %6926  ;;  %v2622_v10 = vmul.f32 1.442695, %v2533_v36  ;;  %3248 = vmatmul.f32.gmra.mxu2 %v10700_v18  ;;  %v10918_v18 = vpop.f32.mrf.mxu0 }
 0x3ef   :  { %3274 = vmatmul.f32.gmra.mxu3 %v10604_v53  ;;  %v5361_v50 = vadd.f32 -1.0, %v6927_v63 }
 0x3f0   :  { %6928 = vpow2.f32 %v2622_v10  ;;  %3350 = vmatmul.f32.vlgmr.msra.gmra.mxu1 %v10752_v42 }
 0x3f1   :  { %v2441_v55 = vpop.f32.mrf.mxu2  ;;  %v2719_v29 = vsel %vm2479_vm1, %v2436_v34, %v5361_v50  ;;  %vm14222_vm1 = vmmov %vm14220_vm0 }
 0x3f2   :  { %v2442_v61 = vadd.f32 %v2441_v55, %v2401_v48  ;;  %3160 = vmatmul.f32.gmra.mxu0 %v2719_v29  ;;  %v10914_v43 = vpop.f32.mrf.mxu3 }
 0x3f4   :  { %v2539_v12 = vmin.f32 %v2442_v61, 0.0  ;;  %vm2491_vm2 = vcmp.gt.f32.partialorder %v2442_v61, 0.0 }
 0x3f5   :  { %v10911_v4 = vpop.f32.mrf.mxu1 }
 0x3f6   :  { %v6929_v40 = vpop.eup %6928  ;;  %v2634_v27 = vmul.f32 1.442695, %v2539_v12  ;;  %3391 = vmatmul.f32.vlgmr.msra.gmra.mxu2 %v10855_v60  ;;  %v10931_v34 = vpop.f32.mrf.mxu0 }
 0x3f7   :  { %3277 = vmatmul.f32.gmra.mxu3 %v10647_v39  ;;  %v5367_v53 = vadd.f32 -1.0, %v6929_v40 }
 0x3f8   :  { %6930 = vpow2.f32 %v2634_v27  ;;  %3353 = vmatmul.f32.gmra.mxu1 %v10779_v25 }
 0x3f9   :  { %v10920_v42 = vpop.f32.mrf.mxu2  ;;  %v2725_v17 = vsel %vm2485_vm4, %v2439_v14, %v5367_v53  ;;  %vm14225_vm4 = vmmov %vm14220_vm0 }
 0x3fa   :  { %3163 = vmatmul.f32.gmra.mxu0 %v2725_v17  ;;  %v10927_v39 = vpop.f32.mrf.mxu3 }
 0x3fd   :  { %v10922_v54 = vpop.f32.mrf.mxu1 }
 0x3fe   :  { %v6931_v26 = vpop.eup %6930  ;;  %3394 = vmatmul.f32.gmra.mxu2 %v10873_v35  ;;  %v10943_v35 = vpop.f32.mrf.mxu0 }
 0x3ff   :  { %3280 = vmatmul.f32.gmra.mxu3 %v10690_v62  ;;  %v5373_v60 = vadd.f32 -1.0, %v6931_v26 }
 0x400   :  { %3356 = vmatmul.f32.gmra.mxu1 %v10801_v8 }
 0x401   :  { %v10929_v25 = vpop.f32.mrf.mxu2  ;;  %v2731_v57 = vsel %vm2491_vm2, %v2442_v61, %v5373_v60  ;;  %vm14227_vm2 = vmmov %vm14220_vm0 }
 0x402   :  { %3166 = vmatmul.f32.gmra.mxu0 %v2731_v57  ;;  %v10941_v8 = vpop.f32.mrf.mxu3 }
 0x405   :  { %v10934_v38 = vpop.f32.mrf.mxu1 }
 0x406   :  { %3397 = vmatmul.f32.gmra.mxu2 %v10886_v9 }
 0x407   :  { %3283 = vmatmul.f32.gmra.mxu3 %v10728_v59 }
 0x408   :  { %3359 = vmatmul.f32.gmra.mxu1 %v10818_v23 }
 0x409   :  { %v10938_v62 = vpop.f32.mrf.mxu2 }
 0x40a   :  { %3309 = vmatmul.f32.vlgmr.msra.gmra.mxu0 %v10551_v41  ;;  %v10953_v59 = vpop.f32.mrf.mxu3  ;;  %v10956_v41 = vpop.f32.mrf.mxu0 }
 0x40d   :  { %v10948_v9 = vpop.f32.mrf.mxu1 }
 0x40e   :  { %3400 = vmatmul.f32.gmra.mxu2 %v10893_v11 }
 0x40f   :  { %3286 = vmatmul.f32.gmra.mxu3 %v10755_v31 }
 0x410   :  { %3362 = vmatmul.f32.gmra.mxu1 %v10835_v3 }
 0x411   :  { %v10950_v28 = vpop.f32.mrf.mxu2 }
 0x412   :  { %3312 = vmatmul.f32.gmra.mxu0 %v10593_v49  ;;  %v10965_v3 = vpop.f32.mrf.mxu3  ;;  %v10968_v49 = vpop.f32.mrf.mxu0 }
 0x413   :  { %14124 = vst [vmem:[#allocation15_spill] sm:$0xff] %v10965_v3 }
 0x415   :  { %v10963_v31 = vpop.f32.mrf.mxu1 }
 0x416   :  { %3403 = vmatmul.f32.gmra.mxu2 %v10901_v47 }
 0x417   :  { %3289 = vmatmul.f32.gmra.mxu3 %v10782_v7 }
 0x418   :  { %3365 = vmatmul.f32.gmra.mxu1 %v10849_v13 }
 0x419   :  { %v10960_v23 = vpop.f32.mrf.mxu2 }
 0x41a   :  { %3315 = vmatmul.f32.gmra.mxu0 %v10636_v51  ;;  %v10976_v13 = vpop.f32.mrf.mxu3  ;;  %v10981_v52 = vpop.f32.mrf.mxu0 }
 0x41b   :  { %14126 = vst [vmem:[#allocation66_spill] sm:$0xff] %v10976_v13 }
 0x41d   :  { %v10973_v7 = vpop.f32.mrf.mxu1 }
 0x41e   :  { %3406 = vmatmul.f32.gmra.mxu2 %v2719_v29  ;;  %14125 = vst [vmem:[#allocation41_spill] sm:$0xff] %v10973_v7 }
 0x420   :  { %3368 = vmatmul.f32.gmra.mxu1 %v10867_v45 }
 0x421   :  { %v10970_v11 = vpop.f32.mrf.mxu2 }
 0x422   :  { %3318 = vmatmul.f32.gmra.mxu0 %v10677_v22  ;;  %v3105_v22 = vpop.f32.mrf.mxu3  ;;  %v10988_v2 = vpop.f32.mrf.mxu0 }
 0x423   :  { %14130 = vst [vmem:[#allocation37_spill] sm:$0xff] %v10988_v2 }
 0x425   :  { %v10983_v45 = vpop.f32.mrf.mxu1 }
 0x426   :  { %3409 = vmatmul.f32.gmra.mxu2 %v2725_v17  ;;  %14128 = vst [vmem:[#allocation102_spill] sm:$0xff] %v10983_v45  ;;  %v2983_v45 = vadd.f32 %v10918_v18, %v10896_v44 }
 0x428   :  { %3371 = vmatmul.f32.gmra.mxu1 %v10880_v33  ;;  %v3024_v13 = vadd.f32 %v10906_v24, %v2983_v45 }
 0x429   :  { %v10978_v51 = vpop.f32.mrf.mxu2 }
 0x42a   :  { %14127 = vst [vmem:[#allocation63_spill] sm:$0xff] %v10978_v51  ;;  %3321 = vmatmul.f32.gmra.mxu0 %v10718_v5  ;;  %v10991_v46 = vpop.f32.mrf.mxu3  ;;  %v10993_v30 = vpop.f32.mrf.mxu0  ;;  %v3065_v7 = vadd.f32 %v10920_v42, %v3024_v13 }
 0x42b   :  { %14131 = vst [vmem:[#allocation20_spill] sm:$0xff] %v10993_v30 }
 0x42d   :  { %v3187_v20 = vpop.f32.mrf.mxu1 }
 0x42e   :  { %3412 = vmatmul.f32.gmra.mxu2 %v2731_v57 }
 0x431   :  { %v10985_v58 = vpop.f32.mrf.mxu2 }
 0x432   :  { %14129 = vst [vmem:[#allocation114_spill] sm:$0xff] %v10985_v58  ;;  %3324 = vmatmul.f32.gmra.mxu0 %v10739_v1  ;;  %v10996_v37 = vpop.f32.mrf.mxu3 }
 0x435   :  { %v3190_v5 = vpop.f32.mrf.mxu1 }
 0x439   :  { %v3228_v33 = vpop.f32.mrf.mxu2 }
 0x43a   :  { %3327 = vmatmul.f32.gmra.mxu0 %v10767_v0  ;;  %v11002_v15 = vpop.f32.mrf.mxu3  ;;  %v3229_v30 = vadd.f32 %v3228_v33, %v3187_v20 }
 0x43d   :  { %v10998_v21 = vpop.f32.mrf.mxu1 }
 0x441   :  { %v3231_v6 = vpop.f32.mrf.mxu2 }
 0x442   :  { %3330 = vmatmul.f32.gmra.mxu0 %v10792_v19  ;;  %v11010_v36 = vpop.f32.mrf.mxu3 }
 0x445   :  { %v11004_v0 = vpop.f32.mrf.mxu1 }
 0x447   :  { %v3146_v32 = vpop.f32.mrf.mxu0 }
 0x449   :  { %v11000_v1 = vpop.f32.mrf.mxu2 }
 0x44a   :  { %v11018_v10 = vpop.f32.mrf.mxu3 }
 0x44d   :  { %v11014_v63 = vpop.f32.mrf.mxu1 }
 0x44f   :  { %v3149_v47 = vpop.f32.mrf.mxu0 }
 0x451   :  { %v11008_v56 = vpop.f32.mrf.mxu2 }
 0x452   :  { %v11026_v61 = vpop.f32.mrf.mxu3 }
 0x453   :  { %14132 = vst [vmem:[#allocation27_spill] sm:$0xff] %v11026_v61 }
 0x455   :  { %v11022_v55 = vpop.f32.mrf.mxu1 }
 0x457   :  { %v11006_v14 = vpop.f32.mrf.mxu0 }
 0x459   :  { %v11016_v48 = vpop.f32.mrf.mxu2 }
 0x45a   :  { %v11036_v17 = vpop.f32.mrf.mxu3 }
 0x45b   :  { %14136 = vst [vmem:[#allocation106_spill] sm:$0xff] %v11036_v17  ;;  %v3106_v17 = vadd.f32 %v3105_v22, %v3065_v7 }
 0x45d   :  { %v11030_v40 = vpop.f32.mrf.mxu1 }
 0x45e   :  { %14133 = vst [vmem:[#allocation107_spill] sm:$0xff] %v11030_v40  ;;  %v3232_v40 = vadd.f32 %v3231_v6, %v3190_v5 }
 0x45f   :  { %v11012_v19 = vpop.f32.mrf.mxu0 }
 0x461   :  { %v11024_v29 = vpop.f32.mrf.mxu2 }
 0x462   :  { %v3269_v58 = vpop.f32.mrf.mxu3 }
 0x463   :  { %v3270_v61 = vadd.f32 %v3269_v58, %v3229_v30  ;;  %v2989_v30 = vadd.f32 %v10943_v35, %v10914_v43  ;;  %v3238_v35 = vadd.f32 %v11008_v56, %v11004_v0 }
 0x465   :  { %v11038_v26 = vpop.f32.mrf.mxu1  ;;  %v3030_v6 = vadd.f32 %v10922_v54, %v2989_v30 }
 0x466   :  { %14137 = vst [vmem:[#allocation39_spill] sm:$0xff] %v11038_v26 }
 0x467   :  { %v11020_v50 = vpop.f32.mrf.mxu0 }
 0x469   :  { %v11032_v27 = vpop.f32.mrf.mxu2 }
 0x46a   :  { %14134 = vst [vmem:[#allocation51_spill] sm:$0xff] %v11032_v27  ;;  %v11048_v27 = vadd.f32 %v3146_v32, %v3106_v17 }
 0x46d   :  { %v3351_v2 = vpop.f32.mrf.mxu1 }
 0x46f   :  { %v11028_v12 = vpop.f32.mrf.mxu0 }
 0x471   :  { %v11042_v57 = vpop.f32.mrf.mxu2 }
 0x472   :  { %14139 = vst [vmem:[#allocation111_spill] sm:$0xff] %v11042_v57  ;;  %v3272_v57 = vpop.f32.mrf.mxu3 }
 0x473   :  { %v3273_v18 = vadd.f32 %v3272_v57, %v3232_v40 }
 0x475   :  { %v3354_v7 = vpop.f32.mrf.mxu1 }
 0x477   :  { %v11034_v53 = vpop.f32.mrf.mxu0 }
 0x478   :  { %14135 = vst [vmem:[#allocation23_spill] sm:$0xff] %v11034_v53 }
 0x479   :  { %v3392_v26 = vpop.f32.mrf.mxu2 }
 0x47d   :  { %v3357_v5 = vpop.f32.mrf.mxu1 }
 0x47f   :  { %v11040_v60 = vpop.f32.mrf.mxu0 }
 0x480   :  { %14138 = vst [vmem:[#allocation13_spill] sm:$0xff] %v11040_v60 }
 0x481   :  { %v3395_v58 = vpop.f32.mrf.mxu2 }
 0x485   :  { %v3360_v17 = vpop.f32.mrf.mxu1 }
 0x487   :  { %v3310_v51 = vpop.f32.mrf.mxu0 }
 0x488   :  { %v3311_v53 = vadd.f32 %v3310_v51, %v3270_v61 }
 0x48a   :  { %v3352_v3 = vadd.f32 %v3351_v2, %v3311_v53  ;;  %v2992_v53 = vadd.f32 %v10956_v41, %v10927_v39  ;;  %v3241_v41 = vadd.f32 %v11016_v48, %v11014_v63 }
 0x48c   :  { %v11050_v60 = vadd.f32 %v3392_v26, %v3352_v3  ;;  %v2986_v3 = vadd.f32 %v10931_v34, %v10904_v16  ;;  %v3235_v34 = vadd.f32 %v11000_v1, %v10998_v21  ;;  %v3071_v21 = vadd.f32 %v10938_v62, %v3030_v6  ;;  %v3398_v1 = vpop.f32.mrf.mxu2 }
 0x48d   :  { %v3033_v26 = vadd.f32 %v10934_v38, %v2992_v53 }
 0x48e   :  { %14140 = vst [vmem:[#allocation109_spill] sm:$0xff] %v11050_v60  ;;  %v11054_v44 = vpack.i.bf16 %v11050_v60, %v11048_v27  ;;  %v3027_v13 = vadd.f32 %v10911_v4, %v2986_v3  ;;  %v2995_v3 = vadd.f32 %v10968_v49, %v10941_v8  ;;  %v3244_v49 = vadd.f32 %v11024_v29, %v11022_v55 }
 0x48f   :  { %v3313_v24 = vpop.f32.mrf.mxu0  ;;  %v3074_v0 = vadd.f32 %v10950_v28, %v3033_v26  ;;  %v2998_v55 = vadd.f32 %v10981_v52, %v10953_v59 }
 0x490   :  { %6282 = vrot.lane.b32.xlu1 %v11054_v44, %s7136_s7  ;;  %6277 = vrot.lane.b32.xlu2 %v11054_v44, %s7135_s24  ;;  %v3314_v42 = vadd.f32 %v3313_v24, %v3273_v18  ;;  %v3068_v45 = vadd.f32 %v10929_v25, %v3027_v13  ;;  %v3275_v25 = vpop.f32.mrf.mxu3  ;;  %v3036_v13 = vadd.f32 %v10948_v9, %v2995_v3 }
 0x491   :  { %6272 = vrot.lane.b32.xlu0 %v11054_v44, %s7134_s23  ;;  %v3276_v33 = vadd.f32 %v3275_v25, %v3235_v34  ;;  %v3115_v24 = vadd.f32 %v11002_v15, %v3074_v0  ;;  %v14159_v0 = vld [vmem:[#allocation15_spill] sm:$0xff] }
 0x492   :  { %v3355_v51 = vadd.f32 %v3354_v7, %v3314_v42  ;;  %v3109_v22 = vadd.f32 %v10991_v46, %v3068_v45  ;;  %v3363_v7 = vpop.f32.mrf.mxu1  ;;  %v3077_v63 = vadd.f32 %v10960_v23, %v3036_v13  ;;  %v14163_v13 = vld [vmem:[#allocation27_spill] sm:$0xff] }
 0x493   :  { %v11143_v39 = vadd.f32 %v11012_v19, %v3115_v24 }
 0x494   :  { %v11073_v2 = vadd.f32 %v3395_v58, %v3355_v51  ;;  %v11075_v16 = vadd.f32 %v3149_v47, %v3109_v22  ;;  %v3112_v47 = vadd.f32 %v10996_v37, %v3071_v21  ;;  %v3401_v56 = vpop.f32.mrf.mxu2  ;;  %v3118_v45 = vadd.f32 %v11010_v36, %v3077_v63 }
 0x496   :  { %14141 = vst [vmem:[#allocation54_spill] sm:$0xff] %v11073_v2  ;;  %v11079_v4 = vpack.i.bf16 %v11073_v2, %v11075_v16  ;;  %v11109_v43 = vadd.f32 %v11006_v14, %v3112_v47  ;;  %v11185_v9 = vadd.f32 %v11020_v50, %v3118_v45 }
 0x497   :  { %v3316_v20 = vpop.f32.mrf.mxu0 }
 0x498   :  { %6292 = vrot.lane.b32.xlu1 %v11054_v44, %s7140_s2  ;;  %6307 = vrot.lane.b32.xlu2 %v11054_v44, %s7142_s12  ;;  %v3317_v46 = vadd.f32 %v3316_v20, %v3276_v33  ;;  %v3278_v62 = vpop.f32.mrf.mxu3  ;;  %v3039_v20 = vadd.f32 %v10963_v31, %v2998_v55 }
 0x499   :  { %6287 = vrot.lane.b32.xlu0 %v11054_v44, %s7137_s8  ;;  %v3279_v14 = vadd.f32 %v3278_v62, %v3238_v35  ;;  %v14154_v62 = vld [vmem:[#allocation107_spill] sm:$0xff] }
 0x49a   :  { %v3358_v32 = vadd.f32 %v3357_v5, %v3317_v46  ;;  %v3366_v29 = vpop.f32.mrf.mxu1  ;;  %v3080_v46 = vadd.f32 %v10970_v11, %v3039_v20  ;;  %v14155_v35 = vld [vmem:[#allocation51_spill] sm:$0xff] }
 0x49c   :  { %v11106_v61 = vadd.f32 %v3398_v1, %v3358_v32  ;;  %v3404_v48 = vpop.f32.mrf.mxu2  ;;  %v3121_v5 = vadd.f32 %v11018_v10, %v3080_v46 }
 0x49e   :  { %14142 = vst [vmem:[#allocation113_spill] sm:$0xff] %v11106_v61  ;;  %v11113_v54 = vpack.i.bf16 %v11106_v61, %v11109_v43  ;;  %v11217_v31 = vadd.f32 %v11028_v12, %v3121_v5 }
 0x49f   :  { %v3319_v37 = vpop.f32.mrf.mxu0 }
 0x4a0   :  { %6297 = vrot.lane.b32.xlu1 %v11054_v44, %s7138_s9  ;;  %6322 = vrot.lane.b32.xlu2 %v11079_v4, %s7136_s7  ;;  %v3320_v40 = vadd.f32 %v3319_v37, %v3279_v14  ;;  %v3281_v28 = vpop.f32.mrf.mxu3  ;;  %v3247_v37 = vadd.f32 %v14155_v35, %v14154_v62  ;;  %v14176_v35 = vld [vmem:[#allocation39_spill] sm:$0xff] }
 0x4a1   :  { %6317 = vrot.lane.b32.xlu0 %v11079_v4, %s7135_s24  ;;  %v3282_v19 = vadd.f32 %v3281_v28, %v3241_v41  ;;  %v14161_v41 = vld [vmem:[#allocation41_spill] sm:$0xff] }
 0x4a2   :  { %v3361_v57 = vadd.f32 %v3360_v17, %v3320_v40  ;;  %v3369_v28 = vpop.f32.mrf.mxu1 }
 0x4a4   :  { %v11140_v18 = vadd.f32 %v3401_v56, %v3361_v57  ;;  %v3407_v30 = vpop.f32.mrf.mxu2  ;;  %v14160_v56 = vld [vmem:[#allocation37_spill] sm:$0xff] }
 0x4a5   :  { %v3001_v24 = vadd.f32 %v14160_v56, %v14159_v0 }
 0x4a6   :  { %14143 = vst [vmem:[#allocation112_spill] sm:$0xff] %v11140_v18  ;;  %v11147_v38 = vpack.i.bf16 %v11140_v18, %v11143_v39 }
 0x4a7   :  { %v3322_v15 = vpop.f32.mrf.mxu0 }
 0x4a8   :  { %6302 = vrot.lane.b32.xlu1 %v11054_v44, %s7139_s10  ;;  %6332 = vrot.lane.b32.xlu2 %v11079_v4, %s7140_s2  ;;  %v3323_v42 = vadd.f32 %v3322_v15, %v3282_v19  ;;  %v3284_v23 = vpop.f32.mrf.mxu3  ;;  %v3042_v15 = vadd.f32 %v14161_v41, %v3001_v24  ;;  %v14181_v41 = vld [vmem:[#allocation66_spill] sm:$0xff] }
 0x4a9   :  { %6342 = vrot.lane.b32.xlu0 %v11079_v4, %s7139_s10  ;;  %v3285_v34 = vadd.f32 %v3284_v23, %v3244_v49  ;;  %v14167_v49 = vld [vmem:[#allocation23_spill] sm:$0xff] }
 0x4aa   :  { %v3364_v51 = vadd.f32 %v3363_v7, %v3323_v42  ;;  %v14162_v42 = vld [vmem:[#allocation63_spill] sm:$0xff] }
 0x4ab   :  { %v3083_v3 = vadd.f32 %v14162_v42, %v3042_v15  ;;  %v14182_v15 = vld [vmem:[#allocation20_spill] sm:$0xff]  ;;  %v3372_v42 = vpop.f32.mrf.mxu1 }
 0x4ac   :  { %v11180_v58 = vadd.f32 %v3404_v48, %v3364_v51  ;;  %v3410_v7 = vpop.f32.mrf.mxu2 }
 0x4ad   :  { %v3124_v51 = vadd.f32 %v14163_v13, %v3083_v3  ;;  %v14183_v3 = vld [vmem:[#allocation102_spill] sm:$0xff] }
 0x4ae   :  { %14144 = vst [vmem:[#allocation42_spill] sm:$0xff] %v11180_v58  ;;  %v11191_v22 = vpack.i.bf16 %v11180_v58, %v11185_v9 }
 0x4af   :  { %v3325_v25 = vpop.f32.mrf.mxu0 }
 0x4b0   :  { %6312 = vrot.lane.b32.xlu1 %v11079_v4, %s7134_s23  ;;  %6337 = vrot.lane.b32.xlu2 %v11079_v4, %s7138_s9  ;;  %v3326_v36 = vadd.f32 %v3325_v25, %v3285_v34  ;;  %v3287_v47 = vpop.f32.mrf.mxu3  ;;  %v11281_v25 = vadd.f32 %v14167_v49, %v3124_v51  ;;  %v14184_v51 = vld [vmem:[#allocation114_spill] sm:$0xff] }
 0x4b1   :  { %6352 = vrot.lane.b32.xlu0 %v11079_v4, %s7144_s14  ;;  %v3288_v40 = vadd.f32 %v3287_v47, %v3247_v37  ;;  %v14177_v37 = vld [vmem:[#allocation111_spill] sm:$0xff] }
 0x4b2   :  { %v3367_v33 = vadd.f32 %v3366_v29, %v3326_v36 }
 0x4b4   :  { %v11212_v6 = vadd.f32 %v3407_v30, %v3367_v33 }
 0x4b6   :  { %14147 = vst [vmem:[#allocation58_spill] sm:$0xff] %v11212_v6  ;;  %v11221_v11 = vpack.i.bf16 %v11212_v6, %v11217_v31 }
 0x4b7   :  { %v3328_v14 = vpop.f32.mrf.mxu0 }
 0x4b8   :  { %6327 = vrot.lane.b32.xlu1 %v11079_v4, %s7137_s8  ;;  %6347 = vrot.lane.b32.xlu2 %v11079_v4, %s7142_s12  ;;  %v3329_v53 = vadd.f32 %v3328_v14, %v3288_v40  ;;  %v3290_v62 = vpop.f32.mrf.mxu3  ;;  %v3250_v14 = vadd.f32 %v14177_v37, %v14176_v35  ;;  %v14185_v35 = vld [vmem:[#allocation106_spill] sm:$0xff] }
 0x4b9   :  { %6367 = vrot.lane.b32.xlu0 %v11113_v54, %s7136_s7 }
 0x4ba   :  { %v3370_v19 = vadd.f32 %v3369_v28, %v3329_v53  ;;  %v3291_v53 = vadd.f32 %v3290_v62, %v3250_v14  ;;  %v3413_v62 = vpop.f32.mrf.mxu2 }
 0x4bc   :  { %v11272_v63 = vadd.f32 %v3410_v7, %v3370_v19  ;;  %v3004_v19 = vadd.f32 %v14182_v15, %v14181_v41  ;;  %v14189_v41 = vld [vmem:[#allocation13_spill] sm:$0xff] }
 0x4be   :  { %14164 = vst [vmem:[#allocation95_spill] sm:$0xff] %v11272_v63  ;;  %v11285_v34 = vpack.i.bf16 %v11272_v63, %v11281_v25  ;;  %v3045_v7 = vadd.f32 %v14183_v3, %v3004_v19 }
 0x4bf   :  { %v3331_v40 = vpop.f32.mrf.mxu0 }
 0x4c0   :  { %6362 = vrot.lane.b32.xlu1 %v11113_v54, %s7135_s24  ;;  %6357 = vrot.lane.b32.xlu2 %v11113_v54, %s7134_s23  ;;  %v3332_v0 = vadd.f32 %v3331_v40, %v3291_v53  ;;  %v3086_v49 = vadd.f32 %v14184_v51, %v3045_v7 }
 0x4c1   :  { %6377 = vrot.lane.b32.xlu0 %v11113_v54, %s7140_s2 }
 0x4c2   :  { %v3373_v13 = vadd.f32 %v3372_v42, %v3332_v0  ;;  %v3127_v37 = vadd.f32 %v14185_v35, %v3086_v49 }
 0x4c4   :  { %v11348_v14 = vadd.f32 %v3413_v62, %v3373_v13  ;;  %v11357_v15 = vadd.f32 %v14189_v41, %v3127_v37 }
 0x4c6   :  { %14186 = vst [vmem:[#allocation26_spill] sm:$0xff] %v11348_v14  ;;  %v11361_v19 = vpack.i.bf16 %v11348_v14, %v11357_v15 }
 0x4c8   :  { %6387 = vrot.lane.b32.xlu1 %v11113_v54, %s7139_s10  ;;  %6372 = vrot.lane.b32.xlu2 %v11113_v54, %s7137_s8 }
 0x4c9   :  { %6382 = vrot.lane.b32.xlu0 %v11113_v54, %s7138_s9 }
 0x4d0   :  { %6412 = vrot.lane.b32.xlu1 %v11147_v38, %s7136_s7  ;;  %6392 = vrot.lane.b32.xlu2 %v11113_v54, %s7142_s12 }
 0x4d1   :  { %6397 = vrot.lane.b32.xlu0 %v11113_v54, %s7144_s14 }
 0x4d8   :  { %6417 = vrot.lane.b32.xlu1 %v11147_v38, %s7140_s2  ;;  %6407 = vrot.lane.b32.xlu2 %v11147_v38, %s7135_s24 }
 0x4d9   :  { %6402 = vrot.lane.b32.xlu0 %v11147_v38, %s7134_s23 }
 0x4e0   :  { %6422 = vrot.lane.b32.xlu1 %v11147_v38, %s7138_s9  ;;  %6427 = vrot.lane.b32.xlu2 %v11147_v38, %s7139_s10 }
 0x4e1   :  { %6437 = vrot.lane.b32.xlu0 %v11147_v38, %s7142_s12 }
 0x4e8   :  { %6447 = vrot.lane.b32.xlu1 %v11147_v38, %s7146_s1  ;;  %6432 = vrot.lane.b32.xlu2 %v11147_v38, %s7137_s8 }
 0x4e9   :  { %6442 = vrot.lane.b32.xlu0 %v11147_v38, %s7144_s14 }
 0x4ea   :  { %v11182_v8 = vpop.permute.xlu2 %6277 }
 0x4eb   :  { %14145 = vst [vmem:[#allocation72_spill] sm:$0xff] %v11182_v8 }
 0x4f0   :  { %6452 = vrot.lane.b32.xlu1 %v11191_v22, %s7134_s23  ;;  %6462 = vrot.lane.b32.xlu2 %v11191_v22, %s7136_s7 }
 0x4f1   :  { %6457 = vrot.lane.b32.xlu0 %v11191_v22, %s7135_s24 }
 0x4f2   :  { %v11199_v50 = vpop.permute.xlu2 %6307 }
 0x4f3   :  { %14146 = vst [vmem:[#allocation36_spill] sm:$0xff] %v11199_v50 }
 0x4f8   :  { %6497 = vrot.lane.b32.xlu1 %v11191_v22, %s7146_s1  ;;  %6467 = vrot.lane.b32.xlu2 %v11191_v22, %s7140_s2 }
 0x4f9   :  { %6477 = vrot.lane.b32.xlu0 %v11191_v22, %s7139_s10 }
 0x4fa   :  { %v11214_v59 = vpop.permute.xlu2 %6322 }
 0x4fb   :  { %14148 = vst [vmem:[#allocation93_spill] sm:$0xff] %v11214_v59 }
 0x500   :  { %6507 = vrot.lane.b32.xlu1 %v11221_v11, %s7135_s24  ;;  %6472 = vrot.lane.b32.xlu2 %v11191_v22, %s7138_s9 }
 0x501   :  { %6482 = vrot.lane.b32.xlu0 %v11191_v22, %s7137_s8 }
 0x502   :  { %v11229_v52 = vpop.permute.xlu1 %6282  ;;  %v11231_v10 = vpop.permute.xlu2 %6332 }
 0x503   :  { %14149 = vst [vmem:[#allocation48_spill] sm:$0xff] %v11229_v52  ;;  %v11233_v32 = vpop.permute.xlu0 %6272 }
 0x504   :  { %14150 = vst [vmem:[#allocation82_spill] sm:$0xff] %v11231_v10 }
 0x508   :  { %6527 = vrot.lane.b32.xlu1 %v11221_v11, %s7139_s10  ;;  %6487 = vrot.lane.b32.xlu2 %v11191_v22, %s7142_s12 }
 0x509   :  { %6492 = vrot.lane.b32.xlu0 %v11191_v22, %s7144_s14 }
 0x50a   :  { %v11241_v12 = vpop.permute.xlu1 %6292  ;;  %v11243_v21 = vpop.permute.xlu2 %6337 }
 0x50b   :  { %14151 = vst [vmem:[#allocation90_spill] sm:$0xff] %v11241_v12  ;;  %v11245_v1 = vpop.permute.xlu0 %6287 }
 0x50c   :  { %14152 = vst [vmem:[#allocation87_spill] sm:$0xff] %v11243_v21 }
 0x50d   :  { %14153 = vst [vmem:[#allocation103_spill] sm:$0xff] %v11245_v1 }
 0x510   :  { %6532 = vrot.lane.b32.xlu1 %v11221_v11, %s7137_s8  ;;  %6502 = vrot.lane.b32.xlu2 %v11221_v11, %s7134_s23 }
 0x511   :  { %6512 = vrot.lane.b32.xlu0 %v11221_v11, %s7136_s7 }
 0x512   :  { %v11255_v17 = vpop.permute.xlu1 %6297  ;;  %v11257_v26 = vpop.permute.xlu2 %6347 }
 0x513   :  { %14156 = vst [vmem:[#allocation100_spill] sm:$0xff] %v11255_v17  ;;  %v11259_v57 = vpop.permute.xlu0 %6317 }
 0x514   :  { %14157 = vst [vmem:[#allocation104_spill] sm:$0xff] %v11257_v26 }
 0x515   :  { %14158 = vst [vmem:[#allocation94_spill] sm:$0xff] %v11259_v57 }
 0x518   :  { %6537 = vrot.lane.b32.xlu1 %v11221_v11, %s7142_s12  ;;  %6552 = vrot.lane.b32.xlu2 %v11221_v11, %s7141_s11 }
 0x519   :  { %6517 = vrot.lane.b32.xlu0 %v11221_v11, %s7140_s2 }
 0x51a   :  { %v11274_v48 = vpop.permute.xlu1 %6302  ;;  %v11276_v45 = vpop.permute.xlu2 %6357 }
 0x51b   :  { %14165 = vst [vmem:[#allocation101_spill] sm:$0xff] %v11274_v48  ;;  %v11278_v23 = vpop.permute.xlu0 %6342 }
 0x51c   :  { %14166 = vst [vmem:[#allocation33_spill] sm:$0xff] %v11278_v23 }
 0x520   :  { %6547 = vrot.lane.b32.xlu1 %v11221_v11, %s7146_s1  ;;  %6562 = vrot.lane.b32.xlu2 %v11285_v34, %s7135_s24 }
 0x521   :  { %6522 = vrot.lane.b32.xlu0 %v11221_v11, %s7138_s9 }
 0x522   :  { %v11293_v36 = vpop.permute.xlu1 %6312  ;;  %v11295_v55 = vpop.permute.xlu2 %6372 }
 0x523   :  { %14168 = vst [vmem:[#allocation47_spill] sm:$0xff] %v11295_v55  ;;  %v11297_v29 = vpop.permute.xlu0 %6352 }
 0x524   :  { %14169 = vst [vmem:[#allocation105_spill] sm:$0xff] %v11297_v29 }
 0x528   :  { %6567 = vrot.lane.b32.xlu1 %v11285_v34, %s7136_s7  ;;  %6582 = vrot.lane.b32.xlu2 %v11285_v34, %s7139_s10 }
 0x529   :  { %6542 = vrot.lane.b32.xlu0 %v11221_v11, %s7144_s14 }
 0x52a   :  { %v11305_v20 = vpop.permute.xlu1 %6327  ;;  %v11307_v33 = vpop.permute.xlu2 %6392 }
 0x52b   :  { %14170 = vst [vmem:[#allocation45_spill] sm:$0xff] %v11305_v20  ;;  %v11309_v46 = vpop.permute.xlu0 %6367 }
 0x52c   :  { %14171 = vst [vmem:[#allocation38_spill] sm:$0xff] %v11307_v33 }
 0x52d   :  { %14172 = vst [vmem:[#allocation32_spill] sm:$0xff] %v11309_v46 }
 0x530   :  { %6572 = vrot.lane.b32.xlu1 %v11285_v34, %s7140_s2  ;;  %6587 = vrot.lane.b32.xlu2 %v11285_v34, %s7137_s8 }
 0x531   :  { %6557 = vrot.lane.b32.xlu0 %v11285_v34, %s7134_s23 }
 0x532   :  { %v11317_v30 = vpop.permute.xlu1 %6362  ;;  %v11319_v5 = vpop.permute.xlu2 %6407 }
 0x533   :  { %14173 = vst [vmem:[#allocation24_spill] sm:$0xff] %v11317_v30  ;;  %v11321_v47 = vpop.permute.xlu0 %6377 }
 0x534   :  { %14174 = vst [vmem:[#allocation69_spill] sm:$0xff] %v11319_v5 }
 0x535   :  { %14175 = vst [vmem:[#allocation53_spill] sm:$0xff] %v11321_v47 }
 0x538   :  { %6577 = vrot.lane.b32.xlu1 %v11285_v34, %s7138_s9  ;;  %6607 = vrot.lane.b32.xlu2 %v11285_v34, %s7141_s11 }
 0x539   :  { %6592 = vrot.lane.b32.xlu0 %v11285_v34, %s7142_s12 }
 0x53a   :  { %v11331_v56 = vpop.permute.xlu1 %6387  ;;  %v11333_v24 = vpop.permute.xlu2 %6427 }
 0x53b   :  { %14178 = vst [vmem:[#allocation108_spill] sm:$0xff] %v11331_v56  ;;  %v11335_v28 = vpop.permute.xlu0 %6382 }
 0x53c   :  { %14179 = vst [vmem:[#allocation110_spill] sm:$0xff] %v11333_v24 }
 0x53d   :  { %14180 = vst [vmem:[#allocation46_spill] sm:$0xff] %v11335_v28 }
 0x540   :  { %6602 = vrot.lane.b32.xlu1 %v11285_v34, %s7146_s1  ;;  %6622 = vrot.lane.b32.xlu2 %v11191_v22, %s7141_s11 }
 0x541   :  { %6597 = vrot.lane.b32.xlu0 %v11285_v34, %s7144_s14 }
 0x542   :  { %v11350_v40 = vpop.permute.xlu1 %6412  ;;  %v11352_v53 = vpop.permute.xlu2 %6432 }
 0x543   :  { %14187 = vst [vmem:[#allocation44_spill] sm:$0xff] %v11352_v53  ;;  %v11354_v0 = vpop.permute.xlu0 %6397  ;;  %v6414_v23 = vunpack.i.l.bf16 %v11350_v40 }
 0x544   :  { %14188 = vst [vmem:[#allocation43_spill] sm:$0xff] %v11354_v0 }
 0x548   :  { %6632 = vrot.lane.b32.xlu2 %v11361_v19, %s7136_s7  ;;  %6612 = vrot.lane.b32.xlu1 %v11361_v19, %s7134_s23 }
 0x549   :  { %6627 = vrot.lane.b32.xlu0 %v11361_v19, %s7135_s24 }
 0x54a   :  { %v11369_v42 = vpop.permute.xlu1 %6417  ;;  %v11371_v3 = vpop.permute.xlu2 %6462 }
 0x54b   :  { %14190 = vst [vmem:[#allocation30_spill] sm:$0xff] %v11371_v3  ;;  %v11373_v7 = vpop.permute.xlu0 %6402 }
 0x550   :  { %6652 = vrot.lane.b32.xlu2 %v11361_v19, %s7138_s9  ;;  %6617 = vrot.lane.b32.xlu1 %v11113_v54, %s7146_s1 }
 0x551   :  { %6637 = vrot.lane.b32.xlu0 %v11361_v19, %s7140_s2 }
 0x552   :  { %v11381_v13 = vpop.permute.xlu1 %6422  ;;  %v11383_v51 = vpop.permute.xlu2 %6467 }
 0x553   :  { %14191 = vst [vmem:[#allocation81_spill] sm:$0xff] %v11381_v13  ;;  %v11385_v49 = vpop.permute.xlu0 %6437 }
 0x554   :  { %14192 = vst [vmem:[#allocation75_spill] sm:$0xff] %v11385_v49 }
 0x558   :  { %6672 = vrot.lane.b32.xlu2 %v11054_v44, %s7146_s1  ;;  %6647 = vrot.lane.b32.xlu1 %v11079_v4, %s7146_s1 }
 0x559   :  { %6642 = vrot.lane.b32.xlu0 %v11054_v44, %s7144_s14 }
 0x55a   :  { %v11393_v62 = vpop.permute.xlu1 %6447  ;;  %v11395_v35 = vpop.permute.xlu2 %6472 }
 0x55b   :  { %14193 = vst [vmem:[#allocation65_spill] sm:$0xff] %v11393_v62  ;;  %v11397_v37 = vpop.permute.xlu0 %6442 }
 0x55c   :  { %14194 = vst [vmem:[#allocation19_spill] sm:$0xff] %v11395_v35 }
 0x55d   :  { %14195 = vst [vmem:[#allocation21_spill] sm:$0xff] %v11397_v37 }
 0x560   :  { %6687 = vrot.lane.b32.xlu2 %v11285_v34, %s7143_s13  ;;  %6682 = vrot.lane.b32.xlu1 %v11113_v54, %s7141_s11 }
 0x561   :  { %6657 = vrot.lane.b32.xlu0 %v11361_v19, %s7139_s10 }
 0x562   :  { %v11405_v41 = vpop.permute.xlu1 %6452  ;;  %v11407_v60 = vpop.permute.xlu2 %6487 }
 0x563   :  { %14196 = vst [vmem:[#allocation50_spill] sm:$0xff] %v11407_v60  ;;  %v11409_v2 = vpop.permute.xlu0 %6457  ;;  %v6464_v60 = vunpack.i.l.bf16 %v11371_v3 }
 0x564   :  { %14197 = vst [vmem:[#allocation49_spill] sm:$0xff] %v11409_v2 }
 0x568   :  { %6697 = vrot.lane.b32.xlu2 %v11079_v4, %s7141_s11  ;;  %6692 = vrot.lane.b32.xlu1 %v11221_v11, %s7147_s16 }
 0x569   :  { %6662 = vrot.lane.b32.xlu0 %v11361_v19, %s7137_s8 }
 0x56a   :  { %v11417_v61 = vpop.permute.xlu1 %6497  ;;  %v11419_v18 = vpop.permute.xlu2 %6502 }
 0x56b   :  { %14198 = vst [vmem:[#allocation28_spill] sm:$0xff] %v11417_v61  ;;  %v11421_v58 = vpop.permute.xlu0 %6477 }
 0x56c   :  { %14199 = vst [vmem:[#allocation29_spill] sm:$0xff] %v11421_v58 }
 0x570   :  { %6712 = vrot.lane.b32.xlu2 %v11191_v22, %s7147_s16  ;;  %6707 = vrot.lane.b32.xlu1 %v11285_v34, %s7145_s15 }
 0x571   :  { %6667 = vrot.lane.b32.xlu0 %v11147_v38, %s7141_s11 }
 0x572   :  { %v11429_v6 = vpop.permute.xlu1 %6507  ;;  %v11431_v63 = vpop.permute.xlu2 %6552 }
 0x573   :  { %14200 = vst [vmem:[#allocation22_spill] sm:$0xff] %v11429_v6  ;;  %v11433_v14 = vpop.permute.xlu0 %6482 }
 0x574   :  { %14201 = vst [vmem:[#allocation70_spill] sm:$0xff] %v11431_v63 }
 0x575   :  { %14202 = vst [vmem:[#allocation34_spill] sm:$0xff] %v11433_v14  ;;  %v13359_v14 = vunpack.i.h.bf16 %v11371_v3 }
 0x578   :  { %6727 = vrot.lane.b32.xlu2 %v11221_v11, %s7145_s15  ;;  %6722 = vrot.lane.b32.xlu1 %v11191_v22, %s7143_s13 }
 0x579   :  { %6677 = vrot.lane.b32.xlu0 %v11285_v34, %s7147_s16 }
 0x57a   :  { %v11441_v62 = vpop.permute.xlu1 %6527  ;;  %v11443_v61 = vpop.permute.xlu2 %6562 }
 0x57b   :  { %14203 = vst [vmem:[#allocation77_spill] sm:$0xff] %v11441_v62  ;;  %v11445_v29 = vpop.permute.xlu0 %6492 }
 0x57c   :  { %14204 = vst [vmem:[#allocation79_spill] sm:$0xff] %v11443_v61 }
 0x57d   :  { %14205 = vst [vmem:[#allocation61_spill] sm:$0xff] %v11445_v29 }
 0x580   :  { %6742 = vrot.lane.b32.xlu2 %v11191_v22, %s7145_s15  ;;  %6737 = vrot.lane.b32.xlu1 %v11147_v38, %s7143_s13 }
 0x581   :  { %6702 = vrot.lane.b32.xlu0 %v11221_v11, %s7143_s13 }
 0x582   :  { %v11453_v0 = vpop.permute.xlu1 %6532  ;;  %v11455_v37 = vpop.permute.xlu2 %6582 }
 0x583   :  { %14206 = vst [vmem:[#allocation88_spill] sm:$0xff] %v11453_v0  ;;  %v11457_v34 = vpop.permute.xlu0 %6512 }
 0x584   :  { %14207 = vst [vmem:[#allocation57_spill] sm:$0xff] %v11455_v37  ;;  %v6514_v55 = vunpack.i.l.bf16 %v11457_v34 }
 0x585   :  { %14208 = vst [vmem:[#allocation14_spill] sm:$0xff] %v11457_v34 }
 0x588   :  { %6752 = vrot.lane.b32.xlu2 %v11361_v19, %s7142_s12  ;;  %6757 = vrot.lane.b32.xlu1 %v11361_v19, %s7144_s14 }
 0x589   :  { %6717 = vrot.lane.b32.xlu0 %v11054_v44, %s7141_s11 }
 0x58a   :  { %v11465_v22 = vpop.permute.xlu1 %6537  ;;  %v11467_v29 = vpop.permute.xlu2 %6587 }
 0x58b   :  { %14209 = vst [vmem:[#allocation76_spill] sm:$0xff] %v11465_v22  ;;  %v11469_v11 = vpop.permute.xlu0 %6517 }
 0x58c   :  { %14210 = vst [vmem:[#allocation16_spill] sm:$0xff] %v11467_v29 }
 0x590   :  { %6772 = vrot.lane.b32.xlu2 %v11147_v38, %s7145_s15  ;;  %6762 = vrot.lane.b32.xlu1 %v11361_v19, %s7146_s1 }
 0x591   :  { %6732 = vrot.lane.b32.xlu0 %v11147_v38, %s7147_s16 }
 0x592   :  { %v11477_v63 = vpop.permute.xlu1 %6547  ;;  %v11479_v50 = vpop.permute.xlu2 %6607 }
 0x593   :  { %14211 = vst [vmem:[#allocation68_spill] sm:$0xff] %v11477_v63  ;;  %v11481_v26 = vpop.permute.xlu0 %6522 }
 0x594   :  { %14212 = vst [vmem:[#allocation62_spill] sm:$0xff] %v11479_v50  ;;  %v13361_v3 = vunpack.i.h.bf16 %v11481_v26 }
 0x595   :  { %14213 = vst [vmem:[#allocation18_spill] sm:$0xff] %v11481_v26 }
 0x598   :  { %6782 = vrot.lane.b32.xlu2 %v11361_v19, %s7141_s11  ;;  %6767 = vrot.lane.b32.xlu1 %v11113_v54, %s7143_s13  ;;  %s5267_s11 = sshll.u32 %s13029_s6, 4  ;;  %s5268_s11 = int_to_ptr.hbm [resolvable:$true] %s5267_s11 }
 0x599   :  { %6747 = vrot.lane.b32.xlu0 %v11113_v54, %s7147_s16 }
 0x59a   :  { %v11489_v33 = vpop.permute.xlu1 %6567  ;;  %v11491_v49 = vpop.permute.xlu2 %6622 }
 0x59b   :  { %14214 = vst [vmem:[#allocation99_spill] sm:$0xff] %v11489_v33  ;;  %v11493_v38 = vpop.permute.xlu0 %6542  ;;  %v6569_v1 = vunpack.i.l.bf16 %v11489_v33  ;;  %v14219_v48 = vunpack.i.h.bf16 %v11489_v33  ;;  %v14226_v33 = vunpack.i.h.bf16 %v11350_v40 }
 0x59c   :  { %14215 = vst [vmem:[#allocation67_spill] sm:$0xff] %v11491_v49 }
 0x59d   :  { %14216 = vst [vmem:[#allocation56_spill] sm:$0xff] %v11493_v38  ;;  %v3582_v0 = vsel %vm14220_vm0, %v6569_v1, %v14219_v48  ;;  %v14228_v1 = vunpack.i.h.bf16 %v11309_v46 }
 0x5a0   :  { %6787 = vrot.lane.b32.xlu2 %v11361_v19, %s7147_s16  ;;  %6792 = vrot.lane.b32.xlu1 %v11361_v19, %s7143_s13 }
 0x5a1   :  { %6777 = vrot.lane.b32.xlu0 %v11079_v4, %s7147_s16 }
 0x5a2   :  { %v11501_v63 = vpop.permute.xlu1 %6572  ;;  %v11503_v50 = vpop.permute.xlu2 %6632 }
 0x5a3   :  { %14217 = vst [vmem:[#allocation59_spill] sm:$0xff] %v11503_v50  ;;  %v11507_v49 = vpop.permute.xlu0 %6557  ;;  %v13353_v38 = vunpack.i.h.bf16 %v11503_v50  ;;  %v6634_v22 = vunpack.i.l.bf16 %v11503_v50  ;;  %v3579_v50 = vsel %vm14227_vm2, %v6414_v23, %v14226_v33  ;;  %v13363_v23 = vunpack.i.h.bf16 %v11395_v35 }
 0x5a4   :  { %v6474_v33 = vunpack.i.l.bf16 %v11395_v35  ;;  %v6319_v35 = vunpack.i.l.bf16 %v11259_v57 }
 0x5a5   :  { %v3583_v53 = vsel %vm14218_vm15, %v6634_v22, %v13353_v38  ;;  %vm14229_vm15 = vmmov %vm14220_vm0 }
 0x5a6   :  { %4346 = vmatpush.msrb.mxu0 %v3583_v53  ;;  %v14221_v53 = vunpack.i.h.bf16 %v11457_v34  ;;  %v3580_v34 = vsel %vm14225_vm4, %v6464_v60, %v13359_v14  ;;  %v6524_v60 = vunpack.i.l.bf16 %v11481_v26  ;;  %v6284_v14 = vunpack.i.l.bf16 %v11229_v52 }
 0x5a7   :  { %vm14238_vm4 = vcmask 1031168   ;;  %v6274_v26 = vunpack.i.l.bf16 %v11233_v32 }
 0x5a8   :  { %6802 = vrot.lane.b32.xlu2 %v11113_v54, %s7145_s15  ;;  %4347 = vmatpush.msrb.mxu0 %v3582_v0  ;;  %v3581_v22 = vsel %vm14222_vm1, %v6514_v55, %v14221_v53  ;;  %v6369_v0 = vunpack.i.l.bf16 %v11309_v46  ;;  %vm14234_vm1 = vmmov %vm14220_vm0 }
 0x5a9   :  { %6807 = vrot.lane.b32.xlu0 %v11361_v19, %s7145_s15  ;;  %6797 = vrot.lane.b32.xlu1 %v11079_v4, %s7143_s13 }
 0x5aa   :  { %v11533_v48 = vpop.permute.xlu1 %6577  ;;  %v11535_v54 = vpop.permute.xlu2 %6652  ;;  %4348 = vmatpush.msrb.mxu0 %v3581_v22  ;;  %v6324_v22 = vunpack.i.l.bf16 %v11214_v59  ;;  %v3578_v55 = vsel %vm14229_vm15, %v6369_v0, %v14228_v1  ;;  %v13365_v0 = vunpack.i.h.bf16 %v11243_v21  ;;  %vm14242_vm15 = vmmov %vm14238_vm4 }
 0x5ab   :  { %14223 = vst [vmem:[#allocation91_spill] sm:$0xff] %v11533_v48  ;;  %v11538_v38 = vpop.permute.xlu0 %6592  ;;  %v13360_v19 = vunpack.i.h.bf16 %v11535_v54  ;;  %v6654_v20 = vunpack.i.l.bf16 %v11535_v54  ;;  %v6579_v53 = vunpack.i.l.bf16 %v11533_v48 }
 0x5ac   :  { %14224 = vst [vmem:[#allocation98_spill] sm:$0xff] %v11538_v38  ;;  %4349 = vmatpush.msrb.mxu0 %v3580_v34  ;;  %v13362_v34 = vunpack.i.h.bf16 %v11229_v52  ;;  %v6314_v52 = vunpack.i.l.bf16 %v11293_v36 }
 0x5ad   :  { %v3695_v38 = vsel %vm207_vm14, %v6654_v20, %v13360_v19  ;;  %v14230_v20 = vunpack.i.h.bf16 %v11533_v48  ;;  %v6424_v19 = vunpack.i.l.bf16 %v11381_v13 }
 0x5ae   :  { %4350 = vmatpush.msrb.mxu0 %v3579_v50  ;;  %4387 = vmatpush.msrb.mxu1 %v3695_v38  ;;  %v14231_v38 = vunpack.i.h.bf16 %v11214_v59 }
 0x5af   :  { %v3694_v50 = vsel %vm207_vm14, %v6579_v53, %v14230_v20  ;;  %v3693_v53 = vsel %vm207_vm14, %v6524_v60, %v13361_v3  ;;  %v6339_v60 = vunpack.i.l.bf16 %v11243_v21  ;;  %v6299_v3 = vunpack.i.l.bf16 %v11255_v17 }
 0x5b0   :  { %6822 = vrot.lane.b32.xlu2 %v11079_v4, %s7145_s15  ;;  %4351 = vmatpush.msrb.mxu0 %v3578_v55  ;;  %v3577_v1 = vsel %vm14220_vm0, %v6324_v22, %v14231_v38  ;;  %v3576_v22 = vsel %vm14234_vm1, %v6284_v14, %v13362_v34  ;;  %v6384_v38 = vunpack.i.l.bf16 %v11335_v28  ;;  %v14235_v14 = vunpack.i.h.bf16 %v11381_v13  ;;  %vm14246_vm1 = vmmov %vm14238_vm4 }
 0x5b1   :  { %4388 = vmatpush.msrb.mxu1 %v3694_v50  ;;  %6812 = vrot.lane.b32.xlu0 %v11054_v44, %s7147_s16  ;;  %v13364_v50 = vunpack.i.h.bf16 %v11335_v28  ;;  %v6364_v13 = vunpack.i.l.bf16 %v11317_v30 }
 0x5b2   :  { %6817 = vrot.lane.b32.xlu1 %v11054_v44, %s7143_s13  ;;  %v11578_v4 = vpop.permute.xlu1 %6602  ;;  %v11580_v55 = vpop.permute.xlu2 %6672  ;;  %4352 = vmatpush.msrb.mxu0 %v3577_v1  ;;  %v3692_v1 = vsel %vm207_vm14, %v6474_v33, %v13363_v23  ;;  %v3691_v34 = vsel %vm207_vm14, %v6424_v19, %v14235_v14 }
 0x5b3   :  { %14232 = vst [vmem:[#allocation25_spill] sm:$0xff] %v11580_v55  ;;  %v11585_v20 = vpop.permute.xlu0 %6597  ;;  %4389 = vmatpush.msrb.mxu1 %v3693_v53  ;;  %v13367_v53 = vunpack.i.h.bf16 %v11255_v17 }
 0x5b4   :  { %14233 = vst [vmem:[#allocation17_spill] sm:$0xff] %v11585_v20  ;;  %4353 = vmatpush.msrb.mxu0 %v3576_v22  ;;  %v3690_v22 = vsel %vm207_vm14, %v6384_v38, %v13364_v50  ;;  %v6559_v38 = vunpack.i.l.bf16 %v11507_v49  ;;  %v6509_v50 = vunpack.i.l.bf16 %v11429_v6 }
 0x5b5   :  { %4390 = vmatpush.msrb.mxu1 %v3692_v1  ;;  %v3689_v1 = vsel %vm207_vm14, %v6339_v60, %v13365_v0  ;;  %v3688_v19 = vsel %vm207_vm14, %v6299_v3, %v13367_v53  ;;  %v6564_v60 = vunpack.i.l.bf16 %v11443_v61  ;;  %v6504_v53 = vunpack.i.l.bf16 %v11419_v18 }
 0x5b6   :  { %vm14237_vm14 = vcmask 1039360   ;;  %v6454_v3 = vunpack.i.l.bf16 %v11405_v41 }
 0x5b7   :  { %4391 = vmatpush.msrb.mxu1 %v3691_v34  ;;  %vm14240_vm2 = vmmov %vm14237_vm14 }
 0x5b8   :  { %vm14244_vm0 = vmmov %vm14240_vm2 }
 0x5b9   :  { %4392 = vmatpush.msrb.mxu1 %v3690_v22  ;;  %6827 = vrot.lane.b32.xlu0 %v11054_v44, %s7145_s15 }
 0x5ba   :  { %v11607_v33 = vpop.permute.xlu2 %6687  ;;  %v11612_v23 = vpop.permute.xlu1 %6612 }
 0x5bb   :  { %4393 = vmatpush.msrb.mxu1 %v3689_v1  ;;  %v11619_v14 = vpop.permute.xlu0 %6627  ;;  %v13371_v44 = vunpack.i.h.bf16 %v11612_v23  ;;  %v6614_v22 = vunpack.i.l.bf16 %v11612_v23 }
 0x5bc   :  { %14236 = vst [vmem:[#allocation64_spill] sm:$0xff] %v11619_v14  ;;  %v13372_v0 = vunpack.i.h.bf16 %v11619_v14  ;;  %v6629_v17 = vunpack.i.l.bf16 %v11619_v14  ;;  %v6404_v14 = vunpack.i.l.bf16 %v11373_v7 }
 0x5bd   :  { %4394 = vmatpush.msrb.mxu1 %v3688_v19  ;;  %v3471_v1 = vsel %vm14237_vm14, %v6614_v22, %v13371_v44  ;;  %v6459_v19 = vunpack.i.l.bf16 %v11409_v2  ;;  %v14239_v22 = vunpack.i.h.bf16 %v11507_v49  ;;  %vm14248_vm14 = vmmov %vm14244_vm0 }
 0x5be   :  { %4305 = vmatpush.msrb.mxu3 %v3471_v1  ;;  %v3527_v28 = vsel %vm14238_vm4, %v6629_v17, %v13372_v0  ;;  %v14241_v1 = vunpack.i.h.bf16 %v11443_v61  ;;  %v14249_v61 = vunpack.i.h.bf16 %v11409_v2  ;;  %vm14250_vm4 = vmmov %vm14246_vm1  ;;  %v6279_v2 = vunpack.i.l.bf16 %v11182_v8 }
 0x5bf   :  { %4354 = vmatpush.msrb.mxu0 %v3527_v28  ;;  %v3470_v44 = vsel %vm14240_vm2, %v6559_v38, %v14239_v22  ;;  %v14243_v28 = vunpack.i.h.bf16 %v11419_v18  ;;  %v6359_v22 = vunpack.i.l.bf16 %v11276_v45  ;;  %vm14252_vm2 = vmmov %vm14244_vm0 }
 0x5c0   :  { %4306 = vmatpush.msrb.mxu3 %v3470_v44  ;;  %v3526_v17 = vsel %vm14242_vm15, %v6564_v60, %v14241_v1  ;;  %v6409_v44 = vunpack.i.l.bf16 %v11319_v5  ;;  %v14245_v60 = vunpack.i.h.bf16 %v11429_v6  ;;  %v3524_v6 = vsel %vm14250_vm4, %v6459_v19, %v14249_v61  ;;  %vm14254_vm15 = vmmov %vm14246_vm1 }
 0x5c1   :  { %4355 = vmatpush.msrb.mxu0 %v3526_v17  ;;  %v3469_v38 = vsel %vm14244_vm0, %v6504_v53, %v14243_v28  ;;  %v14247_v28 = vunpack.i.h.bf16 %v11405_v41  ;;  %v13381_v19 = vunpack.i.h.bf16 %v11469_v11  ;;  %vm14261_vm4 = vmmov %vm14246_vm1 }
 0x5c2   :  { %v11658_v21 = vpop.permute.xlu2 %6697  ;;  %v3525_v1 = vsel %vm14246_vm1, %v6509_v50, %v14245_v60  ;;  %v11663_v0 = vpop.permute.xlu1 %6617  ;;  %4307 = vmatpush.msrb.mxu3 %v3469_v38  ;;  %v6574_v60 = vunpack.i.l.bf16 %v11501_v63  ;;  %v14253_v50 = vunpack.i.h.bf16 %v11319_v5 }
 0x5c3   :  { %v11667_v53 = vpop.permute.xlu0 %6637  ;;  %4356 = vmatpush.msrb.mxu0 %v3525_v1  ;;  %v3468_v34 = vsel %vm14248_vm14, %v6454_v3, %v14247_v28  ;;  %v14251_v3 = vunpack.i.h.bf16 %v11373_v7  ;;  %v6519_v28 = vunpack.i.l.bf16 %v11469_v11  ;;  %vm14259_vm14 = vmmov %vm14244_vm0  ;;  %v6699_v46 = vunpack.i.l.bf16 %v11658_v21 }
 0x5c4   :  { %v13380_v38 = vunpack.i.h.bf16 %v11667_v53  ;;  %v6639_v17 = vunpack.i.l.bf16 %v11667_v53  ;;  %4308 = vmatpush.msrb.mxu3 %v3468_v34  ;;  %v3523_v34 = vsel %vm14254_vm15, %v6409_v44, %v14253_v50  ;;  %v6469_v44 = vunpack.i.l.bf16 %v11383_v51  ;;  %vm14265_vm15 = vmmov %vm14246_vm1 }
 0x5c5   :  { %4357 = vmatpush.msrb.mxu0 %v3524_v6  ;;  %v3467_v61 = vsel %vm14252_vm2, %v6404_v14, %v14251_v3  ;;  %v14255_v14 = vunpack.i.h.bf16 %v11276_v45  ;;  %v14256_v50 = vunpack.i.h.bf16 %v11317_v30  ;;  %vm14263_vm2 = vmmov %vm14244_vm0 }
 0x5c6   :  { %4309 = vmatpush.msrb.mxu3 %v3467_v61  ;;  %v3807_v1 = vsel %vm261_vm12, %v6639_v17, %v13380_v38  ;;  %v14257_v38 = vunpack.i.h.bf16 %v11501_v63 }
 0x5c7   :  { %4358 = vmatpush.msrb.mxu0 %v3523_v34  ;;  %4428 = vmatpush.msrb.mxu2 %v3807_v1  ;;  %v3466_v3 = vsel %vm14244_vm0, %v6359_v22, %v14255_v14  ;;  %v3522_v17 = vsel %vm14246_vm1, %v6364_v13, %v14256_v50  ;;  %v14258_v1 = vunpack.i.h.bf16 %v11293_v36  ;;  %v13388_v22 = vunpack.i.h.bf16 %v11369_v42 }
 0x5c8   :  { %4310 = vmatpush.msrb.mxu3 %v3466_v3  ;;  %v3806_v6 = vsel %vm261_vm12, %v6574_v60, %v14257_v38  ;;  %v6419_v14 = vunpack.i.l.bf16 %v11369_v42  ;;  %v14260_v3 = vunpack.i.h.bf16 %v11259_v57  ;;  %v3805_v60 = vsel %vm261_vm12, %v6519_v28, %v13381_v19 }
 0x5c9   :  { %4359 = vmatpush.msrb.mxu0 %v3522_v17  ;;  %4429 = vmatpush.msrb.mxu2 %v3806_v6  ;;  %v3465_v34 = vsel %vm14259_vm14, %v6314_v52, %v14258_v1  ;;  %v14262_v52 = vunpack.i.h.bf16 %v11233_v32  ;;  %v4217_v17 = vld [vmem:[#allocation7 + $0x8] sm:$0xff]  ;;  %v13387_v1 = vunpack.i.h.bf16 %v11321_v47  ;;  %v14275_v57 = vunpack.i.h.bf16 %v11467_v29 }
 0x5ca   :  { %v11712_v61 = vpop.permute.xlu2 %6712  ;;  %v3521_v13 = vsel %vm14261_vm4, %v6319_v35, %v14260_v3  ;;  %v11720_v38 = vpop.permute.xlu1 %6647  ;;  %4311 = vmatpush.msrb.mxu3 %v3465_v34  ;;  %v6379_v35 = vunpack.i.l.bf16 %v11321_v47  ;;  %v14264_v3 = vunpack.i.h.bf16 %v11182_v8  ;;  %v14266_v34 = vunpack.i.h.bf16 %v11383_v51 }
 0x5cb   :  { %v11722_v6 = vpop.permute.xlu0 %6642  ;;  %4360 = vmatpush.msrb.mxu0 %v3521_v13  ;;  %4430 = vmatpush.msrb.mxu2 %v3805_v60  ;;  %v3464_v50 = vsel %vm14263_vm2, %v6274_v26, %v14262_v52  ;;  %v13386_v13 = vunpack.i.h.bf16 %v11231_v10  ;;  %v6334_v26 = vunpack.i.l.bf16 %v11231_v10  ;;  %v3803_v60 = vsel %vm261_vm12, %v6419_v14, %v13388_v22 }
 0x5cc   :  { %4312 = vmatpush.msrb.mxu3 %v3464_v50  ;;  %v3520_v28 = vsel %vm14265_vm15, %v6279_v2, %v14264_v3  ;;  %v3804_v19 = vsel %vm261_vm12, %v6469_v44, %v14266_v34  ;;  %v13384_v52 = vunpack.i.h.bf16 %v11241_v12  ;;  %v6294_v2 = vunpack.i.l.bf16 %v11241_v12  ;;  %v14315_v12 = vld [vmem:[#allocation67_spill] sm:$0xff] }
 0x5cd   :  { %4361 = vmatpush.msrb.mxu0 %v3520_v28  ;;  %4431 = vmatpush.msrb.mxu2 %v3804_v19  ;;  %v3802_v19 = vsel %vm261_vm12, %v6379_v35, %v13387_v1  ;;  %v13382_v35 = vunpack.i.h.bf16 %v11455_v37  ;;  %v6584_v3 = vunpack.i.l.bf16 %v11455_v37  ;;  %v6624_v10 = vunpack.i.l.bf16 %v14315_v12 }
 0x5ce   :  { %4313 = vmatpush.msrb.mxu3 %v11357_v15  ;;  %4362 = vmatmul.f32.vlgmr.msrb.gmra.mxu0 %v4217_v17  ;;  %v3801_v15 = vsel %vm261_vm12, %v6334_v26, %v13386_v13  ;;  %v4225_v17 = vld [vmem:[#allocation7 + $0x48] sm:$0xff]  ;;  %v6529_v26 = vunpack.i.l.bf16 %v11441_v62 }
 0x5cf   :  { %4432 = vmatpush.msrb.mxu2 %v3803_v60  ;;  %v14271_v13 = vld [vmem:[#allocation33_spill] sm:$0xff] }
 0x5d0   :  { %4314 = vmatpush.msrb.mxu3 %v11281_v25  ;;  %v3800_v25 = vsel %vm261_vm12, %v6294_v2, %v13384_v52  ;;  %v13389_v2 = vunpack.i.h.bf16 %v11421_v58  ;;  %v6344_v22 = vunpack.i.l.bf16 %v14271_v13  ;;  %v14279_v8 = vunpack.i.h.bf16 %v14271_v13  ;;  %v4219_v13 = vld [vmem:[#allocation7 + $0x18] sm:$0xff] }
 0x5d1   :  { %4433 = vmatpush.msrb.mxu2 %v3802_v19  ;;  %v6479_v19 = vunpack.i.l.bf16 %v11421_v58 }
 0x5d2   :  { %v11747_v44 = vpop.permute.xlu2 %6727  ;;  %v11752_v14 = vpop.permute.xlu1 %6682  ;;  %4315 = vmatpush.msrb.mxu3 %v11217_v31  ;;  %v13385_v31 = vunpack.i.h.bf16 %v11441_v62  ;;  %v11942_v62 = vld [vmem:[#allocation7 + $0x148] sm:$0xff] }
 0x5d3   :  { %14267 = vst [vmem:[#allocation31_spill] sm:$0xff] %v11747_v44  ;;  %v11755_v50 = vpop.permute.xlu0 %6657  ;;  %4434 = vmatpush.msrb.mxu2 %v3801_v15  ;;  %v13394_v15 = vunpack.i.h.bf16 %v11333_v24 }
 0x5d4   :  { %14268 = vst [vmem:[#allocation97_spill] sm:$0xff] %v11752_v14  ;;  %v13383_v28 = vunpack.i.h.bf16 %v11755_v50  ;;  %v6659_v34 = vunpack.i.l.bf16 %v11755_v50  ;;  %4316 = vmatpush.msrb.mxu3 %v11185_v9  ;;  %v3750_v9 = vsel %vm234_vm13, %v6584_v3, %v13382_v35  ;;  %v6389_v3 = vunpack.i.l.bf16 %v11331_v56 }
 0x5d5   :  { %14269 = vst [vmem:[#allocation60_spill] sm:$0xff] %v11755_v50  ;;  %4435 = vmatpush.msrb.mxu2 %v3800_v25  ;;  %v3748_v35 = vsel %vm234_vm13, %v6479_v19, %v13389_v2 }
 0x5d6   :  { %4317 = vmatpush.msrb.mxu3 %v11143_v39  ;;  %v3751_v60 = vsel %vm234_vm13, %v6659_v34, %v13383_v28  ;;  %4365 = vmatmul.f32.gmra.mxu0 %v4225_v17  ;;  %v6429_v39 = vunpack.i.l.bf16 %v11333_v24  ;;  %v3749_v17 = vsel %vm234_vm13, %v6529_v26, %v13385_v31  ;;  %v4233_v28 = vld [vmem:[#allocation7 + $0x88] sm:$0xff]  ;;  %v6589_v26 = vunpack.i.l.bf16 %v11467_v29  ;;  %14317 = vst [vmem:[#allocation74_spill] sm:$0xff] %v11942_v62 }
 0x5d7   :  { %4436 = vmatpush.msrb.mxu2 %v3751_v60  ;;  %v14285_v24 = vld [vmem:[#allocation45_spill] sm:$0xff] }
 0x5d8   :  { %4318 = vmatpush.msrb.mxu3 %v11109_v43  ;;  %v4216_v43 = vld [vmem:[#allocation7] sm:$0xff]  ;;  %v3747_v52 = vsel %vm234_vm13, %v6429_v39, %v13394_v15  ;;  %v3638_v30 = vsel %vm180_vm3, %v6589_v26, %v14275_v57  ;;  %v3745_v57 = vsel %vm234_vm13, %v6344_v22, %v14279_v8  ;;  %v14283_v22 = vld [vmem:[#allocation98_spill] sm:$0xff] }
 0x5d9   :  { %4437 = vmatpush.msrb.mxu2 %v3750_v9 }
 0x5da   :  { %v11779_v25 = vpop.permute.xlu2 %6742  ;;  %v11784_v34 = vpop.permute.xlu1 %6692  ;;  %4319 = vmatpush.msrb.mxu3 %v11075_v16 }
 0x5db   :  { %v11789_v9 = vpop.permute.xlu0 %6662  ;;  %4438 = vmatpush.msrb.mxu2 %v3749_v17  ;;  %v14272_v17 = vld [vmem:[#allocation88_spill] sm:$0xff] }
 0x5dc   :  { %14270 = vst [vmem:[#allocation40_spill] sm:$0xff] %v11789_v9  ;;  %v13393_v31 = vunpack.i.h.bf16 %v11789_v9  ;;  %v6664_v16 = vunpack.i.l.bf16 %v11789_v9  ;;  %4320 = vmatpush.msrb.mxu3 %v11048_v27  ;;  %v6534_v19 = vunpack.i.l.bf16 %v14272_v17  ;;  %v14273_v27 = vld [vmem:[#allocation101_spill] sm:$0xff]  ;;  %v14287_v9 = vld [vmem:[#allocation76_spill] sm:$0xff] }
 0x5dd   :  { %4439 = vmatpush.msrb.mxu2 %v3748_v35  ;;  %4321 = vmatmul.f32.vlgmr.msrb.gmra.mxu3 %v4216_v43  ;;  %v6304_v1 = vunpack.i.l.bf16 %v14273_v27  ;;  %v14274_v35 = vld [vmem:[#allocation34_spill] sm:$0xff]  ;;  %v14281_v39 = vunpack.i.h.bf16 %v14273_v27  ;;  %v6329_v27 = vunpack.i.l.bf16 %v14285_v24 }
 0x5de   :  { %v3639_v2 = vsel %vm180_vm3, %v6664_v16, %v13393_v31  ;;  %4368 = vmatmul.f32.gmra.mxu0 %v4233_v28  ;;  %v6484_v60 = vunpack.i.l.bf16 %v14274_v35  ;;  %v14276_v16 = vunpack.i.h.bf16 %v11331_v56  ;;  %v14277_v28 = vld [vmem:[#allocation44_spill] sm:$0xff]  ;;  %v14280_v56 = vld [vmem:[#allocation47_spill] sm:$0xff] }
 0x5df   :  { %4395 = vmatpush.msrb.mxu1 %v3639_v2  ;;  %4440 = vmatpush.msrb.mxu2 %v3747_v52  ;;  %v6434_v15 = vunpack.i.l.bf16 %v14277_v28  ;;  %v14278_v52 = vunpack.i.h.bf16 %v14272_v17  ;;  %v6374_v8 = vunpack.i.l.bf16 %v14280_v56  ;;  %v6539_v17 = vunpack.i.l.bf16 %v14287_v9 }
 0x5e0   :  { %v3746_v31 = vsel %vm234_vm13, %v6389_v3, %v14276_v16  ;;  %v6594_v3 = vunpack.i.l.bf16 %v14283_v22  ;;  %v14291_v5 = vunpack.i.h.bf16 %v14280_v56 }
 0x5e1   :  { %4396 = vmatpush.msrb.mxu1 %v3638_v30  ;;  %4441 = vmatpush.msrb.mxu2 %v3746_v31  ;;  %v3637_v43 = vsel %vm180_vm3, %v6534_v19, %v14278_v52  ;;  %v3744_v19 = vsel %vm234_vm13, %v6304_v1, %v14281_v39  ;;  %v11839_v52 = vld [vmem:[#allocation7 + $0x40] sm:$0xff]  ;;  %v14284_v30 = vunpack.i.h.bf16 %v14274_v35  ;;  %v4241_v39 = vld [vmem:[#allocation7 + $0xc8] sm:$0xff]  ;;  %v14288_v35 = vunpack.i.h.bf16 %v14277_v28 }
 0x5e2   :  { %v11821_v2 = vpop.permute.xlu2 %6752  ;;  %v11829_v26 = vpop.permute.xlu1 %6707  ;;  %14282 = vst [vmem:[#allocation85_spill] sm:$0xff] %v11839_v52  ;;  %v3634_v58 = vsel %vm180_vm3, %v6374_v8, %v14291_v5 }
 0x5e3   :  { %v6754_v31 = vunpack.i.l.bf16 %v11821_v2  ;;  %v11834_v16 = vpop.permute.xlu0 %6667  ;;  %4397 = vmatpush.msrb.mxu1 %v3637_v43  ;;  %4442 = vmatpush.msrb.mxu2 %v3745_v57  ;;  %v3636_v29 = vsel %vm180_vm3, %v6484_v60, %v14284_v30  ;;  %v14286_v57 = vunpack.i.h.bf16 %v11821_v2  ;;  %v3635_v60 = vsel %vm180_vm3, %v6434_v15, %v14288_v35 }
 0x5e4   :  { %v13407_v15 = vmov 1.0  }
 0x5e5   :  { %4398 = vmatpush.msrb.mxu1 %v3636_v29  ;;  %4443 = vmatpush.msrb.mxu2 %v3744_v19  ;;  %v3919_v1 = vsel %vm315_vm10, %v6754_v31, %v14286_v57  ;;  %v14289_v29 = vld [vmem:[#allocation103_spill] sm:$0xff]  ;;  %v14290_v31 = vld [vmem:[#allocation50_spill] sm:$0xff]  ;;  %v14294_v57 = vunpack.i.h.bf16 %v14285_v24 }
 0x5e6   :  { %4324 = vmatmul.f32.gmra.mxu3 %v11839_v52  ;;  %4444 = vmatmul.f32.vlgmr.msrb.gmra.mxu2 %v4219_v13  ;;  %v6289_v19 = vunpack.i.l.bf16 %v14289_v29  ;;  %v6489_v43 = vunpack.i.l.bf16 %v14290_v31  ;;  %v14292_v52 = vunpack.i.h.bf16 %v14283_v22  ;;  %v14293_v13 = vld [vmem:[#allocation75_spill] sm:$0xff]  ;;  %v14300_v24 = vunpack.i.h.bf16 %v14290_v31 }
 0x5e7   :  { %4399 = vmatpush.msrb.mxu1 %v3635_v60  ;;  %4469 = vmatpush.msra.mxu3 %v3919_v1  ;;  %v6439_v1 = vunpack.i.l.bf16 %v14293_v13  ;;  %v3633_v5 = vsel %vm180_vm3, %v6329_v27, %v14294_v57  ;;  %v14299_v27 = vunpack.i.h.bf16 %v14289_v29  ;;  %v14304_v29 = vunpack.i.h.bf16 %v14293_v13 }
 0x5e8   :  { %v3918_v28 = vsel %vm315_vm10, %v6594_v3, %v14292_v52  ;;  %4599 = vmatpush.msra.mxu2 %v13407_v15  ;;  %4371 = vmatmul.f32.gmra.mxu0 %v4241_v39  ;;  %v14295_v3 = vunpack.i.h.bf16 %v14287_v9  ;;  %v14298_v39 = vld [vmem:[#allocation38_spill] sm:$0xff] }
 0x5e9   :  { %4400 = vmatpush.msrb.mxu1 %v3634_v58  ;;  %4470 = vmatpush.msra.mxu3 %v3918_v28  ;;  %v11883_v58 = vld [vmem:[#allocation7 + $0x80] sm:$0xff]  ;;  %v11885_v28 = vld [vmem:[#allocation7 + $0x10] sm:$0xff]  ;;  %v6394_v30 = vunpack.i.l.bf16 %v14298_v39  ;;  %v3632_v57 = vsel %vm180_vm3, %v6289_v19, %v14299_v27  ;;  %v3915_v19 = vsel %vm315_vm10, %v6439_v1, %v14304_v29  ;;  %vm4280_vm3 = vcmask 588800  }
 0x5ea   :  { %v11871_v60 = vpop.permute.xlu2 %6772  ;;  %v11876_v8 = vpop.permute.xlu1 %6722  ;;  %v3917_v52 = vsel %vm315_vm10, %v6539_v17, %v14295_v3  ;;  %14296 = vst [vmem:[#allocation92_spill] sm:$0xff] %v11883_v58  ;;  %v3916_v17 = vsel %vm315_vm10, %v6489_v43, %v14300_v24  ;;  %v11895_v3 = vld [vmem:[#allocation7 + $0x58] sm:$0xff]  ;;  %v14305_v24 = vld [vmem:[#allocation36_spill] sm:$0xff] }
 0x5eb   :  { %v11881_v15 = vpop.permute.xlu0 %6677  ;;  %4401 = vmatpush.msrb.mxu1 %v3633_v5  ;;  %4471 = vmatpush.msra.mxu3 %v3917_v52  ;;  %14297 = vst [vmem:[#allocation55_spill] sm:$0xff] %v11885_v28  ;;  %v11897_v5 = vld [vmem:[#allocation7 + $0x108] sm:$0xff]  ;;  %v6309_v27 = vunpack.i.l.bf16 %v14305_v24  ;;  %v14313_v50 = vunpack.i.h.bf16 %v14305_v24 }
 0x5ec   :  { %14301 = vst [vmem:[#allocation35_spill] sm:$0xff] %v11895_v3  ;;  %v14303_v52 = vld [vmem:[#allocation104_spill] sm:$0xff] }
 0x5ed   :  { %4402 = vmatpush.msrb.mxu1 %v3632_v57  ;;  %4472 = vmatpush.msra.mxu3 %v3916_v17  ;;  %14302 = vst [vmem:[#allocation71_spill] sm:$0xff] %v11897_v5  ;;  %v6349_v35 = vunpack.i.l.bf16 %v14303_v52  ;;  %v14306_v57 = vunpack.i.h.bf16 %v14298_v39  ;;  %v14308_v29 = vunpack.i.h.bf16 %v14303_v52  ;;  %v6694_v52 = vunpack.i.l.bf16 %v11784_v34 }
 0x5ee   :  { %4327 = vmatmul.f32.gmra.mxu3 %v11883_v58  ;;  %4403 = vmatmul.f32.vlgmr.msrb.gmra.mxu1 %v11885_v28  ;;  %v11924_v28 = vld [vmem:[#allocation7 + $0xc0] sm:$0xff] }
 0x5ef   :  { %4473 = vmatpush.msra.mxu3 %v3915_v19  ;;  %4447 = vmatmul.f32.gmra.mxu2 %v11895_v3  ;;  %v3914_v17 = vsel %vm315_vm10, %v6394_v30, %v14306_v57  ;;  %v3913_v1 = vsel %vm315_vm10, %v6349_v35, %v14308_v29  ;;  %14309 = vst [vmem:[#allocation89_spill] sm:$0xff] %v11924_v28  ;;  %v11926_v30 = vld [vmem:[#allocation7 + $0x50] sm:$0xff]  ;;  %v11934_v29 = vld [vmem:[#allocation7 + $0x98] sm:$0xff] }
 0x5f0   :  { %4374 = vmatmul.f32.gmra.mxu0 %v11897_v5  ;;  %14310 = vst [vmem:[#allocation73_spill] sm:$0xff] %v11926_v30  ;;  %v14311_v57 = vld [vmem:[#allocation70_spill] sm:$0xff]  ;;  %v3912_v35 = vsel %vm315_vm10, %v6309_v27, %v14313_v50 }
 0x5f1   :  { %4474 = vmatpush.msra.mxu3 %v3914_v17  ;;  %v14312_v5 = vld [vmem:[#allocation62_spill] sm:$0xff]  ;;  %14314 = vst [vmem:[#allocation78_spill] sm:$0xff] %v11934_v29  ;;  %v6554_v19 = vunpack.i.l.bf16 %v14311_v57 }
 0x5f2   :  { %v11913_v56 = vpop.permute.xlu2 %6782  ;;  %v11915_v58 = vpop.permute.xlu1 %6737  ;;  %v6609_v37 = vunpack.i.l.bf16 %v14312_v5  ;;  %v14318_v50 = vunpack.i.h.bf16 %v14312_v5 }
 0x5f3   :  { %14307 = vst [vmem:[#allocation52_spill] sm:$0xff] %v11913_v56  ;;  %v6784_v43 = vunpack.i.l.bf16 %v11913_v56  ;;  %v11922_v3 = vpop.permute.xlu0 %6702  ;;  %4475 = vmatpush.msra.mxu3 %v3913_v1  ;;  %v14316_v59 = vunpack.i.h.bf16 %v11913_v56  ;;  %v14320_v56 = vld [vmem:[#allocation56_spill] sm:$0xff] }
 0x5f4   :  { %v3862_v27 = vsel %vm288_vm11, %v6609_v37, %v14318_v50  ;;  %v6669_v50 = vunpack.i.l.bf16 %v11834_v16  ;;  %v11987_v37 = vld [vmem:[#allocation7 + $0x90] sm:$0xff] }
 0x5f5   :  { %4476 = vmatpush.msra.mxu3 %v3912_v35  ;;  %v3863_v17 = vsel %vm288_vm11, %v6784_v43, %v14316_v59  ;;  %v14319_v35 = vld [vmem:[#allocation61_spill] sm:$0xff]  ;;  %v14321_v59 = vunpack.i.h.bf16 %v14311_v57  ;;  %v6679_v57 = vunpack.i.l.bf16 %v11881_v15  ;;  %14327 = vst [vmem:[#allocation84_spill] sm:$0xff] %v11987_v37 }
 0x5f6   :  { %4330 = vmatmul.f32.gmra.mxu3 %v11924_v28  ;;  %4406 = vmatmul.f32.gmra.mxu1 %v11926_v30  ;;  %v14322_v30 = vunpack.i.h.bf16 %v14315_v12  ;;  %v6599_v28 = vunpack.i.l.bf16 %v11585_v20 }
 0x5f7   :  { %4477 = vmatpush.msra.mxu3 %v3863_v17  ;;  %4450 = vmatmul.f32.gmra.mxu2 %v11934_v29  ;;  %v3861_v43 = vsel %vm288_vm11, %v6554_v19, %v14321_v59  ;;  %v11973_v29 = vld [vmem:[#allocation7 + $0x100] sm:$0xff] }
 0x5f8   :  { %4377 = vmatmul.f32.gmra.mxu0 %v11942_v62  ;;  %v3860_v17 = vsel %vm288_vm11, %v6624_v10, %v14322_v30  ;;  %14325 = vst [vmem:[#allocation86_spill] sm:$0xff] %v11973_v29  ;;  %v6684_v62 = vunpack.i.l.bf16 %v11752_v14 }
 0x5f9   :  { %4478 = vmatpush.msra.mxu3 %v3862_v27  ;;  %v6544_v27 = vunpack.i.l.bf16 %v14320_v56 }
 0x5fa   :  { %v11963_v1 = vpop.permute.xlu2 %6787  ;;  %v11965_v24 = vpop.permute.xlu1 %6757 }
 0x5fb   :  { %14323 = vst [vmem:[#allocation96_spill] sm:$0xff] %v11963_v1  ;;  %v6789_v19 = vunpack.i.l.bf16 %v11963_v1  ;;  %v11969_v59 = vpop.permute.xlu0 %6717  ;;  %v13434_v10 = vunpack.i.h.bf16 %v11965_v24  ;;  %v6759_v30 = vunpack.i.l.bf16 %v11965_v24  ;;  %4479 = vmatpush.msra.mxu3 %v3861_v43  ;;  %v14326_v43 = vunpack.i.h.bf16 %v11963_v1  ;;  %v12002_v1 = vld [vmem:[#allocation7 + $0xd8] sm:$0xff] }
 0x5fc   :  { %14324 = vst [vmem:[#allocation80_spill] sm:$0xff] %v11965_v24  ;;  %v6719_v24 = vunpack.i.l.bf16 %v11969_v59 }
 0x5fd   :  { %4480 = vmatpush.msra.mxu3 %v3860_v17  ;;  %v4031_v47 = vsel %vm369_vm8, %v6759_v30, %v13434_v10  ;;  %v4199_v48 = vsel %vm450_vm5, %v6789_v19, %v14326_v43  ;;  %v14328_v17 = vunpack.i.h.bf16 %v11834_v16  ;;  %v6494_v30 = vunpack.i.l.bf16 %v14319_v35  ;;  %14330 = vst [vmem:[#allocation12_spill] sm:$0xff] %v12002_v1 }
 0x5fe   :  { %4333 = vmatmul.f32.gmra.mxu3 %v11973_v29  ;;  %4510 = vmatpush.msra.mxu0 %v4031_v47  ;;  %v6714_v19 = vunpack.i.l.bf16 %v11712_v61  ;;  %v14329_v43 = vunpack.i.h.bf16 %v11585_v20  ;;  %v14331_v47 = vunpack.i.h.bf16 %v11752_v14  ;;  %v6604_v10 = vunpack.i.l.bf16 %v11578_v4 }
 0x5ff   :  { %v3859_v5 = vsel %vm288_vm11, %v6669_v50, %v14328_v17  ;;  %4600 = vmatpush.msra.mxu2 %v4199_v48  ;;  %4409 = vmatmul.f32.gmra.mxu1 %v11987_v37  ;;  %v14333_v17 = vld [vmem:[#allocation21_spill] sm:$0xff]  ;;  %v14335_v37 = vld [vmem:[#allocation43_spill] sm:$0xff] }
 0x600   :  { %4481 = vmatpush.msra.mxu3 %v3859_v5  ;;  %v4030_v12 = vsel %vm369_vm8, %v6599_v28, %v14329_v43  ;;  %v3858_v50 = vsel %vm288_vm11, %v6684_v62, %v14331_v47  ;;  %v14332_v5 = vunpack.i.h.bf16 %v11881_v15  ;;  %v6444_v28 = vunpack.i.l.bf16 %v14333_v17  ;;  %4453 = vmatmul.f32.gmra.mxu2 %v12002_v1 }
 0x601   :  { %4511 = vmatpush.msra.mxu0 %v4030_v12  ;;  %v14334_v43 = vunpack.i.h.bf16 %v14320_v56  ;;  %v14336_v12 = vunpack.i.h.bf16 %v11658_v21 }
 0x602   :  { %v4198_v48 = vsel %vm450_vm5, %v6679_v57, %v14332_v5  ;;  %4482 = vmatpush.msra.mxu3 %v3858_v50  ;;  %v12019_v14 = vpop.permute.xlu1 %6762  ;;  %v14337_v57 = vunpack.i.h.bf16 %v11784_v34  ;;  %v6399_v50 = vunpack.i.l.bf16 %v14335_v37 }
 0x603   :  { %4601 = vmatpush.msra.mxu2 %v4198_v48  ;;  %v4029_v29 = vsel %vm369_vm8, %v6544_v27, %v14334_v43  ;;  %v3857_v62 = vsel %vm288_vm11, %v6699_v46, %v14336_v12  ;;  %v12029_v5 = vpop.permute.xlu0 %6732  ;;  %v6764_v48 = vunpack.i.l.bf16 %v12019_v14  ;;  %v14338_v43 = vunpack.i.h.bf16 %v14319_v35 }
 0x604   :  { %4512 = vmatpush.msra.mxu0 %v4029_v29  ;;  %v4197_v47 = vsel %vm450_vm5, %v6694_v52, %v14337_v57  ;;  %4483 = vmatpush.msra.mxu3 %v3857_v62  ;;  %v12036_v29 = vld [vmem:[#allocation7 + $0x140] sm:$0xff]  ;;  %v6734_v12 = vunpack.i.l.bf16 %v12029_v5  ;;  %v14340_v57 = vunpack.i.h.bf16 %v11969_v59  ;;  %v14341_v27 = vunpack.i.h.bf16 %v11712_v61 }
 0x605   :  { %4602 = vmatpush.msra.mxu2 %v4197_v47  ;;  %v4028_v46 = vsel %vm369_vm8, %v6494_v30, %v14338_v43  ;;  %14339 = vst [vmem:[#allocation83_spill] sm:$0xff] %v12036_v29  ;;  %v14342_v30 = vunpack.i.h.bf16 %v14333_v17  ;;  %v14343_v52 = vunpack.i.h.bf16 %v12019_v14  ;;  %v14360_v47 = vunpack.i.h.bf16 %v11722_v6 }
 0x606   :  { %v3856_v20 = vsel %vm288_vm11, %v6719_v24, %v14340_v57  ;;  %4513 = vmatpush.msra.mxu0 %v4028_v46  ;;  %v4196_v62 = vsel %vm450_vm5, %v6714_v19, %v14341_v27  ;;  %v12054_v24 = vld [vmem:[#allocation7 + $0xd0] sm:$0xff]  ;;  %4336 = vmatmul.f32.gmra.mxu3 %v12036_v29  ;;  %v6644_v57 = vunpack.i.l.bf16 %v11722_v6 }
 0x607   :  { %4484 = vmatpush.msra.mxu3 %v3856_v20  ;;  %4603 = vmatpush.msra.mxu2 %v4196_v62  ;;  %v4027_v43 = vsel %vm369_vm8, %v6444_v28, %v14342_v30  ;;  %v4143_v1 = vsel %vm423_vm6, %v6764_v48, %v14343_v52  ;;  %14344 = vst [vmem:[#allocation107_spill] sm:$0xff] %v12054_v24  ;;  %v14345_v46 = vld [vmem:[#allocation105_spill] sm:$0xff]  ;;  %v14346_v20 = vunpack.i.h.bf16 %v12029_v5  ;;  %v14347_v62 = vld [vmem:[#allocation68_spill] sm:$0xff]  ;;  %v14348_v30 = vunpack.i.h.bf16 %v11612_v23  ;;  %v12066_v48 = vld [vmem:[#allocation7 + $0x118] sm:$0xff] }
 0x608   :  { %v6354_v19 = vunpack.i.l.bf16 %v14345_v46  ;;  %4514 = vmatpush.msra.mxu0 %v4027_v43  ;;  %v6549_v28 = vunpack.i.l.bf16 %v14347_v62  ;;  %4551 = vmatpush.msra.mxu1 %v4143_v1  ;;  %14349 = vst [vmem:[#allocation51_spill] sm:$0xff] %v12066_v48  ;;  %v14350_v43 = vunpack.i.h.bf16 %v14335_v37  ;;  %v14352_v23 = vunpack.i.h.bf16 %v11507_v49  ;;  %v12081_v52 = vld [vmem:[#allocation7 + $0x188] sm:$0xff] }
 0x609   :  { %v4195_v27 = vsel %vm450_vm5, %v6734_v12, %v14346_v20  ;;  %4633 = vmatpush.msrb.mxu3 %v14348_v30  ;;  %4412 = vmatmul.f32.gmra.mxu1 %v12054_v24  ;;  %v14351_v20 = vld [vmem:[#allocation28_spill] sm:$0xff]  ;;  %v14353_v1 = vunpack.i.h.bf16 %v11578_v4  ;;  %14354 = vst [vmem:[#allocation15_spill] sm:$0xff] %v12081_v52  ;;  %v14355_v24 = vunpack.i.h.bf16 %v14345_v46 }
 0x60a   :  { %4604 = vmatpush.msra.mxu2 %v4195_v27  ;;  %v4026_v12 = vsel %vm369_vm8, %v6399_v50, %v14350_v43  ;;  %v6499_v29 = vunpack.i.l.bf16 %v14351_v20  ;;  %v12083_v27 = vpop.permute.xlu1 %6767  ;;  %v14356_v43 = vld [vmem:[#allocation65_spill] sm:$0xff]  ;;  %4380 = vmatmul.f32.gmra.mxu0 %v12081_v52  ;;  %v14376_v52 = vld [vmem:[#allocation26_spill] sm:$0xff] }
 0x60b   :  { %4634 = vmatpush.msrb.mxu3 %v14352_v23  ;;  %4515 = vmatpush.msra.mxu0 %v4026_v12  ;;  %v4142_v30 = vsel %vm423_vm6, %v6604_v10, %v14353_v1  ;;  %v4025_v50 = vsel %vm369_vm8, %v6354_v19, %v14355_v24  ;;  %v6449_v49 = vunpack.i.l.bf16 %v14356_v43  ;;  %v14357_v12 = vunpack.i.h.bf16 %v11419_v18  ;;  %v12093_v23 = vpop.permute.xlu0 %6747 }
 0x60c   :  { %4552 = vmatpush.msra.mxu1 %v4142_v30  ;;  %4456 = vmatmul.f32.gmra.mxu2 %v12066_v48  ;;  %v14358_v10 = vunpack.i.h.bf16 %v14347_v62  ;;  %v12098_v30 = vld [vmem:[#allocation7 + $0x180] sm:$0xff]  ;;  %v13445_v24 = vunpack.i.h.bf16 %v12093_v23  ;;  %v6749_v19 = vunpack.i.l.bf16 %v12093_v23  ;;  %v4024_v48 = vsel %vm369_vm8, %v6644_v57, %v14360_v47  ;;  %v12117_v57 = vld [vmem:[#allocation7 + $0x110] sm:$0xff] }
 0x60d   :  { %4635 = vmatpush.msrb.mxu3 %v14357_v12  ;;  %4516 = vmatpush.msra.mxu0 %v4025_v50  ;;  %14359 = vst [vmem:[#allocation37_spill] sm:$0xff] %v12098_v30  ;;  %v6619_v50 = vunpack.i.l.bf16 %v11663_v0  ;;  %v14361_v12 = vunpack.i.h.bf16 %v11405_v41  ;;  %v6649_v18 = vunpack.i.l.bf16 %v11720_v38  ;;  %v14364_v41 = vunpack.i.h.bf16 %v11373_v7 }
 0x60e   :  { %v4141_v1 = vsel %vm423_vm6, %v6549_v28, %v14358_v10  ;;  %v14362_v28 = vunpack.i.h.bf16 %v14351_v20  ;;  %4339 = vmatmul.f32.gmra.mxu3 %v12098_v30  ;;  %v4194_v47 = vsel %vm450_vm5, %v6749_v19, %v13445_v24  ;;  %14363 = vst [vmem:[#allocation41_spill] sm:$0xff] %v12117_v57  ;;  %v6674_v19 = vunpack.i.l.bf16 %v11580_v55  ;;  %v12136_v24 = vld [vmem:[#allocation7 + $0x1c8] sm:$0xff] }
 0x60f   :  { %4553 = vmatpush.msra.mxu1 %v4141_v1  ;;  %4636 = vmatpush.msrb.mxu3 %v14361_v12  ;;  %v13446_v1 = vunpack.i.h.bf16 %v11720_v38  ;;  %v12126_v12 = vld [vmem:[#allocation7 + $0x158] sm:$0xff]  ;;  %v14368_v7 = vunpack.i.h.bf16 %v11663_v0  ;;  %14369 = vst [vmem:[#allocation27_spill] sm:$0xff] %v12136_v24  ;;  %v14390_v30 = vunpack.i.h.bf16 %v12083_v27 }
 0x610   :  { %4517 = vmatpush.msra.mxu0 %v4024_v48  ;;  %v4140_v10 = vsel %vm423_vm6, %v6499_v29, %v14362_v28  ;;  %v14365_v48 = vunpack.i.h.bf16 %v14356_v43  ;;  %4605 = vmatpush.msra.mxu2 %v4194_v47  ;;  %14366 = vst [vmem:[#allocation63_spill] sm:$0xff] %v12126_v12  ;;  %v13449_v28 = vunpack.i.h.bf16 %v11580_v55  ;;  %v14370_v47 = vunpack.i.h.bf16 %v11293_v36  ;;  %v14386_v55 = vld [vmem:[#allocation112_spill] sm:$0xff] }
 0x611   :  { %4554 = vmatpush.msra.mxu1 %v4140_v10  ;;  %4637 = vmatpush.msrb.mxu3 %v14364_v41  ;;  %v14367_v10 = vunpack.i.h.bf16 %v11276_v45  ;;  %v4138_v41 = vsel %vm423_vm6, %v6619_v50, %v14368_v7  ;;  %v4137_v50 = vsel %vm423_vm6, %v6649_v18, %v13446_v1 }
 0x612   :  { %v4139_v29 = vsel %vm423_vm6, %v6449_v49, %v14365_v48  ;;  %4415 = vmatmul.f32.gmra.mxu1 %v12117_v57  ;;  %v12138_v49 = vpop.permute.xlu1 %6792  ;;  %4383 = vmatmul.f32.gmra.mxu0 %v12136_v24  ;;  %v4136_v18 = vsel %vm423_vm6, %v6674_v19, %v13449_v28  ;;  %v12169_v24 = vld [vmem:[#allocation7 + $0x150] sm:$0xff]  ;;  %v12174_v19 = vld [vmem:[#allocation7 + $0x198] sm:$0xff]  ;;  %v12183_v28 = vpop.permute.xlu2 %6802  ;;  %v14384_v57 = vunpack.i.h.bf16 %v11876_v8 }
 0x613   :  { %4555 = vmatpush.msra.mxu1 %v4139_v29  ;;  %4638 = vmatpush.msrb.mxu3 %v14367_v10  ;;  %v12143_v48 = vpop.permute.xlu0 %6777  ;;  %v6794_v45 = vunpack.i.l.bf16 %v12138_v49  ;;  %v12150_v10 = vld [vmem:[#allocation7 + $0x1c0] sm:$0xff]  ;;  %v14372_v29 = vunpack.i.h.bf16 %v11233_v32  ;;  %v14373_v1 = vunpack.i.h.bf16 %v12138_v49  ;;  %14375 = vst [vmem:[#allocation39_spill] sm:$0xff] %v12169_v24 }
 0x614   :  { %4459 = vmatmul.f32.gmra.mxu2 %v12126_v12  ;;  %14371 = vst [vmem:[#allocation23_spill] sm:$0xff] %v12150_v10  ;;  %v14383_v12 = vld [vmem:[#allocation42_spill] sm:$0xff] }
 0x615   :  { %4556 = vmatpush.msra.mxu1 %v4138_v41  ;;  %4639 = vmatpush.msrb.mxu3 %v14370_v47  ;;  %v6779_v41 = vunpack.i.l.bf16 %v12143_v48  ;;  %v6689_v47 = vunpack.i.l.bf16 %v11607_v33  ;;  %v3975_v7 = vsel %vm342_vm9, %v6794_v45, %v14373_v1  ;;  %14377 = vst [vmem:[#allocation111_spill] sm:$0xff] %v12174_v19  ;;  %v6724_v45 = vunpack.i.l.bf16 %v11876_v8 }
 0x616   :  { %4342 = vmatmul.f32.gmra.mxu3 %v12150_v10  ;;  %4518 = vmatpush.msra.mxu0 %v3975_v7  ;;  %v6739_v7 = vunpack.i.l.bf16 %v11915_v58  ;;  %v6769_v10 = vunpack.i.l.bf16 %v12083_v27 }
 0x617   :  { %4557 = vmatpush.msra.mxu1 %v4137_v50  ;;  %4640 = vmatpush.msrb.mxu3 %v14372_v29  ;;  %v14374_v50 = vunpack.i.h.bf16 %v12143_v48  ;;  %v6704_v29 = vunpack.i.l.bf16 %v11922_v3 }
 0x619   :  { %4558 = vmatpush.msra.mxu1 %v4136_v18  ;;  %v4193_v36 = vsel %vm450_vm5, %v6779_v41, %v14374_v50  ;;  %4641 = vmatpush.msrb.mxu3 %v14376_v52  ;;  %v14378_v18 = vld [vmem:[#allocation95_spill] sm:$0xff]  ;;  %v14379_v41 = vunpack.i.h.bf16 %v11607_v33 }
 0x61a   :  { %4606 = vmatpush.msra.mxu2 %v4193_v36  ;;  %4418 = vmatmul.f32.gmra.mxu1 %v12169_v24  ;;  %v14380_v36 = vld [vmem:[#allocation58_spill] sm:$0xff] }
 0x61b   :  { %4642 = vmatpush.msrb.mxu3 %v14378_v18  ;;  %v3974_v50 = vsel %vm342_vm9, %v6689_v47, %v14379_v41  ;;  %v12189_v1 = vpop.permute.xlu0 %6807  ;;  %v12191_v32 = vpop.permute.xlu1 %6797  ;;  %v14381_v18 = vunpack.i.h.bf16 %v11922_v3  ;;  %v12196_v47 = vld [vmem:[#allocation7 + $0x20] sm:$0xff]  ;;  %v12213_v41 = vld [vmem:[#allocation7 + $0x190] sm:$0xff] }
 0x61c   :  { %4519 = vmatpush.msra.mxu0 %v3974_v50  ;;  %4462 = vmatmul.f32.gmra.mxu2 %v12174_v19  ;;  %14382 = vst [vmem:[#allocation66_spill] sm:$0xff] %v12196_v47  ;;  %v13457_v50 = vunpack.i.h.bf16 %v12189_v1  ;;  %v6809_v52 = vunpack.i.l.bf16 %v12189_v1  ;;  %v6709_v19 = vunpack.i.l.bf16 %v11829_v26 }
 0x61d   :  { %4643 = vmatpush.msrb.mxu3 %v14380_v36  ;;  %v3973_v24 = vsel %vm342_vm9, %v6704_v29, %v14381_v18  ;;  %v3972_v29 = vsel %vm342_vm9, %v6724_v45, %v14384_v57  ;;  %14385 = vst [vmem:[#allocation20_spill] sm:$0xff] %v12213_v41  ;;  %v6729_v36 = vunpack.i.l.bf16 %v11747_v44  ;;  %v14387_v57 = vunpack.i.h.bf16 %v11915_v58  ;;  %v14389_v18 = vld [vmem:[#allocation113_spill] sm:$0xff] }
 0x61e   :  { %4520 = vmatpush.msra.mxu0 %v3973_v24  ;;  %4485 = vmatmul.f32.vlgmr.msra.gmra.mxu3 %v12196_v47  ;;  %v4087_v24 = vsel %vm396_vm7, %v6809_v52, %v13457_v50  ;;  %v6744_v50 = vunpack.i.l.bf16 %v11779_v25  ;;  %v14391_v47 = vunpack.i.h.bf16 %v11829_v26 }
 0x61f   :  { %4644 = vmatpush.msrb.mxu3 %v14383_v12  ;;  %v6799_v12 = vunpack.i.l.bf16 %v12191_v32  ;;  %v3971_v45 = vsel %vm342_vm9, %v6739_v7, %v14387_v57  ;;  %4559 = vmatpush.msra.mxu1 %v4087_v24  ;;  %v6774_v57 = vunpack.i.l.bf16 %v11871_v60  ;;  %v14395_v24 = vld [vmem:[#allocation109_spill] sm:$0xff] }
 0x620   :  { %4521 = vmatpush.msra.mxu0 %v3972_v29  ;;  %v12222_v29 = vld [vmem:[#allocation7 + $0x1d8] sm:$0xff]  ;;  %v4086_v7 = vsel %vm396_vm7, %v6709_v19, %v14391_v47 }
 0x621   :  { %4645 = vmatpush.msrb.mxu3 %v14386_v55  ;;  %14388 = vst [vmem:[#allocation102_spill] sm:$0xff] %v12222_v29  ;;  %v3970_v55 = vsel %vm342_vm9, %v6769_v10, %v14390_v30  ;;  %4560 = vmatpush.msra.mxu1 %v4086_v7  ;;  %v14394_v30 = vunpack.i.h.bf16 %v11747_v44  ;;  %v12250_v7 = vld [vmem:[#allocation7 + $0x60] sm:$0xff]  ;;  %v12267_v44 = vld [vmem:[#allocation7 + $0x1d0] sm:$0xff] }
 0x622   :  { %4522 = vmatpush.msra.mxu0 %v3971_v45  ;;  %4421 = vmatmul.f32.gmra.mxu1 %v12213_v41  ;;  %v14392_v45 = vld [vmem:[#allocation54_spill] sm:$0xff] }
 0x623   :  { %4646 = vmatpush.msrb.mxu3 %v14389_v18  ;;  %v12237_v52 = vpop.permute.xlu0 %6812  ;;  %v14393_v18 = vunpack.i.h.bf16 %v12191_v32  ;;  %v4085_v10 = vsel %vm396_vm7, %v6729_v36, %v14394_v30  ;;  %v14396_v36 = vunpack.i.h.bf16 %v11779_v25 }
 0x624   :  { %4523 = vmatpush.msra.mxu0 %v3970_v55  ;;  %4465 = vmatmul.f32.gmra.mxu2 %v12222_v29  ;;  %v6814_v47 = vunpack.i.l.bf16 %v12237_v52  ;;  %v12248_v55 = vpop.permute.xlu1 %6817  ;;  %v6804_v29 = vunpack.i.l.bf16 %v12183_v28 }
 0x625   :  { %4647 = vmatpush.msrb.mxu3 %v14392_v45  ;;  %v3969_v41 = vsel %vm342_vm9, %v6799_v12, %v14393_v18  ;;  %4561 = vmatpush.msra.mxu1 %v4085_v10  ;;  %v12252_v45 = vpop.permute.xlu2 %6822  ;;  %v6819_v18 = vunpack.i.l.bf16 %v12248_v55  ;;  %v4084_v30 = vsel %vm396_vm7, %v6744_v50, %v14396_v36  ;;  %v14398_v10 = vunpack.i.h.bf16 %v12237_v52 }
 0x626   :  { %4524 = vmatpush.msra.mxu0 %v3969_v41  ;;  %v14397_v41 = vunpack.i.h.bf16 %v11821_v2  ;;  %4488 = vmatmul.f32.gmra.mxu3 %v12250_v7  ;;  %v14400_v36 = vunpack.i.h.bf16 %v11871_v60  ;;  %v13463_v2 = vunpack.i.h.bf16 %v12252_v45 }
 0x627   :  { %4648 = vmatpush.msrb.mxu3 %v14395_v24  ;;  %4562 = vmatpush.msra.mxu1 %v4084_v30  ;;  %v4192_v12 = vsel %vm450_vm5, %v6814_v47, %v14398_v10  ;;  %v14399_v24 = vunpack.i.h.bf16 %v12248_v55  ;;  %v12276_v30 = vld [vmem:[#allocation7 + $0x28] sm:$0xff]  ;;  %v14401_v47 = vunpack.i.h.bf16 %v14283_v22  ;;  %v14404_v10 = vld [vmem:[#allocation59_spill] sm:$0xff]  ;;  %v14406_v22 = vunpack.i.h.bf16 %v14287_v9 }
 0x628   :  { %v4083_v19 = vsel %vm396_vm7, %v6774_v57, %v14400_v36  ;;  %4607 = vmatpush.msra.mxu2 %v4192_v12  ;;  %v14403_v57 = vunpack.i.h.bf16 %v12183_v28  ;;  %v14407_v36 = vunpack.i.h.bf16 %v11501_v63  ;;  %v12310_v63 = vld [vmem:[#allocation7 + $0xa0] sm:$0xff] }
 0x629   :  { %4797 = vmatpush.msra.mxu3 %v14397_v41  ;;  %v3968_v50 = vsel %vm342_vm9, %v6819_v18, %v14399_v24  ;;  %v6824_v41 = vunpack.i.l.bf16 %v12252_v45  ;;  %4563 = vmatpush.msra.mxu1 %v4083_v19  ;;  %v14402_v18 = vunpack.i.h.bf16 %v11667_v53  ;;  %v14405_v24 = vunpack.i.h.bf16 %v14404_v10  ;;  %v12293_v19 = vld [vmem:[#allocation7 + $0x38] sm:$0xff] }
 0x62a   :  { %4525 = vmatpush.msra.mxu0 %v3968_v50  ;;  %4424 = vmatmul.f32.gmra.mxu1 %v12267_v44  ;;  %v4082_v12 = vsel %vm396_vm7, %v6804_v29, %v14403_v57  ;;  %v14411_v10 = vld [vmem:[#allocation14_spill] sm:$0xff] }
 0x62b   :  { %4798 = vmatpush.msra.mxu3 %v14401_v47  ;;  %4526 = vmatmul.f32.vlgmr.msra.gmra.mxu0 %v12276_v30  ;;  %v12291_v50 = vpop.permute.xlu0 %6827  ;;  %v4081_v29 = vsel %vm396_vm7, %v6824_v41, %v13463_v2  ;;  %v14413_v41 = vunpack.i.h.bf16 %v11469_v11  ;;  %v14419_v11 = vunpack.i.h.bf16 %v11350_v40 }
 0x62c   :  { %4756 = vmatpush.msrb.mxu2 %v14402_v18  ;;  %4674 = vmatpush.msrb.mxu0 %v14405_v24  ;;  %v13462_v53 = vunpack.i.h.bf16 %v12291_v50  ;;  %v6829_v47 = vunpack.i.l.bf16 %v12291_v50  ;;  %v14408_v18 = vld [vmem:[#allocation99_spill] sm:$0xff]  ;;  %v14412_v24 = vunpack.i.h.bf16 %v14411_v10 }
 0x62d   :  { %4564 = vmatpush.msra.mxu1 %v4082_v12  ;;  %4799 = vmatpush.msra.mxu3 %v14406_v22  ;;  %v14409_v57 = vunpack.i.h.bf16 %v14408_v18  ;;  %v14410_v12 = vunpack.i.h.bf16 %v14290_v31  ;;  %v14414_v22 = vunpack.i.h.bf16 %v14293_v13  ;;  %v12321_v31 = vld [vmem:[#allocation7 + $0x68] sm:$0xff]  ;;  %v14420_v13 = vunpack.i.h.bf16 %v11535_v54 }
 0x62e   :  { %4757 = vmatpush.msrb.mxu2 %v14407_v36  ;;  %v4080_v9 = vsel %vm396_vm7, %v6829_v47, %v13462_v53  ;;  %v12323_v36 = vld [vmem:[#allocation7 + $0x30] sm:$0xff]  ;;  %4491 = vmatmul.f32.gmra.mxu3 %v12310_v63  ;;  %v14417_v47 = vunpack.i.h.bf16 %v11383_v51  ;;  %v12342_v51 = vld [vmem:[#allocation7 + $0x78] sm:$0xff]  ;;  %vm5105_vm7 = vcmask 523264  }
 0x62f   :  { %4675 = vmatpush.msrb.mxu0 %v14409_v57  ;;  %4565 = vmatpush.msra.mxu1 %v4081_v29  ;;  %v14415_v29 = vld [vmem:[#allocation30_spill] sm:$0xff]  ;;  %v14418_v57 = vunpack.i.h.bf16 %v14298_v39  ;;  %v14424_v39 = vld [vmem:[#allocation32_spill] sm:$0xff]  ;;  %v14460_v53 = vld [vmem:[#allocation57_spill] sm:$0xff] }
 0x630   :  { %4800 = vmatpush.msra.mxu3 %v14410_v12  ;;  %5374 = vmatmul.msk.f32.vlgmr.msra.gmra.mxu2 %vm4280_vm3, %v12293_v19  ;;  %v14416_v18 = vunpack.i.h.bf16 %v14415_v29  ;;  %v14421_v12 = vunpack.i.h.bf16 %v11369_v42  ;;  %v14428_v29 = vld [vmem:[#allocation53_spill] sm:$0xff] }
 0x631   :  { %4676 = vmatpush.msrb.mxu0 %v14412_v24  ;;  %4758 = vmatpush.msrb.mxu2 %v14413_v41  ;;  %v14425_v24 = vunpack.i.h.bf16 %v14424_v39  ;;  %v14426_v41 = vld [vmem:[#allocation91_spill] sm:$0xff]  ;;  %v14429_v40 = vunpack.i.h.bf16 %v14428_v29  ;;  %v14432_v42 = vld [vmem:[#allocation93_spill] sm:$0xff] }
 0x632   :  { %4801 = vmatpush.msra.mxu3 %v14414_v22  ;;  %4566 = vmatpush.msra.mxu1 %v4080_v9  ;;  %v14422_v9 = vld [vmem:[#allocation104_spill] sm:$0xff]  ;;  %v14427_v22 = vunpack.i.h.bf16 %v14426_v41  ;;  %v12368_v29 = vld [vmem:[#allocation7 + $0x70] sm:$0xff] }
 0x633   :  { %4677 = vmatpush.msrb.mxu0 %v14416_v18  ;;  %4759 = vmatpush.msrb.mxu2 %v14417_v47  ;;  %v14423_v10 = vunpack.i.h.bf16 %v14422_v9  ;;  %v14430_v18 = vld [vmem:[#allocation36_spill] sm:$0xff]  ;;  %v14433_v47 = vunpack.i.h.bf16 %v14432_v42 }
 0x634   :  { %4802 = vmatpush.msra.mxu3 %v14418_v57  ;;  %4529 = vmatmul.f32.gmra.mxu0 %v12321_v31  ;;  %v14431_v54 = vunpack.i.h.bf16 %v14430_v18  ;;  %v12356_v57 = vld [vmem:[#allocation7 + $0xe0] sm:$0xff] }
 0x635   :  { %4567 = vmatmul.f32.vlgmr.msra.gmra.mxu1 %v12323_v36  ;;  %4678 = vmatpush.msrb.mxu0 %v14419_v11  ;;  %v14434_v11 = vld [vmem:[#allocation18_spill] sm:$0xff] }
 0x636   :  { %4715 = vmatpush.msrb.mxu1 %v14420_v13  ;;  %4760 = vmatpush.msrb.mxu2 %v14421_v12  ;;  %v14435_v13 = vunpack.i.h.bf16 %v14434_v11  ;;  %v14436_v12 = vld [vmem:[#allocation82_spill] sm:$0xff] }
 0x637   :  { %4803 = vmatpush.msra.mxu3 %v14423_v10  ;;  %4679 = vmatpush.msrb.mxu0 %v14425_v24  ;;  %v14437_v9 = vunpack.i.h.bf16 %v14436_v12  ;;  %v14438_v10 = vld [vmem:[#allocation52_spill] sm:$0xff] }
 0x638   :  { %4716 = vmatpush.msrb.mxu1 %v14427_v22  ;;  %4761 = vmatpush.msrb.mxu2 %v14429_v40  ;;  %v14439_v39 = vunpack.i.h.bf16 %v14438_v10  ;;  %v14440_v24 = vld [vmem:[#allocation48_spill] sm:$0xff]  ;;  %v14442_v40 = vld [vmem:[#allocation19_spill] sm:$0xff] }
 0x639   :  { %4804 = vmatpush.msra.mxu3 %v14431_v54  ;;  %5375 = vmatmul.msk.f32.gmra.mxu2 %vm4280_vm3, %v12342_v51  ;;  %v14441_v41 = vunpack.i.h.bf16 %v14440_v24  ;;  %v12366_v22 = vld [vmem:[#allocation7 + $0xa8] sm:$0xff]  ;;  %v14443_v18 = vunpack.i.h.bf16 %v14442_v40  ;;  %v14444_v54 = vld [vmem:[#allocation90_spill] sm:$0xff] }
 0x63a   :  { %4680 = vmatpush.msrb.mxu0 %v14433_v47  ;;  %4717 = vmatpush.msrb.mxu1 %v14435_v13  ;;  %v14445_v42 = vunpack.i.h.bf16 %v14444_v54  ;;  %v14446_v47 = vld [vmem:[#allocation62_spill] sm:$0xff]  ;;  %v14448_v13 = vld [vmem:[#allocation64_spill] sm:$0xff]  ;;  %v14456_v54 = vld [vmem:[#allocation79_spill] sm:$0xff] }
 0x63b   :  { %4762 = vmatpush.msrb.mxu2 %v14437_v9  ;;  %4805 = vmatpush.msra.mxu3 %v14439_v39  ;;  %v14447_v11 = vunpack.i.h.bf16 %v14446_v47  ;;  %v14449_v12 = vunpack.i.h.bf16 %v14448_v13  ;;  %v14450_v9 = vld [vmem:[#allocation81_spill] sm:$0xff]  ;;  %v14452_v39 = vld [vmem:[#allocation60_spill] sm:$0xff]  ;;  %v14458_v47 = vld [vmem:[#allocation46_spill] sm:$0xff]  ;;  %v14461_v13 = vunpack.i.h.bf16 %v14460_v53  ;;  %v14470_v53 = vunpack.i.h.bf16 %v11834_v16 }
 0x63c   :  { %4681 = vmatpush.msrb.mxu0 %v14441_v41  ;;  %4494 = vmatmul.f32.gmra.mxu3 %v12356_v57  ;;  %v14451_v10 = vunpack.i.h.bf16 %v14450_v9  ;;  %v14453_v24 = vunpack.i.h.bf16 %v14452_v39  ;;  %v14454_v41 = vld [vmem:[#allocation70_spill] sm:$0xff]  ;;  %v14480_v16 = vld [vmem:[#allocation69_spill] sm:$0xff] }
 0x63d   :  { %4718 = vmatpush.msrb.mxu1 %v14443_v18  ;;  %4763 = vmatpush.msrb.mxu2 %v14445_v42  ;;  %v14455_v40 = vunpack.i.h.bf16 %v14454_v41  ;;  %v12387_v18 = vld [vmem:[#allocation7 + $0xb8] sm:$0xff]  ;;  %v14457_v42 = vunpack.i.h.bf16 %v14456_v54  ;;  %v14468_v54 = vld [vmem:[#allocation77_spill] sm:$0xff] }
 0x63e   :  { %4806 = vmatpush.msra.mxu3 %v14447_v11  ;;  %4532 = vmatmul.f32.gmra.mxu0 %v12366_v22  ;;  %v14459_v11 = vunpack.i.h.bf16 %v14458_v47  ;;  %v14466_v41 = vld [vmem:[#allocation87_spill] sm:$0xff]  ;;  %v14471_v47 = vld [vmem:[#allocation49_spill] sm:$0xff] }
 0x63f   :  { %4570 = vmatmul.f32.gmra.mxu1 %v12368_v29  ;;  %4682 = vmatpush.msrb.mxu0 %v14449_v12  ;;  %v14462_v12 = vld [vmem:[#allocation67_spill] sm:$0xff] }
 0x640   :  { %4719 = vmatpush.msrb.mxu1 %v14451_v10  ;;  %4764 = vmatpush.msrb.mxu2 %v14453_v24  ;;  %v14463_v9 = vunpack.i.h.bf16 %v14462_v12  ;;  %v14464_v10 = vld [vmem:[#allocation22_spill] sm:$0xff]  ;;  %v12401_v24 = vld [vmem:[#allocation7 + $0x120] sm:$0xff] }
 0x641   :  { %4807 = vmatpush.msra.mxu3 %v14455_v40  ;;  %4683 = vmatpush.msrb.mxu0 %v14457_v42  ;;  %v14465_v39 = vunpack.i.h.bf16 %v14464_v10  ;;  %v14467_v40 = vunpack.i.h.bf16 %v14466_v41  ;;  %v14469_v42 = vunpack.i.h.bf16 %v14468_v54  ;;  %v12413_v12 = vld [vmem:[#allocation7 + $0xb0] sm:$0xff] }
 0x642   :  { %4720 = vmatpush.msrb.mxu1 %v14459_v11  ;;  %4765 = vmatpush.msrb.mxu2 %v14461_v13  ;;  %v14472_v11 = vunpack.i.h.bf16 %v14471_v47  ;;  %v12411_v13 = vld [vmem:[#allocation7 + $0xe8] sm:$0xff]  ;;  %14473 = vst [vmem:[#allocation114_spill] sm:$0xff] %v12413_v12 }
 0x643   :  { %4808 = vmatpush.msra.mxu3 %v14463_v9  ;;  %5376 = vmatmul.msk.f32.gmra.mxu2 %vm4280_vm3, %v12387_v18  ;;  %v14474_v9 = vld [vmem:[#allocation100_spill] sm:$0xff] }
 0x644   :  { %4684 = vmatpush.msrb.mxu0 %v14465_v39  ;;  %4721 = vmatpush.msrb.mxu1 %v14467_v40  ;;  %v14475_v10 = vunpack.i.h.bf16 %v14474_v9  ;;  %v14476_v39 = vld [vmem:[#allocation29_spill] sm:$0xff]  ;;  %v14486_v9 = vunpack.i.h.bf16 %v11658_v21  ;;  %v14494_v21 = vld [vmem:[#allocation94_spill] sm:$0xff] }
 0x645   :  { %4766 = vmatpush.msrb.mxu2 %v14469_v42  ;;  %4809 = vmatpush.msra.mxu3 %v14470_v53  ;;  %v14477_v41 = vunpack.i.h.bf16 %v14476_v39  ;;  %v14478_v40 = vld [vmem:[#allocation97_spill] sm:$0xff]  ;;  %v14481_v42 = vunpack.i.h.bf16 %v14480_v16  ;;  %v14482_v53 = vld [vmem:[#allocation40_spill] sm:$0xff] }
 0x646   :  { %4685 = vmatpush.msrb.mxu0 %v14472_v11  ;;  %4497 = vmatmul.f32.gmra.mxu3 %v12401_v24  ;;  %v14479_v54 = vunpack.i.h.bf16 %v14478_v40  ;;  %v14483_v47 = vunpack.i.h.bf16 %v14482_v53  ;;  %v14484_v11 = vld [vmem:[#allocation110_spill] sm:$0xff]  ;;  %v14487_v39 = vld [vmem:[#allocation24_spill] sm:$0xff] }
 0x647   :  { %4722 = vmatpush.msrb.mxu1 %v14475_v10  ;;  %4767 = vmatpush.msrb.mxu2 %v14477_v41  ;;  %v14485_v2 = vunpack.i.h.bf16 %v14484_v11  ;;  %v12432_v10 = vld [vmem:[#allocation7 + $0xf8] sm:$0xff]  ;;  %v14488_v41 = vunpack.i.h.bf16 %v14487_v39  ;;  %v14489_v40 = vld [vmem:[#allocation16_spill] sm:$0xff] }
 0x648   :  { %4810 = vmatpush.msra.mxu3 %v14479_v54  ;;  %4535 = vmatmul.f32.gmra.mxu0 %v12411_v13  ;;  %v14490_v54 = vunpack.i.h.bf16 %v14489_v40  ;;  %v12442_v53 = vld [vmem:[#allocation7 + $0x160] sm:$0xff]  ;;  %v12457_v40 = vld [vmem:[#allocation7 + $0xf0] sm:$0xff] }
 0x649   :  { %4573 = vmatmul.f32.gmra.mxu1 %v12413_v12  ;;  %4686 = vmatpush.msrb.mxu0 %v14481_v42  ;;  %v14491_v12 = vld [vmem:[#allocation108_spill] sm:$0xff]  ;;  %v14493_v42 = vunpack.i.h.bf16 %v11969_v59  ;;  %14502 = vst [vmem:[#allocation106_spill] sm:$0xff] %v12457_v40 }
 0x64a   :  { %4723 = vmatpush.msrb.mxu1 %v14483_v47  ;;  %4768 = vmatpush.msrb.mxu2 %v14485_v2  ;;  %v14492_v16 = vunpack.i.h.bf16 %v14491_v12  ;;  %v14495_v2 = vunpack.i.h.bf16 %v14494_v21  ;;  %v14496_v47 = vld [vmem:[#allocation88_spill] sm:$0xff] }
 0x64b   :  { %4811 = vmatpush.msra.mxu3 %v14486_v9  ;;  %4687 = vmatpush.msrb.mxu0 %v14488_v41  ;;  %v14497_v11 = vunpack.i.h.bf16 %v14496_v47  ;;  %v14498_v9 = vld [vmem:[#allocation33_spill] sm:$0xff]  ;;  %v14500_v12 = vld [vmem:[#allocation72_spill] sm:$0xff] }
 0x64c   :  { %4724 = vmatpush.msrb.mxu1 %v14490_v54  ;;  %4769 = vmatpush.msrb.mxu2 %v14492_v16  ;;  %v14499_v39 = vunpack.i.h.bf16 %v14498_v9  ;;  %v14501_v41 = vunpack.i.h.bf16 %v14500_v12  ;;  %v12455_v59 = vld [vmem:[#allocation7 + $0x128] sm:$0xff]  ;;  %v14503_v54 = vld [vmem:[#allocation34_spill] sm:$0xff] }
 0x64d   :  { %4812 = vmatpush.msra.mxu3 %v14493_v42  ;;  %5377 = vmatmul.msk.f32.gmra.mxu2 %vm4280_vm3, %v12432_v10  ;;  %v14504_v16 = vunpack.i.h.bf16 %v14503_v54  ;;  %v14505_v42 = vld [vmem:[#allocation101_spill] sm:$0xff]  ;;  %v14510_v9 = vld [vmem:[#allocation44_spill] sm:$0xff] }
 0x64e   :  { %4688 = vmatpush.msrb.mxu0 %v14495_v2  ;;  %4725 = vmatpush.msrb.mxu1 %v14497_v11  ;;  %v14506_v21 = vunpack.i.h.bf16 %v14505_v42  ;;  %v14507_v2 = vld [vmem:[#allocation80_spill] sm:$0xff]  ;;  %v14509_v11 = vmov 1.0   ;;  %v14512_v12 = vld [vmem:[#allocation17_spill] sm:$0xff]  ;;  %v12474_v42 = vld [vmem:[#allocation7 + $0x138] sm:$0xff] }
 0x64f   :  { %4770 = vmatpush.msrb.mxu2 %v14499_v39  ;;  %4500 = vmatmul.f32.gmra.mxu3 %v12442_v53  ;;  %v14508_v47 = vunpack.i.h.bf16 %v14507_v2  ;;  %v14511_v39 = vunpack.i.h.bf16 %v14510_v9  ;;  %v14514_v54 = vld [vmem:[#allocation96_spill] sm:$0xff]  ;;  %v14520_v9 = vld [vmem:[#allocation45_spill] sm:$0xff] }
 0x650   :  { %4689 = vmatpush.msrb.mxu0 %v14501_v41  ;;  %4726 = vmatpush.msrb.mxu1 %v14504_v16  ;;  %v14513_v41 = vunpack.i.h.bf16 %v14512_v12  ;;  %v14515_v16 = vunpack.i.h.bf16 %v14514_v54  ;;  %v14522_v12 = vunpack.i.h.bf16 %v14319_v35  ;;  %v12492_v54 = vld [vmem:[#allocation7 + $0x168] sm:$0xff]  ;;  %v14527_v35 = vunpack.i.h.bf16 %v12019_v14 }
 0x651   :  { %4771 = vmatpush.msrb.mxu2 %v14506_v21  ;;  %4538 = vmatmul.f32.gmra.mxu0 %v12455_v59  ;;  %v14516_v21 = vld [vmem:[#allocation47_spill] sm:$0xff]  ;;  %v14532_v14 = vunpack.i.h.bf16 %v14345_v46  ;;  %v12533_v46 = vld [vmem:[#allocation7 + $0x1a8] sm:$0xff] }
 0x652   :  { %4838 = vmatpush.msra.mxu0 %v14508_v47  ;;  %4576 = vmatmul.f32.gmra.mxu1 %v12457_v40  ;;  %v14517_v2 = vunpack.i.h.bf16 %v14516_v21  ;;  %v14518_v47 = vunpack.i.h.bf16 %v14320_v56  ;;  %v12482_v40 = vld [vmem:[#allocation7 + $0x1a0] sm:$0xff]  ;;  %v12494_v56 = vpop.f32.mrf.mxu0  ;;  %v12499_v21 = vld [vmem:[#allocation7 + $0x130] sm:$0xff]  ;;  %14539 = vst [vmem:[#allocation98_spill] sm:$0xff] %v12533_v46 }
 0x653   :  { %4927 = vmatpush.msra.mxu2 %v14509_v11  ;;  %4727 = vmatpush.msrb.mxu1 %v14511_v39  ;;  %v14519_v11 = vunpack.i.h.bf16 %v11881_v15  ;;  %v14521_v39 = vunpack.i.h.bf16 %v14520_v9  ;;  %v14524_v15 = vld [vmem:[#allocation103_spill] sm:$0xff]  ;;  %v14531_v9 = vunpack.i.h.bf16 %v12029_v5  ;;  %v14538_v5 = vunpack.i.h.bf16 %v12143_v48 }
 0x654   :  { %4839 = vmatpush.msra.mxu0 %v14513_v41  ;;  %v14523_v41 = vunpack.i.h.bf16 %v11784_v34  ;;  %v14528_v34 = vunpack.i.h.bf16 %v11712_v61  ;;  %v14533_v61 = vunpack.i.h.bf16 %v14347_v62  ;;  %v12535_v62 = vld [vmem:[#allocation7 + $0x170] sm:$0xff]  ;;  %v14544_v48 = vunpack.i.h.bf16 %v11607_v33 }
 0x655   :  { %4928 = vmatpush.msra.mxu2 %v14515_v16  ;;  %4728 = vmatpush.msrb.mxu1 %v14517_v2  ;;  %v14525_v16 = vunpack.i.h.bf16 %v14524_v15  ;;  %v14526_v2 = vunpack.i.h.bf16 %v14333_v17  ;;  %v12515_v17 = vld [vmem:[#allocation7 + $0x178] sm:$0xff]  ;;  %14540 = vst [vmem:[#allocation76_spill] sm:$0xff] %v12535_v62 }
 0x656   :  { %4840 = vmatpush.msra.mxu0 %v14518_v47  ;;  %5378 = vmatmul.msk.f32.gmra.mxu2 %vm4280_vm3, %v12474_v42  ;;  %v14529_v47 = vunpack.i.h.bf16 %v14335_v37  ;;  %v14537_v37 = vunpack.i.h.bf16 %v14351_v20  ;;  %v14543_v20 = vunpack.i.h.bf16 %v12237_v52  ;;  %v14549_v52 = vunpack.i.h.bf16 %v11876_v8 }
 0x657   :  { %4929 = vmatpush.msra.mxu2 %v14519_v11  ;;  %4729 = vmatpush.msrb.mxu1 %v14521_v39  ;;  %v14530_v11 = vunpack.i.h.bf16 %v11578_v4  ;;  %v14534_v39 = vunpack.i.h.bf16 %v12093_v23  ;;  %v14536_v4 = vunpack.i.h.bf16 %v11722_v6  ;;  %v14542_v6 = vunpack.i.h.bf16 %v14356_v43 }
 0x658   :  { %4841 = vmatpush.msra.mxu0 %v14522_v12  ;;  %4503 = vmatmul.f32.gmra.mxu3 %v12482_v40  ;;  %v12523_v12 = vld [vmem:[#allocation7 + $0x1e0] sm:$0xff]  ;;  %v14548_v43 = vunpack.i.h.bf16 %v11720_v38  ;;  %v14554_v38 = vunpack.i.h.bf16 %v11915_v58  ;;  %v14559_v58 = vunpack.i.h.bf16 %v12191_v32  ;;  %v14566_v32 = vunpack.i.h.bf16 %v11871_v60 }
 0x659   :  { %4930 = vmatpush.msra.mxu2 %v14523_v41  ;;  %4730 = vmatpush.msrb.mxu1 %v14525_v16  ;;  %14535 = vst [vmem:[#allocation13_spill] sm:$0xff] %v12523_v12  ;;  %v14541_v41 = vunpack.i.h.bf16 %v12138_v49  ;;  %v14545_v16 = vunpack.i.h.bf16 %v11663_v0  ;;  %v12554_v49 = vld [vmem:[#allocation7 + $0x1b8] sm:$0xff]  ;;  %v12568_v0 = vld [vmem:[#allocation7 + $0x1b0] sm:$0xff]  ;;  %v14569_v60 = vunpack.i.h.bf16 %v12291_v50 }
 0x65a   :  { %4842 = vmatpush.msra.mxu0 %v14526_v2  ;;  %4579 = vmatmul.f32.gmra.mxu1 %v12499_v21  ;;  %v12542_v15 = vpop.f32.mrf.mxu0  ;;  %14546 = vst [vmem:[#allocation50_spill] sm:$0xff] %v12554_v49  ;;  %v14547_v2 = vunpack.i.h.bf16 %v11922_v3 }
 0x65b   :  { %4879 = vmatpush.msra.mxu1 %v14527_v35  ;;  %4931 = vmatpush.msra.mxu2 %v14528_v34  ;;  %v14550_v35 = vld [vmem:[#allocation25_spill] sm:$0xff]  ;;  %14553 = vst [vmem:[#allocation38_spill] sm:$0xff] %v12568_v0 }
 0x65c   :  { %4541 = vmatmul.f32.gmra.mxu0 %v12492_v54  ;;  %v14551_v33 = vunpack.i.h.bf16 %v14550_v35  ;;  %v12566_v34 = vld [vmem:[#allocation7 + $0x1e8] sm:$0xff] }
 0x65d   :  { %4843 = vmatpush.msra.mxu0 %v14529_v47  ;;  %4880 = vmatpush.msra.mxu1 %v14530_v11  ;;  %14552 = vst [vmem:[#allocation75_spill] sm:$0xff] %v12566_v34  ;;  %v7017_v47 = vld [vmem:[#allocation7] sm:$0xff] }
 0x65e   :  { %4932 = vmatpush.msra.mxu2 %v14531_v9  ;;  %v14555_v9 = vunpack.i.h.bf16 %v12189_v1  ;;  %v14560_v1 = vld [vmem:[#allocation31_spill] sm:$0xff] }
 0x65f   :  { %4844 = vmatpush.msra.mxu0 %v14532_v14  ;;  %4881 = vmatpush.msra.mxu1 %v14533_v61  ;;  %v14556_v61 = vunpack.i.h.bf16 %v12083_v27  ;;  %v14563_v27 = vunpack.i.h.bf16 %v11779_v25 }
 0x660   :  { %4933 = vmatpush.msra.mxu2 %v14534_v39  ;;  %v12537_v23 = vpop.f32.mrf.mxu3  ;;  %4506 = vmatmul.f32.gmra.mxu3 %v12523_v12  ;;  %v14557_v39 = vunpack.i.h.bf16 %v11829_v26  ;;  %v14565_v26 = vld [vmem:[#allocation85_spill] sm:$0xff]  ;;  %v14592_v12 = vld [vmem:[#allocation27_spill] sm:$0xff] }
 0x661   :  { %5379 = vmatmul.msk.f32.gmra.mxu2 %vm4280_vm3, %v12515_v17  ;;  %4845 = vmatpush.msra.mxu0 %v14536_v4  ;;  %v12588_v4 = vld [vmem:[#allocation7 + $0x1f8] sm:$0xff] }
 0x662   :  { %4882 = vmatpush.msra.mxu1 %v14537_v37  ;;  %4934 = vmatpush.msra.mxu2 %v14538_v5  ;;  %v12582_v14 = vpop.f32.mrf.mxu0  ;;  %14558 = vst [vmem:[#allocation61_spill] sm:$0xff] %v12588_v4  ;;  %v14561_v37 = vunpack.i.h.bf16 %v14560_v1  ;;  %v14562_v5 = vunpack.i.h.bf16 %v12248_v55 }
 0x663   :  { %4846 = vmatpush.msra.mxu0 %v14541_v41  ;;  %4582 = vmatmul.f32.gmra.mxu1 %v12535_v62  ;;  %v12600_v41 = vld [vmem:[#allocation7 + $0x1f0] sm:$0xff] }
 0x664   :  { %4883 = vmatpush.msra.mxu1 %v14542_v6  ;;  %4935 = vmatpush.msra.mxu2 %v14543_v20  ;;  %14564 = vst [vmem:[#allocation56_spill] sm:$0xff] %v12600_v41 }
 0x665   :  { %4544 = vmatmul.f32.gmra.mxu0 %v12533_v46 }
 0x666   :  { %4847 = vmatpush.msra.mxu0 %v14544_v48  ;;  %4884 = vmatpush.msra.mxu1 %v14545_v16  ;;  %v7018_v48 = vld [vmem:[#allocation7 + $0x8] sm:$0xff]  ;;  %v14567_v16 = vunpack.i.h.bf16 %v12183_v28 }
 0x668   :  { %4848 = vmatpush.msra.mxu0 %v14547_v2  ;;  %4885 = vmatpush.msra.mxu1 %v14548_v43  ;;  %v14568_v2 = vunpack.i.h.bf16 %v12252_v45  ;;  %v7019_v43 = vld [vmem:[#allocation7 + $0x18] sm:$0xff] }
 0x669   :  { %5380 = vmatmul.msk.f32.gmra.mxu2 %vm4280_vm3, %v12554_v49  ;;  %4649 = vmatmul.f32.vlgmr.msrb.gmra.mxu3 %v7017_v47  ;;  %v12570_v3 = vpop.f32.mrf.mxu3  ;;  %v12572_v11 = vpop.f32.mrf.mxu2  ;;  %v14571_v47 = vld [vmem:[#allocation55_spill] sm:$0xff] }
 0x66a   :  { %4849 = vmatpush.msra.mxu0 %v14549_v52  ;;  %4886 = vmatpush.msra.mxu1 %v14551_v33  ;;  %v12612_v25 = vpop.f32.mrf.mxu0  ;;  %v14570_v52 = vld [vmem:[#allocation92_spill] sm:$0xff]  ;;  %v14590_v49 = vld [vmem:[#allocation111_spill] sm:$0xff] }
 0x66b   :  { %4585 = vmatmul.f32.gmra.mxu1 %v12568_v0  ;;  %v12580_v8 = vpop.f32.mrf.mxu1  ;;  %v7020_v33 = vld [vmem:[#allocation7 + $0x48] sm:$0xff] }
 0x66c   :  { %4850 = vmatpush.msra.mxu0 %v14554_v38  ;;  %4887 = vmatpush.msra.mxu1 %v14555_v9  ;;  %v14572_v9 = vld [vmem:[#allocation35_spill] sm:$0xff] }
 0x66d   :  { %4547 = vmatmul.f32.gmra.mxu0 %v12566_v34  ;;  %v14588_v34 = vld [vmem:[#allocation15_spill] sm:$0xff] }
 0x66e   :  { %4851 = vmatpush.msra.mxu0 %v14556_v61  ;;  %4888 = vmatpush.msra.mxu1 %v14557_v39  ;;  %v14573_v61 = vld [vmem:[#allocation89_spill] sm:$0xff] }
 0x66f   :  { %v7021_v39 = vld [vmem:[#allocation7 + $0x88] sm:$0xff] }
 0x670   :  { %4852 = vmatpush.msra.mxu0 %v14559_v58  ;;  %4889 = vmatpush.msra.mxu1 %v14561_v37  ;;  %v14574_v58 = vld [vmem:[#allocation73_spill] sm:$0xff] }
 0x671   :  { %5381 = vmatmul.msk.f32.gmra.mxu2 %vm4280_vm3, %v12588_v4  ;;  %4652 = vmatmul.f32.gmra.mxu3 %v14565_v26  ;;  %v12603_v6 = vpop.f32.mrf.mxu3 }
 0x672   :  { %4853 = vmatpush.msra.mxu0 %v14562_v5  ;;  %4890 = vmatpush.msra.mxu1 %v14563_v27  ;;  %v12607_v20 = vpop.f32.mrf.mxu2  ;;  %v12627_v45 = vpop.f32.mrf.mxu0  ;;  %v14575_v5 = vld [vmem:[#allocation78_spill] sm:$0xff] }
 0x673   :  { %4588 = vmatmul.f32.gmra.mxu1 %v12600_v41  ;;  %v4407_v55 = vpop.f32.mrf.mxu1  ;;  %v14576_v27 = vld [vmem:[#allocation86_spill] sm:$0xff]  ;;  %v14586_v41 = vld [vmem:[#allocation63_spill] sm:$0xff] }
 0x674   :  { %4891 = vmatpush.msra.mxu1 %v14566_v32 }
 0x675   :  { %4690 = vmatmul.f32.vlgmr.msrb.gmra.mxu0 %v7018_v48  ;;  %v7022_v48 = vld [vmem:[#allocation7 + $0xc8] sm:$0xff] }
 0x676   :  { %4892 = vmatpush.msra.mxu1 %v14567_v16  ;;  %v14577_v16 = vld [vmem:[#allocation84_spill] sm:$0xff] }
 0x678   :  { %4893 = vmatpush.msra.mxu1 %v14568_v2 }
 0x679   :  { %4772 = vmatmul.f32.vlgmr.msrb.gmra.mxu2 %v7019_v43  ;;  %4655 = vmatmul.f32.gmra.mxu3 %v14570_v52  ;;  %v12619_v35 = vpop.f32.mrf.mxu3  ;;  %v14579_v52 = vld [vmem:[#allocation83_spill] sm:$0xff] }
 0x67a   :  { %4894 = vmatpush.msra.mxu1 %v14569_v60  ;;  %v12622_v28 = vpop.f32.mrf.mxu2  ;;  %v12641_v32 = vpop.f32.mrf.mxu0  ;;  %v14578_v60 = vld [vmem:[#allocation12_spill] sm:$0xff] }
 0x67b   :  { %4731 = vmatmul.f32.vlgmr.msrb.gmra.mxu1 %v14571_v47  ;;  %v14580_v47 = vld [vmem:[#allocation71_spill] sm:$0xff] }
 0x67c   :  { %v12624_v38 = vpop.f32.mrf.mxu1 }
 0x67d   :  { %4693 = vmatmul.f32.gmra.mxu0 %v7020_v33 }
 0x681   :  { %4775 = vmatmul.f32.gmra.mxu2 %v14572_v9  ;;  %4658 = vmatmul.f32.gmra.mxu3 %v14573_v61  ;;  %v12630_v50 = vpop.f32.mrf.mxu3  ;;  %v14581_v9 = vld [vmem:[#allocation107_spill] sm:$0xff] }
 0x683   :  { %4734 = vmatmul.f32.gmra.mxu1 %v14574_v58  ;;  %v12635_v37 = vpop.f32.mrf.mxu2 }
 0x685   :  { %4696 = vmatmul.f32.gmra.mxu0 %v7021_v39 }
 0x686   :  { %v12633_v1 = vpop.f32.mrf.mxu1 }
 0x687   :  { %v12654_v61 = vpop.f32.mrf.mxu0 }
 0x689   :  { %4778 = vmatmul.f32.gmra.mxu2 %v14575_v5  ;;  %4661 = vmatmul.f32.gmra.mxu3 %v14576_v27  ;;  %v12639_v26 = vpop.f32.mrf.mxu3  ;;  %v14582_v5 = vld [vmem:[#allocation51_spill] sm:$0xff]  ;;  %v14583_v27 = vld [vmem:[#allocation37_spill] sm:$0xff] }
 0x68b   :  { %4737 = vmatmul.f32.gmra.mxu1 %v14577_v16  ;;  %v14584_v16 = vld [vmem:[#allocation74_spill] sm:$0xff] }
 0x68d   :  { %4699 = vmatmul.f32.gmra.mxu0 %v7022_v48 }
 0x68f   :  { %v12644_v2 = vpop.f32.mrf.mxu2  ;;  %v12646_v43 = vpop.f32.mrf.mxu1 }
 0x691   :  { %4781 = vmatmul.f32.gmra.mxu2 %v14578_v60  ;;  %4664 = vmatmul.f32.gmra.mxu3 %v14579_v52  ;;  %v12650_v33 = vpop.f32.mrf.mxu3  ;;  %v14585_v60 = vld [vmem:[#allocation41_spill] sm:$0xff]  ;;  %v4364_v52 = vadd.f32 %v12494_v56, %v12537_v23  ;;  %v4367_v56 = vadd.f32 %v12542_v15, %v12570_v3  ;;  %v4370_v15 = vadd.f32 %v12582_v14, %v12603_v6 }
 0x693   :  { %4740 = vmatmul.f32.gmra.mxu1 %v14581_v9 }
 0x695   :  { %4702 = vmatmul.f32.gmra.mxu0 %v14580_v47  ;;  %v12668_v47 = vpop.f32.mrf.mxu0 }
 0x697   :  { %v12656_v39 = vpop.f32.mrf.mxu2  ;;  %v12658_v58 = vpop.f32.mrf.mxu1 }
 0x699   :  { %4784 = vmatmul.f32.gmra.mxu2 %v14582_v5  ;;  %4667 = vmatmul.f32.gmra.mxu3 %v14583_v27  ;;  %v12662_v48 = vpop.f32.mrf.mxu3  ;;  %v4405_v5 = vadd.f32 %v12580_v8, %v4364_v52  ;;  %v14587_v27 = vld [vmem:[#allocation23_spill] sm:$0xff]  ;;  %v4408_v8 = vadd.f32 %v4407_v55, %v4367_v56  ;;  %v14591_v52 = vld [vmem:[#allocation66_spill] sm:$0xff] }
 0x69b   :  { %4743 = vmatmul.f32.gmra.mxu1 %v14585_v60  ;;  %v4446_v60 = vadd.f32 %v12572_v11, %v4405_v5  ;;  %v4449_v11 = vadd.f32 %v12607_v20, %v4408_v8 }
 0x69d   :  { %4705 = vmatmul.f32.gmra.mxu0 %v14584_v16  ;;  %v14589_v16 = vld [vmem:[#allocation39_spill] sm:$0xff] }
 0x69f   :  { %v12670_v9 = vpop.f32.mrf.mxu1  ;;  %v12673_v4 = vpop.f32.mrf.mxu2 }
 0x6a1   :  { %4787 = vmatmul.f32.gmra.mxu2 %v14586_v41  ;;  %4670 = vmatmul.f32.gmra.mxu3 %v14587_v27  ;;  %v4486_v0 = vpop.f32.mrf.mxu3 }
 0x6a2   :  { %v4487_v23 = vadd.f32 %v4486_v0, %v4446_v60 }
 0x6a3   :  { %4746 = vmatmul.f32.gmra.mxu1 %v14589_v16  ;;  %v14593_v16 = vld [vmem:[#allocation20_spill] sm:$0xff] }
 0x6a5   :  { %4708 = vmatmul.f32.gmra.mxu0 %v14588_v34 }
 0x6a7   :  { %v12683_v62 = vpop.f32.mrf.mxu1  ;;  %v12686_v27 = vpop.f32.mrf.mxu2 }
 0x6a8   :  { %v4527_v41 = vpop.f32.mrf.mxu0 }
 0x6a9   :  { %4790 = vmatmul.f32.gmra.mxu2 %v14590_v49  ;;  %v4528_v46 = vadd.f32 %v4527_v41, %v4487_v23  ;;  %4813 = vmatmul.f32.vlgmr.msra.gmra.mxu3 %v14591_v52  ;;  %v4489_v34 = vpop.f32.mrf.mxu3  ;;  %v14594_v49 = vld [vmem:[#allocation102_spill] sm:$0xff]  ;;  %v4411_v23 = vadd.f32 %v12624_v38, %v4370_v15 }
 0x6aa   :  { %v4490_v0 = vadd.f32 %v4489_v34, %v4449_v11 }
 0x6ab   :  { %4749 = vmatmul.f32.gmra.mxu1 %v14593_v16  ;;  %v4452_v14 = vadd.f32 %v12622_v28, %v4411_v23 }
 0x6ad   :  { %4711 = vmatmul.f32.gmra.mxu0 %v14592_v12 }
 0x6b1   :  { %4793 = vmatmul.f32.gmra.mxu2 %v14594_v49  ;;  %v4530_v3 = vpop.f32.mrf.mxu0  ;;  %4816 = vmatmul.f32.gmra.mxu3 %v12250_v7  ;;  %v4492_v20 = vpop.f32.mrf.mxu3  ;;  %v4373_v7 = vadd.f32 %v12612_v25, %v12619_v35  ;;  %v14596_v49 = vld [vmem:[#allocation106_spill] sm:$0xff] }
 0x6b2   :  { %v4568_v5 = vpop.f32.mrf.mxu1  ;;  %v4531_v55 = vadd.f32 %v4530_v3, %v4490_v0 }
 0x6b3   :  { %v4569_v60 = vadd.f32 %v4568_v5, %v4528_v46  ;;  %v4609_v56 = vpop.f32.mrf.mxu2  ;;  %4752 = vmatmul.f32.gmra.mxu1 %v12267_v44  ;;  %v4493_v46 = vadd.f32 %v4492_v20, %v4452_v14  ;;  %v4414_v28 = vadd.f32 %v12633_v1, %v4373_v7  ;;  %v14597_v20 = vld [vmem:[#allocation13_spill] sm:$0xff]  ;;  %v14598_v14 = vld [vmem:[#allocation98_spill] sm:$0xff] }
 0x6b5   :  { %4854 = vmatmul.f32.vlgmr.msra.gmra.mxu0 %v12276_v30  ;;  %v12698_v12 = vadd.f32 %v4609_v56, %v4569_v60 }
 0x6b7   :  { %vm4961_vm5 = vcmp.gt.f32.partialorder %v12698_v12, 0.0 }
 0x6b9   :  { %5382 = vmatmul.msk.f32.vlgmr.msra.gmra.mxu2 %vm4280_vm3, %v12293_v19  ;;  %4819 = vmatmul.f32.gmra.mxu3 %v12310_v63  ;;  %v4455_v63 = vadd.f32 %v12635_v37, %v4414_v28  ;;  %v14602_v28 = vld [vmem:[#allocation38_spill] sm:$0xff] }
 0x6bb   :  { %v4533_v6 = vpop.f32.mrf.mxu0  ;;  %4895 = vmatmul.f32.vlgmr.msra.gmra.mxu1 %v12323_v36 }
 0x6bc   :  { %v4571_v38 = vpop.f32.mrf.mxu1  ;;  %v4534_v44 = vadd.f32 %v4533_v6, %v4493_v46  ;;  %v4612_v41 = vpop.f32.mrf.mxu2 }
 0x6bd   :  { %4857 = vmatmul.f32.gmra.mxu0 %v12321_v31  ;;  %v4572_v30 = vadd.f32 %v4571_v38, %v4531_v55  ;;  %v4376_v31 = vadd.f32 %v12627_v45, %v12630_v50  ;;  %v4379_v45 = vadd.f32 %v12641_v32, %v12639_v26  ;;  %v4382_v32 = vadd.f32 %v12654_v61, %v12650_v33 }
 0x6be   :  { %v4385_v61 = vadd.f32 %v12668_v47, %v12662_v48  ;;  %v14599_v48 = vld [vmem:[#allocation76_spill] sm:$0xff] }
 0x6bf   :  { %v12709_v8 = vadd.f32 %v4612_v41, %v4572_v30  ;;  %v4495_v19 = vpop.f32.mrf.mxu3  ;;  %v4417_v16 = vadd.f32 %v12646_v43, %v4376_v31  ;;  %v14601_v41 = vld [vmem:[#allocation75_spill] sm:$0xff] }
 0x6c0   :  { %v4496_v36 = vadd.f32 %v4495_v19, %v4455_v63  ;;  %v14603_v63 = vld [vmem:[#allocation61_spill] sm:$0xff] }
 0x6c1   :  { %5383 = vmatmul.msk.f32.gmra.mxu2 %vm4280_vm3, %v12342_v51  ;;  %4822 = vmatmul.f32.gmra.mxu3 %v12356_v57  ;;  %vm4963_vm8 = vcmp.gt.f32.partialorder %v12709_v8, 0.0 }
 0x6c3   :  { %4898 = vmatmul.f32.gmra.mxu1 %v12368_v29  ;;  %v14595_v29 = vld [vmem:[#allocation114_spill] sm:$0xff] }
 0x6c5   :  { %4860 = vmatmul.f32.gmra.mxu0 %v12366_v22  ;;  %v4536_v25 = vpop.f32.mrf.mxu0  ;;  %v4458_v22 = vadd.f32 %v12644_v2, %v4417_v16 }
 0x6c6   :  { %v4574_v35 = vpop.f32.mrf.mxu1  ;;  %v4537_v1 = vadd.f32 %v4536_v25, %v4496_v36  ;;  %v4615_v34 = vpop.f32.mrf.mxu2 }
 0x6c7   :  { %v4575_v52 = vadd.f32 %v4574_v35, %v4534_v44 }
 0x6c9   :  { %5384 = vmatmul.msk.f32.gmra.mxu2 %vm4280_vm3, %v12387_v18  ;;  %v12722_v51 = vadd.f32 %v4615_v34, %v4575_v52  ;;  %v4498_v57 = vpop.f32.mrf.mxu3  ;;  %4825 = vmatmul.f32.gmra.mxu3 %v12401_v24  ;;  %v4420_v24 = vadd.f32 %v12658_v58, %v4379_v45 }
 0x6ca   :  { %v4499_v50 = vadd.f32 %v4498_v57, %v4458_v22 }
 0x6cb   :  { %4901 = vmatmul.f32.gmra.mxu1 %v14595_v29  ;;  %v4461_v26 = vadd.f32 %v12656_v39, %v4420_v24  ;;  %vm4965_vm10 = vcmp.gt.f32.partialorder %v12722_v51, 0.0 }
 0x6cd   :  { %4863 = vmatmul.f32.gmra.mxu0 %v12411_v13 }
 0x6ce   :  { %v4539_v37 = vpop.f32.mrf.mxu0 }
 0x6cf   :  { %v4577_v43 = vpop.f32.mrf.mxu1  ;;  %v4540_v18 = vadd.f32 %v4539_v37, %v4499_v50 }
 0x6d0   :  { %v4578_v11 = vadd.f32 %v4577_v43, %v4537_v1  ;;  %v4618_v15 = vpop.f32.mrf.mxu2  ;;  %v14604_v1 = vld [vmem:[#allocation56_spill] sm:$0xff] }
 0x6d1   :  { %5385 = vmatmul.msk.f32.gmra.mxu2 %vm4280_vm3, %v12432_v10  ;;  %4828 = vmatmul.f32.gmra.mxu3 %v12442_v53  ;;  %v4423_v53 = vadd.f32 %v12670_v9, %v4382_v32 }
 0x6d2   :  { %v12734_v2 = vadd.f32 %v4618_v15, %v4578_v11  ;;  %v4501_v13 = vpop.f32.mrf.mxu3 }
 0x6d3   :  { %4904 = vmatmul.f32.gmra.mxu1 %v14596_v49  ;;  %v4502_v10 = vadd.f32 %v4501_v13, %v4461_v26 }
 0x6d4   :  { %vm4967_vm12 = vcmp.gt.f32.partialorder %v12734_v2, 0.0 }
 0x6d5   :  { %4866 = vmatmul.f32.gmra.mxu0 %v12455_v59 }
 0x6d7   :  { %v4580_v3 = vpop.f32.mrf.mxu1 }
 0x6d8   :  { %v4581_v5 = vadd.f32 %v4580_v3, %v4540_v18 }
 0x6d9   :  { %5386 = vmatmul.msk.f32.gmra.mxu2 %vm4280_vm3, %v12474_v42  ;;  %v4542_v0 = vpop.f32.mrf.mxu0  ;;  %4831 = vmatmul.f32.gmra.mxu3 %v12482_v40  ;;  %v4621_v59 = vpop.f32.mrf.mxu2  ;;  %v4464_v42 = vadd.f32 %v12673_v4, %v4423_v53  ;;  %v4426_v40 = vadd.f32 %v12683_v62, %v4385_v61 }
 0x6da   :  { %v4543_v58 = vadd.f32 %v4542_v0, %v4502_v10  ;;  %v12745_v55 = vadd.f32 %v4621_v59, %v4581_v5 }
 0x6db   :  { %4907 = vmatmul.f32.gmra.mxu1 %v12499_v21  ;;  %v4504_v33 = vpop.f32.mrf.mxu3  ;;  %v4467_v47 = vadd.f32 %v12686_v27, %v4426_v40 }
 0x6dc   :  { %v4505_v39 = vadd.f32 %v4504_v33, %v4464_v42  ;;  %vm4969_vm0 = vcmp.gt.f32.partialorder %v12745_v55, 0.0 }
 0x6dd   :  { %4869 = vmatmul.f32.gmra.mxu0 %v12492_v54 }
 0x6e0   :  { %v4583_v60 = vpop.f32.mrf.mxu1 }
 0x6e1   :  { %5387 = vmatmul.msk.f32.gmra.mxu2 %vm4280_vm3, %v12515_v17  ;;  %v4584_v23 = vadd.f32 %v4583_v60, %v4543_v58  ;;  %4834 = vmatmul.f32.gmra.mxu3 %v14597_v20  ;;  %v14600_v17 = vld [vmem:[#allocation50_spill] sm:$0xff] }
 0x6e2   :  { %v4545_v9 = vpop.f32.mrf.mxu0 }
 0x6e3   :  { %v4546_v56 = vadd.f32 %v4545_v9, %v4505_v39  ;;  %4910 = vmatmul.f32.gmra.mxu1 %v14599_v48  ;;  %v4507_v4 = vpop.f32.mrf.mxu3 }
 0x6e4   :  { %v4624_v54 = vpop.f32.mrf.mxu2  ;;  %v4508_v7 = vadd.f32 %v4507_v4, %v4467_v47 }
 0x6e5   :  { %v12756_v21 = vadd.f32 %v4624_v54, %v4584_v23  ;;  %4872 = vmatmul.f32.gmra.mxu0 %v14598_v14  ;;  %v4977_v54 = vmin.f32 %v12698_v12, 0.0 }
 0x6e7   :  { %vm4971_vm14 = vcmp.gt.f32.partialorder %v12756_v21, 0.0 }
 0x6e8   :  { %v4586_v62 = vpop.f32.mrf.mxu1 }
 0x6e9   :  { %5388 = vmatmul.msk.f32.gmra.mxu2 %vm4280_vm3, %v14600_v17  ;;  %v4587_v38 = vadd.f32 %v4586_v62, %v4546_v56  ;;  %v4993_v17 = vmul.f32 1.442695, %v4977_v54 }
 0x6ea   :  { %v4548_v46 = vpop.f32.mrf.mxu0 }
 0x6eb   :  { %v4549_v6 = vadd.f32 %v4548_v46, %v4508_v7  ;;  %4913 = vmatmul.f32.gmra.mxu1 %v14602_v28  ;;  %6932 = vpow2.f32 %v4993_v17 }
 0x6ec   :  { %v4627_v44 = vpop.f32.mrf.mxu2  ;;  %v4650_v19 = vpop.f32.mrf.mxu3 }
 0x6ed   :  { %v12763_v30 = vadd.f32 %v4627_v44, %v4587_v38  ;;  %4875 = vmatmul.f32.gmra.mxu0 %v14601_v41  ;;  %v4979_v44 = vmin.f32 %v12709_v8, 0.0 }
 0x6ef   :  { %vm4973_vm2 = vcmp.gt.f32.partialorder %v12763_v30, 0.0 }
 0x6f0   :  { %v4589_v27 = vpop.f32.mrf.mxu1 }
 0x6f1   :  { %5389 = vmatmul.msk.f32.gmra.mxu2 %vm4280_vm3, %v14603_v63  ;;  %v4590_v36 = vadd.f32 %v4589_v27, %v4549_v6 }
 0x6f2   :  { %v4691_v31 = vpop.f32.mrf.mxu0 }
 0x6f3   :  { %4916 = vmatmul.f32.gmra.mxu1 %v14604_v1  ;;  %v4692_v9 = vadd.f32 %v4691_v31, %v4650_v19 }
 0x6f4   :  { %v4630_v25 = vpop.f32.mrf.mxu2  ;;  %v4653_v52 = vpop.f32.mrf.mxu3 }
 0x6f5   :  { %v12769_v35 = vadd.f32 %v4630_v25, %v4590_v36  ;;  %v4997_v36 = vmul.f32 1.442695, %v4979_v44  ;;  %v4983_v44 = vmin.f32 %v12734_v2, 0.0 }
 0x6f7   :  { %vm4975_vm3 = vcmp.gt.f32.partialorder %v12769_v35, 0.0 }
 0x6f8   :  { %v4732_v16 = vpop.f32.mrf.mxu1 }
 0x6f9   :  { %v4733_v60 = vadd.f32 %v4732_v16, %v4692_v9 }
 0x6fa   :  { %v4694_v34 = vpop.f32.mrf.mxu0 }
 0x6fb   :  { %v4695_v48 = vadd.f32 %v4694_v34, %v4653_v52 }
 0x6fc   :  { %v4773_v57 = vpop.f32.mrf.mxu2  ;;  %v4656_v22 = vpop.f32.mrf.mxu3 }
 0x6fd   :  { %v4774_v20 = vadd.f32 %v4773_v57, %v4733_v60 }
 0x700   :  { %v4735_v45 = vpop.f32.mrf.mxu1 }
 0x701   :  { %v4736_v47 = vadd.f32 %v4735_v45, %v4695_v48  ;;  %v6933_v45 = vpop.eup %6932 }
 0x702   :  { %v4697_v29 = vpop.f32.mrf.mxu0 }
 0x703   :  { %v4698_v63 = vadd.f32 %v4697_v29, %v4656_v22  ;;  %v5390_v22 = vadd.f32 -1.0, %v6933_v45 }
 0x704   :  { %v4776_v50 = vpop.f32.mrf.mxu2  ;;  %v4659_v37 = vpop.f32.mrf.mxu3 }
 0x705   :  { %v4777_v41 = vadd.f32 %v4776_v50, %v4736_v47 }
 0x708   :  { %v4738_v18 = vpop.f32.mrf.mxu1 }
 0x709   :  { %v4739_v25 = vadd.f32 %v4738_v18, %v4698_v63 }
 0x70a   :  { %v4700_v43 = vpop.f32.mrf.mxu0 }
 0x70b   :  { %v4701_v29 = vadd.f32 %v4700_v43, %v4659_v37  ;;  %v12821_v37 = vld [vmem:[%s13027_s4 + $0x48] sm:$0xff] }
 0x70c   :  { %v4779_v11 = vpop.f32.mrf.mxu2  ;;  %v12772_v15 = vpop.f32.mrf.mxu3 }
 0x70d   :  { %v4780_v50 = vadd.f32 %v4779_v11, %v4739_v25  ;;  %v12816_v11 = vld [vmem:[%s13027_s4 + $0x8] sm:$0xff] }
 0x710   :  { %v4741_v13 = vpop.f32.mrf.mxu1 }
 0x711   :  { %v4742_v48 = vadd.f32 %v4741_v13, %v4701_v29  ;;  %v5041_v13 = vsel %vm4961_vm5, %v12698_v12, %v5390_v22 }
 0x712   :  { %v12774_v24 = vpop.f32.mrf.mxu0 }
 0x714   :  { %v12776_v49 = vpop.f32.mrf.mxu2  ;;  %v12778_v26 = vpop.f32.mrf.mxu3 }
 0x715   :  { %v4783_v12 = vadd.f32 %v12776_v49, %v4742_v48 }
 0x718   :  { %v12782_v10 = vpop.f32.mrf.mxu1 }
 0x71a   :  { %v12780_v32 = vpop.f32.mrf.mxu0 }
 0x71c   :  { %v12784_v0 = vpop.f32.mrf.mxu2  ;;  %v12786_v58 = vpop.f32.mrf.mxu3 }
 0x720   :  { %v12790_v53 = vpop.f32.mrf.mxu1 }
 0x722   :  { %v12788_v3 = vpop.f32.mrf.mxu0 }
 0x724   :  { %v12792_v5 = vpop.f32.mrf.mxu2  ;;  %v12794_v59 = vpop.f32.mrf.mxu3 }
 0x728   :  { %v12798_v61 = vpop.f32.mrf.mxu1 }
 0x72a   :  { %v12796_v33 = vpop.f32.mrf.mxu0 }
 0x72c   :  { %v12800_v42 = vpop.f32.mrf.mxu2  ;;  %v4814_v39 = vpop.f32.mrf.mxu3 }
 0x72d   :  { %v4815_v4 = vadd.f32 %v4814_v39, %v4774_v20  ;;  %v4981_v39 = vmin.f32 %v12722_v51, 0.0 }
 0x72f   :  { %v5001_v54 = vmul.f32 1.442695, %v4981_v39 }
 0x730   :  { %v12802_v40 = vpop.f32.mrf.mxu1 }
 0x732   :  { %v4855_v56 = vpop.f32.mrf.mxu0 }
 0x733   :  { %v4856_v7 = vadd.f32 %v4855_v56, %v4815_v4 }
 0x734   :  { %v12804_v23 = vpop.f32.mrf.mxu2  ;;  %v4817_v14 = vpop.f32.mrf.mxu3 }
 0x735   :  { %v4818_v27 = vadd.f32 %v4817_v14, %v4777_v41 }
 0x738   :  { %v4896_v62 = vpop.f32.mrf.mxu1 }
 0x739   :  { %v4897_v6 = vadd.f32 %v4896_v62, %v4856_v7 }
 0x73a   :  { %v4858_v46 = vpop.f32.mrf.mxu0 }
 0x73b   :  { %v4859_v1 = vadd.f32 %v4858_v46, %v4818_v27 }
 0x73c   :  { %v4937_v38 = vpop.f32.mrf.mxu2  ;;  %v4820_v19 = vpop.f32.mrf.mxu3 }
 0x73d   :  { %v4938_v28 = vadd.f32 %v4937_v38, %v4897_v6  ;;  %v4821_v20 = vadd.f32 %v4820_v19, %v4780_v50  ;;  %v12827_v6 = vld [vmem:[%s13027_s4 + $0x40] sm:$0xff] }
 0x73e   :  { %v12832_v38 = vld [vmem:[%s13027_s4] sm:$0xff] }
 0x73f   :  { %v4978_v31 = vmin.f32 %v4938_v28, 0.0  ;;  %vm4962_vm6 = vcmp.gt.f32.partialorder %v4938_v28, 0.0 }
 0x740   :  { %v4899_v16 = vpop.f32.mrf.mxu1 }
 0x741   :  { %v4995_v52 = vmul.f32 1.442695, %v4978_v31  ;;  %v4900_v57 = vadd.f32 %v4899_v16, %v4859_v1  ;;  %v5081_v1 = vmul.f32 %v12827_v6, %v5041_v13 }
 0x742   :  { %v4861_v34 = vpop.f32.mrf.mxu0 }
 0x743   :  { %6934 = vpow2.f32 %v4995_v52  ;;  %v4862_v4 = vadd.f32 %v4861_v34, %v4821_v20  ;;  %v5073_v52 = vmul.f32 %v12832_v38, %v5041_v13  ;;  %v4704_v34 = vadd.f32 %v12774_v24, %v12772_v15 }
 0x744   :  { %v4940_v9 = vpop.f32.mrf.mxu2  ;;  %6936 = vpow2.f32 %v4997_v36  ;;  %v4823_v56 = vpop.f32.mrf.mxu3  ;;  %v4985_v15 = vmin.f32 %v12745_v55, 0.0 }
 0x745   :  { %v12809_v60 = vadd.f32 %v4940_v9, %v4900_v57  ;;  %v5005_v57 = vmul.f32 1.442695, %v4983_v44  ;;  %v4745_v50 = vadd.f32 %v12782_v10, %v4704_v34 }
 0x746   :  { %v5009_v13 = vmul.f32 1.442695, %v4985_v15  ;;  %v12907_v15 = vld [vmem:[%s13027_s4 + $0x28] sm:$0xff] }
 0x747   :  { %v4980_v18 = vmin.f32 %v12809_v60, 0.0  ;;  %vm4964_vm9 = vcmp.gt.f32.partialorder %v12809_v60, 0.0 }
 0x748   :  { %v4902_v17 = vpop.f32.mrf.mxu1 }
 0x749   :  { %v6935_v14 = vpop.eup %6934  ;;  %v4999_v47 = vmul.f32 1.442695, %v4980_v18  ;;  %v4903_v62 = vadd.f32 %v4902_v17, %v4862_v4  ;;  %v12860_v4 = vld [vmem:[%s13027_s4 + $0x10] sm:$0xff] }
 0x74a   :  { %v5391_v7 = vadd.f32 -1.0, %v6935_v14  ;;  %v4864_v43 = vpop.f32.mrf.mxu0  ;;  %v6937_v46 = vpop.eup %6936 }
 0x74b   :  { %6938 = vpow2.f32 %v4999_v47  ;;  %v5392_v36 = vadd.f32 -1.0, %v6937_v46 }
 0x74c   :  { %6940 = vpow2.f32 %v5001_v54  ;;  %v5042_v41 = vsel %vm4962_vm6, %v4938_v28, %v5391_v7  ;;  %v4943_v19 = vpop.f32.mrf.mxu2  ;;  %v4826_v25 = vpop.f32.mrf.mxu3  ;;  %v4824_v28 = vadd.f32 %v4823_v56, %v4783_v12  ;;  %v12853_v56 = vld [vmem:[%s13027_s4 + $0x18] sm:$0xff]  ;;  %vm5191_vm6 = vcmask 130112  }
 0x74d   :  { %v5074_v63 = vmul.f32 %v12816_v11, %v5042_v41  ;;  %v5082_v27 = vmul.f32 %v12821_v37, %v5042_v41  ;;  %v12838_v31 = vadd.f32 %v4943_v19, %v4903_v62  ;;  %v5043_v48 = vsel %vm4963_vm8, %v12709_v8, %v5392_v36  ;;  %v12870_v62 = vld [vmem:[%s13027_s4 + $0x58] sm:$0xff] }
 0x74e   :  { %v4865_v22 = vadd.f32 %v4864_v43, %v4824_v28  ;;  %v4786_v43 = vadd.f32 %v12784_v0, %v4745_v50  ;;  %v5075_v44 = vmul.f32 %v12860_v4, %v5043_v48  ;;  %vm5199_vm8 = vcmask 261312  }
 0x74f   :  { %v4982_v16 = vmin.f32 %v12838_v31, 0.0  ;;  %v5122_v49 = vsel %vm5105_vm7, %v5082_v27, 0.0  ;;  %v5106_v39 = vsel %vm5105_vm7, %v5074_v63, 0.0  ;;  %vm4966_vm11 = vcmp.gt.f32.partialorder %v12838_v31, 0.0 }
 0x750   :  { %v5123_v45 = vadd.f32 %v5122_v49, %v5081_v1  ;;  %v5107_v20 = vadd.f32 %v5106_v39, %v5073_v52  ;;  %v4905_v14 = vpop.f32.mrf.mxu1  ;;  %v4827_v41 = vadd.f32 %v4826_v25, %v4786_v43  ;;  %v4987_v39 = vmin.f32 %v12756_v21, 0.0 }
 0x751   :  { %v6939_v9 = vpop.eup %6938  ;;  %v5003_v29 = vmul.f32 1.442695, %v4982_v16  ;;  %v4906_v10 = vadd.f32 %v4905_v14, %v4865_v22 }
 0x752   :  { %v6941_v18 = vpop.eup %6940  ;;  %v5393_v24 = vadd.f32 -1.0, %v6939_v9  ;;  %v4867_v54 = vpop.f32.mrf.mxu0  ;;  %5124 = vadd.xlane.f32.xlu0 %v5123_v45  ;;  %5108 = vadd.xlane.f32.xlu1 %v5107_v20  ;;  %v12895_v45 = vld [vmem:[%s13027_s4 + $0x60] sm:$0xff] }
 0x753   :  { %6942 = vpow2.f32 %v5003_v29  ;;  %v5394_v8 = vadd.f32 -1.0, %v6941_v18  ;;  %v4868_v52 = vadd.f32 %v4867_v54, %v4827_v41 }
 0x754   :  { %v5044_v47 = vsel %vm4964_vm9, %v12809_v60, %v5393_v24  ;;  %v4946_v7 = vpop.f32.mrf.mxu2  ;;  %6944 = vpow2.f32 %v5005_v57  ;;  %v4707_v60 = vadd.f32 %v12780_v32, %v12778_v26  ;;  %v4829_v12 = vpop.f32.mrf.mxu3  ;;  %v12883_v26 = vld [vmem:[%s13027_s4 + $0x68] sm:$0xff]  ;;  %v12890_v57 = vld [vmem:[%s13027_s4 + $0x50] sm:$0xff]  ;;  %vm5222_vm9 = vcmask 1041409  }
 0x755   :  { %v5076_v17 = vmul.f32 %v12853_v56, %v5044_v47  ;;  %v12865_v46 = vadd.f32 %v4946_v7, %v4906_v10  ;;  %v5084_v1 = vmul.f32 %v12870_v62, %v5044_v47  ;;  %6946 = vpow2.f32 %v5009_v13 }
 0x756   :  { %v4748_v36 = vadd.f32 %v12790_v53, %v4707_v60  ;;  %v5045_v49 = vsel %vm4965_vm10, %v12722_v51, %v5394_v8  ;;  %v5083_v24 = vmul.f32 %v12890_v57, %v5043_v48  ;;  %v5013_v7 = vmul.f32 1.442695, %v4987_v39 }
 0x757   :  { %v4984_v19 = vmin.f32 %v12865_v46, 0.0  ;;  %v5110_v0 = vsel %vm5105_vm7, %v5076_v17, 0.0  ;;  %v5126_v20 = vsel %vm5105_vm7, %v5084_v1, 0.0  ;;  %v5085_v54 = vmul.f32 %v12895_v45, %v5045_v49 }
 0x758   :  { %v5111_v63 = vadd.f32 %v5110_v0, %v5075_v44  ;;  %v4908_v25 = vpop.f32.mrf.mxu1  ;;  %v4789_v51 = vadd.f32 %v12792_v5, %v4748_v36  ;;  %v5127_v43 = vadd.f32 %v5126_v20, %v5083_v24  ;;  %vm4968_vm13 = vcmp.gt.f32.partialorder %v12865_v46, 0.0 }
 0x759   :  { %v6943_v27 = vpop.eup %6942  ;;  %v5007_v34 = vmul.f32 1.442695, %v4984_v19  ;;  %v4909_v53 = vadd.f32 %v4908_v25, %v4868_v52  ;;  %v4989_v25 = vmin.f32 %v12763_v30, 0.0  ;;  %vm5227_vm10 = vcmask 254976  }
 0x75a   :  { %v5395_v28 = vadd.f32 -1.0, %v6943_v27  ;;  %v4870_v32 = vpop.f32.mrf.mxu0  ;;  %5112 = vadd.xlane.f32.xlu2 %v5111_v63  ;;  %v6945_v16 = vpop.eup %6944  ;;  %v4830_v5 = vadd.f32 %v4829_v12, %v4789_v51  ;;  %v12930_v12 = vld [vmem:[%s13027_s4 + $0x20] sm:$0xff]  ;;  %v12935_v63 = vld [vmem:[%s13027_s4 + $0x30] sm:$0xff] }
 0x75b   :  { %6948 = vpow2.f32 %v5007_v34  ;;  %v5396_v18 = vadd.f32 -1.0, %v6945_v16  ;;  %v6947_v47 = vpop.eup %6946  ;;  %v5077_v16 = vmul.f32 %v12930_v12, %v5045_v49 }
 0x75c   :  { %v5046_v9 = vsel %vm4966_vm11, %v12838_v31, %v5395_v28  ;;  %v4949_v50 = vpop.f32.mrf.mxu2  ;;  %v4710_v31 = vadd.f32 %v12788_v3, %v12786_v58  ;;  %v4871_v48 = vadd.f32 %v4870_v32, %v4830_v5  ;;  %v12921_v58 = vld [vmem:[%s13027_s4 + $0x38] sm:$0xff]  ;;  %v4832_v3 = vpop.f32.mrf.mxu3  ;;  %v5398_v27 = vadd.f32 -1.0, %v6947_v47 }
 0x75d   :  { %v5086_v22 = vmul.f32 %v12883_v26, %v5046_v9  ;;  %v12901_v29 = vadd.f32 %v4949_v50, %v4909_v53  ;;  %v5078_v44 = vmul.f32 %v12907_v15, %v5046_v9  ;;  %v12924_v0 = vsel %vm4967_vm12, %v12734_v2, %v5396_v18 }
 0x75e   :  { %v4751_v13 = vadd.f32 %v12798_v61, %v4710_v31  ;;  %v5079_v53 = vmul.f32 %v12935_v63, %v12924_v0  ;;  %v5049_v20 = vsel %vm4969_vm0, %v12745_v55, %v5398_v27  ;;  %v5017_v31 = vmul.f32 1.442695, %v4989_v25 }
 0x75f   :  { %v4986_v14 = vmin.f32 %v12901_v29, 0.0  ;;  %v5130_v10 = vsel %vm5105_vm7, %v5086_v22, 0.0  ;;  %v5114_v32 = vsel %vm5105_vm7, %v5078_v44, 0.0  ;;  %vm4970_vm1 = vcmp.gt.f32.partialorder %v12901_v29, 0.0 }
 0x760   :  { %v5131_v17 = vadd.f32 %v5130_v10, %v5085_v54  ;;  %v4911_v19 = vpop.f32.mrf.mxu1  ;;  %v4792_v52 = vadd.f32 %v12800_v42, %v4751_v13  ;;  %v5115_v50 = vadd.f32 %v5114_v32, %v5077_v16  ;;  %v5097_v55 = vmul.f32 %v12827_v6, %v5049_v20 }
 0x761   :  { %v6949_v8 = vpop.eup %6948  ;;  %v5011_v60 = vmul.f32 1.442695, %v4986_v14  ;;  %v4912_v61 = vadd.f32 %v4911_v19, %v4871_v48  ;;  %v4991_v13 = vmin.f32 %v12769_v35, 0.0  ;;  %v5089_v48 = vmul.f32 %v12832_v38, %v5049_v20 }
 0x762   :  { %v5397_v41 = vadd.f32 -1.0, %v6949_v8  ;;  %5128 = vadd.xlane.f32.xlu2 %v5127_v43  ;;  %5132 = vadd.xlane.f32.xlu0 %v5131_v17  ;;  %v4873_v2 = vpop.f32.mrf.mxu0  ;;  %v4833_v39 = vadd.f32 %v4832_v3, %v4792_v52  ;;  %vm5258_vm11 = vcmask 9216  }
 0x763   :  { %6950 = vpow2.f32 %v5011_v60 }
 0x764   :  { %6952 = vpow2.f32 %v5013_v7  ;;  %v12938_v36 = vsel %vm4968_vm13, %v12865_v46, %v5397_v41  ;;  %v4952_v1 = vpop.f32.mrf.mxu2  ;;  %v4713_v46 = vadd.f32 %v12796_v33, %v12794_v59  ;;  %v4874_v49 = vadd.f32 %v4873_v2, %v4833_v39  ;;  %v4835_v10 = vpop.f32.mrf.mxu3 }
 0x765   :  { %v5080_v34 = vmul.f32 %v12921_v58, %v12938_v36  ;;  %v4953_v28 = vadd.f32 %v4952_v1, %v4912_v61 }
 0x766   :  { %v4754_v18 = vadd.f32 %v12802_v40, %v4713_v46 }
 0x767   :  { %v4988_v9 = vmin.f32 %v4953_v28, 0.0  ;;  %v5118_v42 = vsel %vm5105_vm7, %v5080_v34, 0.0  ;;  %vm4972_vm4 = vcmp.gt.f32.partialorder %v4953_v28, 0.0 }
 0x768   :  { %v5119_v51 = vadd.f32 %v5118_v42, %v5079_v53  ;;  %v4914_v14 = vpop.f32.mrf.mxu1  ;;  %v4795_v40 = vadd.f32 %v12804_v23, %v4754_v18 }
 0x769   :  { %v6951_v22 = vpop.eup %6950  ;;  %v5015_v24 = vmul.f32 1.442695, %v4988_v9  ;;  %v4915_v59 = vadd.f32 %v4914_v14, %v4874_v49 }
 0x76a   :  { %v6953_v54 = vpop.eup %6952  ;;  %v5399_v5 = vadd.f32 -1.0, %v6951_v22  ;;  %5116 = vadd.xlane.f32.xlu2 %v5115_v50  ;;  %5120 = vadd.xlane.f32.xlu0 %v5119_v51  ;;  %v4876_v44 = vpop.f32.mrf.mxu0  ;;  %v4836_v60 = vadd.f32 %v4835_v10, %v4795_v40 }
 0x76b   :  { %6954 = vpow2.f32 %v5015_v24  ;;  %v5400_v8 = vadd.f32 -1.0, %v6953_v54  ;;  %v5072_v24 = vld [vmem:[%s13027_s4 + $0x78] sm:$0xff] }
 0x76c   :  { %v5050_v33 = vsel %vm4970_vm1, %v12901_v29, %v5399_v5  ;;  %v4955_v47 = vpop.f32.mrf.mxu2  ;;  %6956 = vpow2.f32 %v5017_v31 }
 0x76d   :  { %v5090_v7 = vmul.f32 %v12816_v11, %v5050_v33  ;;  %v5098_v43 = vmul.f32 %v12821_v37, %v5050_v33  ;;  %v4956_v17 = vadd.f32 %v4955_v47, %v4915_v59  ;;  %v4877_v11 = vadd.f32 %v4876_v44, %v4836_v60 }
 0x76e   :  { %v5021_v37 = vmul.f32 1.442695, %v4991_v13  ;;  %v5051_v38 = vsel %vm4971_vm14, %v12756_v21, %v5400_v8 }
 0x76f   :  { %v4990_v29 = vmin.f32 %v4956_v17, 0.0  ;;  %v5154_v41 = vsel %vm5105_vm7, %v5098_v43, 0.0  ;;  %v5138_v6 = vsel %vm5105_vm7, %v5090_v7, 0.0  ;;  %v5091_v46 = vmul.f32 %v12860_v4, %v5051_v38 }
 0x770   :  { %v5155_v3 = vadd.f32 %v5154_v41, %v5097_v55  ;;  %v5139_v23 = vadd.f32 %v5138_v6, %v5089_v48  ;;  %v4917_v2 = vpop.f32.mrf.mxu1  ;;  %v5099_v39 = vmul.f32 %v12890_v57, %v5051_v38  ;;  %vm4974_vm15 = vcmp.gt.f32.partialorder %v4956_v17, 0.0 }
 0x771   :  { %v6955_v19 = vpop.eup %6954  ;;  %v5019_v61 = vmul.f32 1.442695, %v4990_v29  ;;  %v4918_v1 = vadd.f32 %v4917_v2, %v4877_v11 }
 0x772   :  { %v5401_v27 = vadd.f32 -1.0, %v6955_v19  ;;  %5156 = vadd.xlane.f32.xlu0 %v5155_v3  ;;  %5140 = vadd.xlane.f32.xlu1 %v5139_v23  ;;  %v6957_v52 = vpop.eup %6956 }
 0x773   :  { %6958 = vpow2.f32 %v5019_v61  ;;  %v5402_v9 = vadd.f32 -1.0, %v6957_v52 }
 0x774   :  { %v5052_v34 = vsel %vm4972_vm4, %v4953_v28, %v5401_v27  ;;  %v4958_v32 = vpop.f32.mrf.mxu2  ;;  %6960 = vpow2.f32 %v5021_v37 }
 0x775   :  { %v5092_v25 = vmul.f32 %v12853_v56, %v5052_v34  ;;  %v5100_v16 = vmul.f32 %v12870_v62, %v5052_v34  ;;  %v4959_v53 = vadd.f32 %v4958_v32, %v4918_v1  ;;  %v5053_v62 = vsel %vm4973_vm2, %v12763_v30, %v5402_v9 }
 0x776   :  { %v5101_v54 = vmul.f32 %v12895_v45, %v5053_v62  ;;  %v5093_v31 = vmul.f32 %v12930_v12, %v5053_v62  ;;  %v5071_v45 = vld [vmem:[%s13027_s4 + $0x70] sm:$0xff] }
 0x777   :  { %v4992_v42 = vmin.f32 %v4959_v53, 0.0  ;;  %v5142_v21 = vsel %vm5105_vm7, %v5092_v25, 0.0  ;;  %v5158_v50 = vsel %vm5105_vm7, %v5100_v16, 0.0  ;;  %vm4976_vm5 = vcmp.gt.f32.partialorder %v4959_v53, 0.0 }
 0x778   :  { %v5143_v51 = vadd.f32 %v5142_v21, %v5091_v46  ;;  %v5159_v22 = vadd.f32 %v5158_v50, %v5099_v39 }
 0x779   :  { %v6959_v28 = vpop.eup %6958  ;;  %v5023_v20 = vmul.f32 1.442695, %v4992_v42 }
 0x77a   :  { %v5403_v56 = vadd.f32 -1.0, %v6959_v28  ;;  %5144 = vadd.xlane.f32.xlu2 %v5143_v51  ;;  %5160 = vadd.xlane.f32.xlu1 %v5159_v22  ;;  %v6961_v4 = vpop.eup %6960 }
 0x77b   :  { %6962 = vpow2.f32 %v5023_v20  ;;  %v5404_v5 = vadd.f32 -1.0, %v6961_v4 }
 0x77c   :  { %v5054_v57 = vsel %vm4974_vm15, %v4956_v17, %v5403_v56 }
 0x77d   :  { %v5094_v18 = vmul.f32 %v12907_v15, %v5054_v57  ;;  %v5102_v49 = vmul.f32 %v12883_v26, %v5054_v57  ;;  %v5088_v15 = vmul.f32 %v5072_v24, %v12938_v36  ;;  %v5055_v47 = vsel %vm4975_vm3, %v12769_v35, %v5404_v5 }
 0x77e   :  { %v5087_v36 = vmul.f32 %v5071_v45, %v12924_v0  ;;  %v5103_v43 = vmul.f32 %v5071_v45, %v5055_v47  ;;  %v5095_v17 = vmul.f32 %v12935_v63, %v5055_v47  ;;  %v6835_v63 = vld [vmem:[%s13028_s5] ss:$0 sm:$0xff]  ;;  %s7154_s5 = smov [#allocation8]  }
 0x77f   :  { %v5162_v14 = vsel %vm5105_vm7, %v5102_v49, 0.0  ;;  %v5146_v30 = vsel %vm5105_vm7, %v5094_v18, 0.0  ;;  %v5134_v7 = vsel %vm5105_vm7, %v5088_v15, 0.0  ;;  %s5265_s9 = sshll.u32 %s7154_s5, 4  ;;  %s5266_s9 = int_to_ptr.vmem [resolvable:$true] %s5265_s9 }
 0x780   :  { %v5163_v59 = vadd.f32 %v5162_v14, %v5101_v54  ;;  %v5147_v33 = vadd.f32 %v5146_v30, %v5093_v31  ;;  %v5135_v13 = vadd.f32 %v5134_v7, %v5087_v36  ;;  %v7153_v7 = vmov 0  }
 0x781   :  { %v6963_v10 = vpop.eup %6962  ;;  %6833 = vset.pattern.permute.xlu2 %v7153_v7  ;;  %6832 = vset.pattern.permute.xlu1 %v7153_v7 }
 0x782   :  { %v5405_v26 = vadd.f32 -1.0, %v6963_v10  ;;  %5164 = vadd.xlane.f32.xlu2 %v5163_v59  ;;  %5148 = vadd.xlane.f32.xlu1 %v5147_v33 }
 0x784   :  { %v5056_v12 = vsel %vm4976_vm5, %v4959_v53, %v5405_v26 }
 0x785   :  { %v5096_v55 = vmul.f32 %v12921_v58, %v5056_v12  ;;  %v5104_v40 = vmul.f32 %v5072_v24, %v5056_v12  ;;  %v5186_v58 = vlaneseq }
 0x787   :  { %v5166_v8 = vsel %vm5105_vm7, %v5104_v40, 0.0  ;;  %v5150_v35 = vsel %vm5105_vm7, %v5096_v55, 0.0  ;;  %v5238_v41 = vshrl.u32 %v5186_v58, 7  ;;  %v12998_v27 = vand.u32 127, %v5186_v58 }
 0x788   :  { %v5167_v44 = vadd.f32 %v5166_v8, %v5103_v43  ;;  %v5151_v48 = vadd.f32 %v5150_v35, %v5095_v17  ;;  %vm5195_vm7 = vcmask 195712  }
 0x789   :  { %6831 = vset.pattern.permute.xlu0 %v5238_v41  ;;  %v5189_v2 = vadd.s32 4294967288, %v12998_v27  ;;  %v5193_v1 = vadd.s32 4294967280, %v12998_v27  ;;  %v5197_v53 = vadd.s32 4294967272, %v12998_v27 }
 0x78a   :  { %5136 = vadd.xlane.f32.xlu1 %v5135_v13  ;;  %5168 = vadd.xlane.f32.xlu0 %v5167_v44 }
 0x78b   :  { %5152 = vadd.xlane.f32.xlu2 %v5151_v48 }
 0x79e   :  { %5241 = vperm.xlu0 %6831, %v6835_v63  }
 0x7a6   :  { %6834 = vset.pattern.permute.xlu0 %v7153_v7 }
 0x7c5   :  { %v5125_v29 = vpop.xlane.xlu0 %5124  ;;  %v5109_v0 = vpop.xlane.xlu1 %5108 }
 0x7c6   :  { %v5201_v25 = vperm.slane %v5125_v29, %v12998_v27  ;;  %v5188_v9 = vperm.slane %v5109_v0, %v12998_v27 }
 0x7cd   :  { %v5113_v60 = vpop.xlane.xlu2 %5112 }
 0x7ce   :  { %v5190_v16 = vperm.slane %v5113_v60, %v5189_v2 }
 0x7d0   :  { %v5192_v22 = vsel %vm5191_vm6, %v5190_v16, %v5188_v9 }
 0x7d5   :  { %v5129_v6 = vpop.xlane.xlu2 %5128  ;;  %v5133_v3 = vpop.xlane.xlu0 %5132 }
 0x7d6   :  { %v5202_v32 = vperm.slane %v5129_v6, %v5189_v2  ;;  %v5204_v46 = vperm.slane %v5133_v3, %v5193_v1 }
 0x7d8   :  { %v5203_v42 = vsel %vm5191_vm6, %v5202_v32, %v5201_v25 }
 0x7d9   :  { %v5205_v62 = vsel %vm5195_vm7, %v5204_v46, %v5203_v42 }
 0x7dd   :  { %v5117_v23 = vpop.xlane.xlu2 %5116  ;;  %v5121_v11 = vpop.xlane.xlu0 %5120 }
 0x7de   :  { %v5194_v39 = vperm.slane %v5117_v23, %v5193_v1  ;;  %v5198_v28 = vperm.slane %v5121_v11, %v5197_v53 }
 0x7e0   :  { %v5196_v4 = vsel %vm5195_vm7, %v5194_v39, %v5192_v22 }
 0x7e1   :  { %v5200_v10 = vsel %vm5199_vm8, %v5198_v28, %v5196_v4 }
 0x7e5   :  { %v5141_v19 = vpop.xlane.xlu1 %5140  ;;  %v5157_v38 = vpop.xlane.xlu0 %5156 }
 0x7e6   :  { %v5215_v20 = vperm.slane %v5157_v38, %v12998_v27  ;;  %v5208_v57 = vperm.slane %v5141_v19, %v12998_v27 }
 0x7ed   :  { %v5145_v61 = vpop.xlane.xlu2 %5144  ;;  %v5161_v37 = vpop.xlane.xlu1 %5160 }
 0x7ee   :  { %v5216_v21 = vperm.slane %v5161_v37, %v5189_v2  ;;  %v5209_v50 = vperm.slane %v5145_v61, %v5189_v2 }
 0x7f0   :  { %v5217_v24 = vsel %vm5191_vm6, %v5216_v21, %v5215_v20  ;;  %v5210_v14 = vsel %vm5191_vm6, %v5209_v50, %v5208_v57 }
 0x7f5   :  { %v5165_v52 = vpop.xlane.xlu2 %5164  ;;  %v5149_v34 = vpop.xlane.xlu1 %5148 }
 0x7f6   :  { %v5218_v51 = vperm.slane %v5165_v52, %v5193_v1  ;;  %v5211_v56 = vperm.slane %v5149_v34, %v5193_v1 }
 0x7f8   :  { %v5219_v30 = vsel %vm5195_vm7, %v5218_v51, %v5217_v24  ;;  %v5212_v33 = vsel %vm5195_vm7, %v5211_v56, %v5210_v14 }
 0x7fd   :  { %v5137_v18 = vpop.xlane.xlu1 %5136  ;;  %v5169_v49 = vpop.xlane.xlu0 %5168 }
 0x7fe   :  { %v5206_v54 = vperm.slane %v5137_v18, %v5197_v53  ;;  %v5220_v31 = vperm.slane %v5169_v49, %v5197_v53  ;;  %v5153_v5 = vpop.xlane.xlu2 %5152 }
 0x7ff   :  { %v5213_v59 = vperm.slane %v5153_v5, %v5197_v53 }
 0x800   :  { %v5207_v15 = vsel %vm5199_vm8, %v5206_v54, %v5205_v62  ;;  %v5221_v26 = vsel %vm5199_vm8, %v5220_v31, %v5219_v30 }
 0x801   :  { %v5223_v47 = vsel %vm5222_vm9, %v5207_v15, %v5200_v10  ;;  %v5214_v45 = vsel %vm5199_vm8, %v5213_v59, %v5212_v33 }
 0x802   :  { %v5228_v12 = vsel %vm5227_vm10, %v5223_v47, 0.0  ;;  %v5224_v55 = vsel %vm5222_vm9, %v5221_v26, %v5214_v45 }
 0x803   :  { %5229 = vadd.xlane.f32.xlu1 %v5228_v12  ;;  %v5231_v40 = vsel %vm5227_vm10, %v5224_v55, 0.0 }
 0x804   :  { %5232 = vadd.xlane.f32.xlu2 %v5231_v40 }
 0x810   :  { %v5242_v36 = vpop.permute.xlu0 %5241 }
 0x876   :  { %v5230_v43 = vpop.xlane.xlu1 %5229 }
 0x877   :  { %v5244_v17 = vadd.f32 %v5242_v36, %v5230_v43  ;;  %v5233_v8 = vpop.xlane.xlu2 %5232 }
 0x878   :  { %v5245_v35 = vadd.f32 %v5242_v36, %v5233_v8 }
 0x879   :  { %5249 = vperm.xlu1 %6832, %v5244_v17  }
 0x87a   :  { %5252 = vperm.xlu2 %6833, %v5245_v35  }
 0x8d4   :  { %v5253_v13 = vpop.permute.xlu2 %5252 }
 0x8d5   :  { %v5255_v48 = vperm.slane %v5253_v13, %v12998_v27 }
 0x8eb   :  { %v5250_v44 = vpop.permute.xlu1 %5249 }
 0x8ec   :  { %v5254_v60 = vperm.slane %v5250_v44, %v12998_v27 }
 0x8ee   :  { %v5256_v58 = vsel %vm5222_vm9, %v5255_v48, %v5254_v60 }
 0x8ef   :  { %5259 = vst.msk [vmem:[#allocation8] sm:$0x3] %vm5258_vm11, %v5256_v58 }
 0x8f0   :  { %5270 = dma.vmem_to_hbm [thread:$0]  %s5266_s9, 32, %s5268_s11, [#allocation4]  }
 0x8f1   :  { %7123 = dma.done.wait [#allocation4], 32  }
 0x8f2   :  { %7124 = vsyncadd [#allocation4], 4294967264 }
 0x8f3   :  { %5275 = vsyncpa [#allocation3], 1 }
 0x8f4   :  { %5276 = vsyncpa [#allocation6], 1 }
 0x8f5   :  { %5277 = vsyncpa [#allocation4], 1 }

</bundles_post_ra>
